<compile_context>
chip_gen: v7x
topology: tpu7x:2x2x1
jax: 0.10.0
libtpu: 0.0.40
codegen_flags: <defaults>
</compile_context>

<pallas_src>
from functools import partial

import jax
import jax.numpy as jnp
from jax.experimental import pallas as pl
from jax.experimental.pallas import tpu as pltpu


def _round_up(v, m):
    return (v + m - 1) // m * m


# ----------------------------------------------------------------------------
# Fused Pallas kernel: 4x (conv3x3 + bias [+ LeakyReLU(0.1)])  ->  polar->rect
# One grid step == one (batch, H-band) tile.
# ----------------------------------------------------------------------------
def _rfft_align_kernel(phase_ref, amp_ref, xph_ref, mask_ref, w_ref, b_ref,
                       re_ref, im_ref, ext_ref, taps_ref, *,
                       Cp, Cp_out, Wlane, B):
    """Layouts (per (batch, band) tile):
      phase_ref : (1, 1, Cp, LTb)      f32  cat([x_phase, f_phase]) band window
                                            with 4-row fused-conv halo per side,
                                            zero col halo / lane pad / margins
      amp_ref   : (1, 1, Cp_out, Lout) f32  |rfft2(x)| for the B output rows
      xph_ref   : (1, 1, Cp_out, Lout) f32  angle(rfft2(x))
      mask_ref  : (1, 8, Lb)           f32  1.0 at valid image positions
      w_ref     : (36, Cp, Cp)         bf16 per-(layer, ky, kx) conv weights
      b_ref     : (4, Cp, 1)           f32  per-layer biases
      re/im_ref : (1, 1, Cp_out, Lout) f32  amp * cos/sin(conv_out + x_phase)
      ext_ref   : (Cp, LTb)            f32  margin-extended activation scratch
      taps_ref  : (3, Cp, SlabL)       bf16 kx-shifted tap slabs (MXU operands)
    with Rb = B + 8 band rows, Lb = Rb*Wlane, Mb = Wlane + 128 (128-aligned
    margin), LTb = Lb + 2*Mb, Lout = B*Wlane, SlabL = Lb + 2*Wlane.
    """
    Rb = B + 8
    Lb = Rb * Wlane
    Mb = Wlane + 128
    Lout = B * Wlane
    f32 = jnp.float32
    bf16 = jnp.bfloat16

    # Zero ONLY the two margin strips (the interior [Mb, Mb+Lb) is always
    # overwritten before it is read); margins feed the ky=+/-1 taps of the
    # outermost band rows.  NOTE: kept unconditional on purpose -- with both
    # grid axes "parallel" each TensorCore owns its own scratch, so gating on
    # @pl.when(program_id == 0) would leave one core's margins stale.
    ext_ref[:, :Mb] = jnp.zeros((Cp, Mb), f32)
    ext_ref[:, Mb + Lb:] = jnp.zeros((Cp, Mb), f32)

    mask8 = mask_ref[0]                                      # (8, Lb) f32

    def conv3x3(read_src, layer, out_off, out_len, leaky):
        """conv3x3 + bias (+LeakyReLU) over lanes [out_off, out_off+out_len).

        The three kx-shifted slabs are materialised once per layer into the
        bf16 tap scratch (2 unaligned lane shifts + 1 aligned copy); the 9 MXU
        operands are then lane-aligned slices of those slabs, accumulated with
        9 (Cp,Cp)@(Cp,out_len) bf16 dots into one f32 accumulator.
        """
        slab_len = out_len + 2 * Wlane
        for kx in range(3):
            start = Mb + out_off - Wlane + (kx - 1)          # static offsets
            taps_ref[kx, :, :slab_len] = read_src(start, slab_len).astype(bf16)
        acc = None
        for ky in range(3):
            o = ky * Wlane                                   # 128-aligned
            for kx in range(3):
                d = jnp.dot(w_ref[layer * 9 + ky * 3 + kx],
                            taps_ref[kx, :, o:o + out_len],
                            preferred_element_type=f32)
                acc = d if acc is None else acc + d
        acc = acc + b_ref[layer]                             # (Cp, 1) f32 bias
        if leaky:
            acc = jnp.where(acc >= 0.0, acc, 0.1 * acc)      # slope 0.1
        return acc                                           # (Cp, out_len) f32

    def store_masked(h):
        # zero halo rows/cols => "same" zero padding for the next conv; the
        # (8, Lb) replicated mask makes this a plain aligned VPU multiply and
        # the store at Mb (multiple of 128) is an unmasked aligned vst.
        hm = (h.reshape(Cp // 8, 8, Lb) * mask8).reshape(Cp, Lb)
        ext_ref[:, Mb:Mb + Lb] = hm

    h = conv3x3(lambda lo, sz: phase_ref[0, 0, :, lo:lo + sz], 0, 0, Lb, True)
    store_masked(h)
    h = conv3x3(lambda lo, sz: ext_ref[:, lo:lo + sz], 1, 0, Lb, True)
    store_masked(h)
    h = conv3x3(lambda lo, sz: ext_ref[:, lo:lo + sz], 2, 0, Lb, True)
    store_masked(h)
    # Final layer: compute only the B output rows (buffer rows [4, 4+B)).
    h = conv3x3(lambda lo, sz: ext_ref[:, lo:lo + sz], 3, 4 * Wlane, Lout,
                False)

    # polar -> rectangular: amp * exp(i * (phase_output + x_phase))
    ph = h[:Cp_out] + xph_ref[0, 0]                          # f32
    amp = amp_ref[0, 0]
    re_ref[0, 0, :, :] = amp * jnp.cos(ph)
    im_ref[0, 0, :, :] = amp * jnp.sin(ph)


# ----------------------------------------------------------------------------
# Forward (mirrors RFFTAlignment.forward); FFTs stay in plain JAX.
# ----------------------------------------------------------------------------
def rfft_alignment_forward(x, feat_current, params, band_rows=64):
    """x, feat_current: (N, C, H, W) float32 (NCHW, same as PyTorch).

    band_rows: output rows per H-band.  ~64 keeps per-band VMEM under ~48 MiB
    at realistic sizes (C=32, W=256) on v7x; use ~32 on v5e (16 MiB default
    scoped VMEM) or raise vmem_limit_bytes.
    """
    N, C, H, W = x.shape
    Wf = W // 2 + 1

    Wlane = _round_up(Wf + 2, 128)          # lane-padded padded-row width
    Cp = _round_up(2 * C, 8)                # conv channel dim (sublane tile)
    Cp_out = _round_up(C, 8)                # amp/xph/re/im channel dim
    B = max(1, min(band_rows, H))           # output rows per band
    nH = -(-H // B)
    H_r = nH * B
    Rb = B + 8                              # band rows incl. 4-row fused halo
    Lb = Rb * Wlane
    Mb = Wlane + 128                        # 128-aligned margin
    LTb = Lb + 2 * Mb
    Lout = B * Wlane
    SlabL = Lb + 2 * Wlane

    # ---- FFT / amplitude / phase (plain JAX glue) ----
    x_fft = jnp.fft.rfft2(x, axes=(-2, -1))                  # (N, C, H, Wf)
    x_amp = jnp.abs(x_fft)
    x_phase = jnp.angle(x_fft)
    f_phase = jnp.angle(jnp.fft.rfft2(feat_current, axes=(-2, -1)))

    # ---- conv input: overlapping H-band windows with 4-row halo per side ----
    phase_cat = jnp.concatenate([x_phase, f_phase], axis=1)  # (N, 2C, H, Wf)
    phase_pad = jnp.pad(
        phase_cat,
        ((0, 0), (0, Cp - 2 * C), (4, 4 + H_r - H), (1, Wlane - 1 - Wf)))
    phase_bands = jnp.stack(
        [phase_pad[:, :, b * B:b * B + Rb, :] for b in range(nH)], axis=1)
    phase_bands = phase_bands.reshape(N, nH, Cp, Lb)
    phase_bands = jnp.pad(phase_bands, ((0, 0), (0, 0), (0, 0), (Mb, Mb)))

    # ---- amp / x_phase bands (pointwise: no halo, only Cp_out channels) ----
    def band_no_halo(t):
        t = jnp.pad(t, ((0, 0), (0, Cp_out - C), (0, H_r - H),
                        (1, Wlane - 1 - Wf)))
        t = t.reshape(N, Cp_out, nH, B, Wlane).transpose(0, 2, 1, 3, 4)
        return t.reshape(N, nH, Cp_out, Lout)

    amp_bands = band_no_halo(x_amp)                          # (N, nH, Cp_out, Lout)
    xph_bands = band_no_halo(x_phase)

    # ---- per-band valid-position mask (replicated to 8 sublanes) ----
    row_img = jnp.arange(nH)[:, None] * B - 4 + jnp.arange(Rb)[None, :]
    row_ok = (row_img >= 0) & (row_img < H)                  # (nH, Rb)
    col_ok = (jnp.arange(Wlane) >= 1) & (jnp.arange(Wlane) <= Wf)
    mask = (row_ok[:, :, None] & col_ok[None, None, :]).astype(jnp.float32)
    masks = jnp.broadcast_to(mask.reshape(nH, 1, Lb), (nH, 8, Lb))

    # ---- weights (bf16, per-tap blocks) and biases (f32) ----
    ws, bs = [], []
    for i in range(4):
        w = params[f"w{i}"]                       # (cout, cin, 3, 3)  OIHW
        b = params[f"b{i}"]                       # (cout,)
        cout, cin = w.shape[0], w.shape[1]
        wt = jnp.transpose(w, (2, 3, 0, 1))       # (ky, kx, cout, cin)
        wt = jnp.pad(wt, ((0, 0), (0, 0), (0, Cp - cout), (0, Cp - cin)))
        ws.append(wt)
        bs.append(jnp.pad(b, (0, Cp - cout)).reshape(Cp, 1))
    w_stack = jnp.stack(ws).reshape(4 * 9, Cp, Cp).astype(jnp.bfloat16)
    b_stack = jnp.stack(bs)                       # (4, Cp, 1) f32

    kern = partial(_rfft_align_kernel, Cp=Cp, Cp_out=Cp_out, Wlane=Wlane, B=B)

    flops = int(N * nH * 2 * Cp * Cp * 9 * (3 * Lb + Lout))
    transcendentals = int(2 * N * nH * Cp_out * Lout)
    bytes_accessed = int(
        4 * (phase_bands.size + amp_bands.size + xph_bands.size + masks.size
             + b_stack.size + 2 * N * nH * Cp_out * Lout) + 2 * w_stack.size)

    re_f, im_f = pl.pallas_call(
        kern,
        out_shape=(jax.ShapeDtypeStruct((N, nH, Cp_out, Lout), jnp.float32),
                   jax.ShapeDtypeStruct((N, nH, Cp_out, Lout), jnp.float32)),
        grid=(N, nH),
        in_specs=[
            pl.BlockSpec((1, 1, Cp, LTb), lambda n, b: (n, b, 0, 0)),
            pl.BlockSpec((1, 1, Cp_out, Lout), lambda n, b: (n, b, 0, 0)),
            pl.BlockSpec((1, 1, Cp_out, Lout), lambda n, b: (n, b, 0, 0)),
            pl.BlockSpec((1, 8, Lb), lambda n, b: (b, 0, 0)),
            pl.BlockSpec((4 * 9, Cp, Cp), lambda n, b: (0, 0, 0)),
            pl.BlockSpec((4, Cp, 1), lambda n, b: (0, 0, 0)),
        ],
        out_specs=(pl.BlockSpec((1, 1, Cp_out, Lout), lambda n, b: (n, b, 0, 0)),
                   pl.BlockSpec((1, 1, Cp_out, Lout), lambda n, b: (n, b, 0, 0))),
        scratch_shapes=[pltpu.VMEM((Cp, LTb), jnp.float32),
                        pltpu.VMEM((3, Cp, SlabL), jnp.bfloat16)],
        compiler_params=pltpu.CompilerParams(
            dimension_semantics=("parallel", "parallel"),
            vmem_limit_bytes=64 * 1024 * 1024),
        cost_estimate=pl.CostEstimate(flops=flops,
                                      transcendentals=transcendentals,
                                      bytes_accessed=bytes_accessed),
    )(phase_bands, amp_bands, xph_bands, masks, w_stack, b_stack)

    # ---- un-band, strip padding, finish with irfft2 (plain JAX glue) ----
    def unband(t):
        t = t.reshape(N, nH, Cp_out, B, Wlane).transpose(0, 2, 1, 3, 4)
        return t.reshape(N, Cp_out, H_r, Wlane)[:, :C, :H, 1:1 + Wf]

    z = jax.lax.complex(unband(re_f), unband(im_f))
    return jnp.fft.irfft2(z, s=(H, W), axes=(-2, -1))


# ----------------------------------------------------------------------------
# Pure-JAX reference (mirrors the PyTorch module) for numerical verification.
# ----------------------------------------------------------------------------
def rfft_alignment_reference(x, feat_current, params):
    _, _, H, W = x.shape
    x_fft = jnp.fft.rfft2(x, axes=(-2, -1))
    x_amp = jnp.abs(x_fft)
    x_phase = jnp.angle(x_fft)
    f_phase = jnp.angle(jnp.fft.rfft2(feat_current, axes=(-2, -1)))
    h = jnp.concatenate([x_phase, f_phase], axis=1)
    for i in range(4):
        h = jax.lax.conv_general_dilated(
            h, params[f"w{i}"], window_strides=(1, 1),
            padding=((1, 1), (1, 1)),
            dimension_numbers=("NCHW", "OIHW", "NCHW"))
        h = h + params[f"b{i}"][None, :, None, None]
        if i < 3:
            h = jnp.where(h >= 0.0, h, 0.1 * h)
    ph = h + x_phase
    z = jax.lax.complex(x_amp * jnp.cos(ph), x_amp * jnp.sin(ph))
    return jnp.fft.irfft2(z, s=(H, W), axes=(-2, -1))


# ----------------------------------------------------------------------------
# Deterministic synthetic parameters (OIHW, same layout as PyTorch Conv2d)
# ----------------------------------------------------------------------------
def init_params(out_channels, key):
    def init_conv(k, cin, cout):
        kw, kb = jax.random.split(k)
        w = jax.random.normal(kw, (cout, cin, 3, 3), jnp.float32) * 0.05
        b = jax.random.normal(kb, (cout,), jnp.float32) * 0.05
        return w, b

    keys = jax.random.split(key, 4)
    cins = [2 * out_channels, out_channels, out_channels, out_channels]
    params = {}
    for i, (k, cin) in enumerate(zip(keys, cins)):
        w, b = init_conv(k, cin, out_channels)
        params[f"w{i}"] = w
        params[f"b{i}"] = b
    return params


if __name__ == "__main__":
    N, C, H, W = 2, 4, 16, 16

    key = jax.random.PRNGKey(0)
    k1, k2, k3 = jax.random.split(key, 3)
    x = jax.random.normal(k1, (N, C, H, W), jnp.float32)
    feat_current = jax.random.normal(k2, (N, C, H, W), jnp.float32)
    params = init_params(C, k3)

    # band_rows=8 -> 2 H-bands at H=16, exercising the band-halo path as well.
    fwd = jax.jit(partial(rfft_alignment_forward, band_rows=8))
    out = fwd(x, feat_current, params)
    jax.block_until_ready(out)

    assert out.shape == (N, C, H, W), out.shape
    assert out.dtype == jnp.float32, out.dtype

    ref = jax.jit(rfft_alignment_reference)(x, feat_current, params)
    max_err = float(jnp.max(jnp.abs(out - ref)))
    # bf16 MXU operands (f32 accumulation) => slightly looser tolerance.
    assert jnp.allclose(out, ref, atol=2e-2, rtol=2e-2), max_err

    print("KERNEL_OK")
</pallas_src>

<mosaic_0001>
module attributes {stable_mosaic.version = 11 : i64} {
  func.func @_rfft_align_kernel(%arg0: i32, %arg1: i32, %arg2: memref<1x1x8x2560xf32, #tpu.memory_space<vmem>>, %arg3: memref<1x1x8x1024xf32, #tpu.memory_space<vmem>>, %arg4: memref<1x1x8x1024xf32, #tpu.memory_space<vmem>>, %arg5: memref<1x8x2048xf32, #tpu.memory_space<vmem>>, %arg6: memref<36x8x8xbf16, #tpu.memory_space<vmem>>, %arg7: memref<4x8x1xf32, #tpu.memory_space<vmem>>, %arg8: memref<1x1x8x1024xf32, #tpu.memory_space<vmem>>, %arg9: memref<1x1x8x1024xf32, #tpu.memory_space<vmem>>, %arg10: memref<8x2560xf32, #tpu.memory_space<vmem>>, %arg11: memref<3x8x2304xbf16, #tpu.memory_space<vmem>>) attributes {dimension_semantics = [#tpu.dimension_semantics<parallel>, #tpu.dimension_semantics<parallel>], iteration_bounds = array<i64: 2, 2>, scalar_prefetch = 0 : i64, scratch_operands = 2 : i64, tpu.core_type = #tpu.core_type<tc>, window_params = [{transform_indices = @transform_0, window_bounds = array<i64: 1, 1, 8, 2560>}, {transform_indices = @transform_1, window_bounds = array<i64: 1, 1, 8, 1024>}, {transform_indices = @transform_2, window_bounds = array<i64: 1, 1, 8, 1024>}, {transform_indices = @transform_3, window_bounds = array<i64: 1, 8, 2048>}, {pipeline_mode = #tpu.pipeline_mode<synchronous>, transform_indices = @transform_4, window_bounds = array<i64: 36, 8, 8>}, {pipeline_mode = #tpu.pipeline_mode<synchronous>, transform_indices = @transform_5, window_bounds = array<i64: 4, 8, 1>}, {transform_indices = @transform_6, window_bounds = array<i64: 1, 1, 8, 1024>}, {transform_indices = @transform_7, window_bounds = array<i64: 1, 1, 8, 1024>}]} {
    %cst = arith.constant 0.000000e+00 : f32
    %0 = vector.broadcast %cst : f32 to vector<8x256xf32>
    %c0 = arith.constant 0 : index
    %c0_0 = arith.constant 0 : index
    %1 = vector.load %arg10[%c0, %c0_0] : memref<8x2560xf32, #tpu.memory_space<vmem>>, vector<8x256xf32>
    tpu.vector_store %arg10[%c0, %c0_0], %0 {strides = array<i32>} : memref<8x2560xf32, #tpu.memory_space<vmem>>, vector<8x256xf32>,
    %cst_1 = arith.constant 0.000000e+00 : f32
    %2 = vector.broadcast %cst_1 : f32 to vector<8x256xf32>
    %c0_2 = arith.constant 0 : index
    %c2304 = arith.constant 2304 : index
    %3 = vector.load %arg10[%c0_2, %c2304] : memref<8x2560xf32, #tpu.memory_space<vmem>>, vector<8x256xf32>
    tpu.vector_store %arg10[%c0_2, %c2304], %2 {strides = array<i32>} : memref<8x2560xf32, #tpu.memory_space<vmem>>, vector<8x256xf32>,
    %c0_3 = arith.constant 0 : index
    %c0_4 = arith.constant 0 : index
    %c0_5 = arith.constant 0 : index
    %4 = vector.load %arg5[%c0_3, %c0_4, %c0_5] : memref<1x8x2048xf32, #tpu.memory_space<vmem>>, vector<1x8x2048xf32>
    %5 = vector.shape_cast %4 : vector<1x8x2048xf32> to vector<8x2048xf32>
    %c0_6 = arith.constant 0 : index
    %c0_7 = arith.constant 0 : index
    %c0_8 = arith.constant 0 : index
    %c127 = arith.constant 127 : index
    %6 = vector.load %arg2[%c0_6, %c0_7, %c0_8, %c127] : memref<1x1x8x2560xf32, #tpu.memory_space<vmem>>, vector<1x1x8x2304xf32>
    %7 = vector.shape_cast %6 : vector<1x1x8x2304xf32> to vector<8x2304xf32>
    %8 = arith.truncf %7 : vector<8x2304xf32> to vector<8x2304xbf16>
    %c0_9 = arith.constant 0 : index
    %c0_10 = arith.constant 0 : index
    %c0_11 = arith.constant 0 : index
    %9 = vector.load %arg11[%c0_9, %c0_10, %c0_11] : memref<3x8x2304xbf16, #tpu.memory_space<vmem>>, vector<1x8x2304xbf16>
    %10 = vector.shape_cast %9 : vector<1x8x2304xbf16> to vector<8x2304xbf16>
    %11 = vector.shape_cast %8 : vector<8x2304xbf16> to vector<1x8x2304xbf16>
    tpu.vector_store %arg11[%c0_9, %c0_10, %c0_11], %11 {strides = array<i32>} : memref<3x8x2304xbf16, #tpu.memory_space<vmem>>, vector<1x8x2304xbf16>,
    %c0_12 = arith.constant 0 : index
    %c0_13 = arith.constant 0 : index
    %c0_14 = arith.constant 0 : index
    %c128 = arith.constant 128 : index
    %12 = vector.load %arg2[%c0_12, %c0_13, %c0_14, %c128] : memref<1x1x8x2560xf32, #tpu.memory_space<vmem>>, vector<1x1x8x2304xf32>
    %13 = vector.shape_cast %12 : vector<1x1x8x2304xf32> to vector<8x2304xf32>
    %14 = arith.truncf %13 : vector<8x2304xf32> to vector<8x2304xbf16>
    %c1 = arith.constant 1 : index
    %c0_15 = arith.constant 0 : index
    %c0_16 = arith.constant 0 : index
    %15 = vector.load %arg11[%c1, %c0_15, %c0_16] : memref<3x8x2304xbf16, #tpu.memory_space<vmem>>, vector<1x8x2304xbf16>
    %16 = vector.shape_cast %15 : vector<1x8x2304xbf16> to vector<8x2304xbf16>
    %17 = vector.shape_cast %14 : vector<8x2304xbf16> to vector<1x8x2304xbf16>
    tpu.vector_store %arg11[%c1, %c0_15, %c0_16], %17 {strides = array<i32>} : memref<3x8x2304xbf16, #tpu.memory_space<vmem>>, vector<1x8x2304xbf16>,
    %c0_17 = arith.constant 0 : index
    %c0_18 = arith.constant 0 : index
    %c0_19 = arith.constant 0 : index
    %c129 = arith.constant 129 : index
    %18 = vector.load %arg2[%c0_17, %c0_18, %c0_19, %c129] : memref<1x1x8x2560xf32, #tpu.memory_space<vmem>>, vector<1x1x8x2304xf32>
    %19 = vector.shape_cast %18 : vector<1x1x8x2304xf32> to vector<8x2304xf32>
    %20 = arith.truncf %19 : vector<8x2304xf32> to vector<8x2304xbf16>
    %c2 = arith.constant 2 : index
    %c0_20 = arith.constant 0 : index
    %c0_21 = arith.constant 0 : index
    %21 = vector.load %arg11[%c2, %c0_20, %c0_21] : memref<3x8x2304xbf16, #tpu.memory_space<vmem>>, vector<1x8x2304xbf16>
    %22 = vector.shape_cast %21 : vector<1x8x2304xbf16> to vector<8x2304xbf16>
    %23 = vector.shape_cast %20 : vector<8x2304xbf16> to vector<1x8x2304xbf16>
    tpu.vector_store %arg11[%c2, %c0_20, %c0_21], %23 {strides = array<i32>} : memref<3x8x2304xbf16, #tpu.memory_space<vmem>>, vector<1x8x2304xbf16>,
    %c0_22 = arith.constant 0 : index
    %c0_23 = arith.constant 0 : index
    %c0_24 = arith.constant 0 : index
    %24 = vector.load %arg6[%c0_22, %c0_23, %c0_24] : memref<36x8x8xbf16, #tpu.memory_space<vmem>>, vector<1x8x8xbf16>
    %25 = vector.shape_cast %24 : vector<1x8x8xbf16> to vector<8x8xbf16>
    %c0_25 = arith.constant 0 : index
    %c0_26 = arith.constant 0 : index
    %c0_27 = arith.constant 0 : index
    %26 = vector.load %arg11[%c0_25, %c0_26, %c0_27] : memref<3x8x2304xbf16, #tpu.memory_space<vmem>>, vector<1x8x2048xbf16>
    %27 = vector.shape_cast %26 : vector<1x8x2048xbf16> to vector<8x2048xbf16>
    %cst_28 = arith.constant dense<0.000000e+00> : vector<8x2048xf32>
    %28 = tpu.matmul %25, %27, %cst_28 {dimension_numbers = #tpu.dot_dimension_numbers<[1], [0], [0], [1], [0, 0, 1, 1], [], []>} : vector<8x8xbf16>, vector<8x2048xbf16>, vector<8x2048xf32> -> vector<8x2048xf32>
    %c1_29 = arith.constant 1 : index
    %c0_30 = arith.constant 0 : index
    %c0_31 = arith.constant 0 : index
    %29 = vector.load %arg6[%c1_29, %c0_30, %c0_31] : memref<36x8x8xbf16, #tpu.memory_space<vmem>>, vector<1x8x8xbf16>
    %30 = vector.shape_cast %29 : vector<1x8x8xbf16> to vector<8x8xbf16>
    %c1_32 = arith.constant 1 : index
    %c0_33 = arith.constant 0 : index
    %c0_34 = arith.constant 0 : index
    %31 = vector.load %arg11[%c1_32, %c0_33, %c0_34] : memref<3x8x2304xbf16, #tpu.memory_space<vmem>>, vector<1x8x2048xbf16>
    %32 = vector.shape_cast %31 : vector<1x8x2048xbf16> to vector<8x2048xbf16>
    %cst_35 = arith.constant dense<0.000000e+00> : vector<8x2048xf32>
    %33 = tpu.matmul %30, %32, %cst_35 {dimension_numbers = #tpu.dot_dimension_numbers<[1], [0], [0], [1], [0, 0, 1, 1], [], []>} : vector<8x8xbf16>, vector<8x2048xbf16>, vector<8x2048xf32> -> vector<8x2048xf32>
    %34 = arith.addf %28, %33 : vector<8x2048xf32>
    %c2_36 = arith.constant 2 : index
    %c0_37 = arith.constant 0 : index
    %c0_38 = arith.constant 0 : index
    %35 = vector.load %arg6[%c2_36, %c0_37, %c0_38] : memref<36x8x8xbf16, #tpu.memory_space<vmem>>, vector<1x8x8xbf16>
    %36 = vector.shape_cast %35 : vector<1x8x8xbf16> to vector<8x8xbf16>
    %c2_39 = arith.constant 2 : index
    %c0_40 = arith.constant 0 : index
    %c0_41 = arith.constant 0 : index
    %37 = vector.load %arg11[%c2_39, %c0_40, %c0_41] : memref<3x8x2304xbf16, #tpu.memory_space<vmem>>, vector<1x8x2048xbf16>
    %38 = vector.shape_cast %37 : vector<1x8x2048xbf16> to vector<8x2048xbf16>
    %cst_42 = arith.constant dense<0.000000e+00> : vector<8x2048xf32>
    %39 = tpu.matmul %36, %38, %cst_42 {dimension_numbers = #tpu.dot_dimension_numbers<[1], [0], [0], [1], [0, 0, 1, 1], [], []>} : vector<8x8xbf16>, vector<8x2048xbf16>, vector<8x2048xf32> -> vector<8x2048xf32>
    %40 = arith.addf %34, %39 : vector<8x2048xf32>
    %c3 = arith.constant 3 : index
    %c0_43 = arith.constant 0 : index
    %c0_44 = arith.constant 0 : index
    %41 = vector.load %arg6[%c3, %c0_43, %c0_44] : memref<36x8x8xbf16, #tpu.memory_space<vmem>>, vector<1x8x8xbf16>
    %42 = vector.shape_cast %41 : vector<1x8x8xbf16> to vector<8x8xbf16>
    %c0_45 = arith.constant 0 : index
    %c0_46 = arith.constant 0 : index
    %c128_47 = arith.constant 128 : index
    %43 = vector.load %arg11[%c0_45, %c0_46, %c128_47] : memref<3x8x2304xbf16, #tpu.memory_space<vmem>>, vector<1x8x2048xbf16>
    %44 = vector.shape_cast %43 : vector<1x8x2048xbf16> to vector<8x2048xbf16>
    %cst_48 = arith.constant dense<0.000000e+00> : vector<8x2048xf32>
    %45 = tpu.matmul %42, %44, %cst_48 {dimension_numbers = #tpu.dot_dimension_numbers<[1], [0], [0], [1], [0, 0, 1, 1], [], []>} : vector<8x8xbf16>, vector<8x2048xbf16>, vector<8x2048xf32> -> vector<8x2048xf32>
    %46 = arith.addf %40, %45 : vector<8x2048xf32>
    %c4 = arith.constant 4 : index
    %c0_49 = arith.constant 0 : index
    %c0_50 = arith.constant 0 : index
    %47 = vector.load %arg6[%c4, %c0_49, %c0_50] : memref<36x8x8xbf16, #tpu.memory_space<vmem>>, vector<1x8x8xbf16>
    %48 = vector.shape_cast %47 : vector<1x8x8xbf16> to vector<8x8xbf16>
    %c1_51 = arith.constant 1 : index
    %c0_52 = arith.constant 0 : index
    %c128_53 = arith.constant 128 : index
    %49 = vector.load %arg11[%c1_51, %c0_52, %c128_53] : memref<3x8x2304xbf16, #tpu.memory_space<vmem>>, vector<1x8x2048xbf16>
    %50 = vector.shape_cast %49 : vector<1x8x2048xbf16> to vector<8x2048xbf16>
    %cst_54 = arith.constant dense<0.000000e+00> : vector<8x2048xf32>
    %51 = tpu.matmul %48, %50, %cst_54 {dimension_numbers = #tpu.dot_dimension_numbers<[1], [0], [0], [1], [0, 0, 1, 1], [], []>} : vector<8x8xbf16>, vector<8x2048xbf16>, vector<8x2048xf32> -> vector<8x2048xf32>
    %52 = arith.addf %46, %51 : vector<8x2048xf32>
    %c5 = arith.constant 5 : index
    %c0_55 = arith.constant 0 : index
    %c0_56 = arith.constant 0 : index
    %53 = vector.load %arg6[%c5, %c0_55, %c0_56] : memref<36x8x8xbf16, #tpu.memory_space<vmem>>, vector<1x8x8xbf16>
    %54 = vector.shape_cast %53 : vector<1x8x8xbf16> to vector<8x8xbf16>
    %c2_57 = arith.constant 2 : index
    %c0_58 = arith.constant 0 : index
    %c128_59 = arith.constant 128 : index
    %55 = vector.load %arg11[%c2_57, %c0_58, %c128_59] : memref<3x8x2304xbf16, #tpu.memory_space<vmem>>, vector<1x8x2048xbf16>
    %56 = vector.shape_cast %55 : vector<1x8x2048xbf16> to vector<8x2048xbf16>
    %cst_60 = arith.constant dense<0.000000e+00> : vector<8x2048xf32>
    %57 = tpu.matmul %54, %56, %cst_60 {dimension_numbers = #tpu.dot_dimension_numbers<[1], [0], [0], [1], [0, 0, 1, 1], [], []>} : vector<8x8xbf16>, vector<8x2048xbf16>, vector<8x2048xf32> -> vector<8x2048xf32>
    %58 = arith.addf %52, %57 : vector<8x2048xf32>
    %c6 = arith.constant 6 : index
    %c0_61 = arith.constant 0 : index
    %c0_62 = arith.constant 0 : index
    %59 = vector.load %arg6[%c6, %c0_61, %c0_62] : memref<36x8x8xbf16, #tpu.memory_space<vmem>>, vector<1x8x8xbf16>
    %60 = vector.shape_cast %59 : vector<1x8x8xbf16> to vector<8x8xbf16>
    %c0_63 = arith.constant 0 : index
    %c0_64 = arith.constant 0 : index
    %c256 = arith.constant 256 : index
    %61 = vector.load %arg11[%c0_63, %c0_64, %c256] : memref<3x8x2304xbf16, #tpu.memory_space<vmem>>, vector<1x8x2048xbf16>
    %62 = vector.shape_cast %61 : vector<1x8x2048xbf16> to vector<8x2048xbf16>
    %cst_65 = arith.constant dense<0.000000e+00> : vector<8x2048xf32>
    %63 = tpu.matmul %60, %62, %cst_65 {dimension_numbers = #tpu.dot_dimension_numbers<[1], [0], [0], [1], [0, 0, 1, 1], [], []>} : vector<8x8xbf16>, vector<8x2048xbf16>, vector<8x2048xf32> -> vector<8x2048xf32>
    %64 = arith.addf %58, %63 : vector<8x2048xf32>
    %c7 = arith.constant 7 : index
    %c0_66 = arith.constant 0 : index
    %c0_67 = arith.constant 0 : index
    %65 = vector.load %arg6[%c7, %c0_66, %c0_67] : memref<36x8x8xbf16, #tpu.memory_space<vmem>>, vector<1x8x8xbf16>
    %66 = vector.shape_cast %65 : vector<1x8x8xbf16> to vector<8x8xbf16>
    %c1_68 = arith.constant 1 : index
    %c0_69 = arith.constant 0 : index
    %c256_70 = arith.constant 256 : index
    %67 = vector.load %arg11[%c1_68, %c0_69, %c256_70] : memref<3x8x2304xbf16, #tpu.memory_space<vmem>>, vector<1x8x2048xbf16>
    %68 = vector.shape_cast %67 : vector<1x8x2048xbf16> to vector<8x2048xbf16>
    %cst_71 = arith.constant dense<0.000000e+00> : vector<8x2048xf32>
    %69 = tpu.matmul %66, %68, %cst_71 {dimension_numbers = #tpu.dot_dimension_numbers<[1], [0], [0], [1], [0, 0, 1, 1], [], []>} : vector<8x8xbf16>, vector<8x2048xbf16>, vector<8x2048xf32> -> vector<8x2048xf32>
    %70 = arith.addf %64, %69 : vector<8x2048xf32>
    %c8 = arith.constant 8 : index
    %c0_72 = arith.constant 0 : index
    %c0_73 = arith.constant 0 : index
    %71 = vector.load %arg6[%c8, %c0_72, %c0_73] : memref<36x8x8xbf16, #tpu.memory_space<vmem>>, vector<1x8x8xbf16>
    %72 = vector.shape_cast %71 : vector<1x8x8xbf16> to vector<8x8xbf16>
    %c2_74 = arith.constant 2 : index
    %c0_75 = arith.constant 0 : index
    %c256_76 = arith.constant 256 : index
    %73 = vector.load %arg11[%c2_74, %c0_75, %c256_76] : memref<3x8x2304xbf16, #tpu.memory_space<vmem>>, vector<1x8x2048xbf16>
    %74 = vector.shape_cast %73 : vector<1x8x2048xbf16> to vector<8x2048xbf16>
    %cst_77 = arith.constant dense<0.000000e+00> : vector<8x2048xf32>
    %75 = tpu.matmul %72, %74, %cst_77 {dimension_numbers = #tpu.dot_dimension_numbers<[1], [0], [0], [1], [0, 0, 1, 1], [], []>} : vector<8x8xbf16>, vector<8x2048xbf16>, vector<8x2048xf32> -> vector<8x2048xf32>
    %76 = arith.addf %70, %75 : vector<8x2048xf32>
    %c0_78 = arith.constant 0 : index
    %c0_79 = arith.constant 0 : index
    %c0_80 = arith.constant 0 : index
    %77 = vector.load %arg7[%c0_78, %c0_79, %c0_80] : memref<4x8x1xf32, #tpu.memory_space<vmem>>, vector<1x8x1xf32>
    %78 = vector.shape_cast %77 : vector<1x8x1xf32> to vector<8x1xf32>
    %79 = vector.broadcast %78 : vector<8x1xf32> to vector<8x2048xf32>
    %80 = arith.addf %76, %79 : vector<8x2048xf32>
    %cst_81 = arith.constant 0.000000e+00 : f32
    %81 = vector.broadcast %cst_81 : f32 to vector<8x2048xf32>
    %82 = arith.cmpf oge, %80, %81 : vector<8x2048xf32>
    %cst_82 = arith.constant 1.000000e-01 : f32
    %83 = vector.broadcast %cst_82 : f32 to vector<8x2048xf32>
    %84 = arith.mulf %83, %80 : vector<8x2048xf32>
    %85 = arith.select %82, %80, %84 : vector<8x2048xi1>, vector<8x2048xf32>
    %86 = vector.shape_cast %85 : vector<8x2048xf32> to vector<1x8x2048xf32>
    %87 = vector.shape_cast %5 : vector<8x2048xf32> to vector<1x8x2048xf32>
    %88 = arith.mulf %86, %87 : vector<1x8x2048xf32>
    %89 = vector.shape_cast %88 : vector<1x8x2048xf32> to vector<8x2048xf32>
    %c0_83 = arith.constant 0 : index
    %c256_84 = arith.constant 256 : index
    %90 = vector.load %arg10[%c0_83, %c256_84] : memref<8x2560xf32, #tpu.memory_space<vmem>>, vector<8x2048xf32>
    tpu.vector_store %arg10[%c0_83, %c256_84], %89 {strides = array<i32>} : memref<8x2560xf32, #tpu.memory_space<vmem>>, vector<8x2048xf32>,
    %c0_85 = arith.constant 0 : index
    %c127_86 = arith.constant 127 : index
    %91 = vector.load %arg10[%c0_85, %c127_86] : memref<8x2560xf32, #tpu.memory_space<vmem>>, vector<8x2304xf32>
    %92 = arith.truncf %91 : vector<8x2304xf32> to vector<8x2304xbf16>
    %c0_87 = arith.constant 0 : index
    %c0_88 = arith.constant 0 : index
    %c0_89 = arith.constant 0 : index
    %93 = vector.load %arg11[%c0_87, %c0_88, %c0_89] : memref<3x8x2304xbf16, #tpu.memory_space<vmem>>, vector<1x8x2304xbf16>
    %94 = vector.shape_cast %93 : vector<1x8x2304xbf16> to vector<8x2304xbf16>
    %95 = vector.shape_cast %92 : vector<8x2304xbf16> to vector<1x8x2304xbf16>
    tpu.vector_store %arg11[%c0_87, %c0_88, %c0_89], %95 {strides = array<i32>} : memref<3x8x2304xbf16, #tpu.memory_space<vmem>>, vector<1x8x2304xbf16>,
    %c0_90 = arith.constant 0 : index
    %c128_91 = arith.constant 128 : index
    %96 = vector.load %arg10[%c0_90, %c128_91] : memref<8x2560xf32, #tpu.memory_space<vmem>>, vector<8x2304xf32>
    %97 = arith.truncf %96 : vector<8x2304xf32> to vector<8x2304xbf16>
    %c1_92 = arith.constant 1 : index
    %c0_93 = arith.constant 0 : index
    %c0_94 = arith.constant 0 : index
    %98 = vector.load %arg11[%c1_92, %c0_93, %c0_94] : memref<3x8x2304xbf16, #tpu.memory_space<vmem>>, vector<1x8x2304xbf16>
    %99 = vector.shape_cast %98 : vector<1x8x2304xbf16> to vector<8x2304xbf16>
    %100 = vector.shape_cast %97 : vector<8x2304xbf16> to vector<1x8x2304xbf16>
    tpu.vector_store %arg11[%c1_92, %c0_93, %c0_94], %100 {strides = array<i32>} : memref<3x8x2304xbf16, #tpu.memory_space<vmem>>, vector<1x8x2304xbf16>,
    %c0_95 = arith.constant 0 : index
    %c129_96 = arith.constant 129 : index
    %101 = vector.load %arg10[%c0_95, %c129_96] : memref<8x2560xf32, #tpu.memory_space<vmem>>, vector<8x2304xf32>
    %102 = arith.truncf %101 : vector<8x2304xf32> to vector<8x2304xbf16>
    %c2_97 = arith.constant 2 : index
    %c0_98 = arith.constant 0 : index
    %c0_99 = arith.constant 0 : index
    %103 = vector.load %arg11[%c2_97, %c0_98, %c0_99] : memref<3x8x2304xbf16, #tpu.memory_space<vmem>>, vector<1x8x2304xbf16>
    %104 = vector.shape_cast %103 : vector<1x8x2304xbf16> to vector<8x2304xbf16>
    %105 = vector.shape_cast %102 : vector<8x2304xbf16> to vector<1x8x2304xbf16>
    tpu.vector_store %arg11[%c2_97, %c0_98, %c0_99], %105 {strides = array<i32>} : memref<3x8x2304xbf16, #tpu.memory_space<vmem>>, vector<1x8x2304xbf16>,
    %c9 = arith.constant 9 : index
    %c0_100 = arith.constant 0 : index
    %c0_101 = arith.constant 0 : index
    %106 = vector.load %arg6[%c9, %c0_100, %c0_101] : memref<36x8x8xbf16, #tpu.memory_space<vmem>>, vector<1x8x8xbf16>
    %107 = vector.shape_cast %106 : vector<1x8x8xbf16> to vector<8x8xbf16>
    %c0_102 = arith.constant 0 : index
    %c0_103 = arith.constant 0 : index
    %c0_104 = arith.constant 0 : index
    %108 = vector.load %arg11[%c0_102, %c0_103, %c0_104] : memref<3x8x2304xbf16, #tpu.memory_space<vmem>>, vector<1x8x2048xbf16>
    %109 = vector.shape_cast %108 : vector<1x8x2048xbf16> to vector<8x2048xbf16>
    %cst_105 = arith.constant dense<0.000000e+00> : vector<8x2048xf32>
    %110 = tpu.matmul %107, %109, %cst_105 {dimension_numbers = #tpu.dot_dimension_numbers<[1], [0], [0], [1], [0, 0, 1, 1], [], []>} : vector<8x8xbf16>, vector<8x2048xbf16>, vector<8x2048xf32> -> vector<8x2048xf32>
    %c10 = arith.constant 10 : index
    %c0_106 = arith.constant 0 : index
    %c0_107 = arith.constant 0 : index
    %111 = vector.load %arg6[%c10, %c0_106, %c0_107] : memref<36x8x8xbf16, #tpu.memory_space<vmem>>, vector<1x8x8xbf16>
    %112 = vector.shape_cast %111 : vector<1x8x8xbf16> to vector<8x8xbf16>
    %c1_108 = arith.constant 1 : index
    %c0_109 = arith.constant 0 : index
    %c0_110 = arith.constant 0 : index
    %113 = vector.load %arg11[%c1_108, %c0_109, %c0_110] : memref<3x8x2304xbf16, #tpu.memory_space<vmem>>, vector<1x8x2048xbf16>
    %114 = vector.shape_cast %113 : vector<1x8x2048xbf16> to vector<8x2048xbf16>
    %cst_111 = arith.constant dense<0.000000e+00> : vector<8x2048xf32>
    %115 = tpu.matmul %112, %114, %cst_111 {dimension_numbers = #tpu.dot_dimension_numbers<[1], [0], [0], [1], [0, 0, 1, 1], [], []>} : vector<8x8xbf16>, vector<8x2048xbf16>, vector<8x2048xf32> -> vector<8x2048xf32>
    %116 = arith.addf %110, %115 : vector<8x2048xf32>
    %c11 = arith.constant 11 : index
    %c0_112 = arith.constant 0 : index
    %c0_113 = arith.constant 0 : index
    %117 = vector.load %arg6[%c11, %c0_112, %c0_113] : memref<36x8x8xbf16, #tpu.memory_space<vmem>>, vector<1x8x8xbf16>
    %118 = vector.shape_cast %117 : vector<1x8x8xbf16> to vector<8x8xbf16>
    %c2_114 = arith.constant 2 : index
    %c0_115 = arith.constant 0 : index
    %c0_116 = arith.constant 0 : index
    %119 = vector.load %arg11[%c2_114, %c0_115, %c0_116] : memref<3x8x2304xbf16, #tpu.memory_space<vmem>>, vector<1x8x2048xbf16>
    %120 = vector.shape_cast %119 : vector<1x8x2048xbf16> to vector<8x2048xbf16>
    %cst_117 = arith.constant dense<0.000000e+00> : vector<8x2048xf32>
    %121 = tpu.matmul %118, %120, %cst_117 {dimension_numbers = #tpu.dot_dimension_numbers<[1], [0], [0], [1], [0, 0, 1, 1], [], []>} : vector<8x8xbf16>, vector<8x2048xbf16>, vector<8x2048xf32> -> vector<8x2048xf32>
    %122 = arith.addf %116, %121 : vector<8x2048xf32>
    %c12 = arith.constant 12 : index
    %c0_118 = arith.constant 0 : index
    %c0_119 = arith.constant 0 : index
    %123 = vector.load %arg6[%c12, %c0_118, %c0_119] : memref<36x8x8xbf16, #tpu.memory_space<vmem>>, vector<1x8x8xbf16>
    %124 = vector.shape_cast %123 : vector<1x8x8xbf16> to vector<8x8xbf16>
    %c0_120 = arith.constant 0 : index
    %c0_121 = arith.constant 0 : index
    %c128_122 = arith.constant 128 : index
    %125 = vector.load %arg11[%c0_120, %c0_121, %c128_122] : memref<3x8x2304xbf16, #tpu.memory_space<vmem>>, vector<1x8x2048xbf16>
    %126 = vector.shape_cast %125 : vector<1x8x2048xbf16> to vector<8x2048xbf16>
    %cst_123 = arith.constant dense<0.000000e+00> : vector<8x2048xf32>
    %127 = tpu.matmul %124, %126, %cst_123 {dimension_numbers = #tpu.dot_dimension_numbers<[1], [0], [0], [1], [0, 0, 1, 1], [], []>} : vector<8x8xbf16>, vector<8x2048xbf16>, vector<8x2048xf32> -> vector<8x2048xf32>
    %128 = arith.addf %122, %127 : vector<8x2048xf32>
    %c13 = arith.constant 13 : index
    %c0_124 = arith.constant 0 : index
    %c0_125 = arith.constant 0 : index
    %129 = vector.load %arg6[%c13, %c0_124, %c0_125] : memref<36x8x8xbf16, #tpu.memory_space<vmem>>, vector<1x8x8xbf16>
    %130 = vector.shape_cast %129 : vector<1x8x8xbf16> to vector<8x8xbf16>
    %c1_126 = arith.constant 1 : index
    %c0_127 = arith.constant 0 : index
    %c128_128 = arith.constant 128 : index
    %131 = vector.load %arg11[%c1_126, %c0_127, %c128_128] : memref<3x8x2304xbf16, #tpu.memory_space<vmem>>, vector<1x8x2048xbf16>
    %132 = vector.shape_cast %131 : vector<1x8x2048xbf16> to vector<8x2048xbf16>
    %cst_129 = arith.constant dense<0.000000e+00> : vector<8x2048xf32>
    %133 = tpu.matmul %130, %132, %cst_129 {dimension_numbers = #tpu.dot_dimension_numbers<[1], [0], [0], [1], [0, 0, 1, 1], [], []>} : vector<8x8xbf16>, vector<8x2048xbf16>, vector<8x2048xf32> -> vector<8x2048xf32>
    %134 = arith.addf %128, %133 : vector<8x2048xf32>
    %c14 = arith.constant 14 : index
    %c0_130 = arith.constant 0 : index
    %c0_131 = arith.constant 0 : index
    %135 = vector.load %arg6[%c14, %c0_130, %c0_131] : memref<36x8x8xbf16, #tpu.memory_space<vmem>>, vector<1x8x8xbf16>
    %136 = vector.shape_cast %135 : vector<1x8x8xbf16> to vector<8x8xbf16>
    %c2_132 = arith.constant 2 : index
    %c0_133 = arith.constant 0 : index
    %c128_134 = arith.constant 128 : index
    %137 = vector.load %arg11[%c2_132, %c0_133, %c128_134] : memref<3x8x2304xbf16, #tpu.memory_space<vmem>>, vector<1x8x2048xbf16>
    %138 = vector.shape_cast %137 : vector<1x8x2048xbf16> to vector<8x2048xbf16>
    %cst_135 = arith.constant dense<0.000000e+00> : vector<8x2048xf32>
    %139 = tpu.matmul %136, %138, %cst_135 {dimension_numbers = #tpu.dot_dimension_numbers<[1], [0], [0], [1], [0, 0, 1, 1], [], []>} : vector<8x8xbf16>, vector<8x2048xbf16>, vector<8x2048xf32> -> vector<8x2048xf32>
    %140 = arith.addf %134, %139 : vector<8x2048xf32>
    %c15 = arith.constant 15 : index
    %c0_136 = arith.constant 0 : index
    %c0_137 = arith.constant 0 : index
    %141 = vector.load %arg6[%c15, %c0_136, %c0_137] : memref<36x8x8xbf16, #tpu.memory_space<vmem>>, vector<1x8x8xbf16>
    %142 = vector.shape_cast %141 : vector<1x8x8xbf16> to vector<8x8xbf16>
    %c0_138 = arith.constant 0 : index
    %c0_139 = arith.constant 0 : index
    %c256_140 = arith.constant 256 : index
    %143 = vector.load %arg11[%c0_138, %c0_139, %c256_140] : memref<3x8x2304xbf16, #tpu.memory_space<vmem>>, vector<1x8x2048xbf16>
    %144 = vector.shape_cast %143 : vector<1x8x2048xbf16> to vector<8x2048xbf16>
    %cst_141 = arith.constant dense<0.000000e+00> : vector<8x2048xf32>
    %145 = tpu.matmul %142, %144, %cst_141 {dimension_numbers = #tpu.dot_dimension_numbers<[1], [0], [0], [1], [0, 0, 1, 1], [], []>} : vector<8x8xbf16>, vector<8x2048xbf16>, vector<8x2048xf32> -> vector<8x2048xf32>
    %146 = arith.addf %140, %145 : vector<8x2048xf32>
    %c16 = arith.constant 16 : index
    %c0_142 = arith.constant 0 : index
    %c0_143 = arith.constant 0 : index
    %147 = vector.load %arg6[%c16, %c0_142, %c0_143] : memref<36x8x8xbf16, #tpu.memory_space<vmem>>, vector<1x8x8xbf16>
    %148 = vector.shape_cast %147 : vector<1x8x8xbf16> to vector<8x8xbf16>
    %c1_144 = arith.constant 1 : index
    %c0_145 = arith.constant 0 : index
    %c256_146 = arith.constant 256 : index
    %149 = vector.load %arg11[%c1_144, %c0_145, %c256_146] : memref<3x8x2304xbf16, #tpu.memory_space<vmem>>, vector<1x8x2048xbf16>
    %150 = vector.shape_cast %149 : vector<1x8x2048xbf16> to vector<8x2048xbf16>
    %cst_147 = arith.constant dense<0.000000e+00> : vector<8x2048xf32>
    %151 = tpu.matmul %148, %150, %cst_147 {dimension_numbers = #tpu.dot_dimension_numbers<[1], [0], [0], [1], [0, 0, 1, 1], [], []>} : vector<8x8xbf16>, vector<8x2048xbf16>, vector<8x2048xf32> -> vector<8x2048xf32>
    %152 = arith.addf %146, %151 : vector<8x2048xf32>
    %c17 = arith.constant 17 : index
    %c0_148 = arith.constant 0 : index
    %c0_149 = arith.constant 0 : index
    %153 = vector.load %arg6[%c17, %c0_148, %c0_149] : memref<36x8x8xbf16, #tpu.memory_space<vmem>>, vector<1x8x8xbf16>
    %154 = vector.shape_cast %153 : vector<1x8x8xbf16> to vector<8x8xbf16>
    %c2_150 = arith.constant 2 : index
    %c0_151 = arith.constant 0 : index
    %c256_152 = arith.constant 256 : index
    %155 = vector.load %arg11[%c2_150, %c0_151, %c256_152] : memref<3x8x2304xbf16, #tpu.memory_space<vmem>>, vector<1x8x2048xbf16>
    %156 = vector.shape_cast %155 : vector<1x8x2048xbf16> to vector<8x2048xbf16>
    %cst_153 = arith.constant dense<0.000000e+00> : vector<8x2048xf32>
    %157 = tpu.matmul %154, %156, %cst_153 {dimension_numbers = #tpu.dot_dimension_numbers<[1], [0], [0], [1], [0, 0, 1, 1], [], []>} : vector<8x8xbf16>, vector<8x2048xbf16>, vector<8x2048xf32> -> vector<8x2048xf32>
    %158 = arith.addf %152, %157 : vector<8x2048xf32>
    %c1_154 = arith.constant 1 : index
    %c0_155 = arith.constant 0 : index
    %c0_156 = arith.constant 0 : index
    %159 = vector.load %arg7[%c1_154, %c0_155, %c0_156] : memref<4x8x1xf32, #tpu.memory_space<vmem>>, vector<1x8x1xf32>
    %160 = vector.shape_cast %159 : vector<1x8x1xf32> to vector<8x1xf32>
    %161 = vector.broadcast %160 : vector<8x1xf32> to vector<8x2048xf32>
    %162 = arith.addf %158, %161 : vector<8x2048xf32>
    %cst_157 = arith.constant 0.000000e+00 : f32
    %163 = vector.broadcast %cst_157 : f32 to vector<8x2048xf32>
    %164 = arith.cmpf oge, %162, %163 : vector<8x2048xf32>
    %cst_158 = arith.constant 1.000000e-01 : f32
    %165 = vector.broadcast %cst_158 : f32 to vector<8x2048xf32>
    %166 = arith.mulf %165, %162 : vector<8x2048xf32>
    %167 = arith.select %164, %162, %166 : vector<8x2048xi1>, vector<8x2048xf32>
    %168 = vector.shape_cast %167 : vector<8x2048xf32> to vector<1x8x2048xf32>
    %169 = vector.shape_cast %5 : vector<8x2048xf32> to vector<1x8x2048xf32>
    %170 = arith.mulf %168, %169 : vector<1x8x2048xf32>
    %171 = vector.shape_cast %170 : vector<1x8x2048xf32> to vector<8x2048xf32>
    %c0_159 = arith.constant 0 : index
    %c256_160 = arith.constant 256 : index
    %172 = vector.load %arg10[%c0_159, %c256_160] : memref<8x2560xf32, #tpu.memory_space<vmem>>, vector<8x2048xf32>
    tpu.vector_store %arg10[%c0_159, %c256_160], %171 {strides = array<i32>} : memref<8x2560xf32, #tpu.memory_space<vmem>>, vector<8x2048xf32>,
    %c0_161 = arith.constant 0 : index
    %c127_162 = arith.constant 127 : index
    %173 = vector.load %arg10[%c0_161, %c127_162] : memref<8x2560xf32, #tpu.memory_space<vmem>>, vector<8x2304xf32>
    %174 = arith.truncf %173 : vector<8x2304xf32> to vector<8x2304xbf16>
    %c0_163 = arith.constant 0 : index
    %c0_164 = arith.constant 0 : index
    %c0_165 = arith.constant 0 : index
    %175 = vector.load %arg11[%c0_163, %c0_164, %c0_165] : memref<3x8x2304xbf16, #tpu.memory_space<vmem>>, vector<1x8x2304xbf16>
    %176 = vector.shape_cast %175 : vector<1x8x2304xbf16> to vector<8x2304xbf16>
    %177 = vector.shape_cast %174 : vector<8x2304xbf16> to vector<1x8x2304xbf16>
    tpu.vector_store %arg11[%c0_163, %c0_164, %c0_165], %177 {strides = array<i32>} : memref<3x8x2304xbf16, #tpu.memory_space<vmem>>, vector<1x8x2304xbf16>,
    %c0_166 = arith.constant 0 : index
    %c128_167 = arith.constant 128 : index
    %178 = vector.load %arg10[%c0_166, %c128_167] : memref<8x2560xf32, #tpu.memory_space<vmem>>, vector<8x2304xf32>
    %179 = arith.truncf %178 : vector<8x2304xf32> to vector<8x2304xbf16>
    %c1_168 = arith.constant 1 : index
    %c0_169 = arith.constant 0 : index
    %c0_170 = arith.constant 0 : index
    %180 = vector.load %arg11[%c1_168, %c0_169, %c0_170] : memref<3x8x2304xbf16, #tpu.memory_space<vmem>>, vector<1x8x2304xbf16>
    %181 = vector.shape_cast %180 : vector<1x8x2304xbf16> to vector<8x2304xbf16>
    %182 = vector.shape_cast %179 : vector<8x2304xbf16> to vector<1x8x2304xbf16>
    tpu.vector_store %arg11[%c1_168, %c0_169, %c0_170], %182 {strides = array<i32>} : memref<3x8x2304xbf16, #tpu.memory_space<vmem>>, vector<1x8x2304xbf16>,
    %c0_171 = arith.constant 0 : index
    %c129_172 = arith.constant 129 : index
    %183 = vector.load %arg10[%c0_171, %c129_172] : memref<8x2560xf32, #tpu.memory_space<vmem>>, vector<8x2304xf32>
    %184 = arith.truncf %183 : vector<8x2304xf32> to vector<8x2304xbf16>
    %c2_173 = arith.constant 2 : index
    %c0_174 = arith.constant 0 : index
    %c0_175 = arith.constant 0 : index
    %185 = vector.load %arg11[%c2_173, %c0_174, %c0_175] : memref<3x8x2304xbf16, #tpu.memory_space<vmem>>, vector<1x8x2304xbf16>
    %186 = vector.shape_cast %185 : vector<1x8x2304xbf16> to vector<8x2304xbf16>
    %187 = vector.shape_cast %184 : vector<8x2304xbf16> to vector<1x8x2304xbf16>
    tpu.vector_store %arg11[%c2_173, %c0_174, %c0_175], %187 {strides = array<i32>} : memref<3x8x2304xbf16, #tpu.memory_space<vmem>>, vector<1x8x2304xbf16>,
    %c18 = arith.constant 18 : index
    %c0_176 = arith.constant 0 : index
    %c0_177 = arith.constant 0 : index
    %188 = vector.load %arg6[%c18, %c0_176, %c0_177] : memref<36x8x8xbf16, #tpu.memory_space<vmem>>, vector<1x8x8xbf16>
    %189 = vector.shape_cast %188 : vector<1x8x8xbf16> to vector<8x8xbf16>
    %c0_178 = arith.constant 0 : index
    %c0_179 = arith.constant 0 : index
    %c0_180 = arith.constant 0 : index
    %190 = vector.load %arg11[%c0_178, %c0_179, %c0_180] : memref<3x8x2304xbf16, #tpu.memory_space<vmem>>, vector<1x8x2048xbf16>
    %191 = vector.shape_cast %190 : vector<1x8x2048xbf16> to vector<8x2048xbf16>
    %cst_181 = arith.constant dense<0.000000e+00> : vector<8x2048xf32>
    %192 = tpu.matmul %189, %191, %cst_181 {dimension_numbers = #tpu.dot_dimension_numbers<[1], [0], [0], [1], [0, 0, 1, 1], [], []>} : vector<8x8xbf16>, vector<8x2048xbf16>, vector<8x2048xf32> -> vector<8x2048xf32>
    %c19 = arith.constant 19 : index
    %c0_182 = arith.constant 0 : index
    %c0_183 = arith.constant 0 : index
    %193 = vector.load %arg6[%c19, %c0_182, %c0_183] : memref<36x8x8xbf16, #tpu.memory_space<vmem>>, vector<1x8x8xbf16>
    %194 = vector.shape_cast %193 : vector<1x8x8xbf16> to vector<8x8xbf16>
    %c1_184 = arith.constant 1 : index
    %c0_185 = arith.constant 0 : index
    %c0_186 = arith.constant 0 : index
    %195 = vector.load %arg11[%c1_184, %c0_185, %c0_186] : memref<3x8x2304xbf16, #tpu.memory_space<vmem>>, vector<1x8x2048xbf16>
    %196 = vector.shape_cast %195 : vector<1x8x2048xbf16> to vector<8x2048xbf16>
    %cst_187 = arith.constant dense<0.000000e+00> : vector<8x2048xf32>
    %197 = tpu.matmul %194, %196, %cst_187 {dimension_numbers = #tpu.dot_dimension_numbers<[1], [0], [0], [1], [0, 0, 1, 1], [], []>} : vector<8x8xbf16>, vector<8x2048xbf16>, vector<8x2048xf32> -> vector<8x2048xf32>
    %198 = arith.addf %192, %197 : vector<8x2048xf32>
    %c20 = arith.constant 20 : index
    %c0_188 = arith.constant 0 : index
    %c0_189 = arith.constant 0 : index
    %199 = vector.load %arg6[%c20, %c0_188, %c0_189] : memref<36x8x8xbf16, #tpu.memory_space<vmem>>, vector<1x8x8xbf16>
    %200 = vector.shape_cast %199 : vector<1x8x8xbf16> to vector<8x8xbf16>
    %c2_190 = arith.constant 2 : index
    %c0_191 = arith.constant 0 : index
    %c0_192 = arith.constant 0 : index
    %201 = vector.load %arg11[%c2_190, %c0_191, %c0_192] : memref<3x8x2304xbf16, #tpu.memory_space<vmem>>, vector<1x8x2048xbf16>
    %202 = vector.shape_cast %201 : vector<1x8x2048xbf16> to vector<8x2048xbf16>
    %cst_193 = arith.constant dense<0.000000e+00> : vector<8x2048xf32>
    %203 = tpu.matmul %200, %202, %cst_193 {dimension_numbers = #tpu.dot_dimension_numbers<[1], [0], [0], [1], [0, 0, 1, 1], [], []>} : vector<8x8xbf16>, vector<8x2048xbf16>, vector<8x2048xf32> -> vector<8x2048xf32>
    %204 = arith.addf %198, %203 : vector<8x2048xf32>
    %c21 = arith.constant 21 : index
    %c0_194 = arith.constant 0 : index
    %c0_195 = arith.constant 0 : index
    %205 = vector.load %arg6[%c21, %c0_194, %c0_195] : memref<36x8x8xbf16, #tpu.memory_space<vmem>>, vector<1x8x8xbf16>
    %206 = vector.shape_cast %205 : vector<1x8x8xbf16> to vector<8x8xbf16>
    %c0_196 = arith.constant 0 : index
    %c0_197 = arith.constant 0 : index
    %c128_198 = arith.constant 128 : index
    %207 = vector.load %arg11[%c0_196, %c0_197, %c128_198] : memref<3x8x2304xbf16, #tpu.memory_space<vmem>>, vector<1x8x2048xbf16>
    %208 = vector.shape_cast %207 : vector<1x8x2048xbf16> to vector<8x2048xbf16>
    %cst_199 = arith.constant dense<0.000000e+00> : vector<8x2048xf32>
    %209 = tpu.matmul %206, %208, %cst_199 {dimension_numbers = #tpu.dot_dimension_numbers<[1], [0], [0], [1], [0, 0, 1, 1], [], []>} : vector<8x8xbf16>, vector<8x2048xbf16>, vector<8x2048xf32> -> vector<8x2048xf32>
    %210 = arith.addf %204, %209 : vector<8x2048xf32>
    %c22 = arith.constant 22 : index
    %c0_200 = arith.constant 0 : index
    %c0_201 = arith.constant 0 : index
    %211 = vector.load %arg6[%c22, %c0_200, %c0_201] : memref<36x8x8xbf16, #tpu.memory_space<vmem>>, vector<1x8x8xbf16>
    %212 = vector.shape_cast %211 : vector<1x8x8xbf16> to vector<8x8xbf16>
    %c1_202 = arith.constant 1 : index
    %c0_203 = arith.constant 0 : index
    %c128_204 = arith.constant 128 : index
    %213 = vector.load %arg11[%c1_202, %c0_203, %c128_204] : memref<3x8x2304xbf16, #tpu.memory_space<vmem>>, vector<1x8x2048xbf16>
    %214 = vector.shape_cast %213 : vector<1x8x2048xbf16> to vector<8x2048xbf16>
    %cst_205 = arith.constant dense<0.000000e+00> : vector<8x2048xf32>
    %215 = tpu.matmul %212, %214, %cst_205 {dimension_numbers = #tpu.dot_dimension_numbers<[1], [0], [0], [1], [0, 0, 1, 1], [], []>} : vector<8x8xbf16>, vector<8x2048xbf16>, vector<8x2048xf32> -> vector<8x2048xf32>
    %216 = arith.addf %210, %215 : vector<8x2048xf32>
    %c23 = arith.constant 23 : index
    %c0_206 = arith.constant 0 : index
    %c0_207 = arith.constant 0 : index
    %217 = vector.load %arg6[%c23, %c0_206, %c0_207] : memref<36x8x8xbf16, #tpu.memory_space<vmem>>, vector<1x8x8xbf16>
    %218 = vector.shape_cast %217 : vector<1x8x8xbf16> to vector<8x8xbf16>
    %c2_208 = arith.constant 2 : index
    %c0_209 = arith.constant 0 : index
    %c128_210 = arith.constant 128 : index
    %219 = vector.load %arg11[%c2_208, %c0_209, %c128_210] : memref<3x8x2304xbf16, #tpu.memory_space<vmem>>, vector<1x8x2048xbf16>
    %220 = vector.shape_cast %219 : vector<1x8x2048xbf16> to vector<8x2048xbf16>
    %cst_211 = arith.constant dense<0.000000e+00> : vector<8x2048xf32>
    %221 = tpu.matmul %218, %220, %cst_211 {dimension_numbers = #tpu.dot_dimension_numbers<[1], [0], [0], [1], [0, 0, 1, 1], [], []>} : vector<8x8xbf16>, vector<8x2048xbf16>, vector<8x2048xf32> -> vector<8x2048xf32>
    %222 = arith.addf %216, %221 : vector<8x2048xf32>
    %c24 = arith.constant 24 : index
    %c0_212 = arith.constant 0 : index
    %c0_213 = arith.constant 0 : index
    %223 = vector.load %arg6[%c24, %c0_212, %c0_213] : memref<36x8x8xbf16, #tpu.memory_space<vmem>>, vector<1x8x8xbf16>
    %224 = vector.shape_cast %223 : vector<1x8x8xbf16> to vector<8x8xbf16>
    %c0_214 = arith.constant 0 : index
    %c0_215 = arith.constant 0 : index
    %c256_216 = arith.constant 256 : index
    %225 = vector.load %arg11[%c0_214, %c0_215, %c256_216] : memref<3x8x2304xbf16, #tpu.memory_space<vmem>>, vector<1x8x2048xbf16>
    %226 = vector.shape_cast %225 : vector<1x8x2048xbf16> to vector<8x2048xbf16>
    %cst_217 = arith.constant dense<0.000000e+00> : vector<8x2048xf32>
    %227 = tpu.matmul %224, %226, %cst_217 {dimension_numbers = #tpu.dot_dimension_numbers<[1], [0], [0], [1], [0, 0, 1, 1], [], []>} : vector<8x8xbf16>, vector<8x2048xbf16>, vector<8x2048xf32> -> vector<8x2048xf32>
    %228 = arith.addf %222, %227 : vector<8x2048xf32>
    %c25 = arith.constant 25 : index
    %c0_218 = arith.constant 0 : index
    %c0_219 = arith.constant 0 : index
    %229 = vector.load %arg6[%c25, %c0_218, %c0_219] : memref<36x8x8xbf16, #tpu.memory_space<vmem>>, vector<1x8x8xbf16>
    %230 = vector.shape_cast %229 : vector<1x8x8xbf16> to vector<8x8xbf16>
    %c1_220 = arith.constant 1 : index
    %c0_221 = arith.constant 0 : index
    %c256_222 = arith.constant 256 : index
    %231 = vector.load %arg11[%c1_220, %c0_221, %c256_222] : memref<3x8x2304xbf16, #tpu.memory_space<vmem>>, vector<1x8x2048xbf16>
    %232 = vector.shape_cast %231 : vector<1x8x2048xbf16> to vector<8x2048xbf16>
    %cst_223 = arith.constant dense<0.000000e+00> : vector<8x2048xf32>
    %233 = tpu.matmul %230, %232, %cst_223 {dimension_numbers = #tpu.dot_dimension_numbers<[1], [0], [0], [1], [0, 0, 1, 1], [], []>} : vector<8x8xbf16>, vector<8x2048xbf16>, vector<8x2048xf32> -> vector<8x2048xf32>
    %234 = arith.addf %228, %233 : vector<8x2048xf32>
    %c26 = arith.constant 26 : index
    %c0_224 = arith.constant 0 : index
    %c0_225 = arith.constant 0 : index
    %235 = vector.load %arg6[%c26, %c0_224, %c0_225] : memref<36x8x8xbf16, #tpu.memory_space<vmem>>, vector<1x8x8xbf16>
    %236 = vector.shape_cast %235 : vector<1x8x8xbf16> to vector<8x8xbf16>
    %c2_226 = arith.constant 2 : index
    %c0_227 = arith.constant 0 : index
    %c256_228 = arith.constant 256 : index
    %237 = vector.load %arg11[%c2_226, %c0_227, %c256_228] : memref<3x8x2304xbf16, #tpu.memory_space<vmem>>, vector<1x8x2048xbf16>
    %238 = vector.shape_cast %237 : vector<1x8x2048xbf16> to vector<8x2048xbf16>
    %cst_229 = arith.constant dense<0.000000e+00> : vector<8x2048xf32>
    %239 = tpu.matmul %236, %238, %cst_229 {dimension_numbers = #tpu.dot_dimension_numbers<[1], [0], [0], [1], [0, 0, 1, 1], [], []>} : vector<8x8xbf16>, vector<8x2048xbf16>, vector<8x2048xf32> -> vector<8x2048xf32>
    %240 = arith.addf %234, %239 : vector<8x2048xf32>
    %c2_230 = arith.constant 2 : index
    %c0_231 = arith.constant 0 : index
    %c0_232 = arith.constant 0 : index
    %241 = vector.load %arg7[%c2_230, %c0_231, %c0_232] : memref<4x8x1xf32, #tpu.memory_space<vmem>>, vector<1x8x1xf32>
    %242 = vector.shape_cast %241 : vector<1x8x1xf32> to vector<8x1xf32>
    %243 = vector.broadcast %242 : vector<8x1xf32> to vector<8x2048xf32>
    %244 = arith.addf %240, %243 : vector<8x2048xf32>
    %cst_233 = arith.constant 0.000000e+00 : f32
    %245 = vector.broadcast %cst_233 : f32 to vector<8x2048xf32>
    %246 = arith.cmpf oge, %244, %245 : vector<8x2048xf32>
    %cst_234 = arith.constant 1.000000e-01 : f32
    %247 = vector.broadcast %cst_234 : f32 to vector<8x2048xf32>
    %248 = arith.mulf %247, %244 : vector<8x2048xf32>
    %249 = arith.select %246, %244, %248 : vector<8x2048xi1>, vector<8x2048xf32>
    %250 = vector.shape_cast %249 : vector<8x2048xf32> to vector<1x8x2048xf32>
    %251 = vector.shape_cast %5 : vector<8x2048xf32> to vector<1x8x2048xf32>
    %252 = arith.mulf %250, %251 : vector<1x8x2048xf32>
    %253 = vector.shape_cast %252 : vector<1x8x2048xf32> to vector<8x2048xf32>
    %c0_235 = arith.constant 0 : index
    %c256_236 = arith.constant 256 : index
    %254 = vector.load %arg10[%c0_235, %c256_236] : memref<8x2560xf32, #tpu.memory_space<vmem>>, vector<8x2048xf32>
    tpu.vector_store %arg10[%c0_235, %c256_236], %253 {strides = array<i32>} : memref<8x2560xf32, #tpu.memory_space<vmem>>, vector<8x2048xf32>,
    %c0_237 = arith.constant 0 : index
    %c639 = arith.constant 639 : index
    %255 = vector.load %arg10[%c0_237, %c639] : memref<8x2560xf32, #tpu.memory_space<vmem>>, vector<8x1280xf32>
    %256 = arith.truncf %255 : vector<8x1280xf32> to vector<8x1280xbf16>
    %c0_238 = arith.constant 0 : index
    %c0_239 = arith.constant 0 : index
    %c0_240 = arith.constant 0 : index
    %257 = vector.load %arg11[%c0_238, %c0_239, %c0_240] : memref<3x8x2304xbf16, #tpu.memory_space<vmem>>, vector<1x8x1280xbf16>
    %258 = vector.shape_cast %257 : vector<1x8x1280xbf16> to vector<8x1280xbf16>
    %259 = vector.shape_cast %256 : vector<8x1280xbf16> to vector<1x8x1280xbf16>
    tpu.vector_store %arg11[%c0_238, %c0_239, %c0_240], %259 {strides = array<i32>} : memref<3x8x2304xbf16, #tpu.memory_space<vmem>>, vector<1x8x1280xbf16>,
    %c0_241 = arith.constant 0 : index
    %c640 = arith.constant 640 : index
    %260 = vector.load %arg10[%c0_241, %c640] : memref<8x2560xf32, #tpu.memory_space<vmem>>, vector<8x1280xf32>
    %261 = arith.truncf %260 : vector<8x1280xf32> to vector<8x1280xbf16>
    %c1_242 = arith.constant 1 : index
    %c0_243 = arith.constant 0 : index
    %c0_244 = arith.constant 0 : index
    %262 = vector.load %arg11[%c1_242, %c0_243, %c0_244] : memref<3x8x2304xbf16, #tpu.memory_space<vmem>>, vector<1x8x1280xbf16>
    %263 = vector.shape_cast %262 : vector<1x8x1280xbf16> to vector<8x1280xbf16>
    %264 = vector.shape_cast %261 : vector<8x1280xbf16> to vector<1x8x1280xbf16>
    tpu.vector_store %arg11[%c1_242, %c0_243, %c0_244], %264 {strides = array<i32>} : memref<3x8x2304xbf16, #tpu.memory_space<vmem>>, vector<1x8x1280xbf16>,
    %c0_245 = arith.constant 0 : index
    %c641 = arith.constant 641 : index
    %265 = vector.load %arg10[%c0_245, %c641] : memref<8x2560xf32, #tpu.memory_space<vmem>>, vector<8x1280xf32>
    %266 = arith.truncf %265 : vector<8x1280xf32> to vector<8x1280xbf16>
    %c2_246 = arith.constant 2 : index
    %c0_247 = arith.constant 0 : index
    %c0_248 = arith.constant 0 : index
    %267 = vector.load %arg11[%c2_246, %c0_247, %c0_248] : memref<3x8x2304xbf16, #tpu.memory_space<vmem>>, vector<1x8x1280xbf16>
    %268 = vector.shape_cast %267 : vector<1x8x1280xbf16> to vector<8x1280xbf16>
    %269 = vector.shape_cast %266 : vector<8x1280xbf16> to vector<1x8x1280xbf16>
    tpu.vector_store %arg11[%c2_246, %c0_247, %c0_248], %269 {strides = array<i32>} : memref<3x8x2304xbf16, #tpu.memory_space<vmem>>, vector<1x8x1280xbf16>,
    %c27 = arith.constant 27 : index
    %c0_249 = arith.constant 0 : index
    %c0_250 = arith.constant 0 : index
    %270 = vector.load %arg6[%c27, %c0_249, %c0_250] : memref<36x8x8xbf16, #tpu.memory_space<vmem>>, vector<1x8x8xbf16>
    %271 = vector.shape_cast %270 : vector<1x8x8xbf16> to vector<8x8xbf16>
    %c0_251 = arith.constant 0 : index
    %c0_252 = arith.constant 0 : index
    %c0_253 = arith.constant 0 : index
    %272 = vector.load %arg11[%c0_251, %c0_252, %c0_253] : memref<3x8x2304xbf16, #tpu.memory_space<vmem>>, vector<1x8x1024xbf16>
    %273 = vector.shape_cast %272 : vector<1x8x1024xbf16> to vector<8x1024xbf16>
    %cst_254 = arith.constant dense<0.000000e+00> : vector<8x1024xf32>
    %274 = tpu.matmul %271, %273, %cst_254 {dimension_numbers = #tpu.dot_dimension_numbers<[1], [0], [0], [1], [0, 0, 1, 1], [], []>} : vector<8x8xbf16>, vector<8x1024xbf16>, vector<8x1024xf32> -> vector<8x1024xf32>
    %c28 = arith.constant 28 : index
    %c0_255 = arith.constant 0 : index
    %c0_256 = arith.constant 0 : index
    %275 = vector.load %arg6[%c28, %c0_255, %c0_256] : memref<36x8x8xbf16, #tpu.memory_space<vmem>>, vector<1x8x8xbf16>
    %276 = vector.shape_cast %275 : vector<1x8x8xbf16> to vector<8x8xbf16>
    %c1_257 = arith.constant 1 : index
    %c0_258 = arith.constant 0 : index
    %c0_259 = arith.constant 0 : index
    %277 = vector.load %arg11[%c1_257, %c0_258, %c0_259] : memref<3x8x2304xbf16, #tpu.memory_space<vmem>>, vector<1x8x1024xbf16>
    %278 = vector.shape_cast %277 : vector<1x8x1024xbf16> to vector<8x1024xbf16>
    %cst_260 = arith.constant dense<0.000000e+00> : vector<8x1024xf32>
    %279 = tpu.matmul %276, %278, %cst_260 {dimension_numbers = #tpu.dot_dimension_numbers<[1], [0], [0], [1], [0, 0, 1, 1], [], []>} : vector<8x8xbf16>, vector<8x1024xbf16>, vector<8x1024xf32> -> vector<8x1024xf32>
    %280 = arith.addf %274, %279 : vector<8x1024xf32>
    %c29 = arith.constant 29 : index
    %c0_261 = arith.constant 0 : index
    %c0_262 = arith.constant 0 : index
    %281 = vector.load %arg6[%c29, %c0_261, %c0_262] : memref<36x8x8xbf16, #tpu.memory_space<vmem>>, vector<1x8x8xbf16>
    %282 = vector.shape_cast %281 : vector<1x8x8xbf16> to vector<8x8xbf16>
    %c2_263 = arith.constant 2 : index
    %c0_264 = arith.constant 0 : index
    %c0_265 = arith.constant 0 : index
    %283 = vector.load %arg11[%c2_263, %c0_264, %c0_265] : memref<3x8x2304xbf16, #tpu.memory_space<vmem>>, vector<1x8x1024xbf16>
    %284 = vector.shape_cast %283 : vector<1x8x1024xbf16> to vector<8x1024xbf16>
    %cst_266 = arith.constant dense<0.000000e+00> : vector<8x1024xf32>
    %285 = tpu.matmul %282, %284, %cst_266 {dimension_numbers = #tpu.dot_dimension_numbers<[1], [0], [0], [1], [0, 0, 1, 1], [], []>} : vector<8x8xbf16>, vector<8x1024xbf16>, vector<8x1024xf32> -> vector<8x1024xf32>
    %286 = arith.addf %280, %285 : vector<8x1024xf32>
    %c30 = arith.constant 30 : index
    %c0_267 = arith.constant 0 : index
    %c0_268 = arith.constant 0 : index
    %287 = vector.load %arg6[%c30, %c0_267, %c0_268] : memref<36x8x8xbf16, #tpu.memory_space<vmem>>, vector<1x8x8xbf16>
    %288 = vector.shape_cast %287 : vector<1x8x8xbf16> to vector<8x8xbf16>
    %c0_269 = arith.constant 0 : index
    %c0_270 = arith.constant 0 : index
    %c128_271 = arith.constant 128 : index
    %289 = vector.load %arg11[%c0_269, %c0_270, %c128_271] : memref<3x8x2304xbf16, #tpu.memory_space<vmem>>, vector<1x8x1024xbf16>
    %290 = vector.shape_cast %289 : vector<1x8x1024xbf16> to vector<8x1024xbf16>
    %cst_272 = arith.constant dense<0.000000e+00> : vector<8x1024xf32>
    %291 = tpu.matmul %288, %290, %cst_272 {dimension_numbers = #tpu.dot_dimension_numbers<[1], [0], [0], [1], [0, 0, 1, 1], [], []>} : vector<8x8xbf16>, vector<8x1024xbf16>, vector<8x1024xf32> -> vector<8x1024xf32>
    %292 = arith.addf %286, %291 : vector<8x1024xf32>
    %c31 = arith.constant 31 : index
    %c0_273 = arith.constant 0 : index
    %c0_274 = arith.constant 0 : index
    %293 = vector.load %arg6[%c31, %c0_273, %c0_274] : memref<36x8x8xbf16, #tpu.memory_space<vmem>>, vector<1x8x8xbf16>
    %294 = vector.shape_cast %293 : vector<1x8x8xbf16> to vector<8x8xbf16>
    %c1_275 = arith.constant 1 : index
    %c0_276 = arith.constant 0 : index
    %c128_277 = arith.constant 128 : index
    %295 = vector.load %arg11[%c1_275, %c0_276, %c128_277] : memref<3x8x2304xbf16, #tpu.memory_space<vmem>>, vector<1x8x1024xbf16>
    %296 = vector.shape_cast %295 : vector<1x8x1024xbf16> to vector<8x1024xbf16>
    %cst_278 = arith.constant dense<0.000000e+00> : vector<8x1024xf32>
    %297 = tpu.matmul %294, %296, %cst_278 {dimension_numbers = #tpu.dot_dimension_numbers<[1], [0], [0], [1], [0, 0, 1, 1], [], []>} : vector<8x8xbf16>, vector<8x1024xbf16>, vector<8x1024xf32> -> vector<8x1024xf32>
    %298 = arith.addf %292, %297 : vector<8x1024xf32>
    %c32 = arith.constant 32 : index
    %c0_279 = arith.constant 0 : index
    %c0_280 = arith.constant 0 : index
    %299 = vector.load %arg6[%c32, %c0_279, %c0_280] : memref<36x8x8xbf16, #tpu.memory_space<vmem>>, vector<1x8x8xbf16>
    %300 = vector.shape_cast %299 : vector<1x8x8xbf16> to vector<8x8xbf16>
    %c2_281 = arith.constant 2 : index
    %c0_282 = arith.constant 0 : index
    %c128_283 = arith.constant 128 : index
    %301 = vector.load %arg11[%c2_281, %c0_282, %c128_283] : memref<3x8x2304xbf16, #tpu.memory_space<vmem>>, vector<1x8x1024xbf16>
    %302 = vector.shape_cast %301 : vector<1x8x1024xbf16> to vector<8x1024xbf16>
    %cst_284 = arith.constant dense<0.000000e+00> : vector<8x1024xf32>
    %303 = tpu.matmul %300, %302, %cst_284 {dimension_numbers = #tpu.dot_dimension_numbers<[1], [0], [0], [1], [0, 0, 1, 1], [], []>} : vector<8x8xbf16>, vector<8x1024xbf16>, vector<8x1024xf32> -> vector<8x1024xf32>
    %304 = arith.addf %298, %303 : vector<8x1024xf32>
    %c33 = arith.constant 33 : index
    %c0_285 = arith.constant 0 : index
    %c0_286 = arith.constant 0 : index
    %305 = vector.load %arg6[%c33, %c0_285, %c0_286] : memref<36x8x8xbf16, #tpu.memory_space<vmem>>, vector<1x8x8xbf16>
    %306 = vector.shape_cast %305 : vector<1x8x8xbf16> to vector<8x8xbf16>
    %c0_287 = arith.constant 0 : index
    %c0_288 = arith.constant 0 : index
    %c256_289 = arith.constant 256 : index
    %307 = vector.load %arg11[%c0_287, %c0_288, %c256_289] : memref<3x8x2304xbf16, #tpu.memory_space<vmem>>, vector<1x8x1024xbf16>
    %308 = vector.shape_cast %307 : vector<1x8x1024xbf16> to vector<8x1024xbf16>
    %cst_290 = arith.constant dense<0.000000e+00> : vector<8x1024xf32>
    %309 = tpu.matmul %306, %308, %cst_290 {dimension_numbers = #tpu.dot_dimension_numbers<[1], [0], [0], [1], [0, 0, 1, 1], [], []>} : vector<8x8xbf16>, vector<8x1024xbf16>, vector<8x1024xf32> -> vector<8x1024xf32>
    %310 = arith.addf %304, %309 : vector<8x1024xf32>
    %c34 = arith.constant 34 : index
    %c0_291 = arith.constant 0 : index
    %c0_292 = arith.constant 0 : index
    %311 = vector.load %arg6[%c34, %c0_291, %c0_292] : memref<36x8x8xbf16, #tpu.memory_space<vmem>>, vector<1x8x8xbf16>
    %312 = vector.shape_cast %311 : vector<1x8x8xbf16> to vector<8x8xbf16>
    %c1_293 = arith.constant 1 : index
    %c0_294 = arith.constant 0 : index
    %c256_295 = arith.constant 256 : index
    %313 = vector.load %arg11[%c1_293, %c0_294, %c256_295] : memref<3x8x2304xbf16, #tpu.memory_space<vmem>>, vector<1x8x1024xbf16>
    %314 = vector.shape_cast %313 : vector<1x8x1024xbf16> to vector<8x1024xbf16>
    %cst_296 = arith.constant dense<0.000000e+00> : vector<8x1024xf32>
    %315 = tpu.matmul %312, %314, %cst_296 {dimension_numbers = #tpu.dot_dimension_numbers<[1], [0], [0], [1], [0, 0, 1, 1], [], []>} : vector<8x8xbf16>, vector<8x1024xbf16>, vector<8x1024xf32> -> vector<8x1024xf32>
    %316 = arith.addf %310, %315 : vector<8x1024xf32>
    %c35 = arith.constant 35 : index
    %c0_297 = arith.constant 0 : index
    %c0_298 = arith.constant 0 : index
    %317 = vector.load %arg6[%c35, %c0_297, %c0_298] : memref<36x8x8xbf16, #tpu.memory_space<vmem>>, vector<1x8x8xbf16>
    %318 = vector.shape_cast %317 : vector<1x8x8xbf16> to vector<8x8xbf16>
    %c2_299 = arith.constant 2 : index
    %c0_300 = arith.constant 0 : index
    %c256_301 = arith.constant 256 : index
    %319 = vector.load %arg11[%c2_299, %c0_300, %c256_301] : memref<3x8x2304xbf16, #tpu.memory_space<vmem>>, vector<1x8x1024xbf16>
    %320 = vector.shape_cast %319 : vector<1x8x1024xbf16> to vector<8x1024xbf16>
    %cst_302 = arith.constant dense<0.000000e+00> : vector<8x1024xf32>
    %321 = tpu.matmul %318, %320, %cst_302 {dimension_numbers = #tpu.dot_dimension_numbers<[1], [0], [0], [1], [0, 0, 1, 1], [], []>} : vector<8x8xbf16>, vector<8x1024xbf16>, vector<8x1024xf32> -> vector<8x1024xf32>
    %322 = arith.addf %316, %321 : vector<8x1024xf32>
    %c3_303 = arith.constant 3 : index
    %c0_304 = arith.constant 0 : index
    %c0_305 = arith.constant 0 : index
    %323 = vector.load %arg7[%c3_303, %c0_304, %c0_305] : memref<4x8x1xf32, #tpu.memory_space<vmem>>, vector<1x8x1xf32>
    %324 = vector.shape_cast %323 : vector<1x8x1xf32> to vector<8x1xf32>
    %325 = vector.broadcast %324 : vector<8x1xf32> to vector<8x1024xf32>
    %326 = arith.addf %322, %325 : vector<8x1024xf32>
    %c0_306 = arith.constant 0 : index
    %c0_307 = arith.constant 0 : index
    %c0_308 = arith.constant 0 : index
    %c0_309 = arith.constant 0 : index
    %327 = vector.load %arg4[%c0_306, %c0_307, %c0_308, %c0_309] : memref<1x1x8x1024xf32, #tpu.memory_space<vmem>>, vector<1x1x8x1024xf32>
    %328 = vector.shape_cast %327 : vector<1x1x8x1024xf32> to vector<8x1024xf32>
    %329 = arith.addf %326, %328 : vector<8x1024xf32>
    %c0_310 = arith.constant 0 : index
    %c0_311 = arith.constant 0 : index
    %c0_312 = arith.constant 0 : index
    %c0_313 = arith.constant 0 : index
    %330 = vector.load %arg3[%c0_310, %c0_311, %c0_312, %c0_313] : memref<1x1x8x1024xf32, #tpu.memory_space<vmem>>, vector<1x1x8x1024xf32>
    %331 = vector.shape_cast %330 : vector<1x1x8x1024xf32> to vector<8x1024xf32>
    %332 = math.cos %329 : vector<8x1024xf32>
    %333 = arith.mulf %331, %332 : vector<8x1024xf32>
    %c0_314 = arith.constant 0 : index
    %c0_315 = arith.constant 0 : index
    %c0_316 = arith.constant 0 : index
    %c0_317 = arith.constant 0 : index
    %334 = vector.load %arg8[%c0_314, %c0_315, %c0_316, %c0_317] : memref<1x1x8x1024xf32, #tpu.memory_space<vmem>>, vector<1x1x8x1024xf32>
    %335 = vector.shape_cast %334 : vector<1x1x8x1024xf32> to vector<8x1024xf32>
    %336 = vector.shape_cast %333 : vector<8x1024xf32> to vector<1x1x8x1024xf32>
    tpu.vector_store %arg8[%c0_314, %c0_315, %c0_316, %c0_317], %336 {strides = array<i32>} : memref<1x1x8x1024xf32, #tpu.memory_space<vmem>>, vector<1x1x8x1024xf32>,
    %337 = math.sin %329 : vector<8x1024xf32>
    %338 = arith.mulf %331, %337 : vector<8x1024xf32>
    %c0_318 = arith.constant 0 : index
    %c0_319 = arith.constant 0 : index
    %c0_320 = arith.constant 0 : index
    %c0_321 = arith.constant 0 : index
    %339 = vector.load %arg9[%c0_318, %c0_319, %c0_320, %c0_321] : memref<1x1x8x1024xf32, #tpu.memory_space<vmem>>, vector<1x1x8x1024xf32>
    %340 = vector.shape_cast %339 : vector<1x1x8x1024xf32> to vector<8x1024xf32>
    %341 = vector.shape_cast %338 : vector<8x1024xf32> to vector<1x1x8x1024xf32>
    tpu.vector_store %arg9[%c0_318, %c0_319, %c0_320, %c0_321], %341 {strides = array<i32>} : memref<1x1x8x1024xf32, #tpu.memory_space<vmem>>, vector<1x1x8x1024xf32>,
    return
  }
  func.func @transform_0(%arg0: i32, %arg1: i32) -> (i32, i32, i32, i32) {
    %c0_i32 = arith.constant 0 : i32
    %c0_i32_0 = arith.constant 0 : i32
    %c0_i32_1 = arith.constant 0 : i32
    return %arg0, %arg1, %c0_i32, %c0_i32_0 : i32, i32, i32, i32
  }
  func.func @transform_1(%arg0: i32, %arg1: i32) -> (i32, i32, i32, i32) {
    %c0_i32 = arith.constant 0 : i32
    %c0_i32_0 = arith.constant 0 : i32
    %c0_i32_1 = arith.constant 0 : i32
    return %arg0, %arg1, %c0_i32, %c0_i32_0 : i32, i32, i32, i32
  }
  func.func @transform_2(%arg0: i32, %arg1: i32) -> (i32, i32, i32, i32) {
    %c0_i32 = arith.constant 0 : i32
    %c0_i32_0 = arith.constant 0 : i32
    %c0_i32_1 = arith.constant 0 : i32
    return %arg0, %arg1, %c0_i32, %c0_i32_0 : i32, i32, i32, i32
  }
  func.func @transform_3(%arg0: i32, %arg1: i32) -> (i32, i32, i32) {
    %c0_i32 = arith.constant 0 : i32
    %c0_i32_0 = arith.constant 0 : i32
    %c0_i32_1 = arith.constant 0 : i32
    return %arg1, %c0_i32, %c0_i32_0 : i32, i32, i32
  }
  func.func @transform_4(%arg0: i32, %arg1: i32) -> (i32, i32, i32) {
    %c0_i32 = arith.constant 0 : i32
    %c0_i32_0 = arith.constant 0 : i32
    %c0_i32_1 = arith.constant 0 : i32
    %c0_i32_2 = arith.constant 0 : i32
    return %c0_i32, %c0_i32_0, %c0_i32_1 : i32, i32, i32
  }
  func.func @transform_5(%arg0: i32, %arg1: i32) -> (i32, i32, i32) {
    %c0_i32 = arith.constant 0 : i32
    %c0_i32_0 = arith.constant 0 : i32
    %c0_i32_1 = arith.constant 0 : i32
    %c0_i32_2 = arith.constant 0 : i32
    return %c0_i32, %c0_i32_0, %c0_i32_1 : i32, i32, i32
  }
  func.func @transform_6(%arg0: i32, %arg1: i32) -> (i32, i32, i32, i32) {
    %c0_i32 = arith.constant 0 : i32
    %c0_i32_0 = arith.constant 0 : i32
    %c0_i32_1 = arith.constant 0 : i32
    return %arg0, %arg1, %c0_i32, %c0_i32_0 : i32, i32, i32, i32
  }
  func.func @transform_7(%arg0: i32, %arg1: i32) -> (i32, i32, i32, i32) {
    %c0_i32 = arith.constant 0 : i32
    %c0_i32_0 = arith.constant 0 : i32
    %c0_i32_1 = arith.constant 0 : i32
    return %arg0, %arg1, %c0_i32, %c0_i32_0 : i32, i32, i32, i32
  }
}

</mosaic_0001>

<bundles_post_ra>
// kernel: reverse.0
= control target key start
LH: loop header
LB: loop body
LE: loop exit
PB: predicated region body
PF: predicated region fallthrough
CT: control target
= control target key end

     0   :  { %v71_v3 = vlaneseq  ;;  %v64_v9 = vld [vmem:[#allocation0 + $0x7] ss:$-1 sm:$0xff]  ;;  %v78_v12 = vld [vmem:[#allocation0 + $0x17] ss:$-1 sm:$0xff]  ;;  %s329_s0 = inlined_call_operand.vmem [shape: f32[2,4,16,7], index: 0, kind: input, shape index: {}]   ;;  %s330_s1 = inlined_call_operand.vmem [shape: f32[2,4,16,7], index: 1, kind: output, shape index: {}]  }
   0x1   :  { %v44_v0 = vld [vmem:[%s329_s0] sm:$0xff]  ;;  %v46_v1 = vld [vmem:[%s329_s0 + $0x8] sm:$0xff]  ;;  %v48_v2 = vld [vmem:[%s329_s0 + $0x10] sm:$0xff]  ;;  %v65_v10 = vrot.slane %v64_v9, 1  ;;  %v79_v14 = vrot.slane %v78_v12, 1 }
   0x2   :  { %45 = vst [vmem:[#allocation0 + $0x8] sm:$0xff] %v44_v0  ;;  %47 = vst [vmem:[#allocation0 + $0x18] sm:$0xff] %v46_v1  ;;  %v50_v4 = vld [vmem:[%s329_s0 + $0x18] sm:$0xff]  ;;  %v52_v5 = vld [vmem:[%s329_s0 + $0x20] sm:$0xff]  ;;  %v72_v11 = vshrl.u32 %v71_v3, 7 }
   0x3   :  { %49 = vst [vmem:[#allocation0 + $0x28] sm:$0xff] %v48_v2  ;;  %v54_v6 = vld [vmem:[%s329_s0 + $0x28] sm:$0xff]  ;;  %51 = vst [vmem:[#allocation0 + $0x38] sm:$0xff] %v50_v4  ;;  %v56_v7 = vld [vmem:[%s329_s0 + $0x30] sm:$0xff] }
   0x4   :  { %53 = vst [vmem:[#allocation0 + $0x48] sm:$0xff] %v52_v5  ;;  %55 = vst [vmem:[#allocation0 + $0x58] sm:$0xff] %v54_v6  ;;  %v58_v8 = vld [vmem:[%s329_s0 + $0x38] sm:$0xff]  ;;  %v92_v13 = vld [vmem:[#allocation0 + $0x27] ss:$-1 sm:$0xff]  ;;  %vm73_vm0 = vcmp.lt.s32.totalorder %v72_v11, 7 }
   0x5   :  { %57 = vst [vmem:[#allocation0 + $0x68] sm:$0xff] %v56_v7  ;;  %59 = vst [vmem:[#allocation0 + $0x78] sm:$0xff] %v58_v8  ;;  %v93_v15 = vrot.slane %v92_v13, 1  ;;  %v106_v16 = vld [vmem:[#allocation0 + $0x37] ss:$-1 sm:$0xff] }
   0x6   :  { %66 = vst [vmem:[#allocation1] sm:$0xff] %v65_v10  ;;  %v107_v17 = vrot.slane %v106_v16, 1  ;;  %v120_v18 = vld [vmem:[#allocation0 + $0x47] ss:$-1 sm:$0xff]  ;;  %v134_v19 = vld [vmem:[#allocation0 + $0x57] ss:$-1 sm:$0xff] }
   0x7   :  { %80 = vst [vmem:[#allocation1 + $0x8] sm:$0xff] %v79_v14  ;;  %94 = vst [vmem:[#allocation1 + $0x10] sm:$0xff] %v93_v15  ;;  %v121_v20 = vrot.slane %v120_v18, 1  ;;  %v135_v21 = vrot.slane %v134_v19, 1  ;;  %v148_v22 = vld [vmem:[#allocation0 + $0x67] ss:$-1 sm:$0xff] }
   0x8   :  { %v162_v23 = vld [vmem:[#allocation0 + $0x77] ss:$-1 sm:$0xff]  ;;  %108 = vst [vmem:[#allocation1 + $0x18] sm:$0xff] %v107_v17  ;;  %v149_v24 = vrot.slane %v148_v22, 1 }
   0x9   :  { %v163_v25 = vrot.slane %v162_v23, 1  ;;  %v69_v26 = vld [vmem:[#allocation0 + $0xf] ss:$-1 sm:$0xff]  ;;  %v83_v27 = vld [vmem:[#allocation0 + $0x1f] ss:$-1 sm:$0xff]  ;;  %122 = vst [vmem:[#allocation1 + $0x20] sm:$0xff] %v121_v20 }
   0xa   :  { %v97_v28 = vld [vmem:[#allocation0 + $0x2f] ss:$-1 sm:$0xff]  ;;  %136 = vst [vmem:[#allocation1 + $0x28] sm:$0xff] %v135_v21  ;;  %v70_v29 = vrot.slane %v69_v26, 1  ;;  %v84_v30 = vrot.slane %v83_v27, 1  ;;  %150 = vst [vmem:[#allocation1 + $0x30] sm:$0xff] %v149_v24 }
   0xb   :  { %v98_v31 = vrot.slane %v97_v28, 1  ;;  %v111_v32 = vld [vmem:[#allocation0 + $0x3f] ss:$-1 sm:$0xff]  ;;  %164 = vst [vmem:[#allocation1 + $0x38] sm:$0xff] %v163_v25  ;;  %v125_v34 = vld [vmem:[#allocation0 + $0x4f] ss:$-1 sm:$0xff] }
   0xc   :  { %v112_v33 = vrot.slane %v111_v32, 1  ;;  %v139_v35 = vld [vmem:[#allocation0 + $0x5f] ss:$-1 sm:$0xff]  ;;  %74 = vst.msk [vmem:[#allocation1] sm:$0xff] %vm73_vm0, %v70_v29  ;;  %88 = vst.msk [vmem:[#allocation1 + $0x8] sm:$0xff] %vm73_vm0, %v84_v30  ;;  %v126_v36 = vrot.slane %v125_v34, 1 }
   0xd   :  { %102 = vst.msk [vmem:[#allocation1 + $0x10] sm:$0xff] %vm73_vm0, %v98_v31  ;;  %v140_v37 = vrot.slane %v139_v35, 1  ;;  %v153_v38 = vld [vmem:[#allocation0 + $0x6f] ss:$-1 sm:$0xff]  ;;  %v167_v39 = vld [vmem:[#allocation0 + $0x7f] ss:$-1 sm:$0xff] }
   0xe   :  { %116 = vst.msk [vmem:[#allocation1 + $0x18] sm:$0xff] %vm73_vm0, %v112_v33  ;;  %v154_v40 = vrot.slane %v153_v38, 1  ;;  %v168_v41 = vrot.slane %v167_v39, 1  ;;  %130 = vst.msk [vmem:[#allocation1 + $0x20] sm:$0xff] %vm73_vm0, %v126_v36 }
   0xf   :  { %144 = vst.msk [vmem:[#allocation1 + $0x28] sm:$0xff] %vm73_vm0, %v140_v37 }
  0x10   :  { %158 = vst.msk [vmem:[#allocation1 + $0x30] sm:$0xff] %vm73_vm0, %v154_v40  ;;  %172 = vst.msk [vmem:[#allocation1 + $0x38] sm:$0xff] %vm73_vm0, %v168_v41 }
  0x13   :  { %v214_v42 = vld [vmem:[#allocation1] sm:$0xff]  ;;  %v216_v43 = vld [vmem:[#allocation1 + $0x8] sm:$0xff] }
  0x14   :  { %v218_v44 = vld [vmem:[#allocation1 + $0x10] sm:$0xff]  ;;  %215 = vst [vmem:[%s330_s1] sm:$0xff] %v214_v42  ;;  %217 = vst [vmem:[%s330_s1 + $0x8] sm:$0xff] %v216_v43 }
  0x15   :  { %219 = vst [vmem:[%s330_s1 + $0x10] sm:$0xff] %v218_v44  ;;  %v220_v45 = vld [vmem:[#allocation1 + $0x18] sm:$0xff]  ;;  %v222_v46 = vld [vmem:[#allocation1 + $0x20] sm:$0xff] }
  0x16   :  { %221 = vst [vmem:[%s330_s1 + $0x18] sm:$0xff] %v220_v45  ;;  %v224_v47 = vld [vmem:[#allocation1 + $0x28] sm:$0xff]  ;;  %223 = vst [vmem:[%s330_s1 + $0x20] sm:$0xff] %v222_v46 }
  0x17   :  { %225 = vst [vmem:[%s330_s1 + $0x28] sm:$0xff] %v224_v47  ;;  %v226_v48 = vld [vmem:[#allocation1 + $0x30] sm:$0xff]  ;;  %v228_v49 = vld [vmem:[#allocation1 + $0x38] sm:$0xff] }
  0x18   :  { %227 = vst [vmem:[%s330_s1 + $0x30] sm:$0xff] %v226_v48  ;;  %229 = vst [vmem:[%s330_s1 + $0x38] sm:$0xff] %v228_v49 }

// kernel: rfft_alignment_forward.1
= control target key start
LH: loop header
LB: loop body
LE: loop exit
PB: predicated region body
PF: predicated region fallthrough
CT: control target
= control target key end

     0   :  { %s24254_s0 = inlined_call_operand.hbm [shape: f32[2,2,8,2560], index: 0, kind: input, shape index: {}]   ;;  %s24255_s1 = inlined_call_operand.hbm [shape: f32[2,2,8,1024], index: 1, kind: input, shape index: {}]   ;;  %s24256_s2 = inlined_call_operand.hbm [shape: f32[2,2,8,1024], index: 2, kind: input, shape index: {}]   ;;  %s24257_s3 = inlined_call_operand.hbm [shape: f32[2,8,2048], index: 3, kind: input, shape index: {}]   ;;  %s24258_s4 = inlined_call_operand.hbm [shape: bf16[36,8,8], index: 4, kind: input, shape index: {}]   ;;  %s24259_s5 = inlined_call_operand.hbm [shape: f32[4,8,1], index: 5, kind: input, shape index: {}]   ;;  %s24260_s6 = inlined_call_operand.hbm [shape: f32[2,2,8,1024], index: 6, kind: output, shape index: {0}]   ;;  %s24261_s7 = inlined_call_operand.hbm [shape: f32[2,2,8,1024], index: 7, kind: output, shape index: {1}]  }
   0x1   :  { %24293 = sst [smem:[#allocation39_spill]] %s24255_s1 }
   0x2   :  { %24294 = sst [smem:[#allocation40_spill]] %s24257_s3 }
   0x3   :  { %24295 = sst [smem:[#allocation41_spill]] %s24258_s4 }
   0x4   :  { %24296 = sst [smem:[#allocation42_spill]] %s24260_s6 }
   0x5   :  { %24297 = sst [smem:[#allocation43_spill]] %s24261_s7 }
   0x6   :  { %13 = vsyncpa [#allocation5], 0 }
   0x7   :  { %15 = vsyncpa [#allocation5 + $0x1], 0 }
   0x8   :  { %16 = vsyncpa [#allocation8], 0 }
   0x9   :  { %18 = vsyncpa [#allocation8 + $0x1], 0 }
   0xa   :  { %19 = vsyncpa [#allocation11], 0 }
   0xb   :  { %21 = vsyncpa [#allocation11 + $0x1], 0 }
   0xc   :  { %22 = vsyncpa [#allocation14], 0 }
   0xd   :  { %23 = vsyncpa [#allocation6], 0 }
   0xe   :  { %25 = vsyncpa [#allocation6 + $0x1], 0 }
   0xf   :  { %26 = vsyncpa [#allocation17], 0 }
  0x10   :  { %28 = vsyncpa [#allocation17 + $0x1], 0  ;;  %s20412_s24 = smov 0   ;;  %s20414_s25 = smov 0  }
  0x11   :  { %s20416_s26 = smov 0   ;;  %s20418_s27 = smov 0  }
  0x12   :  { %s20420_s28 = smov 0   ;;  %s20422_s29 = smov 0  }
  0x13   :  { %s20424_s30 = smov 0   ;;  %s20426_s8 = smov 0  }
  0x14   :  { %s20428_s9 = smov 0   ;;  %s20430_s10 = smov 0  }
  0x15   :  { %s20432_s11 = smov 0  }
  0x16 LB: > { %24298 = sst [smem:[#allocation25_spill]] %s20307_s24  ;;  %s20468_s12 = sadd.s32 4294967295, %s20347_s11   ;;  %s20347_s11 = sphi %s20432_s11, %s34_s11   ;;  %s20343_s10 = sphi %s20430_s10, %s24382_s10   ;;  %s20339_s9 = sphi %s20428_s9, %s24381_s9   ;;  %s20335_s8 = sphi %s20426_s8, %s24380_s8   ;;  %s20331_s30 = sphi %s20424_s30, %s24379_s30   ;;  %s20327_s29 = sphi %s20422_s29, %s24373_s29   ;;  %s20323_s28 = sphi %s20420_s28, %s24372_s28   ;;  %s20319_s27 = sphi %s20418_s27, %s24371_s27   ;;  %s20315_s26 = sphi %s20416_s26, %s24378_s26   ;;  %s20311_s25 = sphi %s20414_s25, %s24377_s25   ;;  %s20307_s24 = sphi %s20412_s24, %s24376_s24  }
  0x17   : > { %24299 = sst [smem:[#allocation26_spill]] %s20319_s27  ;;  %p18157_p0 = scmp.ge.s32.totalorder %s20347_s11, 1 }
  0x18   : > { %24300 = sst [smem:[#allocation27_spill]] %s20323_s28  ;;  %p24262_p1 = scmp.eq.s32.totalorder %s20468_s12, 0 }
  0x19   : > { %24301 = sst [smem:[#allocation28_spill]] %s20327_s29  ;;  %p259_p2 = scmp.lt.s32.totalorder %s20347_s11, 5 }
  0x1a   : > { %24302 = sst [smem:[#allocation29_spill]] %s20331_s30  ;;  %s20349_s14 = smov [#allocation12]  }
  0x1b   : > { %24303 = sst [smem:[#allocation30_spill]] %s20335_s8  ;;  %p20473_p3 = pnand %p18157_p0, %p259_p2 }
  0x1c   : > { %24304 = sst [smem:[#allocation31_spill]] %s20468_s12  ;;  %s271_s15 = sshll.u32 %s20349_s14, 4  ;;  %s272_s15 = int_to_ptr.vmem [resolvable:$true] %s271_s15 }
  0x1d   : > { %s24305_s13 = scalar_select %p20473_p3, 1, 0 }
  0x1e   : > { %p19528_p4 = pneg %p20473_p3  ;;  %s24308_s4 = sld [smem:[#allocation41_spill]] }
  0x1f   : > { %24306 = sst [smem:[#allocation32_spill]] %s24305_s13 }
  0x20   : > { %p20481_p5 = pnand %p19528_p4, %p24262_p1 }
  0x22   : > { %s24307_s16 = scalar_select %p20481_p5, 1, 0 }
  0x23   : > { %p24278_p7 = pneg %p20481_p5 }
  0x24   : > { %s20001_s19 = scalar_lea.hbm %s24308_s4, 2304 }
  0x25   : > { %p20002_p6 = scmp.ne.s32.totalorder %s24308_s4, %s20001_s19  ;;  %p20008_p10 = scmp.lt.u32.totalorder %s20001_s19, %s24308_s4 }
  0x27   : > { %p20004_p8 = pnand %p24278_p7, %p20002_p6 }
  0x29   : > { %p20005_p9 = pneg %p20004_p8 }
  0x2b   : > { %p20010_p11 = pnand %p20008_p10, %p20005_p9 }
  0x2d   : > { %20013 = shalt.err (!%p20010_p11)
}
  0x2e   : > { %s20014_s14 = scalar_lea.vmem %s272_s15, 2304  ;;  %p20022_p2 = scmp.lt.s32.totalorder %s272_s15, %s272_s15 }
  0x2f   : > { %p20015_p12 = scmp.ne.s32.totalorder %s272_s15, %s20014_s14  ;;  %p20023_p4 = scmp.lt.s32.totalorder %s20014_s14, %s20014_s14 }
  0x31   : > { %p20017_p13 = pnand %p20015_p12, %p24278_p7  ;;  %p20024_p1 = por %p20023_p4, %p20022_p2 }
  0x33   : > { %p20018_p0 = pneg %p20017_p13 }
  0x35   : > { %p20025_p3 = pnand %p20024_p1, %p20018_p0 }
  0x37   : > { %20028 = shalt.err (!%p20025_p3)
}
  0x38   : > { %s20350_s17 = smov 64   ;;  %s20351_s18 = smov 4  }
  0x39   : > { %19531 = dma.hbm_to_vmem [thread:$0]  (!%p20481_p5), %s24308_s4, 2304, %s272_s15, [#allocation11], %s20350_s17, %s20350_s17, %s20351_s18  }
  0x3a   : > { %s18156_s21 = sadd.s32 4294967294, %s20347_s11   ;;  %s43_s22 = sadd.s32 1, %s20339_s9 }
  0x3b   : > { %s46_s23 = sadd.s32 1, %s20343_s10  ;;  %p44_p1 = scmp.ge.s32.totalorder %s43_s22, 2 }
  0x3c   : > { %s55_s14 = sadd.s32 1, %s20327_s29  ;;  %p62_p3 = scmp.ne.s32.totalorder %s20327_s29, %s20323_s28 }
  0x3d   : > { %p24277_p6 = scmp.eq.s32.totalorder %s20347_s11, 0  ;;  %s24384_s22 = smov (%p44_p1, %s43_s22), 0 }
  0x3e   : > { %24309 = sst [smem:[#allocation33_spill]] %s24384_s22  ;;  %s24386_s23 = smov (!%p44_p1, %s46_s23), %s20343_s10 }
  0x3f   : > { %s20519_s7 = ssub.s32 %s20339_s9, %s24384_s22  ;;  %p20523_p8 = por %p24277_p6, %p62_p3 }
  0x40   : > { %p48_p9 = scmp.ge.s32.totalorder %s24386_s23, 2  ;;  %p68_p10 = scmp.ne.s32.totalorder %s20323_s28, %s20319_s27 }
  0x41   : > { %p218_p11 = scmp.eq.s32.totalorder %s20468_s12, 3  ;;  %p224_p12 = scmp.eq.s32.totalorder %s18156_s21, 3 }
  0x42   : > { %s24388_s23 = smov (%p48_p9, %s24386_s23), 0  ;;  %p24312_p13 = scmp.eq.s32.totalorder %s20468_s12, 0 }
  0x43   : > { %24311 = sst [smem:[#allocation34_spill]] %s24388_s23  ;;  %p20538_p2 = por %p218_p11, %p62_p3 }
  0x44   : > { %p20534_p0 = por %p24312_p13, %p68_p10  ;;  %s50_s19 = ssub.s32 %s20343_s10, %s24388_s23 }
  0x45   : > { %s24315_s18 = scalar_select %p20538_p2, 1, 0 }
  0x46   : > { %s24313_s17 = scalar_select %p20534_p0, 1, 0 }
  0x47   : > { %24316 = sst [smem:[#allocation36_spill]] %s24315_s18  ;;  %p20544_p4 = por %p224_p12, %p68_p10 }
  0x48   : > { %24314 = sst [smem:[#allocation35_spill]] %s24313_s17  ;;  %s52_s4 = sor.u32 %s20519_s7, %s50_s19 }
  0x49   : > { %s24317_s20 = scalar_select %p20544_p4, 1, 0 }
  0x4a   : > { %p24276_p1 = scmp.lt.s32.totalorder %s20347_s11, 4  ;;  %p53_p9 = scmp.eq.s32.totalorder %s52_s4, 0 }
  0x4b   : > { %24318 = sst [smem:[#allocation37_spill]] %s24317_s20  ;;  %s20551_s21 = sand.u32 1, %s20327_s29  }
  0x4c   : > { %p20557_p13 = pnand %p24276_p1, %p20523_p8  ;;  %s24274_s6 = sshll.u32 %s20551_s21, 6 }
  0x4d   : > { %s20563_s27 = scalar_select %p53_p9, %s20327_s29, %s55_s14  }
  0x4e   : > { %s24319_s22 = scalar_select %p20557_p13, 1, 0 }
  0x4f   : > { %24320 = sst [smem:[#allocation38_spill]] %s20563_s27  ;;  %s18163_s20 = sshll.u32 %s20339_s9, 3 }
  0x50   : > { %s18164_s19 = sshll.u32 %s20343_s10, 4  ;;  %s323_s4 = scalar_lea.vmem [#allocation7], %s24274_s6 }
  0x51   : > { %s20568_s18 = sadd.s32 %s18164_s19, %s18163_s20  ;;  %s333_s15 = sshll.u32 %s323_s4, 4  ;;  %s20573_s15 = int_to_ptr.vmem [resolvable:$true] %s333_s15 }
  0x52   : > { %s24275_s8 = sshll.u32 %s20568_s18, 7  ;;  %s24321_s1 = sld [smem:[#allocation39_spill]] }
  0x53   : > { %s24322_s14 = sand.u32 1, %s20347_s11   ;;  %p20590_p8 = pneg %p20557_p13 }
  0x54   : > { %s20584_s20 = scalar_lea.sflag [#allocation8], %s24322_s14 }
  0x55   : > { %s24323_s4 = scalar_select %p20590_p8, 1, 0 }
  0x58   : > { %s20580_s23 = scalar_lea.hbm %s24321_s1, %s24275_s8  ;;  %s20034_s6 = scalar_lea.hbm %s24321_s1, 4096 }
  0x59   : > { %s20029_s19 = scalar_lea.hbm %s20580_s23, 1024  ;;  %p20035_p12 = scmp.lt.u32.totalorder %s20580_s23, %s24321_s1 }
  0x5a   : > { %p20030_p3 = scmp.ne.s32.totalorder %s20580_s23, %s20029_s19  ;;  %p20036_p9 = scmp.lt.u32.totalorder %s20034_s6, %s20029_s19 }
  0x5b   : > { %p20038_p6 = scmp.lt.u32.totalorder %s20029_s19, %s20580_s23 }
  0x5c   : > { %p20032_p10 = pnand %p20590_p8, %p20030_p3  ;;  %p20037_p1 = por %p20036_p9, %p20035_p12 }
  0x5e   : > { %p20033_p11 = pneg %p20032_p10  ;;  %p20039_p7 = por %p20038_p6, %p20037_p1 }
  0x60   : > { %p20040_p4 = pnand %p20039_p7, %p20033_p11 }
  0x62   : > { %20043 = shalt.err (!%p20040_p4)
}
  0x63   : > { %s20044_s14 = scalar_lea.vmem %s20573_s15, 1024  ;;  %s20352_s30 = smov [#allocation7]  }
  0x64   : > { %p20045_p3 = scmp.ne.s32.totalorder %s20573_s15, %s20044_s14  ;;  %s20049_s17 = sshll.u32 %s20352_s30, 4  ;;  %s20050_s17 = int_to_ptr.vmem [resolvable:$false] %s20049_s17 }
  0x65   : > { %s20051_s27 = scalar_lea.vmem %s20050_s17, 2048  ;;  %p20052_p0 = scmp.lt.s32.totalorder %s20573_s15, %s20050_s17 }
  0x66   : > { %p20047_p10 = pnand %p20045_p3, %p20590_p8  ;;  %p20053_p5 = scmp.lt.s32.totalorder %s20051_s27, %s20044_s14 }
  0x68   : > { %p20048_p2 = pneg %p20047_p10  ;;  %p20054_p12 = por %p20053_p5, %p20052_p0 }
  0x6a   : > { %p20055_p9 = pnand %p20054_p12, %p20048_p2 }
  0x6c   : > { %20058 = shalt.err (!%p20055_p9)
}
  0x6d   : > { %19541 = dma.hbm_to_vmem [thread:$0]  (!%p20557_p13), %s20580_s23, 1024, %s20573_s15, %s20584_s20  }
  0x6e   : > { %s24324_s6 = sshll.u32 %s20568_s18, 7  ;;  %s20353_s1 = smov [#allocation13]  }
  0x6f   : > { %s20619_s30 = scalar_lea.hbm %s24256_s2, %s24324_s6  ;;  %s284_s17 = sshll.u32 %s20353_s1, 4  ;;  %s285_s17 = int_to_ptr.vmem [resolvable:$true] %s284_s17 }
  0x70   : > { %s20059_s29 = scalar_lea.hbm %s24259_s5, 512  ;;  %p24325_p7 = scmp.ne.s32.totalorder %s24307_s16, 0 }
  0x71   : > { %p20060_p5 = scmp.ne.s32.totalorder %s24259_s5, %s20059_s29  ;;  %p20066_p4 = scmp.lt.u32.totalorder %s20059_s29, %s24259_s5 }
  0x72   : > { %p24326_p6 = pneg %p24325_p7 }
  0x74   : > { %p20062_p0 = pnand %p20060_p5, %p24326_p6 }
  0x76   : > { %p20063_p2 = pneg %p20062_p0 }
  0x78   : > { %p20068_p1 = pnand %p20066_p4, %p20063_p2 }
  0x7a   : > { %20071 = shalt.err (!%p20068_p1)
}
  0x7b   : > { %s20072_s1 = scalar_lea.vmem %s285_s17, 512  ;;  %p24327_p3 = pmov %p24326_p6 }
  0x7c   : > { %p20073_p11 = scmp.ne.s32.totalorder %s285_s17, %s20072_s1  ;;  %p20080_p9 = scmp.lt.s32.totalorder %s285_s17, %s285_s17 }
  0x7d   : > { %p20081_p13 = scmp.lt.s32.totalorder %s20072_s1, %s20072_s1 }
  0x7e   : > { %p20075_p10 = pnand %p20073_p11, %p24327_p3 }
  0x7f   : > { %p20082_p8 = por %p20081_p13, %p20080_p9 }
  0x80   : > { %p20076_p12 = pneg %p20075_p10 }
  0x82   : > { %p20083_p5 = pnand %p20082_p8, %p20076_p12 }
  0x84   : > { %20086 = shalt.err (!%p20083_p5)
}
  0x85   : > { %s20354_s28 = smov 128   ;;  %s20355_s29 = smov 8  }
  0x86   : > { %19534 = dma.hbm_to_vmem [thread:$0]  (!%p24325_p7), %s24259_s5, 512, %s285_s17, [#allocation14], %s20354_s28, %s20354_s28, %s20355_s29  }
  0x87   : > { %s19472_s6 = smul.u32 160, %s20551_s21  ;;  %s24328_s8 = sshll.u32 %s20551_s21, 6 }
  0x88   : > { %s344_s19 = scalar_lea.vmem [#allocation9], %s24328_s8  ;;  %s19473_s27 = smul.u32 20, %s20339_s9 }
  0x89   : > { %s354_s14 = sshll.u32 %s344_s19, 4  ;;  %s19474_s23 = smul.u32 40, %s20343_s10  ;;  %s20645_s14 = int_to_ptr.vmem [resolvable:$true] %s354_s14 }
  0x8a   : > { %s302_s18 = scalar_lea.vmem [#allocation4], %s19472_s6  ;;  %s299_s17 = scalar_lea.sflag [#allocation5], %s20551_s21 }
  0x8b   : > { %s312_s1 = sshll.u32 %s302_s18, 4  ;;  %s308_s3 = sadd.s32 %s19474_s23, %s19473_s27  ;;  %s20648_s1 = int_to_ptr.vmem [resolvable:$true] %s312_s1 }
  0x8c   : > { %s18161_s12 = sshll.u32 %s308_s3, 7  ;;  %p24329_p8 = scmp.ne.s32.totalorder %s24323_s4, 0 }
  0x8d   : > { %s310_s13 = scalar_lea.hbm %s24254_s0, %s18161_s12  ;;  %s20092_s8 = scalar_lea.hbm %s24254_s0, 10240 }
  0x8e   : > { %s20087_s28 = scalar_lea.hbm %s310_s13, 2560  ;;  %p20093_p0 = scmp.lt.u32.totalorder %s310_s13, %s24254_s0 }
  0x8f   : > { %p20088_p13 = scmp.ne.s32.totalorder %s310_s13, %s20087_s28  ;;  %p20094_p2 = scmp.lt.u32.totalorder %s20092_s8, %s20087_s28 }
  0x90   : > { %p20096_p1 = scmp.lt.u32.totalorder %s20087_s28, %s310_s13 }
  0x91   : > { %p20090_p7 = pnand %p20088_p13, %p24329_p8  ;;  %p20095_p4 = por %p20094_p2, %p20093_p0 }
  0x93   : > { %p20091_p6 = pneg %p20090_p7  ;;  %p20097_p11 = por %p20096_p1, %p20095_p4 }
  0x95   : > { %p20098_p3 = pnand %p20097_p11, %p20091_p6 }
  0x97   : > { %20101 = shalt.err (!%p20098_p3)
}
  0x98   : > { %s20102_s3 = scalar_lea.vmem %s20648_s1, 2560  ;;  %s20356_s24 = smov [#allocation4]  }
  0x99   : > { %p20103_p10 = scmp.ne.s32.totalorder %s20648_s1, %s20102_s3  ;;  %s20107_s12 = sshll.u32 %s20356_s24, 4  ;;  %s20108_s12 = int_to_ptr.vmem [resolvable:$false] %s20107_s12 }
  0x9a   : > { %s20109_s21 = scalar_lea.vmem %s20108_s12, 5120  ;;  %p20110_p5 = scmp.lt.s32.totalorder %s20648_s1, %s20108_s12 }
  0x9b   : > { %p20105_p12 = pnand %p20103_p10, %p24329_p8  ;;  %p20111_p13 = scmp.lt.s32.totalorder %s20109_s21, %s20102_s3 }
  0x9d   : > { %p20106_p9 = pneg %p20105_p12  ;;  %p20112_p7 = por %p20111_p13, %p20110_p5 }
  0x9f   : > { %p20113_p0 = pnand %p20112_p7, %p20106_p9 }
  0xa1   : > { %20116 = shalt.err (!%p20113_p0)
}
  0xa2   : > { %p24330_p6 = scmp.ne.s32.totalorder %s24319_s22, 0  ;;  %s20117_s27 = scalar_lea.hbm %s20619_s30, 1024 }
  0xa3   : > { %p20118_p2 = scmp.ne.s32.totalorder %s20619_s30, %s20117_s27  ;;  %s20122_s16 = scalar_lea.hbm %s24256_s2, 4096 }
  0xa4   : > { %19538 = dma.hbm_to_vmem [thread:$0]  (!%p24330_p6), %s310_s13, 2560, %s20648_s1, %s299_s17  }
  0xa5   : > { %p20120_p4 = pnand %p20118_p2, %p24329_p8  ;;  %p20123_p11 = scmp.lt.u32.totalorder %s20619_s30, %s24256_s2 }
  0xa6   : > { %p20124_p3 = scmp.lt.u32.totalorder %s20122_s16, %s20117_s27  ;;  %p20126_p12 = scmp.lt.u32.totalorder %s20117_s27, %s20619_s30 }
  0xa7   : > { %p20121_p1 = pneg %p20120_p4 }
  0xa8   : > { %p20125_p10 = por %p20124_p3, %p20123_p11 }
  0xaa   : > { %p20127_p9 = por %p20126_p12, %p20125_p10 }
  0xac   : > { %p20128_p5 = pnand %p20127_p9, %p20121_p1 }
  0xae   : > { %20131 = shalt.err (!%p20128_p5)
}
  0xaf   : > { %s20132_s1 = scalar_lea.vmem %s20645_s14, 1024  ;;  %s20357_s13 = smov [#allocation9]  }
  0xb0   : > { %p20133_p13 = scmp.ne.s32.totalorder %s20645_s14, %s20132_s1  ;;  %s20137_s17 = sshll.u32 %s20357_s13, 4  ;;  %s20138_s17 = int_to_ptr.vmem [resolvable:$false] %s20137_s17 }
  0xb1   : > { %s20139_s15 = scalar_lea.vmem %s20138_s17, 2048  ;;  %p20140_p2 = scmp.lt.s32.totalorder %s20645_s14, %s20138_s17 }
  0xb2   : > { %p20135_p7 = pnand %p20133_p13, %p24329_p8  ;;  %p20141_p4 = scmp.lt.s32.totalorder %s20139_s15, %s20132_s1 }
  0xb4   : > { %p20136_p0 = pneg %p20135_p7  ;;  %p20142_p11 = por %p20141_p4, %p20140_p2 }
  0xb6   : > { %p20143_p3 = pnand %p20142_p11, %p20136_p0 }
  0xb8   : > { %20146 = shalt.err (!%p20143_p3)
}
  0xb9   : > { %s24331_s4 = sld [smem:[#allocation25_spill]]  ;;  %s24332_s8 = sld [smem:[#allocation31_spill]] }
  0xba   : > { %19544 = dma.hbm_to_vmem [thread:$0]  (!%p24330_p6), %s20619_s30, 1024, %s20645_s14, %s20584_s20  }
  0xbb   : > { %p135_p8 = scmp.eq.s32.totalorder %s20519_s7, 0  ;;  %s137_s6 = sadd.s32 1, %s20315_s26 }
  0xbc   : > { %p144_p1 = scmp.ne.s32.totalorder %s20315_s26, %s20311_s25  ;;  %p24333_p10 = scmp.eq.s32.totalorder %s20347_s11, 0 }
  0xbd   : > { %s20697_s22 = scalar_select %p135_p8, %s20315_s26, %s137_s6  }
  0xbe   : > { %p146_p12 = por %p144_p1, %p24333_p10  ;;  %s363_s19 = sand.u32 1, %s20315_s26  }
  0xbf   : > { %p150_p9 = scmp.ne.s32.totalorder %s20311_s25, %s24331_s4  ;;  %s19367_s3 = sshll.u32 %s20339_s9, 11 }
  0xc0   : > { %p24334_p5 = scmp.eq.s32.totalorder %s24332_s8, 0  ;;  %s18170_s12 = sshll.u32 %s363_s19, 7 }
  0xc1   : > { %s24336_s20 = sld [smem:[#allocation40_spill]]  ;;  %s365_s7 = scalar_lea.vmem [#allocation10], %s18170_s12 }
  0xc2   : > { %p20707_p13 = por %p150_p9, %p24334_p5  ;;  %s373_s14 = sshll.u32 %s365_s7, 4  ;;  %s20722_s14 = int_to_ptr.vmem [resolvable:$true] %s373_s14 }
  0xc3   : > { %p24337_p6 = scmp.lt.s32.totalorder %s20347_s11, 4  ;;  %s24339_s18 = sand.u32 1, %s20347_s11  }
  0xc4   : > { %s362_s16 = scalar_lea.sflag [#allocation11], %s24339_s18 }
  0xc5   : > { %p20718_p7 = pnand %p24337_p6, %p146_p12 }
  0xc7   : > { %s20714_s30 = scalar_lea.hbm %s24336_s20, %s19367_s3  ;;  %p20149_p2 = pneg %p20718_p7 }
  0xc8   : > { %s20147_s28 = scalar_lea.hbm %s20714_s30, 2048  ;;  %s20152_s13 = scalar_lea.hbm %s24336_s20, 4096 }
  0xc9   : > { %p20148_p0 = scmp.ne.s32.totalorder %s20714_s30, %s20147_s28  ;;  %p20153_p3 = scmp.lt.u32.totalorder %s20714_s30, %s24336_s20 }
  0xca   : > { %p20154_p8 = scmp.lt.u32.totalorder %s20152_s13, %s20147_s28  ;;  %p20156_p10 = scmp.lt.u32.totalorder %s20147_s28, %s20714_s30 }
  0xcb   : > { %p20150_p4 = pnand %p20149_p2, %p20148_p0 }
  0xcc   : > { %p20155_p1 = por %p20154_p8, %p20153_p3 }
  0xcd   : > { %p20151_p11 = pneg %p20150_p4 }
  0xce   : > { %p20157_p12 = por %p20156_p10, %p20155_p1 }
  0xd0   : > { %p20158_p9 = pnand %p20157_p12, %p20151_p11 }
  0xd2   : > { %20161 = shalt.err (!%p20158_p9)
}
  0xd3   : > { %s20162_s4 = scalar_lea.vmem %s20722_s14, 2048  ;;  %s20358_s8 = smov [#allocation10]  }
  0xd4   : > { %p20163_p5 = scmp.ne.s32.totalorder %s20722_s14, %s20162_s4  ;;  %s20167_s6 = sshll.u32 %s20358_s8, 4  ;;  %s20168_s6 = int_to_ptr.vmem [resolvable:$false] %s20167_s6 }
  0xd5   : > { %s20169_s19 = scalar_lea.vmem %s20168_s6, 4096  ;;  %p20170_p4 = scmp.lt.s32.totalorder %s20722_s14, %s20168_s6 }
  0xd6   : > { %p20165_p6 = pnand %p20163_p5, %p20149_p2  ;;  %p20171_p3 = scmp.lt.s32.totalorder %s20169_s19, %s20162_s4 }
  0xd8   : > { %p20166_p0 = pneg %p20165_p6  ;;  %p20172_p8 = por %p20171_p3, %p20170_p4 }
  0xda   : > { %p20173_p1 = pnand %p20172_p8, %p20166_p0 }
  0xdc   : > { %20176 = shalt.err (!%p20173_p1)
}
  0xdd   : > { %19547 = dma.hbm_to_vmem [thread:$0]  (!%p20718_p7), %s20714_s30, 2048, %s20722_s14, %s362_s16  }
  0xde   : > { %s24340_s3 = sld [smem:[#allocation32_spill]] }
  0xe4   : > { %p24341_p11 = scmp.ne.s32.totalorder %s24340_s3, 0 }
  0xe5   : > { %s24342_s12 = sld [smem:[#allocation27_spill]] (!%p24341_p11)  ;;  %s24343_s21 = sld [smem:[#allocation35_spill]] (!%p24341_p11) }
  0xe6   : > { %382 = sbr.rel (%p24341_p11) target bundleno = 2741 (0xab5), region = 44 }
  0xeb   : > { %s20754_s27 = sand.u32 (!%p24341_p11), 1, %s24342_s12   ;;  %p24344_p2 = scmp.ne.s32.totalorder (!%p24341_p11), %s24343_s21, 0 }
  0xec   : > { %s19475_s7 = smul.u32 (!%p24341_p11), 160, %s20754_s27  ;;  %s385_s18 = scalar_lea.sflag (!%p24341_p11), [#allocation5], %s20754_s27 }
  0xee   : > { %s20758_s28 = scalar_lea.vmem [#allocation4], %s19475_s7 }
  0xef   : > { %20278 = dma.done.wait (%p24344_p2), %s385_s18, 2560  }
  0xf0   : > { %20280 = vsyncadd (%p24344_p2), %s385_s18, 4294964736  ;;  %s24345_s23 = sld [smem:[#allocation31_spill]]  ;;  %s20766_s14 = sshll.u32 %s20754_s27, 6 }
  0xf1   : > { %s20769_s29 = scalar_lea.vmem [#allocation7], %s20766_s14 }
  0xf6   : > { %s393_s30 = sand.u32 1, %s24345_s23  }
  0xf7   : > { %s394_s16 = scalar_lea.sflag [#allocation8], %s393_s30 }
  0xf8   : > { %20282 = dma.done.wait (%p24344_p2), %s394_s16, 2048  }
  0xf9   : > { %20284 = vsyncadd (%p24344_p2), %s394_s16, 4294965248  ;;  %s413_s1 = sand.u32 1, %s20311_s25   ;;  %s20777_s17 = scalar_lea.vmem [#allocation9], %s20766_s14 }
  0xfa   : > { %s18176_s13 = sshll.u32 %s413_s1, 7  ;;  %s412_s15 = scalar_lea.sflag [#allocation11], %s393_s30 }
  0xfb   : > { %s20779_s4 = scalar_lea.vmem [#allocation10], %s18176_s13 }
  0xfc   : > { %20286 = dma.done.wait (%p20707_p13), %s412_s15, 2048  }
  0xfd   : > { %20288 = vsyncadd (%p20707_p13), %s412_s15, 4294965248  ;;  %p24346_p7 = scmp.eq.s32.totalorder %s24345_s23, 0 }
  0xff   : > { %20290 = dma.done.wait (%p24346_p7), [#allocation11], 2304   ;;  %p24347_p10 = pmov %p24346_p7 }
 0x100   : > { %p24348_p12 = pmov %p24346_p7 }
 0x101   : > { %20292 = vsyncadd (%p24347_p10), [#allocation11], 4294964992 }
 0x102   : > { %20294 = dma.done.wait (%p24348_p12), [#allocation14], 512   ;;  %p24349_p9 = pmov %p24346_p7 }
 0x103   : > { %v20359_v0 = vmov 0   ;;  %v499_v1 = vld [vmem:[%s20758_s28 + $0x20] sm:$0xff]  ;;  %v20799_v2 = vld [vmem:[%s20758_s28 + $0x28] sm:$0xff]  ;;  %v20805_v6 = vld [vmem:[%s20758_s28 + $0x30] sm:$0xff]  ;;  %s20360_s24 = smov 1   ;;  %vm611_vm0 = vcmask 1043456  }
 0x104   : > { %20296 = vsyncadd (%p24349_p9), [#allocation14], 4294966784  ;;  %1047 = vmatprep.mubr.bf16.mxu0 %v20359_v0  ;;  %1088 = vmatprep.mubr.bf16.mxu1 %v20359_v0  ;;  %v495_v3 = vld [vmem:[%s20758_s28] sm:$0xff]  ;;  %v19370_v4 = vpack.c.bf16 %v20799_v2, %v499_v1  ;;  %v496_v5 = vld [vmem:[%s20758_s28 + $0x8] sm:$0xff]  ;;  %v20815_v12 = vpack.c.bf16 %v20805_v6, %v20799_v2  ;;  %v19944_v29 = vpack.c.bf16 %v499_v1, %v499_v1  ;;  %vm962_vm1 = vcmask 64512   ;;  %s20361_s8 = smov 127  }
 0x105   : > { %19666 = vset.pattern.permute.xlu0 %v20359_v0  ;;  %19667 = vset.pattern.permute.xlu1 %v20359_v0  ;;  %v20808_v7 = vld [vmem:[%s20758_s28 + $0x38] sm:$0xff]  ;;  %v19368_v8 = vpack.c.bf16 %v496_v5, %v495_v3  ;;  %v497_v9 = vld [vmem:[%s20758_s28 + $0x10] sm:$0xff]  ;;  %v503_v11 = vld [vmem:[%s20758_s28 + $0x40] sm:$0xff]  ;;  %v19945_v37 = vpack.c.bf16 %v496_v5, %v496_v5  ;;  %v19947_v39 = vpack.c.bf16 %v20805_v6, %v20805_v6  ;;  %vm613_vm2 = vcmask 7168   ;;  %s23669_s6 = scalar_lea.vmem [#allocation15], %s20766_s14  ;;  %s23673_s19 = scalar_lea.vmem [#allocation16], %s20766_s14 }
 0x106   : > { %v498_v10 = vld [vmem:[%s20758_s28 + $0x18] sm:$0xff]  ;;  %585 = vrot.lane.b32.xlu1 %v19370_v4, %s20360_s24  ;;  %v19371_v13 = vpack.c.bf16 %v20808_v7, %v20805_v6  ;;  %v20821_v14 = vld [vmem:[%s20758_s28 + $0x48] sm:$0xff]  ;;  %v20824_v15 = vld [vmem:[%s20758_s28 + $0x50] sm:$0xff]  ;;  %v20829_v17 = vpack.c.bf16 %v503_v11, %v20808_v7  ;;  %v20831_v18 = vpack.c.bf16 %v497_v9, %v496_v5  ;;  %742 = vst [vmem:[#allocation3 + $0x58] sm:$0xff] %v20815_v12  ;;  %vm866_vm3 = vcmask 1039360   ;;  %s24362_s3 = sld [smem:[#allocation29_spill]] }
 0x107   : > { %v20826_v16 = vpack.c.bf16 %v499_v1, %v498_v10  ;;  %581 = vrot.lane.b32.xlu0 %v19368_v8, %s20360_s24  ;;  %v19369_v19 = vpack.c.bf16 %v498_v10, %v497_v9  ;;  %v20835_v20 = vld [vmem:[%s20758_s28 + $0x58] sm:$0xff]  ;;  %v20838_v21 = vld [vmem:[%s20758_s28 + $0x60] sm:$0xff]  ;;  %v20841_v22 = vld [vmem:[%s20758_s28 + $0x68] sm:$0xff]  ;;  %v20845_v23 = vpack.c.bf16 %v20824_v15, %v20821_v14  ;;  %v19943_v28 = vpack.c.bf16 %v497_v9, %v497_v9  ;;  %s24363_s12 = sld [smem:[#allocation30_spill]]  ;;  %s17926_s23 = sshll.u32 %s23669_s6, 4  ;;  %s24162_s23 = int_to_ptr.vmem [resolvable:$true] %s17926_s23 }
 0x108   : > { %v20849_v24 = vld [vmem:[%s20758_s28 + $0x80] sm:$0xff]  ;;  %v20852_v25 = vld [vmem:[%s20758_s28 + $0x70] sm:$0xff]  ;;  %v20855_v26 = vld [vmem:[%s20758_s28 + $0x78] sm:$0xff]  ;;  %v20859_v27 = vpack.c.bf16 %v20838_v21, %v20835_v20  ;;  %740 = vst [vmem:[#allocation3 + $0x48] sm:$0xff] %v20831_v18  ;;  %v19373_v34 = vpack.c.bf16 %v20835_v20, %v20824_v15  ;;  %v19372_v36 = vpack.c.bf16 %v20821_v14, %v503_v11  ;;  %18228 = vmatprep.subr.msk.bf16.mxu1 %vm611_vm0, %v19944_v29  ;;  %v968_v42 = vsel %vm611_vm0, %v19945_v37, 0  ;;  %s24364_s30 = sld [smem:[#allocation36_spill]] }
 0x109   : > { %741 = vst [vmem:[#allocation3 + $0x50] sm:$0xff] %v20826_v16  ;;  %743 = vst [vmem:[#allocation3 + $0x60] sm:$0xff] %v20829_v17  ;;  %v512_v30 = vld [vmem:[%s20758_s28 + $0x88] sm:$0xff]  ;;  %v20867_v31 = vpack.c.bf16 %v20849_v24, %v20855_v26  ;;  %v20870_v32 = vld [vmem:[%s20758_s28 + $0x90] sm:$0xff]  ;;  %v20874_v33 = vpack.c.bf16 %v20852_v25, %v20841_v22  ;;  %18226 = vmatprep.subr.msk.bf16.mxu0 %vm611_vm0, %v19943_v28  ;;  %v19946_v38 = vpack.c.bf16 %v498_v10, %v498_v10  ;;  %s17942_s14 = sshll.u32 %s23673_s19, 4  ;;  %s24365_s13 = sld [smem:[#allocation42_spill]]  ;;  %s24169_s14 = int_to_ptr.vmem [resolvable:$true] %s17942_s14 }
 0x10a   : > { %744 = vst [vmem:[#allocation3 + $0x68] sm:$0xff] %v20845_v23  ;;  %587 = vrot.lane.b32.xlu1 %v19371_v13, %s20360_s24  ;;  %v20881_v35 = vpack.c.bf16 %v20870_v32, %v512_v30  ;;  %745 = vst [vmem:[#allocation3 + $0x70] sm:$0xff] %v20859_v27  ;;  %v19948_v40 = vpack.c.bf16 %v503_v11, %v503_v11  ;;  %v19949_v41 = vpack.c.bf16 %v20799_v2, %v20799_v2  ;;  %v913_v46 = vld [vmem:[#allocation12 + $0x4] sm:$0xf]  ;;  %v767_v63 = vld [vmem:[%s20758_s28 + $0x98] sm:$0xff] }
 0x10b   : > { %583 = vrot.lane.b32.xlu0 %v19369_v19, %s20360_s24  ;;  %746 = vst [vmem:[#allocation3 + $0x78] sm:$0xff] %v20874_v33  ;;  %747 = vst [vmem:[#allocation3 + $0x80] sm:$0xff] %v20867_v31  ;;  %v974_v43 = vsel %vm611_vm0, %v19946_v38, 0  ;;  %v19950_v44 = vpack.c.bf16 %v20808_v7, %v20808_v7  ;;  %v19375_v45 = vpack.c.bf16 %v20855_v26, %v20852_v25  ;;  %1016 = vmatpush1.bf16.msra.mxu0 %v968_v42 }
 0x10c   : > { %748 = vst [vmem:[#allocation3 + $0x88] sm:$0xff] %v20881_v35  ;;  %v19374_v47 = vpack.c.bf16 %v20841_v22, %v20838_v21  ;;  %1057 = vmatpush1.bf16.msra.mxu1 %v974_v43  ;;  %18230 = vmatprep.subr.msk.bf16.mxu0 %vm611_vm0, %v19947_v39  ;;  %v980_v48 = vsel %vm611_vm0, %v19949_v41, 0  ;;  %v19951_v50 = vpack.c.bf16 %v20824_v15, %v20824_v15  ;;  %s19359_s21 = sshll.u32 %s24362_s3, 3  ;;  %s20177_s3 = scalar_lea.vmem %s24162_s23, 1024 }
 0x10d   : > { %18232 = vmatprep.subr.msk.bf16.mxu1 %vm611_vm0, %v19948_v40  ;;  %v986_v49 = vsel %vm611_vm0, %v19950_v44, 0  ;;  %v19952_v51 = vpack.c.bf16 %v20838_v21, %v20838_v21  ;;  %v19376_v52 = vpack.c.bf16 %v512_v30, %v20849_v24  ;;  %v19953_v53 = vpack.c.bf16 %v20821_v14, %v20821_v14  ;;  %s19360_s7 = sshll.u32 %s24363_s12, 4  ;;  %p20178_p13 = scmp.ne.s32.totalorder %s24162_s23, %s20177_s3 }
 0x10e   : > { %591 = vrot.lane.b32.xlu1 %v19373_v34, %s20360_s24  ;;  %18227 = vmatmul.mubr.msk.bf16.vlgmr.msra.gmra.mrb[0].mxu0 %vm962_vm1, %v913_v46  ;;  %v19954_v54 = vpack.c.bf16 %v20835_v20, %v20835_v20  ;;  %v19955_v57 = vpack.c.bf16 %v20852_v25, %v20852_v25  ;;  %v19956_v58 = vpack.c.bf16 %v20849_v24, %v20849_v24  ;;  %s17922_s18 = sadd.s32 %s19360_s7, %s19359_s21  ;;  %p24367_p5 = scmp.ne.s32.totalorder %s24364_s30, 0 }
 0x10f   : > { %589 = vrot.lane.b32.xlu0 %v19372_v36, %s20360_s24  ;;  %18229 = vmatmul.mubr.msk.bf16.vlgmr.msra.gmra.mrb[0].mxu1 %vm962_vm1, %v913_v46  ;;  %v992_v55 = vsel %vm611_vm0, %v19953_v53, 0  ;;  %v19957_v59 = vpack.c.bf16 %v20841_v22, %v20841_v22  ;;  %v19958_v60 = vpack.c.bf16 %v20855_v26, %v20855_v26  ;;  %v19396_v1 = vpack.c.bf16 %v767_v63, %v767_v63  ;;  %v20997_v36 = vld [vmem:[#allocation12] sm:$0xf]  ;;  %s19361_s28 = sshll.u32 %s17922_s18, 7  ;;  %s20370_s12 = smov [#allocation15]  }
 0x110   : > { %1098 = vmatpush1.bf16.msra.mxu0 %v980_v48  ;;  %1139 = vmatpush1.bf16.msra.mxu1 %v986_v49  ;;  %v998_v56 = vsel %vm611_vm0, %v19954_v54, 0  ;;  %v19377_v2 = vpack.c.bf16 %v20870_v32, %v20870_v32  ;;  %p20179_p6 = pnand %p20178_p13, %p24367_p5  ;;  %s20181_s21 = sshll.u32 %s20370_s12, 4  ;;  %s20182_s21 = int_to_ptr.vmem [resolvable:$false] %s20181_s21 }
 0x111   : > { %1129 = vmatprep.mubr.bf16.mxu0 %v20359_v0  ;;  %1170 = vmatprep.mubr.bf16.mxu1 %v20359_v0  ;;  %v1004_v61 = vsel %vm611_vm0, %v19957_v59, 0  ;;  %v1010_v62 = vsel %vm611_vm0, %v19958_v60, 0  ;;  %s20183_s7 = scalar_lea.vmem %s20182_s21, 2048  ;;  %p20184_p4 = scmp.lt.s32.totalorder %s24162_s23, %s20182_s21 }
 0x112   : > { %595 = vrot.lane.b32.xlu1 %v19375_v45, %s20360_s24  ;;  %18234 = vmatprep.subr.msk.bf16.mxu0 %vm611_vm0, %v19951_v50  ;;  %p20180_p0 = pneg %p20179_p6  ;;  %p20185_p3 = scmp.lt.s32.totalorder %s20183_s7, %s20177_s3 }
 0x113   : > { %593 = vrot.lane.b32.xlu0 %v19374_v47, %s20360_s24  ;;  %18236 = vmatprep.subr.msk.bf16.mxu1 %vm611_vm0, %v19952_v51 }
 0x114   : > { %p20186_p8 = por %p20185_p3, %p20184_p4 }
 0x116   : > { %835 = vrot.lane.b32.xlu1 %v20831_v18, %s20361_s8  ;;  %18231 = vmatmul.mubr.msk.bf16.vlgmr.msra.gmra.mrb[4].mxu0 %vm962_vm1, %v913_v46  ;;  %p20187_p1 = pnand %p20186_p8, %p20180_p0 }
 0x117   : > { %597 = vrot.lane.b32.xlu0 %v19376_v52, %s20360_s24  ;;  %18233 = vmatmul.mubr.msk.bf16.vlgmr.msra.gmra.mrb[4].mxu1 %vm962_vm1, %v913_v46 }
 0x118   : > { %1180 = vmatpush1.bf16.msra.mxu0 %v992_v55  ;;  %1221 = vmatpush1.bf16.msra.mxu1 %v998_v56 }
 0x119   : > { %1211 = vmatprep.mubr.bf16.mxu0 %v20359_v0  ;;  %1252 = vmatprep.mubr.bf16.mxu1 %v20359_v0 }
 0x11a   : > { %839 = vrot.lane.b32.xlu1 %v20815_v12, %s20361_s8  ;;  %18238 = vmatprep.subr.msk.bf16.mxu0 %vm611_vm0, %v19955_v57 }
 0x11b   : > { %837 = vrot.lane.b32.xlu0 %v20826_v16, %s20361_s8  ;;  %18240 = vmatprep.subr.msk.bf16.mxu1 %vm611_vm0, %v19956_v58 }
 0x11e   : > { %843 = vrot.lane.b32.xlu1 %v20845_v23, %s20361_s8  ;;  %18235 = vmatmul.mubr.msk.bf16.vlgmr.msra.gmra.mrb[8].mxu0 %vm962_vm1, %v913_v46 }
 0x11f   : > { %841 = vrot.lane.b32.xlu0 %v20829_v17, %s20361_s8  ;;  %18237 = vmatmul.mubr.msk.bf16.vlgmr.msra.gmra.mrb[8].mxu1 %vm962_vm1, %v913_v46 }
 0x120   : > { %1262 = vmatpush1.bf16.msra.mxu0 %v1004_v61  ;;  %1303 = vmatpush1.bf16.msra.mxu1 %v1010_v62 }
 0x121   : > { %1293 = vmatprep.mubr.bf16.mxu0 %v20359_v0  ;;  %1334 = vmatprep.mubr.bf16.mxu1 %v20359_v0 }
 0x122   : > { %847 = vrot.lane.b32.xlu1 %v20874_v33, %s20361_s8 }
 0x123   : > { %845 = vrot.lane.b32.xlu0 %v20859_v27, %s20361_s8 }
 0x126   : > { %851 = vrot.lane.b32.xlu1 %v20881_v35, %s20361_s8  ;;  %18239 = vmatmul.mubr.msk.bf16.vlgmr.msra.gmra.mrb[12].mxu0 %vm962_vm1, %v913_v46 }
 0x127   : > { %849 = vrot.lane.b32.xlu0 %v20867_v31, %s20361_s8  ;;  %18241 = vmatmul.mubr.msk.bf16.vlgmr.msra.gmra.mrb[12].mxu1 %vm962_vm1, %v913_v46 }
 0x128   : > { %1466 = vmatprep.mubr.bf16.mxu0 %v20359_v0  ;;  %1507 = vmatprep.mubr.bf16.mxu1 %v20359_v0 }
 0x12a   : > { %853 = vrot.lane.b32.xlu1 %v19396_v1, %s20361_s8 }
 0x12b   : > { %599 = vrot.lane.b32.xlu0 %v19377_v2, %s20360_s24 }
 0x178   : > { %v586_v3 = vpop.permute.xlu1 %585 }
 0x179   : > { %v582_v4 = vpop.permute.xlu0 %581  ;;  %v603_v5 = vrot.slane %v586_v3, 4 }
 0x17a   : > { %v601_v9 = vrot.slane %v582_v4, 4 }
 0x17c   : > { %v588_v6 = vpop.permute.xlu1 %587 }
 0x17d   : > { %v604_v7 = vrot.slane %v588_v6, 4  ;;  %v584_v8 = vpop.permute.xlu0 %583 }
 0x17e   : > { %v602_v10 = vrot.slane %v584_v8, 4 }
 0x17f   : > { %v617_v11 = vsel %vm611_vm0, %v603_v5, %v604_v7 }
 0x180   : > { %v618_v12 = vsel %vm613_vm2, %v586_v3, %v617_v11  ;;  %v612_v13 = vsel %vm611_vm0, %v601_v9, %v602_v10  ;;  %v615_v14 = vsel %vm611_vm0, %v602_v10, %v603_v5  ;;  %v592_v15 = vpop.permute.xlu1 %591 }
 0x181   : > { %642 = vst [vmem:[#allocation3 + $0x10] sm:$0xff] %v618_v12  ;;  %v614_v16 = vsel %vm613_vm2, %v582_v4, %v612_v13  ;;  %v616_v17 = vsel %vm613_vm2, %v584_v8, %v615_v14  ;;  %v590_v18 = vpop.permute.xlu0 %589  ;;  %v606_v19 = vrot.slane %v592_v15, 4  ;;  %v20984_v25 = vcombine.high %v618_v12, %v618_v12 }
 0x182   : > { %640 = vst [vmem:[#allocation3] sm:$0xff] %v614_v16  ;;  %641 = vst [vmem:[#allocation3 + $0x8] sm:$0xff] %v616_v17  ;;  %v605_v20 = vrot.slane %v590_v18, 4  ;;  %v18243_v21 = vcombine.high %v614_v16, %v614_v16  ;;  %v20982_v22 = vcombine.high %v616_v17, %v616_v17  ;;  %v18242_v23 = vcombine.low %v614_v16, %v614_v16 }
 0x183   : > { %v18244_v24 = vcombine.low %v616_v17, %v616_v17  ;;  %v18246_v30 = vcombine.low %v618_v12, %v618_v12 }
 0x184   : > { %v619_v26 = vsel %vm611_vm0, %v604_v7, %v605_v20  ;;  %v621_v27 = vsel %vm611_vm0, %v605_v20, %v606_v19  ;;  %v596_v28 = vpop.permute.xlu1 %595  ;;  %18258 = vmatprep.subr.msk.bf16.mxu0 %vm611_vm0, %v18243_v21  ;;  %18260 = vmatprep.subr.msk.bf16.mxu1 %vm611_vm0, %v20982_v22  ;;  %v1387_v29 = vsel %vm611_vm0, %v18242_v23, 0 }
 0x185   : > { %v620_v31 = vsel %vm613_vm2, %v588_v6, %v619_v26  ;;  %v622_v32 = vsel %vm613_vm2, %v590_v18, %v621_v27  ;;  %v594_v33 = vpop.permute.xlu0 %593  ;;  %v608_v34 = vrot.slane %v596_v28, 4  ;;  %1435 = vmatpush1.bf16.msra.mxu0 %v1387_v29  ;;  %v20995_v35 = vsel %vm611_vm0, %v18244_v24, 0 }
 0x186   : > { %643 = vst [vmem:[#allocation3 + $0x18] sm:$0xff] %v620_v31  ;;  %644 = vst [vmem:[#allocation3 + $0x20] sm:$0xff] %v622_v32  ;;  %v607_v37 = vrot.slane %v594_v33, 4  ;;  %1476 = vmatpush1.bf16.msra.mxu1 %v20995_v35  ;;  %18262 = vmatprep.subr.msk.bf16.mxu0 %vm611_vm0, %v20984_v25  ;;  %v21002_v38 = vcombine.high %v620_v31, %v620_v31  ;;  %v18248_v39 = vcombine.low %v620_v31, %v620_v31 }
 0x187   : > { %v21004_v40 = vcombine.high %v622_v32, %v622_v32  ;;  %v21011_v43 = vsel %vm611_vm0, %v18246_v30, 0  ;;  %v18250_v55 = vcombine.low %v622_v32, %v622_v32 }
 0x188   : > { %v623_v41 = vsel %vm611_vm0, %v606_v19, %v607_v37  ;;  %v625_v42 = vsel %vm611_vm0, %v607_v37, %v608_v34  ;;  %18259 = vmatmul.mubr.msk.bf16.vlgmr.msra.gmra.mrb[16].mxu0 %vm962_vm1, %v20997_v36  ;;  %18264 = vmatprep.subr.msk.bf16.mxu1 %vm611_vm0, %v21002_v38  ;;  %v836_v44 = vpop.permute.xlu1 %835  ;;  %v21016_v45 = vsel %vm611_vm0, %v18248_v39, 0 }
 0x189   : > { %v624_v46 = vsel %vm613_vm2, %v592_v15, %v623_v41  ;;  %v21019_v47 = vpop.permute.xlu0 %597  ;;  %v626_v48 = vsel %vm613_vm2, %v594_v33, %v625_v42  ;;  %18261 = vmatmul.mubr.msk.bf16.vlgmr.msra.gmra.mrb[16].mxu1 %vm962_vm1, %v20997_v36  ;;  %1517 = vmatpush1.bf16.msra.mxu0 %v21011_v43  ;;  %v855_v53 = vrot.slane %v836_v44, 4  ;;  %v21049_v1 = vsel %vm611_vm0, %v18250_v55, 0 }
 0x18a   : > { %645 = vst [vmem:[#allocation3 + $0x28] sm:$0xff] %v624_v46  ;;  %v609_v49 = vrot.slane %v21019_v47, 4  ;;  %646 = vst [vmem:[#allocation3 + $0x30] sm:$0xff] %v626_v48  ;;  %1558 = vmatpush1.bf16.msra.mxu1 %v21016_v45  ;;  %18266 = vmatprep.subr.msk.bf16.mxu0 %vm611_vm0, %v21004_v40  ;;  %v21029_v50 = vcombine.high %v624_v46, %v624_v46  ;;  %v18252_v51 = vcombine.low %v624_v46, %v624_v46 }
 0x18b   : > { %1548 = vmatprep.mubr.bf16.mxu0 %v20359_v0  ;;  %1589 = vmatprep.mubr.bf16.mxu1 %v20359_v0  ;;  %v21039_v60 = vcombine.high %v626_v48, %v626_v48  ;;  %v18254_v12 = vcombine.low %v626_v48, %v626_v48 }
 0x18c   : > { %v627_v52 = vsel %vm611_vm0, %v608_v34, %v609_v49  ;;  %v840_v54 = vpop.permute.xlu1 %839  ;;  %18268 = vmatprep.subr.msk.bf16.mxu1 %vm611_vm0, %v21029_v50  ;;  %v21042_v61 = vsel %vm611_vm0, %v18252_v51, 0 }
 0x18d   : > { %v628_v56 = vsel %vm613_vm2, %v596_v28, %v627_v52  ;;  %v838_v57 = vpop.permute.xlu0 %837  ;;  %v857_v58 = vrot.slane %v840_v54, 4  ;;  %v21084_v23 = vsel %vm611_vm0, %v18254_v12, 0 }
 0x18e   : > { %647 = vst [vmem:[#allocation3 + $0x38] sm:$0xff] %v628_v56  ;;  %v856_v59 = vrot.slane %v838_v57, 4  ;;  %v21051_v3 = vcombine.high %v628_v56, %v628_v56  ;;  %v18256_v9 = vcombine.low %v628_v56, %v628_v56 }
 0x190   : > { %v865_v62 = vsel %vm611_vm0, %v855_v53, %v856_v59  ;;  %v868_v63 = vsel %vm611_vm0, %v856_v59, %v857_v58  ;;  %18263 = vmatmul.mubr.msk.bf16.vlgmr.msra.gmra.mrb[20].mxu0 %vm962_vm1, %v20997_v36  ;;  %v844_v2 = vpop.permute.xlu1 %843  ;;  %v21078_v20 = vsel %vm611_vm0, %v18256_v9, 0 }
 0x191   : > { %v842_v4 = vpop.permute.xlu0 %841  ;;  %v21054_v5 = vsel %vm866_vm3, %v836_v44, %v865_v62  ;;  %v869_v6 = vsel %vm866_vm3, %v838_v57, %v868_v63  ;;  %18265 = vmatmul.mubr.msk.bf16.vlgmr.msra.gmra.mrb[20].mxu1 %vm962_vm1, %v20997_v36  ;;  %1599 = vmatpush1.bf16.msra.mxu0 %v21049_v1  ;;  %v859_v7 = vrot.slane %v844_v2, 4 }
 0x192   : > { %v858_v8 = vrot.slane %v842_v4, 4  ;;  %894 = vst [vmem:[#allocation3 + $0x90] sm:$0xff] %v21054_v5  ;;  %895 = vst [vmem:[#allocation3 + $0x98] sm:$0xff] %v869_v6  ;;  %18270 = vmatprep.subr.msk.bf16.mxu0 %vm611_vm0, %v21039_v60  ;;  %1640 = vmatpush1.bf16.msra.mxu1 %v21042_v61  ;;  %v18275_v19 = vcombine.high %v21054_v5, %v21054_v5  ;;  %v21087_v26 = vcombine.high %v869_v6, %v869_v6 }
 0x193   : > { %1630 = vmatprep.mubr.bf16.mxu0 %v20359_v0  ;;  %1671 = vmatprep.mubr.bf16.mxu1 %v20359_v0  ;;  %v18276_v33 = vcombine.low %v869_v6, %v869_v6  ;;  %v18274_v37 = vcombine.low %v21054_v5, %v21054_v5 }
 0x194   : > { %v870_v10 = vsel %vm611_vm0, %v857_v58, %v858_v8  ;;  %v872_v11 = vsel %vm611_vm0, %v858_v8, %v859_v7  ;;  %18272 = vmatprep.subr.msk.bf16.mxu1 %vm611_vm0, %v21051_v3  ;;  %v848_v13 = vpop.permute.xlu1 %847 }
 0x195   : > { %v846_v14 = vpop.permute.xlu0 %845  ;;  %v21071_v15 = vsel %vm866_vm3, %v840_v54, %v870_v10  ;;  %v873_v16 = vsel %vm866_vm3, %v842_v4, %v872_v11  ;;  %v861_v17 = vrot.slane %v848_v13, 4  ;;  %v21114_v53 = vsel %vm611_vm0, %v18276_v33, 0  ;;  %v2208_v33 = vld [vmem:[#allocation12 + $0xc] sm:$0xf] }
 0x196   : > { %v860_v18 = vrot.slane %v846_v14, 4  ;;  %896 = vst [vmem:[#allocation3 + $0xa0] sm:$0xff] %v21071_v15  ;;  %897 = vst [vmem:[#allocation3 + $0xa8] sm:$0xff] %v873_v16  ;;  %v21111_v52 = vcombine.high %v21071_v15, %v21071_v15  ;;  %v1816_v56 = vsel %vm611_vm0, %v18274_v37, 0  ;;  %v21123_v57 = vcombine.high %v873_v16, %v873_v16  ;;  %v2213_v37 = vld [vmem:[#allocation3 + $0x24] sm:$0xff] }
 0x198   : > { %v874_v21 = vsel %vm611_vm0, %v859_v7, %v860_v18  ;;  %18267 = vmatmul.mubr.msk.bf16.vlgmr.msra.gmra.mrb[24].mxu0 %vm962_vm1, %v20997_v36  ;;  %v876_v24 = vsel %vm611_vm0, %v860_v18, %v861_v17  ;;  %v852_v27 = vpop.permute.xlu1 %851 }
 0x199   : > { %v850_v28 = vpop.permute.xlu0 %849  ;;  %v21090_v29 = vsel %vm866_vm3, %v844_v2, %v874_v21  ;;  %18269 = vmatmul.mubr.msk.bf16.vlgmr.msra.gmra.mrb[24].mxu1 %vm962_vm1, %v20997_v36  ;;  %1681 = vmatpush1.bf16.msra.mxu0 %v21084_v23  ;;  %v877_v30 = vsel %vm866_vm3, %v846_v14, %v876_v24  ;;  %v863_v31 = vrot.slane %v852_v27, 4  ;;  %v2210_v14 = vld [vmem:[#allocation3 + $0xc] sm:$0xff]  ;;  %v2211_v24 = vld [vmem:[#allocation3 + $0x14] sm:$0xff] }
 0x19a   : > { %v862_v32 = vrot.slane %v850_v28, 4  ;;  %898 = vst [vmem:[#allocation3 + $0xb0] sm:$0xff] %v21090_v29  ;;  %899 = vst [vmem:[#allocation3 + $0xb8] sm:$0xff] %v877_v30  ;;  %1722 = vmatpush1.bf16.msra.mxu1 %v21078_v20  ;;  %18290 = vmatprep.subr.msk.bf16.mxu0 %vm611_vm0, %v18275_v19  ;;  %v21147_v62 = vcombine.high %v21090_v29, %v21090_v29  ;;  %v21156_v4 = vcombine.high %v877_v30, %v877_v30 }
 0x19b   : > { %1712 = vmatprep.mubr.bf16.mxu0 %v20359_v0  ;;  %1753 = vmatprep.mubr.bf16.mxu1 %v20359_v0  ;;  %v18284_v5 = vcombine.low %v877_v30, %v877_v30  ;;  %v18282_v6 = vcombine.low %v21090_v29, %v21090_v29  ;;  %v18309_v18 = vcombine.high %v2210_v14, %v2210_v14 }
 0x19c   : > { %v878_v34 = vsel %vm611_vm0, %v861_v17, %v862_v32  ;;  %18292 = vmatprep.subr.msk.bf16.mxu1 %vm611_vm0, %v21087_v26  ;;  %v880_v39 = vsel %vm611_vm0, %v862_v32, %v863_v31  ;;  %v854_v41 = vpop.permute.xlu1 %853  ;;  %v18308_v21 = vcombine.low %v2210_v14, %v2210_v14  ;;  %v18311_v29 = vcombine.high %v2211_v24, %v2211_v24 }
 0x19d   : > { %v600_v42 = vpop.permute.xlu0 %599  ;;  %v879_v44 = vsel %vm866_vm3, %v848_v13, %v878_v34  ;;  %v881_v46 = vsel %vm866_vm3, %v850_v28, %v880_v39  ;;  %v864_v48 = vrot.slane %v854_v41, 4  ;;  %v21172_v8 = vsel %vm611_vm0, %v18284_v5, 0  ;;  %v2209_v13 = vld [vmem:[#allocation3 + $0x4] sm:$0xff]  ;;  %v2214_v39 = vld [vmem:[#allocation3 + $0x2c] sm:$0xff] }
 0x19e   : > { %v610_v51 = vrot.slane %v600_v42, 4  ;;  %900 = vst [vmem:[#allocation3 + $0xc0] sm:$0xff] %v879_v44  ;;  %901 = vst [vmem:[#allocation3 + $0xc8] sm:$0xff] %v881_v46  ;;  %v21169_v7 = vcombine.high %v879_v44, %v879_v44  ;;  %v21176_v9 = vsel %vm611_vm0, %v18282_v6, 0  ;;  %v21178_v10 = vcombine.high %v881_v46, %v881_v46  ;;  %v2654_v6 = vld [vmem:[#allocation3 + $0x4c] sm:$0xff] }
 0x19f   : > { %v882_v54 = vsel %vm611_vm0, %v863_v31, %v864_v48  ;;  %v18288_v11 = vcombine.low %v881_v46, %v881_v46  ;;  %v18286_v12 = vcombine.low %v879_v44, %v879_v44  ;;  %v18307_v17 = vcombine.high %v2209_v13, %v2209_v13 }
 0x1a0   : > { %v629_v55 = vsel %vm611_vm0, %v609_v49, %v610_v51  ;;  %18271 = vmatmul.mubr.msk.bf16.vlgmr.msra.gmra.mrb[28].mxu0 %vm962_vm1, %v20997_v36  ;;  %v21126_v58 = vsel %vm866_vm3, %v852_v27, %v882_v54  ;;  %v18280_v49 = vcombine.low %v873_v16, %v873_v16  ;;  %v18306_v19 = vcombine.low %v2209_v13, %v2209_v13  ;;  %v2212_v27 = vld [vmem:[#allocation3 + $0x1c] sm:$0xff]  ;;  %v2215_v54 = vld [vmem:[#allocation3 + $0x34] sm:$0xff] }
 0x1a1   : > { %v21130_v59 = vsel %vm613_vm2, %v21019_v47, %v629_v55  ;;  %18273 = vmatmul.mubr.msk.bf16.vlgmr.msra.gmra.mrb[28].mxu1 %vm962_vm1, %v20997_v36  ;;  %1864 = vmatpush1.bf16.msra.mxu0 %v1816_v56  ;;  %902 = vst [vmem:[#allocation3 + $0xd0] sm:$0xff] %v21126_v58  ;;  %v18278_v47 = vcombine.low %v21071_v15, %v21071_v15  ;;  %v1763_v36 = vld [vmem:[#allocation12 + $0x8] sm:$0xf]  ;;  %v21190_v15 = vsel %vm611_vm0, %v18288_v11, 0  ;;  %v21194_v16 = vsel %vm611_vm0, %v18286_v12, 0  ;;  %v2655_v12 = vld [vmem:[#allocation3 + $0x54] sm:$0xff] }
 0x1a2   : > { %648 = vst [vmem:[#allocation3 + $0x40] sm:$0xff] %v21130_v59  ;;  %18294 = vmatprep.subr.msk.bf16.mxu0 %vm611_vm0, %v21111_v52  ;;  %1905 = vmatpush1.bf16.msra.mxu1 %v21114_v53  ;;  %v21150_v63 = vsel %vm611_vm0, %v18280_v49, 0  ;;  %v2261_v28 = vsel %vm611_vm0, %v18306_v19, 0  ;;  %v2267_v30 = vsel %vm611_vm0, %v18308_v21, 0  ;;  %v18313_v31 = vcombine.high %v2212_v27, %v2212_v27 }
 0x1a3   : > { %1895 = vmatprep.mubr.bf16.mxu0 %v20359_v0  ;;  %1936 = vmatprep.mubr.bf16.mxu1 %v20359_v0  ;;  %v21154_v2 = vsel %vm611_vm0, %v18278_v47, 0  ;;  %v18310_v32 = vcombine.low %v2211_v24, %v2211_v24  ;;  %v18312_v34 = vcombine.low %v2212_v27, %v2212_v27  ;;  %v18315_v42 = vcombine.high %v2213_v37, %v2213_v37  ;;  %v2656_v24 = vld [vmem:[#allocation3 + $0x5c] sm:$0xff]  ;;  %v2657_v27 = vld [vmem:[#allocation3 + $0x64] sm:$0xff] }
 0x1a4   : > { %18296 = vmatprep.subr.msk.bf16.mxu1 %vm611_vm0, %v21123_v57  ;;  %v18317_v46 = vcombine.high %v2214_v39, %v2214_v39  ;;  %v18314_v48 = vcombine.low %v2213_v37, %v2213_v37  ;;  %v18316_v51 = vcombine.low %v2214_v39, %v2214_v39  ;;  %v18319_v49 = vcombine.high %v2215_v54, %v2215_v54  ;;  %v2658_v37 = vld [vmem:[#allocation3 + $0x6c] sm:$0xff] }
 0x1a5   : > { %v2273_v41 = vsel %vm611_vm0, %v18310_v32, 0  ;;  %v2279_v44 = vsel %vm611_vm0, %v18312_v34, 0  ;;  %v18318_v5 = vcombine.low %v2215_v54, %v2215_v54  ;;  %v18339_v13 = vcombine.high %v2654_v6, %v2654_v6 }
 0x1a6   : > { %v2285_v56 = vsel %vm611_vm0, %v18314_v48, 0  ;;  %v2291_v47 = vsel %vm611_vm0, %v18316_v51, 0  ;;  %v18338_v19 = vcombine.low %v2654_v6, %v2654_v6  ;;  %v18340_v21 = vcombine.low %v2655_v12, %v2655_v12 }
 0x1a7   : > { %v2297_v14 = vsel %vm611_vm0, %v18318_v5, 0  ;;  %v18342_v32 = vcombine.low %v2656_v24, %v2656_v24  ;;  %v18344_v34 = vcombine.low %v2657_v27, %v2657_v27  ;;  %v18346_v5 = vcombine.low %v2658_v37, %v2658_v37 }
 0x1a8   : > { %18291 = vmatmul.mubr.msk.bf16.vlgmr.msra.gmra.mrb[32].mxu0 %vm962_vm1, %v1763_v36 }
 0x1a9   : > { %18293 = vmatmul.mubr.msk.bf16.vlgmr.msra.gmra.mrb[32].mxu1 %vm962_vm1, %v1763_v36  ;;  %1946 = vmatpush1.bf16.msra.mxu0 %v21154_v2  ;;  %v2216_v55 = vld [vmem:[#allocation3 + $0x3c] sm:$0xff]  ;;  %v2724_v54 = vsel %vm611_vm0, %v18344_v34, 0 }
 0x1aa   : > { %18298 = vmatprep.subr.msk.bf16.mxu0 %vm611_vm0, %v21147_v62  ;;  %1987 = vmatpush1.bf16.msra.mxu1 %v21150_v63  ;;  %v18320_v11 = vcombine.low %v2216_v55, %v2216_v55 }
 0x1ab   : > { %1977 = vmatprep.mubr.bf16.mxu0 %v20359_v0  ;;  %2018 = vmatprep.mubr.bf16.mxu1 %v20359_v0 }
 0x1ac   : > { %18300 = vmatprep.subr.msk.bf16.mxu1 %vm611_vm0, %v21156_v4 }
 0x1b0   : > { %18295 = vmatmul.mubr.msk.bf16.vlgmr.msra.gmra.mrb[36].mxu0 %vm962_vm1, %v1763_v36 }
 0x1b1   : > { %18297 = vmatmul.mubr.msk.bf16.vlgmr.msra.gmra.mrb[36].mxu1 %vm962_vm1, %v1763_v36  ;;  %2028 = vmatpush1.bf16.msra.mxu0 %v21176_v9 }
 0x1b2   : > { %18302 = vmatprep.subr.msk.bf16.mxu0 %vm611_vm0, %v21169_v7  ;;  %2069 = vmatpush1.bf16.msra.mxu1 %v21172_v8 }
 0x1b3   : > { %2059 = vmatprep.mubr.bf16.mxu0 %v20359_v0  ;;  %2100 = vmatprep.mubr.bf16.mxu1 %v20359_v0 }
 0x1b4   : > { %18304 = vmatprep.subr.msk.bf16.mxu1 %vm611_vm0, %v21178_v10 }
 0x1b8   : > { %18299 = vmatmul.mubr.msk.bf16.vlgmr.msra.gmra.mrb[40].mxu0 %vm962_vm1, %v1763_v36 }
 0x1b9   : > { %18301 = vmatmul.mubr.msk.bf16.vlgmr.msra.gmra.mrb[40].mxu1 %vm962_vm1, %v1763_v36  ;;  %2110 = vmatpush1.bf16.msra.mxu0 %v21194_v16 }
 0x1ba   : > { %2151 = vmatpush1.bf16.msra.mxu1 %v21190_v15  ;;  %18322 = vmatprep.subr.msk.bf16.mxu0 %vm611_vm0, %v18307_v17  ;;  %v18341_v17 = vcombine.high %v2655_v12, %v2655_v12 }
 0x1bb   : > { %18324 = vmatprep.subr.msk.bf16.mxu1 %vm611_vm0, %v18309_v18  ;;  %2141 = vmatprep.mubr.bf16.mxu0 %v20359_v0  ;;  %v2303_v18 = vsel %vm611_vm0, %v18320_v11, 0  ;;  %v2660_v11 = vld [vmem:[#allocation3 + $0x7c] sm:$0xff] }
 0x1bc   : > { %2182 = vmatprep.mubr.bf16.mxu1 %v20359_v0 }
 0x1c0   : > { %18303 = vmatmul.mubr.msk.bf16.vlgmr.msra.gmra.mrb[44].mxu0 %vm962_vm1, %v1763_v36 }
 0x1c1   : > { %18305 = vmatmul.mubr.msk.bf16.vlgmr.msra.gmra.mrb[44].mxu1 %vm962_vm1, %v1763_v36  ;;  %2309 = vmatpush1.bf16.msra.mxu0 %v2261_v28  ;;  %v18321_v36 = vcombine.high %v2216_v55, %v2216_v55  ;;  %v2706_v28 = vsel %vm611_vm0, %v18338_v19, 0  ;;  %v18347_v55 = vcombine.high %v2658_v37, %v2658_v37 }
 0x1c2   : > { %2350 = vmatpush1.bf16.msra.mxu1 %v2267_v30  ;;  %18326 = vmatprep.subr.msk.bf16.mxu0 %vm611_vm0, %v18311_v29  ;;  %v2712_v29 = vsel %vm611_vm0, %v18340_v21, 0  ;;  %v18343_v30 = vcombine.high %v2656_v24, %v2656_v24 }
 0x1c3   : > { %18328 = vmatprep.subr.msk.bf16.mxu1 %vm611_vm0, %v18313_v31  ;;  %2340 = vmatprep.mubr.bf16.mxu0 %v20359_v0  ;;  %v18345_v31 = vcombine.high %v2657_v27, %v2657_v27  ;;  %v18351_v27 = vcombine.high %v2660_v11, %v2660_v11 }
 0x1c4   : > { %2381 = vmatprep.mubr.bf16.mxu1 %v20359_v0 }
 0x1c8   : > { %18323 = vmatmul.mubr.msk.bf16.vlgmr.msra.gmra.mrb[48].mxu0 %vm962_vm1, %v2208_v33 }
 0x1c9   : > { %18325 = vmatmul.mubr.msk.bf16.vlgmr.msra.gmra.mrb[48].mxu1 %vm962_vm1, %v2208_v33  ;;  %2391 = vmatpush1.bf16.msra.mxu0 %v2273_v41  ;;  %v21245_v41 = vld [vmem:[#allocation12 + $0x10] sm:$0xf] }
 0x1ca   : > { %2432 = vmatpush1.bf16.msra.mxu1 %v2279_v44  ;;  %18330 = vmatprep.subr.msk.bf16.mxu0 %vm611_vm0, %v18315_v42  ;;  %v2659_v42 = vld [vmem:[#allocation3 + $0x74] sm:$0xff] }
 0x1cb   : > { %18332 = vmatprep.subr.msk.bf16.mxu1 %vm611_vm0, %v18317_v46  ;;  %2422 = vmatprep.mubr.bf16.mxu0 %v20359_v0  ;;  %v2718_v46 = vsel %vm611_vm0, %v18342_v32, 0  ;;  %v18348_v6 = vcombine.low %v2659_v42, %v2659_v42  ;;  %v18350_v32 = vcombine.low %v2660_v11, %v2660_v11 }
 0x1cc   : > { %2463 = vmatprep.mubr.bf16.mxu1 %v20359_v0 }
 0x1cd   : > { %v2736_v24 = vsel %vm611_vm0, %v18348_v6, 0 }
 0x1d0   : > { %18327 = vmatmul.mubr.msk.bf16.vlgmr.msra.gmra.mrb[52].mxu0 %vm962_vm1, %v2208_v33 }
 0x1d1   : > { %18329 = vmatmul.mubr.msk.bf16.vlgmr.msra.gmra.mrb[52].mxu1 %vm962_vm1, %v2208_v33  ;;  %2473 = vmatpush1.bf16.msra.mxu0 %v2285_v56 }
 0x1d2   : > { %2514 = vmatpush1.bf16.msra.mxu1 %v2291_v47  ;;  %18334 = vmatprep.subr.msk.bf16.mxu0 %vm611_vm0, %v18319_v49  ;;  %v18349_v47 = vcombine.high %v2659_v42, %v2659_v42  ;;  %v3099_v42 = vld [vmem:[#allocation3 + $0x94] sm:$0xff] }
 0x1d3   : > { %18336 = vmatprep.subr.msk.bf16.mxu1 %vm611_vm0, %v18321_v36  ;;  %2504 = vmatprep.mubr.bf16.mxu0 %v20359_v0  ;;  %v18371_v6 = vcombine.high %v3099_v42, %v3099_v42 }
 0x1d4   : > { %2545 = vmatprep.mubr.bf16.mxu1 %v20359_v0 }
 0x1d8   : > { %18331 = vmatmul.mubr.msk.bf16.vlgmr.msra.gmra.mrb[56].mxu0 %vm962_vm1, %v2208_v33 }
 0x1d9   : > { %18333 = vmatmul.mubr.msk.bf16.vlgmr.msra.gmra.mrb[56].mxu1 %vm962_vm1, %v2208_v33  ;;  %2555 = vmatpush1.bf16.msra.mxu0 %v2297_v14 }
 0x1da   : > { %2596 = vmatpush1.bf16.msra.mxu1 %v2303_v18  ;;  %2586 = vmatprep.mubr.bf16.mxu0 %v20359_v0  ;;  %v2730_v18 = vsel %vm611_vm0, %v18346_v5, 0 }
 0x1db   : > { %2627 = vmatprep.mubr.bf16.mxu1 %v20359_v0  ;;  %18354 = vmatprep.subr.msk.bf16.mxu0 %vm611_vm0, %v18339_v13  ;;  %v2661_v13 = vld [vmem:[#allocation3 + $0x84] sm:$0xff] }
 0x1dc   : > { %18356 = vmatprep.subr.msk.bf16.mxu1 %vm611_vm0, %v18341_v17  ;;  %v18352_v34 = vcombine.low %v2661_v13, %v2661_v13 }
 0x1e0   : > { %18335 = vmatmul.mubr.msk.bf16.vlgmr.msra.gmra.mrb[60].mxu0 %vm962_vm1, %v2208_v33 }
 0x1e1   : > { %18337 = vmatmul.mubr.msk.bf16.vlgmr.msra.gmra.mrb[60].mxu1 %vm962_vm1, %v2208_v33  ;;  %2754 = vmatpush1.bf16.msra.mxu0 %v2706_v28  ;;  %v21243_v39 = vpop.f32.mrb[0].mxu0 }
 0x1e2   : > { %2795 = vmatpush1.bf16.msra.mxu1 %v2712_v29  ;;  %2785 = vmatprep.mubr.bf16.mxu0 %v20359_v0  ;;  %v21247_v44 = vpop.f32.mrb[0].mxu1  ;;  %v21249_v33 = vpop.f32.mrb[1].mxu0 }
 0x1e3   : > { %2826 = vmatprep.mubr.bf16.mxu1 %v20359_v0  ;;  %18358 = vmatprep.subr.msk.bf16.mxu0 %vm611_vm0, %v18343_v30  ;;  %v21252_v48 = vpop.f32.mrb[1].mxu1  ;;  %v1053_v51 = vpop.f32.mrb[2].mxu0  ;;  %v18353_v30 = vcombine.high %v2661_v13, %v2661_v13 }
 0x1e4   : > { %18360 = vmatprep.subr.msk.bf16.mxu1 %vm611_vm0, %v18345_v31  ;;  %v1094_v56 = vpop.f32.mrb[2].mxu1  ;;  %v1054_v49 = vpop.f32.mrb[3].mxu0 }
 0x1e5   : > { %v1095_v36 = vpop.f32.mrb[3].mxu1 }
 0x1e8   : > { %18355 = vmatmul.mubr.msk.bf16.vlgmr.msra.gmra.mrb[64].mxu0 %vm962_vm1, %v21245_v41 }
 0x1e9   : > { %18357 = vmatmul.mubr.msk.bf16.vlgmr.msra.gmra.mrb[64].mxu1 %vm962_vm1, %v21245_v41  ;;  %2836 = vmatpush1.bf16.msra.mxu0 %v2718_v46  ;;  %v21263_v12 = vpop.f32.mrb[4].mxu0 }
 0x1ea   : > { %2877 = vmatpush1.bf16.msra.mxu1 %v2724_v54  ;;  %2867 = vmatprep.mubr.bf16.mxu0 %v20359_v0  ;;  %v21265_v14 = vpop.f32.mrb[4].mxu1  ;;  %v21267_v17 = vpop.f32.mrb[5].mxu0  ;;  %v2742_v54 = vsel %vm611_vm0, %v18350_v32, 0 }
 0x1eb   : > { %2908 = vmatprep.mubr.bf16.mxu1 %v20359_v0  ;;  %18362 = vmatprep.subr.msk.bf16.mxu0 %vm611_vm0, %v18347_v55  ;;  %v21270_v19 = vpop.f32.mrb[5].mxu1  ;;  %v1135_v21 = vpop.f32.mrb[6].mxu0  ;;  %v3100_v55 = vld [vmem:[#allocation3 + $0x9c] sm:$0xff] }
 0x1ec   : > { %18364 = vmatprep.subr.msk.bf16.mxu1 %vm611_vm0, %v18349_v47  ;;  %v1176_v28 = vpop.f32.mrb[6].mxu1  ;;  %v1136_v29 = vpop.f32.mrb[7].mxu0  ;;  %v2748_v47 = vsel %vm611_vm0, %v18352_v34, 0  ;;  %v18373_v13 = vcombine.high %v3100_v55, %v3100_v55 }
 0x1ed   : > { %v1177_v31 = vpop.f32.mrb[7].mxu1 }
 0x1f0   : > { %18359 = vmatmul.mubr.msk.bf16.vlgmr.msra.gmra.mrb[68].mxu0 %vm962_vm1, %v21245_v41 }
 0x1f1   : > { %18361 = vmatmul.mubr.msk.bf16.vlgmr.msra.gmra.mrb[68].mxu1 %vm962_vm1, %v21245_v41  ;;  %2918 = vmatpush1.bf16.msra.mxu0 %v2730_v18  ;;  %v21281_v37 = vpop.f32.mrb[8].mxu0  ;;  %v18370_v18 = vcombine.low %v3099_v42, %v3099_v42 }
 0x1f2   : > { %2959 = vmatpush1.bf16.msra.mxu1 %v2736_v24  ;;  %2949 = vmatprep.mubr.bf16.mxu0 %v20359_v0  ;;  %v21283_v46 = vpop.f32.mrb[8].mxu1  ;;  %v21285_v51 = vpop.f32.mrb[9].mxu0  ;;  %v18372_v24 = vcombine.low %v3100_v55, %v3100_v55 }
 0x1f3   : > { %2990 = vmatprep.mubr.bf16.mxu1 %v20359_v0  ;;  %18366 = vmatprep.subr.msk.bf16.mxu0 %vm611_vm0, %v18351_v27  ;;  %v21288_v56 = vpop.f32.mrb[9].mxu1  ;;  %v1217_v49 = vpop.f32.mrb[10].mxu0  ;;  %v3101_v27 = vld [vmem:[#allocation3 + $0xa4] sm:$0xff] }
 0x1f4   : > { %18368 = vmatprep.subr.msk.bf16.mxu1 %vm611_vm0, %v18353_v30  ;;  %v1258_v36 = vpop.f32.mrb[10].mxu1  ;;  %v1218_v5 = vpop.f32.mrb[11].mxu0  ;;  %v3102_v30 = vld [vmem:[#allocation3 + $0xac] sm:$0xff]  ;;  %v3151_v49 = vsel %vm611_vm0, %v18370_v18, 0  ;;  %v18375_v42 = vcombine.high %v3101_v27, %v3101_v27  ;;  %v3157_v55 = vsel %vm611_vm0, %v18372_v24, 0  ;;  %v3104_v18 = vld [vmem:[#allocation3 + $0xbc] sm:$0xff] }
 0x1f5   : > { %v1259_v11 = vpop.f32.mrb[11].mxu1  ;;  %v18377_v36 = vcombine.high %v3102_v30, %v3102_v30  ;;  %v18374_v5 = vcombine.low %v3101_v27, %v3101_v27 }
 0x1f6   : > { %v18376_v11 = vcombine.low %v3102_v30, %v3102_v30  ;;  %v18380_v30 = vcombine.low %v3104_v18, %v3104_v18 }
 0x1f8   : > { %18363 = vmatmul.mubr.msk.bf16.vlgmr.msra.gmra.mrb[72].mxu0 %vm962_vm1, %v21245_v41 }
 0x1f9   : > { %18365 = vmatmul.mubr.msk.bf16.vlgmr.msra.gmra.mrb[72].mxu1 %vm962_vm1, %v21245_v41  ;;  %3000 = vmatpush1.bf16.msra.mxu0 %v2742_v54  ;;  %v21299_v21 = vpop.f32.mrb[12].mxu0 }
 0x1fa   : > { %3041 = vmatpush1.bf16.msra.mxu1 %v2748_v47  ;;  %18386 = vmatprep.subr.msk.bf16.mxu0 %vm611_vm0, %v18371_v6  ;;  %v21301_v28 = vpop.f32.mrb[12].mxu1  ;;  %v21303_v29 = vpop.f32.mrb[13].mxu0  ;;  %v3098_v6 = vld [vmem:[#allocation12 + $0x14] sm:$0xf] }
 0x1fb   : > { %18388 = vmatprep.subr.msk.bf16.mxu1 %vm611_vm0, %v18373_v13  ;;  %3031 = vmatprep.mubr.bf16.mxu0 %v20359_v0  ;;  %v21305_v31 = vpop.f32.mrb[13].mxu1  ;;  %v1299_v32 = vpop.f32.mrb[14].mxu0  ;;  %v3103_v13 = vld [vmem:[#allocation3 + $0xb4] sm:$0xff] }
 0x1fc   : > { %3072 = vmatprep.mubr.bf16.mxu1 %v20359_v0  ;;  %v1340_v34 = vpop.f32.mrb[14].mxu1  ;;  %v1300_v54 = vpop.f32.mrb[15].mxu0  ;;  %v18379_v24 = vcombine.high %v3103_v13, %v3103_v13  ;;  %v3169_v32 = vsel %vm611_vm0, %v18376_v11, 0  ;;  %v18378_v27 = vcombine.low %v3103_v13, %v3103_v13 }
 0x1fd   : > { %v1341_v47 = vpop.f32.mrb[15].mxu1  ;;  %v18381_v34 = vcombine.high %v3104_v18, %v3104_v18  ;;  %v3105_v54 = vld [vmem:[#allocation3 + $0xc4] sm:$0xff] }
 0x1fe   : > { %v18383_v47 = vcombine.high %v3105_v54, %v3105_v54 }
 0x200   : > { %18367 = vmatmul.mubr.msk.bf16.vlgmr.msra.gmra.mrb[76].mxu0 %vm962_vm1, %v21245_v41 }
 0x201   : > { %18369 = vmatmul.mubr.msk.bf16.vlgmr.msra.gmra.mrb[76].mxu1 %vm962_vm1, %v21245_v41  ;;  %3199 = vmatpush1.bf16.msra.mxu0 %v3151_v49  ;;  %v3163_v41 = vsel %vm611_vm0, %v18374_v5, 0  ;;  %v3106_v49 = vld [vmem:[#allocation3 + $0xcc] sm:$0xff]  ;;  %v18382_v5 = vcombine.low %v3105_v54, %v3105_v54 }
 0x202   : > { %3240 = vmatpush1.bf16.msra.mxu1 %v3157_v55  ;;  %18390 = vmatprep.subr.msk.bf16.mxu0 %vm611_vm0, %v18375_v42  ;;  %v3175_v42 = vsel %vm611_vm0, %v18378_v27, 0  ;;  %v3181_v55 = vsel %vm611_vm0, %v18380_v30, 0  ;;  %v18384_v11 = vcombine.low %v3106_v49, %v3106_v49  ;;  %v3988_v27 = vld [vmem:[#allocation12 + $0x1c] sm:$0xf]  ;;  %v3994_v30 = vld [vmem:[#allocation3 + $0x78] sm:$0xff] }
 0x203   : > { %18392 = vmatprep.subr.msk.bf16.mxu1 %vm611_vm0, %v18377_v36  ;;  %3230 = vmatprep.mubr.bf16.mxu0 %v20359_v0  ;;  %v18385_v36 = vcombine.high %v3106_v49, %v3106_v49  ;;  %v3187_v13 = vsel %vm611_vm0, %v18382_v5, 0  ;;  %v3995_v5 = vld [vmem:[#allocation3 + $0x80] sm:$0xff] }
 0x204   : > { %3271 = vmatprep.mubr.bf16.mxu1 %v20359_v0  ;;  %v3193_v18 = vsel %vm611_vm0, %v18384_v11, 0 }
 0x208   : > { %18387 = vmatmul.mubr.msk.bf16.vlgmr.msra.gmra.mrb[80].mxu0 %vm962_vm1, %v3098_v6 }
 0x209   : > { %18389 = vmatmul.mubr.msk.bf16.vlgmr.msra.gmra.mrb[80].mxu1 %vm962_vm1, %v3098_v6  ;;  %3281 = vmatpush1.bf16.msra.mxu0 %v3163_v41 }
 0x20a   : > { %3322 = vmatpush1.bf16.msra.mxu1 %v3169_v32  ;;  %18394 = vmatprep.subr.msk.bf16.mxu0 %vm611_vm0, %v18379_v24 }
 0x20b   : > { %18396 = vmatprep.subr.msk.bf16.mxu1 %vm611_vm0, %v18381_v34  ;;  %3312 = vmatprep.mubr.bf16.mxu0 %v20359_v0  ;;  %v3993_v34 = vld [vmem:[#allocation3 + $0x70] sm:$0xff] }
 0x20c   : > { %3353 = vmatprep.mubr.bf16.mxu1 %v20359_v0 }
 0x210   : > { %18391 = vmatmul.mubr.msk.bf16.vlgmr.msra.gmra.mrb[84].mxu0 %vm962_vm1, %v3098_v6 }
 0x211   : > { %18393 = vmatmul.mubr.msk.bf16.vlgmr.msra.gmra.mrb[84].mxu1 %vm962_vm1, %v3098_v6  ;;  %3363 = vmatpush1.bf16.msra.mxu0 %v3175_v42  ;;  %v18443_v42 = vcombine.high %v3993_v34, %v3993_v34 }
 0x212   : > { %3404 = vmatpush1.bf16.msra.mxu1 %v3181_v55  ;;  %18398 = vmatprep.subr.msk.bf16.mxu0 %vm611_vm0, %v18383_v47  ;;  %v18445_v47 = vcombine.high %v3994_v30, %v3994_v30  ;;  %v18442_v55 = vcombine.low %v3993_v34, %v3993_v34 }
 0x213   : > { %18400 = vmatprep.subr.msk.bf16.mxu1 %vm611_vm0, %v18385_v36  ;;  %3394 = vmatprep.mubr.bf16.mxu0 %v20359_v0  ;;  %v18444_v36 = vcombine.low %v3994_v30, %v3994_v30 }
 0x214   : > { %3435 = vmatprep.mubr.bf16.mxu1 %v20359_v0  ;;  %v4065_v11 = vsel %vm611_vm0, %v18442_v55, 0 }
 0x218   : > { %18395 = vmatmul.mubr.msk.bf16.vlgmr.msra.gmra.mrb[88].mxu0 %vm962_vm1, %v3098_v6 }
 0x219   : > { %18397 = vmatmul.mubr.msk.bf16.vlgmr.msra.gmra.mrb[88].mxu1 %vm962_vm1, %v3098_v6  ;;  %3445 = vmatpush1.bf16.msra.mxu0 %v3187_v13  ;;  %v4071_v13 = vsel %vm611_vm0, %v18444_v36, 0 }
 0x21a   : > { %3486 = vmatpush1.bf16.msra.mxu1 %v3193_v18  ;;  %18418 = vmatprep.subr.msk.bf16.mxu0 %vm611_vm0, %v20982_v22  ;;  %v3543_v22 = vld [vmem:[#allocation12 + $0x18] sm:$0xf]  ;;  %v18447_v18 = vcombine.high %v3995_v5, %v3995_v5 }
 0x21b   : > { %18420 = vmatprep.subr.msk.bf16.mxu1 %vm611_vm0, %v20984_v25  ;;  %3476 = vmatprep.mubr.bf16.mxu0 %v20359_v0  ;;  %v18417_v25 = vcombine.high %v21130_v59, %v21130_v59 }
 0x21c   : > { %3517 = vmatprep.mubr.bf16.mxu1 %v20359_v0 }
 0x220   : > { %18399 = vmatmul.mubr.msk.bf16.vlgmr.msra.gmra.mrb[92].mxu0 %vm962_vm1, %v3098_v6 }
 0x221   : > { %18401 = vmatmul.mubr.msk.bf16.vlgmr.msra.gmra.mrb[92].mxu1 %vm962_vm1, %v3098_v6  ;;  %3644 = vmatpush1.bf16.msra.mxu0 %v20995_v35  ;;  %v3989_v35 = vld [vmem:[#allocation3 + $0x50] sm:$0xff] }
 0x222   : > { %3685 = vmatpush1.bf16.msra.mxu1 %v21011_v43  ;;  %18422 = vmatprep.subr.msk.bf16.mxu0 %vm611_vm0, %v21002_v38  ;;  %v18416_v38 = vcombine.low %v21130_v59, %v21130_v59  ;;  %v18435_v43 = vcombine.high %v3989_v35, %v3989_v35  ;;  %v4877_v59 = vld [vmem:[#allocation13] sm:$0xff] }
 0x223   : > { %18424 = vmatprep.subr.msk.bf16.mxu1 %vm611_vm0, %v21004_v40  ;;  %3675 = vmatprep.mubr.bf16.mxu0 %v20359_v0  ;;  %v3990_v40 = vld [vmem:[#allocation3 + $0x58] sm:$0xff] }
 0x224   : > { %3716 = vmatprep.mubr.bf16.mxu1 %v20359_v0  ;;  %4880 = vperm.xlu0 %19666, %v4877_v59  }
 0x228   : > { %18419 = vmatmul.mubr.msk.bf16.vlgmr.msra.gmra.mrb[96].mxu0 %vm962_vm1, %v3543_v22 }
 0x229   : > { %18421 = vmatmul.mubr.msk.bf16.vlgmr.msra.gmra.mrb[96].mxu1 %vm962_vm1, %v3543_v22  ;;  %3726 = vmatpush1.bf16.msra.mxu0 %v21016_v45  ;;  %v18437_v45 = vcombine.high %v3990_v40, %v3990_v40 }
 0x22a   : > { %3767 = vmatpush1.bf16.msra.mxu1 %v21049_v1  ;;  %18426 = vmatprep.subr.msk.bf16.mxu0 %vm611_vm0, %v21029_v50  ;;  %v3638_v50 = vsel %vm611_vm0, %v18416_v38, 0  ;;  %v3991_v1 = vld [vmem:[#allocation3 + $0x60] sm:$0xff] }
 0x22b   : > { %18428 = vmatprep.subr.msk.bf16.mxu1 %vm611_vm0, %v21039_v60  ;;  %3757 = vmatprep.mubr.bf16.mxu0 %v20359_v0  ;;  %v18434_v60 = vcombine.low %v3989_v35, %v3989_v35  ;;  %v18439_v6 = vcombine.high %v3991_v1, %v3991_v1  ;;  %v18438_v24 = vcombine.low %v3991_v1, %v3991_v1 }
 0x22c   : > { %3798 = vmatprep.mubr.bf16.mxu1 %v20359_v0  ;;  %v18446_v35 = vcombine.low %v3995_v5, %v3995_v5 }
 0x22d   : > { %v4053_v54 = vsel %vm611_vm0, %v18438_v24, 0  ;;  %v21449_v24 = vld [vmem:[#allocation12 + $0x20] sm:$0xf] }
 0x230   : > { %18423 = vmatmul.mubr.msk.bf16.vlgmr.msra.gmra.mrb[100].mxu0 %vm962_vm1, %v3543_v22 }
 0x231   : > { %18425 = vmatmul.mubr.msk.bf16.vlgmr.msra.gmra.mrb[100].mxu1 %vm962_vm1, %v3543_v22  ;;  %3808 = vmatpush1.bf16.msra.mxu0 %v21042_v61  ;;  %v18436_v61 = vcombine.low %v3990_v40, %v3990_v40  ;;  %v4077_v40 = vsel %vm611_vm0, %v18446_v35, 0 }
 0x232   : > { %3849 = vmatpush1.bf16.msra.mxu1 %v21084_v23  ;;  %18430 = vmatprep.subr.msk.bf16.mxu0 %vm611_vm0, %v21051_v3  ;;  %v3992_v3 = vld [vmem:[#allocation3 + $0x68] sm:$0xff]  ;;  %v4041_v23 = vsel %vm611_vm0, %v18434_v60, 0 }
 0x233   : > { %18432 = vmatprep.subr.msk.bf16.mxu1 %vm611_vm0, %v18417_v25  ;;  %3839 = vmatprep.mubr.bf16.mxu0 %v20359_v0  ;;  %v18441_v41 = vcombine.high %v3992_v3, %v3992_v3  ;;  %v18440_v32 = vcombine.low %v3992_v3, %v3992_v3 }
 0x234   : > { %3880 = vmatprep.mubr.bf16.mxu1 %v20359_v0 }
 0x235   : > { %v4059_v49 = vsel %vm611_vm0, %v18440_v32, 0 }
 0x238   : > { %18427 = vmatmul.mubr.msk.bf16.vlgmr.msra.gmra.mrb[104].mxu0 %vm962_vm1, %v3543_v22 }
 0x239   : > { %18429 = vmatmul.mubr.msk.bf16.vlgmr.msra.gmra.mrb[104].mxu1 %vm962_vm1, %v3543_v22  ;;  %3890 = vmatpush1.bf16.msra.mxu0 %v21078_v20  ;;  %v4047_v20 = vsel %vm611_vm0, %v18436_v61, 0 }
 0x23a   : > { %3931 = vmatpush1.bf16.msra.mxu1 %v3638_v50  ;;  %3921 = vmatprep.mubr.bf16.mxu0 %v20359_v0 }
 0x23b   : > { %3962 = vmatprep.mubr.bf16.mxu1 %v20359_v0  ;;  %18450 = vmatprep.subr.msk.bf16.mxu0 %vm611_vm0, %v18435_v43 }
 0x23c   : > { %18452 = vmatprep.subr.msk.bf16.mxu1 %vm611_vm0, %v18437_v45 }
 0x240   : > { %18431 = vmatmul.mubr.msk.bf16.vlgmr.msra.gmra.mrb[108].mxu0 %vm962_vm1, %v3543_v22 }
 0x241   : > { %18433 = vmatmul.mubr.msk.bf16.vlgmr.msra.gmra.mrb[108].mxu1 %vm962_vm1, %v3543_v22  ;;  %4089 = vmatpush1.bf16.msra.mxu0 %v4041_v23  ;;  %v19914_v22 = vld [vmem:[#allocation3 + $0x88] sm:$0xff] }
 0x242   : > { %4130 = vmatpush1.bf16.msra.mxu1 %v4047_v20  ;;  %4120 = vmatprep.mubr.bf16.mxu0 %v20359_v0  ;;  %v18449_v25 = vcombine.high %v19914_v22, %v19914_v22  ;;  %v18448_v38 = vcombine.low %v19914_v22, %v19914_v22 }
 0x243   : > { %4161 = vmatprep.mubr.bf16.mxu1 %v20359_v0  ;;  %18454 = vmatprep.subr.msk.bf16.mxu0 %vm611_vm0, %v18439_v6 }
 0x244   : > { %18456 = vmatprep.subr.msk.bf16.mxu1 %vm611_vm0, %v18441_v41  ;;  %v4083_v43 = vsel %vm611_vm0, %v18448_v38, 0 }
 0x248   : > { %18451 = vmatmul.mubr.msk.bf16.vlgmr.msra.gmra.mrb[112].mxu0 %vm962_vm1, %v3988_v27 }
 0x249   : > { %18453 = vmatmul.mubr.msk.bf16.vlgmr.msra.gmra.mrb[112].mxu1 %vm962_vm1, %v3988_v27  ;;  %4171 = vmatpush1.bf16.msra.mxu0 %v4053_v54 }
 0x24a   : > { %4212 = vmatpush1.bf16.msra.mxu1 %v4059_v49  ;;  %4202 = vmatprep.mubr.bf16.mxu0 %v20359_v0 }
 0x24b   : > { %4243 = vmatprep.mubr.bf16.mxu1 %v20359_v0  ;;  %18458 = vmatprep.subr.msk.bf16.mxu0 %vm611_vm0, %v18443_v42 }
 0x24c   : > { %18460 = vmatprep.subr.msk.bf16.mxu1 %vm611_vm0, %v18445_v47 }
 0x250   : > { %18455 = vmatmul.mubr.msk.bf16.vlgmr.msra.gmra.mrb[116].mxu0 %vm962_vm1, %v3988_v27 }
 0x251   : > { %18457 = vmatmul.mubr.msk.bf16.vlgmr.msra.gmra.mrb[116].mxu1 %vm962_vm1, %v3988_v27  ;;  %4253 = vmatpush1.bf16.msra.mxu0 %v4065_v11 }
 0x252   : > { %4294 = vmatpush1.bf16.msra.mxu1 %v4071_v13  ;;  %4284 = vmatprep.mubr.bf16.mxu0 %v20359_v0 }
 0x253   : > { %4325 = vmatprep.mubr.bf16.mxu1 %v20359_v0  ;;  %18462 = vmatprep.subr.msk.bf16.mxu0 %vm611_vm0, %v18447_v18 }
 0x254   : > { %18464 = vmatprep.subr.msk.bf16.mxu1 %vm611_vm0, %v18449_v25 }
 0x258   : > { %18459 = vmatmul.mubr.msk.bf16.vlgmr.msra.gmra.mrb[120].mxu0 %vm962_vm1, %v3988_v27 }
 0x259   : > { %18461 = vmatmul.mubr.msk.bf16.vlgmr.msra.gmra.mrb[120].mxu1 %vm962_vm1, %v3988_v27  ;;  %4335 = vmatpush1.bf16.msra.mxu0 %v4077_v40 }
 0x25a   : > { %4376 = vmatpush1.bf16.msra.mxu1 %v4083_v43  ;;  %18482 = vmatprep.subr.msk.bf16.mxu0 %vm611_vm0, %v21087_v26 }
 0x25b   : > { %18484 = vmatprep.subr.msk.bf16.mxu1 %vm611_vm0, %v21111_v52  ;;  %v1468_v45 = vpop.f32.mrb[16].mxu0  ;;  %4366 = vmatprep.mubr.bf16.mxu0 %v20359_v0 }
 0x25c   : > { %v21418_v50 = vadd.f32 %v1468_v45, %v21243_v39  ;;  %v1509_v60 = vpop.f32.mrb[16].mxu1  ;;  %v1470_v61 = vpop.f32.mrb[17].mxu0  ;;  %4407 = vmatprep.mubr.bf16.mxu1 %v20359_v0 }
 0x25d   : > { %v21422_v1 = vadd.f32 %v1509_v60, %v21247_v44  ;;  %v21425_v3 = vadd.f32 %v1470_v61, %v21249_v33  ;;  %v1511_v26 = vpop.f32.mrb[17].mxu1  ;;  %v1472_v23 = vpop.f32.mrb[18].mxu0 }
 0x25e   : > { %v21428_v52 = vadd.f32 %v1511_v26, %v21252_v48  ;;  %v1513_v59 = vpop.f32.mrb[18].mxu1  ;;  %v1473_v20 = vpop.f32.mrb[19].mxu0 }
 0x25f   : > { %v1514_v6 = vpop.f32.mrb[19].mxu1 }
 0x260   : > { %18463 = vmatmul.mubr.msk.bf16.vlgmr.msra.gmra.mrb[124].mxu0 %vm962_vm1, %v3988_v27 }
 0x261   : > { %18465 = vmatmul.mubr.msk.bf16.vlgmr.msra.gmra.mrb[124].mxu1 %vm962_vm1, %v3988_v27  ;;  %4534 = vmatpush1.bf16.msra.mxu0 %v21114_v53 }
 0x262   : > { %4575 = vmatpush1.bf16.msra.mxu1 %v21154_v2  ;;  %18486 = vmatprep.subr.msk.bf16.mxu0 %vm611_vm0, %v21123_v57 }
 0x263   : > { %18488 = vmatprep.subr.msk.bf16.mxu1 %vm611_vm0, %v21147_v62  ;;  %v1550_v39 = vpop.f32.mrb[20].mxu0  ;;  %4565 = vmatprep.mubr.bf16.mxu0 %v20359_v0 }
 0x264   : > { %v21440_v44 = vadd.f32 %v1550_v39, %v21263_v12  ;;  %v1591_v33 = vpop.f32.mrb[20].mxu1  ;;  %v1552_v48 = vpop.f32.mrb[21].mxu0  ;;  %4606 = vmatprep.mubr.bf16.mxu1 %v20359_v0 }
 0x265   : > { %v21444_v53 = vadd.f32 %v1591_v33, %v21265_v14  ;;  %v21447_v2 = vadd.f32 %v1552_v48, %v21267_v17  ;;  %v1593_v57 = vpop.f32.mrb[21].mxu1  ;;  %v1554_v41 = vpop.f32.mrb[22].mxu0 }
 0x266   : > { %v21452_v62 = vadd.f32 %v1593_v57, %v21270_v19  ;;  %v1595_v32 = vpop.f32.mrb[22].mxu1  ;;  %v1555_v12 = vpop.f32.mrb[23].mxu0 }
 0x267   : > { %v1596_v34 = vpop.f32.mrb[23].mxu1 }
 0x268   : > { %18483 = vmatmul.mubr.msk.bf16.vlgmr.msra.gmra.mrb[128].mxu0 %vm962_vm1, %v21449_v24 }
 0x269   : > { %18485 = vmatmul.mubr.msk.bf16.vlgmr.msra.gmra.mrb[128].mxu1 %vm962_vm1, %v21449_v24  ;;  %4616 = vmatpush1.bf16.msra.mxu0 %v21150_v63 }
 0x26a   : > { %4657 = vmatpush1.bf16.msra.mxu1 %v21176_v9  ;;  %18490 = vmatprep.subr.msk.bf16.mxu0 %vm611_vm0, %v21156_v4 }
 0x26b   : > { %18492 = vmatprep.subr.msk.bf16.mxu1 %vm611_vm0, %v21169_v7  ;;  %v1632_v14 = vpop.f32.mrb[24].mxu0  ;;  %4647 = vmatprep.mubr.bf16.mxu0 %v20359_v0 }
 0x26c   : > { %v21466_v17 = vadd.f32 %v1632_v14, %v21281_v37  ;;  %v1673_v19 = vpop.f32.mrb[24].mxu1  ;;  %v1634_v27 = vpop.f32.mrb[25].mxu0  ;;  %4688 = vmatprep.mubr.bf16.mxu1 %v20359_v0  ;;  %v18481_v37 = vcombine.high %v21126_v58, %v21126_v58 }
 0x26d   : > { %v21470_v63 = vadd.f32 %v1673_v19, %v21283_v46  ;;  %v21473_v9 = vadd.f32 %v1634_v27, %v21285_v51  ;;  %v1675_v4 = vpop.f32.mrb[25].mxu1  ;;  %v1636_v30 = vpop.f32.mrb[26].mxu0 }
 0x26e   : > { %v21476_v7 = vadd.f32 %v1675_v4, %v21288_v56  ;;  %v1677_v54 = vpop.f32.mrb[26].mxu1  ;;  %v1637_v49 = vpop.f32.mrb[27].mxu0 }
 0x26f   : > { %v1678_v42 = vpop.f32.mrb[27].mxu1 }
 0x270   : > { %18487 = vmatmul.mubr.msk.bf16.vlgmr.msra.gmra.mrb[132].mxu0 %vm962_vm1, %v21449_v24 }
 0x271   : > { %18489 = vmatmul.mubr.msk.bf16.vlgmr.msra.gmra.mrb[132].mxu1 %vm962_vm1, %v21449_v24  ;;  %4698 = vmatpush1.bf16.msra.mxu0 %v21172_v8 }
 0x272   : > { %4739 = vmatpush1.bf16.msra.mxu1 %v21194_v16  ;;  %18494 = vmatprep.subr.msk.bf16.mxu0 %vm611_vm0, %v21178_v10  ;;  %v18480_v10 = vcombine.low %v21126_v58, %v21126_v58 }
 0x273   : > { %18496 = vmatprep.subr.msk.bf16.mxu1 %vm611_vm0, %v18481_v37  ;;  %v1714_v46 = vpop.f32.mrb[28].mxu0  ;;  %4729 = vmatprep.mubr.bf16.mxu0 %v20359_v0 }
 0x274   : > { %v1715_v51 = vadd.f32 %v1714_v46, %v21299_v21  ;;  %v1755_v56 = vpop.f32.mrb[28].mxu1  ;;  %v1716_v47 = vpop.f32.mrb[29].mxu0  ;;  %4770 = vmatprep.mubr.bf16.mxu1 %v20359_v0  ;;  %v4528_v21 = vsel %vm611_vm0, %v18480_v10, 0 }
 0x275   : > { %v1756_v8 = vadd.f32 %v1755_v56, %v21301_v28  ;;  %v1717_v55 = vadd.f32 %v1716_v47, %v21303_v29  ;;  %v1757_v36 = vpop.f32.mrb[29].mxu1  ;;  %v1718_v16 = vpop.f32.mrb[30].mxu0 }
 0x276   : > { %v1758_v5 = vadd.f32 %v1757_v36, %v21305_v31  ;;  %v1759_v11 = vpop.f32.mrb[30].mxu1  ;;  %v1719_v13 = vpop.f32.mrb[31].mxu0 }
 0x277   : > { %v1760_v18 = vpop.f32.mrb[31].mxu1 }
 0x278   : > { %18491 = vmatmul.mubr.msk.bf16.vlgmr.msra.gmra.mrb[136].mxu0 %vm962_vm1, %v21449_v24 }
 0x279   : > { %18493 = vmatmul.mubr.msk.bf16.vlgmr.msra.gmra.mrb[136].mxu1 %vm962_vm1, %v21449_v24  ;;  %4780 = vmatpush1.bf16.msra.mxu0 %v21190_v15 }
 0x27a   : > { %4821 = vmatpush1.bf16.msra.mxu1 %v4528_v21  ;;  %4811 = vmatprep.mubr.bf16.mxu0 %v20359_v0 }
 0x27b   : > { %v1897_v28 = vpop.f32.mrb[32].mxu0  ;;  %4852 = vmatprep.mubr.bf16.mxu1 %v20359_v0 }
 0x27c   : > { %v2191_v58 = vadd.f32 %v1897_v28, %v21418_v50  ;;  %v1938_v29 = vpop.f32.mrb[32].mxu1  ;;  %v1899_v31 = vpop.f32.mrb[33].mxu0 }
 0x27d   : > { %v2193_v22 = vadd.f32 %v1938_v29, %v21422_v1  ;;  %v2192_v25 = vadd.f32 %v1899_v31, %v21425_v3  ;;  %v1940_v35 = vpop.f32.mrb[33].mxu1  ;;  %v1901_v38 = vpop.f32.mrb[34].mxu0 }
 0x27e   : > { %v2194_v15 = vadd.f32 %v1940_v35, %v21428_v52  ;;  %v1942_v40 = vpop.f32.mrb[34].mxu1  ;;  %v1902_v43 = vpop.f32.mrb[35].mxu0 }
 0x27f   : > { %v1943_v45 = vpop.f32.mrb[35].mxu1 }
 0x280   : > { %18495 = vmatmul.mubr.msk.bf16.vlgmr.msra.gmra.mrb[140].mxu0 %vm962_vm1, %v21449_v24 }
 0x281   : > { %18497 = vmatmul.mubr.msk.bf16.vlgmr.msra.gmra.mrb[140].mxu1 %vm962_vm1, %v21449_v24  ;;  %5525 = vmatprep.mubr.bf16.mxu0 %v20359_v0 }
 0x282   : > { %5566 = vmatprep.mubr.bf16.mxu1 %v20359_v0 }
 0x283   : > { %v1979_v50 = vpop.f32.mrb[36].mxu0 }
 0x284   : > { %v2195_v60 = vadd.f32 %v1979_v50, %v21440_v44  ;;  %v2020_v61 = vpop.f32.mrb[36].mxu1  ;;  %v1981_v1 = vpop.f32.mrb[37].mxu0 }
 0x285   : > { %v2197_v3 = vadd.f32 %v2020_v61, %v21444_v53  ;;  %v2196_v26 = vadd.f32 %v1981_v1, %v21447_v2  ;;  %v2022_v23 = vpop.f32.mrb[37].mxu1  ;;  %v1983_v52 = vpop.f32.mrb[38].mxu0 }
 0x286   : > { %v2198_v59 = vadd.f32 %v2022_v23, %v21452_v62  ;;  %v2024_v20 = vpop.f32.mrb[38].mxu1  ;;  %v1984_v6 = vpop.f32.mrb[39].mxu0 }
 0x287   : > { %v2025_v39 = vpop.f32.mrb[39].mxu1 }
 0x28b   : > { %v2061_v33 = vpop.f32.mrb[40].mxu0 }
 0x28c   : > { %v2199_v48 = vadd.f32 %v2061_v33, %v21466_v17  ;;  %v2102_v57 = vpop.f32.mrb[40].mxu1  ;;  %v2063_v41 = vpop.f32.mrb[41].mxu0 }
 0x28d   : > { %v2201_v44 = vadd.f32 %v2102_v57, %v21470_v63  ;;  %v2200_v24 = vadd.f32 %v2063_v41, %v21473_v9  ;;  %v2104_v32 = vpop.f32.mrb[41].mxu1  ;;  %v2065_v53 = vpop.f32.mrb[42].mxu0 }
 0x28e   : > { %v2202_v2 = vadd.f32 %v2104_v32, %v21476_v7  ;;  %v2106_v12 = vpop.f32.mrb[42].mxu1  ;;  %v2066_v34 = vpop.f32.mrb[43].mxu0 }
 0x28f   : > { %v2107_v14 = vpop.f32.mrb[43].mxu1 }
 0x293   : > { %v2143_v62 = vpop.f32.mrb[44].mxu0 }
 0x294   : > { %v2203_v19 = vadd.f32 %v2143_v62, %v1715_v51  ;;  %v2184_v27 = vpop.f32.mrb[44].mxu1  ;;  %v2145_v4 = vpop.f32.mrb[45].mxu0 }
 0x295   : > { %v2205_v30 = vadd.f32 %v2184_v27, %v1756_v8  ;;  %v2204_v54 = vadd.f32 %v2145_v4, %v1717_v55  ;;  %v2186_v17 = vpop.f32.mrb[45].mxu1  ;;  %v2147_v49 = vpop.f32.mrb[46].mxu0 }
 0x296   : > { %v2206_v42 = vadd.f32 %v2186_v17, %v1758_v5  ;;  %v2188_v37 = vpop.f32.mrb[46].mxu1  ;;  %v2148_v63 = vpop.f32.mrb[47].mxu0 }
 0x297   : > { %v2189_v46 = vpop.f32.mrb[47].mxu1 }
 0x29b   : > { %v2342_v9 = vpop.f32.mrb[48].mxu0 }
 0x29c   : > { %v2636_v56 = vadd.f32 %v2342_v9, %v2191_v58  ;;  %v2383_v47 = vpop.f32.mrb[48].mxu1  ;;  %v2344_v36 = vpop.f32.mrb[49].mxu0 }
 0x29d   : > { %v2638_v7 = vadd.f32 %v2383_v47, %v2193_v22  ;;  %v2637_v16 = vadd.f32 %v2344_v36, %v2192_v25  ;;  %v2385_v10 = vpop.f32.mrb[49].mxu1  ;;  %v2346_v11 = vpop.f32.mrb[50].mxu0 }
 0x29e   : > { %v2639_v13 = vadd.f32 %v2385_v10, %v2194_v15  ;;  %v2387_v51 = vpop.f32.mrb[50].mxu1  ;;  %v2347_v18 = vpop.f32.mrb[51].mxu0 }
 0x29f   : > { %v2388_v21 = vpop.f32.mrb[51].mxu1 }
 0x2a3   : > { %v2424_v8 = vpop.f32.mrb[52].mxu0 }
 0x2a4   : > { %v2640_v55 = vadd.f32 %v2424_v8, %v2195_v60  ;;  %v2465_v28 = vpop.f32.mrb[52].mxu1  ;;  %v2426_v29 = vpop.f32.mrb[53].mxu0 }
 0x2a5   : > { %v2642_v5 = vadd.f32 %v2465_v28, %v2197_v3  ;;  %v2641_v31 = vadd.f32 %v2426_v29, %v2196_v26  ;;  %v2467_v35 = vpop.f32.mrb[53].mxu1  ;;  %v2428_v38 = vpop.f32.mrb[54].mxu0 }
 0x2a6   : > { %v2643_v40 = vadd.f32 %v2467_v35, %v2198_v59  ;;  %v2469_v58 = vpop.f32.mrb[54].mxu1  ;;  %v2429_v43 = vpop.f32.mrb[55].mxu0 }
 0x2a7   : > { %v2470_v45 = vpop.f32.mrb[55].mxu1 }
 0x2ab   : > { %v2506_v22 = vpop.f32.mrb[56].mxu0 }
 0x2ac   : > { %v2644_v25 = vadd.f32 %v2506_v22, %v2199_v48  ;;  %v2547_v50 = vpop.f32.mrb[56].mxu1  ;;  %v2508_v61 = vpop.f32.mrb[57].mxu0 }
 0x2ad   : > { %v2646_v15 = vadd.f32 %v2547_v50, %v2201_v44  ;;  %v2645_v1 = vadd.f32 %v2508_v61, %v2200_v24  ;;  %v2549_v23 = vpop.f32.mrb[57].mxu1  ;;  %v2510_v52 = vpop.f32.mrb[58].mxu0 }
 0x2ae   : > { %v2647_v20 = vadd.f32 %v2549_v23, %v2202_v2  ;;  %v2551_v60 = vpop.f32.mrb[58].mxu1  ;;  %v2511_v6 = vpop.f32.mrb[59].mxu0 }
 0x2af   : > { %v2552_v39 = vpop.f32.mrb[59].mxu1 }
 0x2b3   : > { %v2588_v3 = vpop.f32.mrb[60].mxu0 }
 0x2b4   : > { %v2648_v26 = vadd.f32 %v2588_v3, %v2203_v19  ;;  %v2629_v33 = vpop.f32.mrb[60].mxu1  ;;  %v2590_v57 = vpop.f32.mrb[61].mxu0 }
 0x2b5   : > { %v2650_v59 = vadd.f32 %v2629_v33, %v2205_v30  ;;  %v2649_v41 = vadd.f32 %v2590_v57, %v2204_v54  ;;  %v2631_v32 = vpop.f32.mrb[61].mxu1  ;;  %v2592_v53 = vpop.f32.mrb[62].mxu0 }
 0x2b6   : > { %v2651_v12 = vadd.f32 %v2631_v32, %v2206_v42  ;;  %v2633_v48 = vpop.f32.mrb[62].mxu1  ;;  %v2593_v34 = vpop.f32.mrb[63].mxu0 }
 0x2b7   : > { %v2634_v14 = vpop.f32.mrb[63].mxu1 }
 0x2bb   : > { %v2787_v44 = vpop.f32.mrb[64].mxu0 }
 0x2bc   : > { %v3081_v24 = vadd.f32 %v2787_v44, %v2636_v56  ;;  %v2828_v62 = vpop.f32.mrb[64].mxu1  ;;  %v2789_v27 = vpop.f32.mrb[65].mxu0 }
 0x2bd   : > { %v3083_v2 = vadd.f32 %v2828_v62, %v2638_v7  ;;  %v3082_v4 = vadd.f32 %v2789_v27, %v2637_v16  ;;  %v2830_v17 = vpop.f32.mrb[65].mxu1  ;;  %v2791_v49 = vpop.f32.mrb[66].mxu0  ;;  %v20362_v7 = vmov 0.0|0.0  }
 0x2be   : > { %v3084_v37 = vadd.f32 %v2830_v17, %v2639_v13  ;;  %v2832_v19 = vpop.f32.mrb[66].mxu1  ;;  %v2792_v63 = vpop.f32.mrb[67].mxu0  ;;  %5065 = vrot.lane.b32.xlu1 %v20362_v7, %s20360_s24 }
 0x2bf   : > { %v2833_v46 = vpop.f32.mrb[67].mxu1 }
 0x2c3   : > { %v2869_v30 = vpop.f32.mrb[68].mxu0 }
 0x2c4   : > { %v3085_v54 = vadd.f32 %v2869_v30, %v2640_v55  ;;  %v2910_v9 = vpop.f32.mrb[68].mxu1  ;;  %v2871_v47 = vpop.f32.mrb[69].mxu0 }
 0x2c5   : > { %v3087_v42 = vadd.f32 %v2910_v9, %v2642_v5  ;;  %v3086_v36 = vadd.f32 %v2871_v47, %v2641_v31  ;;  %v2912_v10 = vpop.f32.mrb[69].mxu1  ;;  %v2873_v11 = vpop.f32.mrb[70].mxu0 }
 0x2c6   : > { %v3088_v51 = vadd.f32 %v2912_v10, %v2643_v40  ;;  %v2914_v56 = vpop.f32.mrb[70].mxu1  ;;  %v2874_v18 = vpop.f32.mrb[71].mxu0 }
 0x2c7   : > { %v2915_v21 = vpop.f32.mrb[71].mxu1 }
 0x2cb   : > { %v2951_v16 = vpop.f32.mrb[72].mxu0 }
 0x2cc   : > { %v3089_v13 = vadd.f32 %v2951_v16, %v2644_v25  ;;  %v2992_v8 = vpop.f32.mrb[72].mxu1  ;;  %v2953_v28 = vpop.f32.mrb[73].mxu0 }
 0x2cd   : > { %v3091_v29 = vadd.f32 %v2992_v8, %v2646_v15  ;;  %v3090_v55 = vadd.f32 %v2953_v28, %v2645_v1  ;;  %v2994_v35 = vpop.f32.mrb[73].mxu1  ;;  %v2955_v38 = vpop.f32.mrb[74].mxu0 }
 0x2ce   : > { %v3092_v5 = vadd.f32 %v2994_v35, %v2647_v20  ;;  %v2996_v31 = vpop.f32.mrb[74].mxu1  ;;  %v2956_v58 = vpop.f32.mrb[75].mxu0 }
 0x2cf   : > { %v2997_v43 = vpop.f32.mrb[75].mxu1 }
 0x2d3   : > { %v3033_v40 = vpop.f32.mrb[76].mxu0 }
 0x2d4   : > { %v3093_v45 = vadd.f32 %v3033_v40, %v2648_v26  ;;  %v3074_v22 = vpop.f32.mrb[76].mxu1  ;;  %v3035_v50 = vpop.f32.mrb[77].mxu0 }
 0x2d5   : > { %v3095_v61 = vadd.f32 %v3074_v22, %v2650_v59  ;;  %v3094_v23 = vadd.f32 %v3035_v50, %v2649_v41  ;;  %v3076_v52 = vpop.f32.mrb[77].mxu1  ;;  %v3037_v60 = vpop.f32.mrb[78].mxu0 }
 0x2d6   : > { %v3096_v6 = vadd.f32 %v3076_v52, %v2651_v12  ;;  %v3078_v25 = vpop.f32.mrb[78].mxu1  ;;  %v3038_v39 = vpop.f32.mrb[79].mxu0 }
 0x2d7   : > { %v3079_v3 = vpop.f32.mrb[79].mxu1 }
 0x2db   : > { %v3232_v15 = vpop.f32.mrb[80].mxu0 }
 0x2dc   : > { %v3526_v1 = vadd.f32 %v3232_v15, %v3081_v24  ;;  %v3273_v33 = vpop.f32.mrb[80].mxu1  ;;  %v3234_v57 = vpop.f32.mrb[81].mxu0 }
 0x2dd   : > { %v3528_v20 = vadd.f32 %v3273_v33, %v3083_v2  ;;  %v3527_v32 = vadd.f32 %v3234_v57, %v3082_v4  ;;  %v3275_v53 = vpop.f32.mrb[81].mxu1  ;;  %v3236_v48 = vpop.f32.mrb[82].mxu0 }
 0x2de   : > { %v3529_v34 = vadd.f32 %v3275_v53, %v3084_v37  ;;  %v3277_v26 = vpop.f32.mrb[82].mxu1  ;;  %v3237_v14 = vpop.f32.mrb[83].mxu0 }
 0x2df   : > { %v3278_v44 = vpop.f32.mrb[83].mxu1 }
 0x2e3   : > { %v3314_v59 = vpop.f32.mrb[84].mxu0 }
 0x2e4   : > { %v3530_v41 = vadd.f32 %v3314_v59, %v3085_v54  ;;  %v3355_v62 = vpop.f32.mrb[84].mxu1  ;;  %v3316_v27 = vpop.f32.mrb[85].mxu0 }
 0x2e5   : > { %v3532_v12 = vadd.f32 %v3355_v62, %v3087_v42  ;;  %v3531_v17 = vadd.f32 %v3316_v27, %v3086_v36  ;;  %v3357_v49 = vpop.f32.mrb[85].mxu1  ;;  %v3318_v19 = vpop.f32.mrb[86].mxu0 }
 0x2e6   : > { %v3533_v63 = vadd.f32 %v3357_v49, %v3088_v51  ;;  %v3359_v24 = vpop.f32.mrb[86].mxu1  ;;  %v3319_v46 = vpop.f32.mrb[87].mxu0 }
 0x2e7   : > { %v3360_v30 = vpop.f32.mrb[87].mxu1 }
 0x2eb   : > { %v3396_v2 = vpop.f32.mrb[88].mxu0 }
 0x2ec   : > { %v3534_v4 = vadd.f32 %v3396_v2, %v3089_v13  ;;  %v3437_v9 = vpop.f32.mrb[88].mxu1  ;;  %v3398_v47 = vpop.f32.mrb[89].mxu0 }
 0x2ed   : > { %v3536_v37 = vadd.f32 %v3437_v9, %v3091_v29  ;;  %v3535_v10 = vadd.f32 %v3398_v47, %v3090_v55  ;;  %v3439_v11 = vpop.f32.mrb[89].mxu1  ;;  %v3400_v56 = vpop.f32.mrb[90].mxu0 }
 0x2ee   : > { %v3537_v18 = vadd.f32 %v3439_v11, %v3092_v5  ;;  %v3441_v54 = vpop.f32.mrb[90].mxu1  ;;  %v3401_v21 = vpop.f32.mrb[91].mxu0 }
 0x2ef   : > { %v3442_v16 = vpop.f32.mrb[91].mxu1 }
 0x2f3   : > { %v3478_v42 = vpop.f32.mrb[92].mxu0 }
 0x2f4   : > { %v3538_v36 = vadd.f32 %v3478_v42, %v3093_v45  ;;  %v3519_v8 = vpop.f32.mrb[92].mxu1  ;;  %v3480_v28 = vpop.f32.mrb[93].mxu0 }
 0x2f5   : > { %v3540_v51 = vadd.f32 %v3519_v8, %v3095_v61  ;;  %v3539_v35 = vadd.f32 %v3480_v28, %v3094_v23  ;;  %v3521_v38 = vpop.f32.mrb[93].mxu1  ;;  %v3482_v31 = vpop.f32.mrb[94].mxu0 }
 0x2f6   : > { %v3541_v58 = vadd.f32 %v3521_v38, %v3096_v6  ;;  %v3523_v13 = vpop.f32.mrb[94].mxu1  ;;  %v3483_v43 = vpop.f32.mrb[95].mxu0 }
 0x2f7   : > { %v3524_v40 = vpop.f32.mrb[95].mxu1 }
 0x2fb   : > { %v3677_v29 = vpop.f32.mrb[96].mxu0 }
 0x2fc   : > { %v3971_v55 = vadd.f32 %v3677_v29, %v3526_v1  ;;  %v3718_v22 = vpop.f32.mrb[96].mxu1  ;;  %v3679_v50 = vpop.f32.mrb[97].mxu0 }
 0x2fd   : > { %v3973_v5 = vadd.f32 %v3718_v22, %v3528_v20  ;;  %v3972_v52 = vadd.f32 %v3679_v50, %v3527_v32  ;;  %v3720_v60 = vpop.f32.mrb[97].mxu1  ;;  %v3681_v25 = vpop.f32.mrb[98].mxu0 }
 0x2fe   : > { %v3974_v39 = vadd.f32 %v3720_v60, %v3529_v34  ;;  %v3722_v45 = vpop.f32.mrb[98].mxu1  ;;  %v3682_v3 = vpop.f32.mrb[99].mxu0 }
 0x2ff   : > { %v3723_v15 = vpop.f32.mrb[99].mxu1 }
 0x303   : > { %v3759_v61 = vpop.f32.mrb[100].mxu0 }
 0x304   : > { %v3975_v23 = vadd.f32 %v3759_v61, %v3530_v41  ;;  %v3800_v33 = vpop.f32.mrb[100].mxu1  ;;  %v3761_v57 = vpop.f32.mrb[101].mxu0 }
 0x305   : > { %v3977_v6 = vadd.f32 %v3800_v33, %v3532_v12  ;;  %v3976_v53 = vadd.f32 %v3761_v57, %v3531_v17  ;;  %v3802_v48 = vpop.f32.mrb[101].mxu1  ;;  %v3763_v26 = vpop.f32.mrb[102].mxu0 }
 0x306   : > { %v3978_v14 = vadd.f32 %v3802_v48, %v3533_v63  ;;  %v3804_v1 = vpop.f32.mrb[102].mxu1  ;;  %v3764_v44 = vpop.f32.mrb[103].mxu0 }
 0x307   : > { %v3805_v59 = vpop.f32.mrb[103].mxu1 }
 0x30b   : > { %v3841_v20 = vpop.f32.mrb[104].mxu0 }
 0x30c   : > { %v3979_v32 = vadd.f32 %v3841_v20, %v3534_v4  ;;  %v3882_v62 = vpop.f32.mrb[104].mxu1  ;;  %v3843_v27 = vpop.f32.mrb[105].mxu0 }
 0x30d   : > { %v3981_v34 = vadd.f32 %v3882_v62, %v3536_v37  ;;  %v3980_v49 = vadd.f32 %v3843_v27, %v3535_v10  ;;  %v3884_v19 = vpop.f32.mrb[105].mxu1  ;;  %v3845_v24 = vpop.f32.mrb[106].mxu0 }
 0x30e   : > { %v3982_v46 = vadd.f32 %v3884_v19, %v3537_v18  ;;  %v3886_v41 = vpop.f32.mrb[106].mxu1  ;;  %v3846_v30 = vpop.f32.mrb[107].mxu0 }
 0x30f   : > { %v3887_v2 = vpop.f32.mrb[107].mxu1 }
 0x310   : > { %v21549_v2 = vpop.permute.xlu0 %4880 }
 0x313   : > { %v3923_v12 = vpop.f32.mrb[108].mxu0 }
 0x314   : > { %v3983_v17 = vadd.f32 %v3923_v12, %v3538_v36  ;;  %v3964_v9 = vpop.f32.mrb[108].mxu1  ;;  %v3925_v47 = vpop.f32.mrb[109].mxu0 }
 0x315   : > { %v3985_v63 = vadd.f32 %v3964_v9, %v3540_v51  ;;  %v3984_v11 = vadd.f32 %v3925_v47, %v3539_v35  ;;  %v3966_v56 = vpop.f32.mrb[109].mxu1  ;;  %v3927_v54 = vpop.f32.mrb[110].mxu0 }
 0x316   : > { %v3986_v21 = vadd.f32 %v3966_v56, %v3541_v58  ;;  %v3968_v4 = vpop.f32.mrb[110].mxu1  ;;  %v3928_v16 = vpop.f32.mrb[111].mxu0 }
 0x317   : > { %v3969_v42 = vpop.f32.mrb[111].mxu1 }
 0x31b   : > { %v4122_v37 = vpop.f32.mrb[112].mxu0 }
 0x31c   : > { %v4416_v10 = vadd.f32 %v4122_v37, %v3971_v55  ;;  %v4163_v8 = vpop.f32.mrb[112].mxu1  ;;  %v4124_v28 = vpop.f32.mrb[113].mxu0 }
 0x31d   : > { %v4418_v18 = vadd.f32 %v4163_v8, %v3973_v5  ;;  %v4417_v38 = vadd.f32 %v4124_v28, %v3972_v52  ;;  %v4165_v31 = vpop.f32.mrb[113].mxu1  ;;  %v4126_v13 = vpop.f32.mrb[114].mxu0 }
 0x31e   : > { %v4419_v43 = vadd.f32 %v4165_v31, %v3974_v39  ;;  %v4167_v36 = vpop.f32.mrb[114].mxu1  ;;  %v4127_v40 = vpop.f32.mrb[115].mxu0  ;;  %v479_v31 = vld [vmem:[%s20779_s4] sm:$0xff]  ;;  %v480_v13 = vld [vmem:[%s20779_s4 + $0x8] sm:$0xff] }
 0x31f   : > { %v4168_v29 = vpop.f32.mrb[115].mxu1  ;;  %v482_v36 = vld [vmem:[%s20779_s4 + $0x18] sm:$0xff] }
 0x323   : > { %v4204_v51 = vpop.f32.mrb[116].mxu0 }
 0x324   : > { %v21525_v35 = vadd.f32 %v4204_v51, %v3975_v23  ;;  %v4245_v22 = vpop.f32.mrb[116].mxu1  ;;  %v4206_v58 = vpop.f32.mrb[117].mxu0 }
 0x325   : > { %v21527_v50 = vadd.f32 %v4245_v22, %v3977_v6  ;;  %v21529_v60 = vadd.f32 %v4206_v58, %v3976_v53  ;;  %v4247_v55 = vpop.f32.mrb[117].mxu1  ;;  %v4208_v25 = vpop.f32.mrb[118].mxu0 }
 0x326   : > { %v21531_v45 = vadd.f32 %v4247_v55, %v3978_v14  ;;  %v4249_v5 = vpop.f32.mrb[118].mxu1  ;;  %v4209_v52 = vpop.f32.mrb[119].mxu0 }
 0x327   : > { %v4250_v3 = vpop.f32.mrb[119].mxu1 }
 0x32b   : > { %v4286_v39 = vpop.f32.mrb[120].mxu0 }
 0x32c   : > { %v21533_v15 = vadd.f32 %v4286_v39, %v3979_v32  ;;  %v4327_v61 = vpop.f32.mrb[120].mxu1  ;;  %v4288_v33 = vpop.f32.mrb[121].mxu0 }
 0x32d   : > { %v21535_v23 = vadd.f32 %v4327_v61, %v3981_v34  ;;  %v21537_v57 = vadd.f32 %v4288_v33, %v3980_v49  ;;  %v4329_v6 = vpop.f32.mrb[121].mxu1  ;;  %v4290_v48 = vpop.f32.mrb[122].mxu0 }
 0x32e   : > { %v21539_v53 = vadd.f32 %v4329_v6, %v3982_v46  ;;  %v4331_v26 = vpop.f32.mrb[122].mxu1  ;;  %v4291_v1 = vpop.f32.mrb[123].mxu0 }
 0x32f   : > { %v4332_v14 = vpop.f32.mrb[123].mxu1 }
 0x330   : > { %v20363_v14 = vmov 0.0  }
 0x333   : > { %v4368_v44 = vpop.f32.mrb[124].mxu0 }
 0x334   : > { %v21541_v59 = vadd.f32 %v4368_v44, %v3983_v17  ;;  %v4409_v20 = vpop.f32.mrb[124].mxu1  ;;  %v4370_v62 = vpop.f32.mrb[125].mxu0 }
 0x335   : > { %v21543_v32 = vadd.f32 %v4409_v20, %v3985_v63  ;;  %v21545_v27 = vadd.f32 %v4370_v62, %v3984_v11  ;;  %v4411_v34 = vpop.f32.mrb[125].mxu1  ;;  %v4372_v19 = vpop.f32.mrb[126].mxu0 }
 0x336   : > { %v21547_v49 = vadd.f32 %v4411_v34, %v3986_v21  ;;  %v4413_v24 = vpop.f32.mrb[126].mxu1  ;;  %v4373_v41 = vpop.f32.mrb[127].mxu0 }
 0x337   : > { %v4414_v46 = vpop.f32.mrb[127].mxu1 }
 0x33b   : > { %v4567_v30 = vpop.f32.mrb[128].mxu0 }
 0x33c   : > { %v4861_v12 = vadd.f32 %v4567_v30, %v4416_v10  ;;  %v4608_v17 = vpop.f32.mrb[128].mxu1  ;;  %v4569_v9 = vpop.f32.mrb[129].mxu0  ;;  %v481_v10 = vld [vmem:[%s20779_s4 + $0x10] sm:$0xff] }
 0x33d   : > { %v4863_v47 = vadd.f32 %v4608_v17, %v4418_v18  ;;  %v4862_v63 = vadd.f32 %v4569_v9, %v4417_v38  ;;  %v4610_v11 = vpop.f32.mrb[129].mxu1  ;;  %v4571_v56 = vpop.f32.mrb[130].mxu0  ;;  %v485_v17 = vld [vmem:[%s20779_s4 + $0x30] sm:$0xff]  ;;  %v483_v9 = vld [vmem:[%s20779_s4 + $0x20] sm:$0xff] }
 0x33e   : > { %v4864_v54 = vadd.f32 %v4610_v11, %v4419_v43  ;;  %v4612_v4 = vpop.f32.mrb[130].mxu1  ;;  %v4572_v21 = vpop.f32.mrb[131].mxu0  ;;  %v4883_v16 = vadd.f32 %v21549_v2, %v4861_v12 }
 0x33f   : > { %v4613_v42 = vpop.f32.mrb[131].mxu1  ;;  %v4885_v37 = vadd.f32 %v21549_v2, %v4863_v47  ;;  %v4884_v8 = vadd.f32 %v21549_v2, %v4862_v63  ;;  %v484_v47 = vld [vmem:[%s20779_s4 + $0x28] sm:$0xff] }
 0x340   : > { %v4886_v28 = vadd.f32 %v21549_v2, %v4864_v54  ;;  %vm4899_vm4 = vcmp.ge.f32.partialorder %v4883_v16, 0.0  ;;  %v4915_v18 = vmul.f32 0.1, %v4883_v16  ;;  %v486_v54 = vld [vmem:[%s20779_s4 + $0x38] sm:$0xff] }
 0x341   : > { %vm4901_vm5 = vcmp.ge.f32.partialorder %v4885_v37, 0.0  ;;  %v4917_v38 = vmul.f32 0.1, %v4885_v37  ;;  %vm4900_vm6 = vcmp.ge.f32.partialorder %v4884_v8, 0.0  ;;  %v4916_v43 = vmul.f32 0.1, %v4884_v8 }
 0x342   : > { %vm4902_vm7 = vcmp.ge.f32.partialorder %v4886_v28, 0.0  ;;  %v4918_v40 = vmul.f32 0.1, %v4886_v28  ;;  %v4931_v29 = vsel %vm4899_vm4, %v4883_v16, %v4915_v18 }
 0x343   : > { %v4649_v51 = vpop.f32.mrb[132].mxu0  ;;  %v4933_v22 = vsel %vm4901_vm5, %v4885_v37, %v4917_v38  ;;  %v4932_v58 = vsel %vm4900_vm6, %v4884_v8, %v4916_v43  ;;  %v4947_v55 = vmul.f32 %v4931_v29, %v479_v31 }
 0x344   : > { %v4865_v25 = vadd.f32 %v4649_v51, %v21525_v35  ;;  %v4690_v5 = vpop.f32.mrb[132].mxu1  ;;  %v4651_v52 = vpop.f32.mrb[133].mxu0  ;;  %v4934_v3 = vsel %vm4902_vm7, %v4886_v28, %v4918_v40  ;;  %v4949_v39 = vmul.f32 %v4933_v22, %v481_v10  ;;  %v21560_v61 = vmul.f32 %v4932_v58, %v480_v13  ;;  %v21589_v10 = vld [vmem:[#allocation12 + $0x28] sm:$0xf] }
 0x345   : > { %v4867_v33 = vadd.f32 %v4690_v5, %v21527_v50  ;;  %v4866_v6 = vadd.f32 %v4651_v52, %v21529_v60  ;;  %v4692_v48 = vpop.f32.mrb[133].mxu1  ;;  %v4653_v26 = vpop.f32.mrb[134].mxu0  ;;  %v21564_v1 = vmul.f32 %v4934_v3, %v482_v36  ;;  %v21567_v44 = vpack.c.bf16 %v4947_v55, %v20363_v14 }
 0x346   : > { %v4887_v35 = vadd.f32 %v21549_v2, %v4865_v25  ;;  %v4868_v20 = vadd.f32 %v4692_v48, %v21531_v45  ;;  %v4694_v62 = vpop.f32.mrb[134].mxu1  ;;  %v4654_v34 = vpop.f32.mrb[135].mxu0  ;;  %v19398_v50 = vpack.c.bf16 %v21560_v61, %v4947_v55  ;;  %v21573_v60 = vpack.c.bf16 %v4949_v39, %v21560_v61  ;;  %v489_v26 = vld [vmem:[%s20779_s4 + $0x50] sm:$0xff] }
 0x347   : > { %v4889_v19 = vadd.f32 %v21549_v2, %v4867_v33  ;;  %v4888_v24 = vadd.f32 %v21549_v2, %v4866_v6  ;;  %v4695_v41 = vpop.f32.mrb[135].mxu1  ;;  %v19399_v46 = vpack.c.bf16 %v21564_v1, %v4949_v39  ;;  %5221 = vst [vmem:[#allocation3 + $0x48] sm:$0xff] %v21567_v44  ;;  %v19959_v30 = vpack.c.bf16 %v4947_v55, %v4947_v55 }
 0x348   : > { %v4919_v45 = vmul.f32 0.1, %v4887_v35  ;;  %v4890_v12 = vadd.f32 %v21549_v2, %v4868_v20  ;;  %5222 = vst [vmem:[#allocation3 + $0x50] sm:$0xff] %v21573_v60  ;;  %5067 = vrot.lane.b32.xlu1 %v19398_v50, %s20360_s24  ;;  %vm4903_vm8 = vcmp.ge.f32.partialorder %v4887_v35, 0.0  ;;  %v19961_v8 = vpack.c.bf16 %v4949_v39, %v4949_v39  ;;  %v488_v20 = vld [vmem:[%s20779_s4 + $0x48] sm:$0xff] }
 0x349   : > { %v4921_v63 = vmul.f32 0.1, %v4889_v19  ;;  %v4920_v11 = vmul.f32 0.1, %v4888_v24  ;;  %5069 = vrot.lane.b32.xlu0 %v19399_v46, %s20360_s24  ;;  %vm4905_vm9 = vcmp.ge.f32.partialorder %v4889_v19, 0.0  ;;  %vm4904_vm10 = vcmp.ge.f32.partialorder %v4888_v24, 0.0  ;;  %18543 = vmatprep.subr.msk.bf16.mxu0 %vm611_vm0, %v19959_v30 }
 0x34a   : > { %v4922_v56 = vmul.f32 0.1, %v4890_v12  ;;  %vm4906_vm11 = vcmp.ge.f32.partialorder %v4890_v12, 0.0  ;;  %v4935_v4 = vsel %vm4903_vm8, %v4887_v35, %v4919_v45  ;;  %5494 = vmatpush1.bf16.msra.mxu0 %v20362_v7  ;;  %18545 = vmatprep.subr.msk.bf16.mxu1 %vm611_vm0, %v19961_v8  ;;  %v19962_v33 = vpack.c.bf16 %v21560_v61, %v21560_v61  ;;  %v487_v35 = vld [vmem:[%s20779_s4 + $0x40] sm:$0xff] }
 0x34b   : > { %v4731_v21 = vpop.f32.mrb[136].mxu0  ;;  %v4937_v16 = vsel %vm4905_vm9, %v4889_v19, %v4921_v63  ;;  %v4936_v42 = vsel %vm4904_vm10, %v4888_v24, %v4920_v11  ;;  %v4951_v37 = vmul.f32 %v4935_v4, %v483_v9  ;;  %v490_v24 = vld [vmem:[%s20779_s4 + $0x58] sm:$0xff] }
 0x34c   : > { %v4869_v28 = vadd.f32 %v4731_v21, %v21533_v15  ;;  %v4772_v31 = vpop.f32.mrb[136].mxu1  ;;  %v4733_v13 = vpop.f32.mrb[137].mxu0  ;;  %v4938_v18 = vsel %vm4906_vm11, %v4890_v12, %v4922_v56  ;;  %v21592_v38 = vmul.f32 %v4937_v16, %v485_v17  ;;  %v21594_v43 = vmul.f32 %v4936_v42, %v484_v47 }
 0x34d   : > { %v4871_v36 = vadd.f32 %v4772_v31, %v21535_v23  ;;  %v4870_v40 = vadd.f32 %v4733_v13, %v21537_v57  ;;  %v4774_v29 = vpop.f32.mrb[137].mxu1  ;;  %v4735_v51 = vpop.f32.mrb[138].mxu0  ;;  %v21598_v22 = vmul.f32 %v4938_v18, %v486_v54  ;;  %v21601_v58 = vpack.c.bf16 %v4951_v37, %v21564_v1  ;;  %18544 = vmatmul.mubr.msk.bf16.vlgmr.msra.gmra.mrb[144].mxu0 %vm962_vm1, %v21589_v10 }
 0x34e   : > { %v4891_v15 = vadd.f32 %v21549_v2, %v4869_v28  ;;  %v4872_v55 = vadd.f32 %v4774_v29, %v21539_v53  ;;  %v4776_v25 = vpop.f32.mrb[138].mxu1  ;;  %v4736_v5 = vpop.f32.mrb[139].mxu0  ;;  %v19400_v23 = vpack.c.bf16 %v21594_v43, %v4951_v37  ;;  %v21609_v57 = vpack.c.bf16 %v21592_v38, %v21594_v43  ;;  %5607 = vmatprep.mubr.bf16.mxu0 %v20359_v0 }
 0x34f   : > { %v4893_v52 = vadd.f32 %v21549_v2, %v4871_v36  ;;  %v4892_v3 = vadd.f32 %v21549_v2, %v4870_v40  ;;  %v4777_v39 = vpop.f32.mrb[139].mxu1  ;;  %v19401_v53 = vpack.c.bf16 %v21598_v22, %v21592_v38  ;;  %5223 = vst [vmem:[#allocation3 + $0x58] sm:$0xff] %v21601_v58  ;;  %v19963_v62 = vpack.c.bf16 %v4951_v37, %v4951_v37  ;;  %v493_v25 = vld [vmem:[%s20779_s4 + $0x70] sm:$0xff]  ;;  %v491_v5 = vld [vmem:[%s20779_s4 + $0x60] sm:$0xff] }
 0x350   : > { %v4923_v6 = vmul.f32 0.1, %v4891_v15  ;;  %v4894_v48 = vadd.f32 %v21549_v2, %v4872_v55  ;;  %5224 = vst [vmem:[#allocation3 + $0x60] sm:$0xff] %v21609_v57  ;;  %5071 = vrot.lane.b32.xlu1 %v19400_v23, %s20360_s24  ;;  %vm4907_vm12 = vcmp.ge.f32.partialorder %v4891_v15, 0.0  ;;  %v5452_v61 = vsel %vm611_vm0, %v19962_v33, 0  ;;  %v492_v23 = vld [vmem:[%s20779_s4 + $0x68] sm:$0xff] }
 0x351   : > { %v4925_v34 = vmul.f32 0.1, %v4893_v52  ;;  %v4924_v50 = vmul.f32 0.1, %v4892_v3  ;;  %5073 = vrot.lane.b32.xlu0 %v19401_v53, %s20360_s24  ;;  %vm4909_vm13 = vcmp.ge.f32.partialorder %v4893_v52, 0.0  ;;  %5535 = vmatpush1.bf16.msra.mxu1 %v5452_v61  ;;  %vm4908_vm15 = vcmp.ge.f32.partialorder %v4892_v3, 0.0 }
 0x352   : > { %v4926_v19 = vmul.f32 0.1, %v4894_v48  ;;  %vm4910_vm14 = vcmp.ge.f32.partialorder %v4894_v48, 0.0  ;;  %v4939_v41 = vsel %vm4907_vm12, %v4891_v15, %v4923_v6  ;;  %18547 = vmatprep.subr.msk.bf16.mxu0 %vm611_vm0, %v19963_v62  ;;  %v19964_v17 = vpack.c.bf16 %v21564_v1, %v21564_v1  ;;  %v494_v53 = vld [vmem:[%s20779_s4 + $0x78] sm:$0xff] }
 0x353   : > { %v4813_v46 = vpop.f32.mrb[140].mxu0  ;;  %v4941_v30 = vsel %vm4909_vm13, %v4893_v52, %v4925_v34  ;;  %v4940_v45 = vsel %vm4908_vm15, %v4892_v3, %v4924_v50  ;;  %v4955_v12 = vmul.f32 %v4939_v41, %v487_v35  ;;  %v19965_v15 = vpack.c.bf16 %v21592_v38, %v21592_v38 }
 0x354   : > { %v4873_v9 = vadd.f32 %v4813_v46, %v21541_v59  ;;  %v4854_v47 = vpop.f32.mrb[140].mxu1  ;;  %v4815_v63 = vpop.f32.mrb[141].mxu0  ;;  %v4942_v11 = vsel %vm4910_vm14, %v4894_v48, %v4926_v19  ;;  %v21634_v56 = vmul.f32 %v4941_v30, %v489_v26  ;;  %v21636_v54 = vmul.f32 %v4940_v45, %v488_v20  ;;  %18546 = vmatmul.mubr.msk.bf16.vlgmr.msra.gmra.mrb[144].mxu1 %vm962_vm1, %v21589_v10 }
 0x355   : > { %v4875_v4 = vadd.f32 %v4854_v47, %v21543_v32  ;;  %v4874_v21 = vadd.f32 %v4815_v63, %v21545_v27  ;;  %v4856_v16 = vpop.f32.mrb[141].mxu1  ;;  %v4817_v42 = vpop.f32.mrb[142].mxu0  ;;  %v21640_v37 = vmul.f32 %v4942_v11, %v490_v24  ;;  %v21643_v8 = vpack.c.bf16 %v4955_v12, %v21598_v22  ;;  %5648 = vmatprep.mubr.bf16.mxu1 %v20359_v0 }
 0x356   : > { %v4895_v59 = vadd.f32 %v21549_v2, %v4873_v9  ;;  %v4876_v1 = vadd.f32 %v4856_v16, %v21547_v49  ;;  %v4858_v28 = vpop.f32.mrb[142].mxu1  ;;  %v4818_v31 = vpop.f32.mrb[143].mxu0  ;;  %v19402_v32 = vpack.c.bf16 %v21636_v54, %v4955_v12  ;;  %v21652_v27 = vpack.c.bf16 %v21634_v56, %v21636_v54  ;;  %18549 = vmatprep.subr.msk.bf16.mxu1 %vm611_vm0, %v19965_v15 }
 0x357   : > { %v4897_v13 = vadd.f32 %v21549_v2, %v4875_v4  ;;  %v4896_v18 = vadd.f32 %v21549_v2, %v4874_v21  ;;  %v4859_v36 = vpop.f32.mrb[143].mxu1  ;;  %v19403_v49 = vpack.c.bf16 %v21640_v37, %v21634_v56  ;;  %5225 = vst [vmem:[#allocation3 + $0x68] sm:$0xff] %v21643_v8  ;;  %v5458_v40 = vsel %vm611_vm0, %v19964_v17, 0 }
 0x358   : > { %v4927_v29 = vmul.f32 0.1, %v4895_v59  ;;  %v4898_v51 = vadd.f32 %v21549_v2, %v4876_v1  ;;  %5226 = vst [vmem:[#allocation3 + $0x70] sm:$0xff] %v21652_v27  ;;  %5075 = vrot.lane.b32.xlu1 %v19402_v32, %s20360_s24  ;;  %5576 = vmatpush1.bf16.msra.mxu0 %v5458_v40  ;;  %v19966_v55 = vpack.c.bf16 %v21594_v43, %v21594_v43  ;;  %vm4911_vm5 = vcmp.ge.f32.partialorder %v4895_v59, 0.0 }
 0x359   : > { %v4929_v52 = vmul.f32 0.1, %v4897_v13  ;;  %v4928_v3 = vmul.f32 0.1, %v4896_v18  ;;  %5077 = vrot.lane.b32.xlu0 %v19403_v49, %s20360_s24  ;;  %vm4913_vm4 = vcmp.ge.f32.partialorder %v4897_v13, 0.0  ;;  %vm4912_vm7 = vcmp.ge.f32.partialorder %v4896_v18, 0.0 }
 0x35a   : > { %v4930_v2 = vmul.f32 0.1, %v4898_v51  ;;  %v5464_v39 = vsel %vm611_vm0, %v19966_v55, 0  ;;  %vm4914_vm6 = vcmp.ge.f32.partialorder %v4898_v51, 0.0  ;;  %v4943_v43 = vsel %vm4911_vm5, %v4895_v59, %v4927_v29 }
 0x35b   : > { %5617 = vmatpush1.bf16.msra.mxu1 %v5464_v39  ;;  %v4945_v38 = vsel %vm4913_vm4, %v4897_v13, %v4929_v52  ;;  %v4944_v33 = vsel %vm4912_vm7, %v4896_v18, %v4928_v3  ;;  %v19967_v6 = vpack.c.bf16 %v4955_v12, %v4955_v12  ;;  %v4959_v35 = vmul.f32 %v4943_v43, %v491_v5 }
 0x35c   : > { %v4946_v48 = vsel %vm4914_vm6, %v4898_v51, %v4930_v2  ;;  %v4961_v26 = vmul.f32 %v4945_v38, %v493_v25  ;;  %v4960_v20 = vmul.f32 %v4944_v33, %v492_v23  ;;  %18548 = vmatmul.mubr.msk.bf16.vlgmr.msra.gmra.mrb[148].mxu0 %vm962_vm1, %v21589_v10  ;;  %v19968_v34 = vpack.c.bf16 %v21598_v22, %v21598_v22 }
 0x35d   : > { %v4962_v62 = vmul.f32 %v4946_v48, %v494_v53  ;;  %18551 = vmatprep.subr.msk.bf16.mxu0 %vm611_vm0, %v19967_v6  ;;  %v19969_v50 = vpack.c.bf16 %v21634_v56, %v21634_v56  ;;  %v19970_v61 = vpack.c.bf16 %v21636_v54, %v21636_v54  ;;  %v19413_v24 = vpack.c.bf16 %v4959_v35, %v21640_v37 }
 0x35e   : > { %v19404_v19 = vpack.c.bf16 %v4960_v20, %v4959_v35  ;;  %v19414_v41 = vpack.c.bf16 %v4961_v26, %v4960_v20  ;;  %18550 = vmatmul.mubr.msk.bf16.vlgmr.msra.gmra.mrb[148].mxu1 %vm962_vm1, %v21589_v10  ;;  %5689 = vmatprep.mubr.bf16.mxu0 %v20359_v0  ;;  %v5470_v30 = vsel %vm611_vm0, %v19968_v34, 0  ;;  %v19971_v12 = vpack.c.bf16 %v4959_v35, %v4959_v35 }
 0x35f   : > { %v19405_v46 = vpack.c.bf16 %v4962_v62, %v4961_v26  ;;  %18553 = vmatprep.subr.msk.bf16.mxu1 %vm611_vm0, %v19969_v50  ;;  %v5476_v22 = vsel %vm611_vm0, %v19970_v61, 0  ;;  %5730 = vmatprep.mubr.bf16.mxu1 %v20359_v0  ;;  %v19415_v45 = vpack.c.bf16 %v20363_v14, %v4962_v62  ;;  %5227 = vst [vmem:[#allocation3 + $0x78] sm:$0xff] %v19413_v24 }
 0x360   : > { %5228 = vst [vmem:[#allocation3 + $0x80] sm:$0xff] %v19414_v41  ;;  %5079 = vrot.lane.b32.xlu1 %v19404_v19, %s20360_s24  ;;  %5658 = vmatpush1.bf16.msra.mxu0 %v5470_v30  ;;  %v19972_v17 = vpack.c.bf16 %v21640_v37, %v21640_v37  ;;  %v19973_v9 = vpack.c.bf16 %v4961_v26, %v4961_v26 }
 0x361   : > { %5081 = vrot.lane.b32.xlu0 %v19405_v46, %s20360_s24  ;;  %5699 = vmatpush1.bf16.msra.mxu1 %v5476_v22  ;;  %v19974_v47 = vpack.c.bf16 %v4960_v20, %v4960_v20  ;;  %5229 = vst [vmem:[#allocation3 + $0x88] sm:$0xff] %v19415_v45 }
 0x362   : > { %18555 = vmatprep.subr.msk.bf16.mxu0 %vm611_vm0, %v19971_v12  ;;  %v5482_v63 = vsel %vm611_vm0, %v19972_v17, 0  ;;  %18557 = vmatprep.subr.msk.bf16.mxu1 %vm611_vm0, %v19973_v9 }
 0x363   : > { %v5488_v11 = vsel %vm611_vm0, %v19974_v47, 0 }
 0x364   : > { %5316 = vrot.lane.b32.xlu1 %v21567_v44, %s20361_s8  ;;  %18552 = vmatmul.mubr.msk.bf16.vlgmr.msra.gmra.mrb[152].mxu0 %vm962_vm1, %v21589_v10  ;;  %v9356_v44 = vld [vmem:[#allocation13 + $0x8] sm:$0xff] }
 0x365   : > { %5318 = vrot.lane.b32.xlu0 %v21573_v60, %s20361_s8  ;;  %5740 = vmatpush1.bf16.msra.mxu0 %v5482_v63  ;;  %v5066_v60 = vpop.permute.xlu1 %5065 }
 0x366   : > { %18554 = vmatmul.mubr.msk.bf16.vlgmr.msra.gmra.mrb[152].mxu1 %vm962_vm1, %v21589_v10  ;;  %5771 = vmatprep.mubr.bf16.mxu0 %v20359_v0 }
 0x367   : > { %5781 = vmatpush1.bf16.msra.mxu1 %v5488_v11  ;;  %5812 = vmatprep.mubr.bf16.mxu1 %v20359_v0 }
 0x368   : > { %5320 = vrot.lane.b32.xlu1 %v21601_v58, %s20361_s8  ;;  %v5085_v58 = vrot.slane %v5066_v60, 4 }
 0x369   : > { %5322 = vrot.lane.b32.xlu0 %v21609_v57, %s20361_s8 }
 0x36c   : > { %5324 = vrot.lane.b32.xlu1 %v21643_v8, %s20361_s8  ;;  %18556 = vmatmul.mubr.msk.bf16.vlgmr.msra.gmra.mrb[156].mxu0 %vm962_vm1, %v21589_v10 }
 0x36d   : > { %5326 = vrot.lane.b32.xlu0 %v21652_v27, %s20361_s8  ;;  %5944 = vmatprep.mubr.bf16.mxu0 %v20359_v0  ;;  %v21747_v27 = vld [vmem:[#allocation12 + $0x24] sm:$0xf] }
 0x36e   : > { %18558 = vmatmul.mubr.msk.bf16.vlgmr.msra.gmra.mrb[156].mxu1 %vm962_vm1, %v21589_v10 }
 0x36f   : > { %5985 = vmatprep.mubr.bf16.mxu1 %v20359_v0 }
 0x370   : > { %5328 = vrot.lane.b32.xlu1 %v19413_v24, %s20361_s8 }
 0x371   : > { %5330 = vrot.lane.b32.xlu0 %v19414_v41, %s20361_s8 }
 0x374   : > { %5332 = vrot.lane.b32.xlu1 %v19415_v45, %s20361_s8 }
 0x375   : > { %5083 = vrot.lane.b32.xlu0 %v20362_v7, %s20360_s24 }
 0x378   : > { %5334 = vrot.lane.b32.xlu1 %v20362_v7, %s20361_s8 }
 0x379   : > { %9359 = vperm.xlu0 %19666, %v9356_v44  }
 0x37c   : > { %9544 = vrot.lane.b32.xlu1 %v20362_v7, %s20360_s24 }
 0x3ba   : > { %v5068_v10 = vpop.permute.xlu1 %5067 }
 0x3bb   : > { %v5070_v57 = vpop.permute.xlu0 %5069  ;;  %v5086_v56 = vrot.slane %v5068_v10, 4 }
 0x3bc   : > { %v5087_v54 = vrot.slane %v5070_v57, 4 }
 0x3bd   : > { %v5095_v4 = vsel %vm611_vm0, %v5085_v58, %v5086_v56 }
 0x3be   : > { %v5096_v21 = vsel %vm613_vm2, %v5066_v60, %v5095_v4  ;;  %v5097_v16 = vsel %vm611_vm0, %v5086_v56, %v5087_v54 }
 0x3bf   : > { %v5098_v42 = vsel %vm613_vm2, %v5068_v10, %v5097_v16  ;;  %5122 = vst [vmem:[#allocation3] sm:$0xff] %v5096_v21  ;;  %v18560_v37 = vcombine.high %v5096_v21, %v5096_v21  ;;  %v18559_v8 = vcombine.low %v5096_v21, %v5096_v21 }
 0x3c0   : > { %5123 = vst [vmem:[#allocation3 + $0x8] sm:$0xff] %v5098_v42  ;;  %v21738_v59 = vcombine.high %v5098_v42, %v5098_v42  ;;  %v18561_v1 = vcombine.low %v5098_v42, %v5098_v42 }
 0x3c1   : > { %18575 = vmatprep.subr.msk.bf16.mxu0 %vm611_vm0, %v18560_v37  ;;  %v5865_v28 = vsel %vm611_vm0, %v18559_v8, 0 }
 0x3c2   : > { %v5072_v31 = vpop.permute.xlu1 %5071  ;;  %18577 = vmatprep.subr.msk.bf16.mxu1 %vm611_vm0, %v21738_v59  ;;  %5913 = vmatpush1.bf16.msra.mxu0 %v5865_v28  ;;  %v21745_v32 = vsel %vm611_vm0, %v18561_v1, 0 }
 0x3c3   : > { %v5074_v13 = vpop.permute.xlu0 %5073  ;;  %v5088_v18 = vrot.slane %v5072_v31, 4  ;;  %5954 = vmatpush1.bf16.msra.mxu1 %v21745_v32 }
 0x3c4   : > { %v5089_v36 = vrot.slane %v5074_v13, 4 }
 0x3c5   : > { %v5099_v49 = vsel %vm611_vm0, %v5087_v54, %v5088_v18  ;;  %18576 = vmatmul.mubr.msk.bf16.vlgmr.msra.gmra.mrb[160].mxu0 %vm962_vm1, %v21747_v27 }
 0x3c6   : > { %v5100_v40 = vsel %vm613_vm2, %v5070_v57, %v5099_v49  ;;  %v5101_v29 = vsel %vm611_vm0, %v5088_v18, %v5089_v36  ;;  %18578 = vmatmul.mubr.msk.bf16.vlgmr.msra.gmra.mrb[160].mxu1 %vm962_vm1, %v21747_v27  ;;  %6026 = vmatprep.mubr.bf16.mxu0 %v20359_v0 }
 0x3c7   : > { %v5102_v51 = vsel %vm613_vm2, %v5072_v31, %v5101_v29  ;;  %5124 = vst [vmem:[#allocation3 + $0x10] sm:$0xff] %v5100_v40  ;;  %v21759_v15 = vcombine.high %v5100_v40, %v5100_v40  ;;  %v18563_v55 = vcombine.low %v5100_v40, %v5100_v40  ;;  %6067 = vmatprep.mubr.bf16.mxu1 %v20359_v0 }
 0x3c8   : > { %5125 = vst [vmem:[#allocation3 + $0x18] sm:$0xff] %v5102_v51  ;;  %v21762_v25 = vcombine.high %v5102_v51, %v5102_v51  ;;  %v18565_v5 = vcombine.low %v5102_v51, %v5102_v51 }
 0x3c9   : > { %18579 = vmatprep.subr.msk.bf16.mxu0 %vm611_vm0, %v21759_v15  ;;  %v21767_v23 = vsel %vm611_vm0, %v18563_v55, 0 }
 0x3ca   : > { %v5076_v52 = vpop.permute.xlu1 %5075  ;;  %18581 = vmatprep.subr.msk.bf16.mxu1 %vm611_vm0, %v21762_v25  ;;  %5995 = vmatpush1.bf16.msra.mxu0 %v21767_v23  ;;  %v21773_v3 = vsel %vm611_vm0, %v18565_v5, 0 }
 0x3cb   : > { %v5078_v2 = vpop.permute.xlu0 %5077  ;;  %v5090_v39 = vrot.slane %v5076_v52, 4  ;;  %6036 = vmatpush1.bf16.msra.mxu1 %v21773_v3 }
 0x3cc   : > { %v5091_v53 = vrot.slane %v5078_v2, 4 }
 0x3cd   : > { %v5103_v38 = vsel %vm611_vm0, %v5089_v36, %v5090_v39  ;;  %18580 = vmatmul.mubr.msk.bf16.vlgmr.msra.gmra.mrb[164].mxu0 %vm962_vm1, %v21747_v27 }
 0x3ce   : > { %v5104_v43 = vsel %vm613_vm2, %v5074_v13, %v5103_v38  ;;  %v5105_v33 = vsel %vm611_vm0, %v5090_v39, %v5091_v53  ;;  %18582 = vmatmul.mubr.msk.bf16.vlgmr.msra.gmra.mrb[164].mxu1 %vm962_vm1, %v21747_v27  ;;  %6108 = vmatprep.mubr.bf16.mxu0 %v20359_v0 }
 0x3cf   : > { %v5106_v6 = vsel %vm613_vm2, %v5076_v52, %v5105_v33  ;;  %5126 = vst [vmem:[#allocation3 + $0x20] sm:$0xff] %v5104_v43  ;;  %v21785_v48 = vcombine.high %v5104_v43, %v5104_v43  ;;  %v18567_v26 = vcombine.low %v5104_v43, %v5104_v43  ;;  %6149 = vmatprep.mubr.bf16.mxu1 %v20359_v0 }
 0x3d0   : > { %5127 = vst [vmem:[#allocation3 + $0x28] sm:$0xff] %v5106_v6  ;;  %v21788_v35 = vcombine.high %v5106_v6, %v5106_v6  ;;  %v18569_v20 = vcombine.low %v5106_v6, %v5106_v6 }
 0x3d1   : > { %18583 = vmatprep.subr.msk.bf16.mxu0 %vm611_vm0, %v21785_v48  ;;  %v21793_v62 = vsel %vm611_vm0, %v18567_v26, 0 }
 0x3d2   : > { %v5080_v34 = vpop.permute.xlu1 %5079  ;;  %18585 = vmatprep.subr.msk.bf16.mxu1 %vm611_vm0, %v21788_v35  ;;  %6077 = vmatpush1.bf16.msra.mxu0 %v21793_v62  ;;  %v21799_v50 = vsel %vm611_vm0, %v18569_v20, 0 }
 0x3d3   : > { %v21801_v61 = vpop.permute.xlu0 %5081  ;;  %v5092_v19 = vrot.slane %v5080_v34, 4  ;;  %6118 = vmatpush1.bf16.msra.mxu1 %v21799_v50 }
 0x3d4   : > { %v5093_v24 = vrot.slane %v21801_v61, 4 }
 0x3d5   : > { %v5107_v41 = vsel %vm611_vm0, %v5091_v53, %v5092_v19  ;;  %18584 = vmatmul.mubr.msk.bf16.vlgmr.msra.gmra.mrb[168].mxu0 %vm962_vm1, %v21747_v27  ;;  %v21862_v53 = vld [vmem:[#allocation12 + $0x2c] sm:$0xf] }
 0x3d6   : > { %v5108_v46 = vsel %vm613_vm2, %v5078_v2, %v5107_v41  ;;  %v5109_v30 = vsel %vm611_vm0, %v5092_v19, %v5093_v24  ;;  %v5317_v22 = vpop.permute.xlu1 %5316  ;;  %18586 = vmatmul.mubr.msk.bf16.vlgmr.msra.gmra.mrb[168].mxu1 %vm962_vm1, %v21747_v27  ;;  %6190 = vmatprep.mubr.bf16.mxu0 %v20359_v0 }
 0x3d7   : > { %v5110_v45 = vsel %vm613_vm2, %v5080_v34, %v5109_v30  ;;  %5128 = vst [vmem:[#allocation3 + $0x30] sm:$0xff] %v5108_v46  ;;  %v5319_v12 = vpop.permute.xlu0 %5318  ;;  %v5336_v17 = vrot.slane %v5317_v22, 4  ;;  %v21816_v9 = vcombine.high %v5108_v46, %v5108_v46  ;;  %v18571_v47 = vcombine.low %v5108_v46, %v5108_v46  ;;  %6231 = vmatprep.mubr.bf16.mxu1 %v20359_v0 }
 0x3d8   : > { %5129 = vst [vmem:[#allocation3 + $0x38] sm:$0xff] %v5110_v45  ;;  %v5337_v63 = vrot.slane %v5319_v12, 4  ;;  %v21819_v11 = vcombine.high %v5110_v45, %v5110_v45  ;;  %v18573_v44 = vcombine.low %v5110_v45, %v5110_v45 }
 0x3d9   : > { %18587 = vmatprep.subr.msk.bf16.mxu0 %vm611_vm0, %v21816_v9  ;;  %v21824_v60 = vsel %vm611_vm0, %v18571_v47, 0 }
 0x3da   : > { %v5346_v10 = vsel %vm611_vm0, %v5336_v17, %v5337_v63  ;;  %v5321_v58 = vpop.permute.xlu1 %5320  ;;  %18589 = vmatprep.subr.msk.bf16.mxu1 %vm611_vm0, %v21819_v11  ;;  %6159 = vmatpush1.bf16.msra.mxu0 %v21824_v60  ;;  %v21831_v57 = vsel %vm611_vm0, %v18573_v44, 0 }
 0x3db   : > { %v5347_v56 = vsel %vm866_vm3, %v5317_v22, %v5346_v10  ;;  %v5323_v54 = vpop.permute.xlu0 %5322  ;;  %v5338_v4 = vrot.slane %v5321_v58, 4  ;;  %6200 = vmatpush1.bf16.msra.mxu1 %v21831_v57 }
 0x3dc   : > { %5373 = vst [vmem:[#allocation3 + $0x90] sm:$0xff] %v5347_v56  ;;  %v5339_v21 = vrot.slane %v5323_v54, 4  ;;  %v18592_v16 = vcombine.high %v5347_v56, %v5347_v56  ;;  %v18591_v42 = vcombine.low %v5347_v56, %v5347_v56 }
 0x3dd   : > { %v5348_v37 = vsel %vm611_vm0, %v5337_v63, %v5338_v4  ;;  %18588 = vmatmul.mubr.msk.bf16.vlgmr.msra.gmra.mrb[172].mxu0 %vm962_vm1, %v21747_v27 }
 0x3de   : > { %v5349_v8 = vsel %vm866_vm3, %v5319_v12, %v5348_v37  ;;  %v5350_v1 = vsel %vm611_vm0, %v5338_v4, %v5339_v21  ;;  %v5325_v28 = vpop.permute.xlu1 %5324  ;;  %18590 = vmatmul.mubr.msk.bf16.vlgmr.msra.gmra.mrb[172].mxu1 %vm962_vm1, %v21747_v27  ;;  %18607 = vmatprep.subr.msk.bf16.mxu0 %vm611_vm0, %v18592_v16  ;;  %v6294_v31 = vsel %vm611_vm0, %v18591_v42, 0 }
 0x3df   : > { %v5351_v13 = vsel %vm866_vm3, %v5321_v58, %v5350_v1  ;;  %5374 = vst [vmem:[#allocation3 + $0x98] sm:$0xff] %v5349_v8  ;;  %v5327_v18 = vpop.permute.xlu0 %5326  ;;  %v5340_v36 = vrot.slane %v5325_v28, 4  ;;  %6342 = vmatpush1.bf16.msra.mxu0 %v6294_v31  ;;  %v21845_v49 = vcombine.high %v5349_v8, %v5349_v8  ;;  %v18593_v40 = vcombine.low %v5349_v8, %v5349_v8 }
 0x3e0   : > { %6373 = vmatprep.mubr.bf16.mxu0 %v20359_v0  ;;  %5375 = vst [vmem:[#allocation3 + $0xa0] sm:$0xff] %v5351_v13  ;;  %v5341_v29 = vrot.slane %v5327_v18, 4  ;;  %v21848_v51 = vcombine.high %v5351_v13, %v5351_v13  ;;  %6414 = vmatprep.mubr.bf16.mxu1 %v20359_v0  ;;  %v18595_v5 = vcombine.low %v5351_v13, %v5351_v13 }
 0x3e1   : > { %v5352_v27 = vsel %vm611_vm0, %v5339_v21, %v5340_v36  ;;  %18609 = vmatprep.subr.msk.bf16.mxu1 %vm611_vm0, %v21845_v49  ;;  %v21855_v55 = vsel %vm611_vm0, %v18593_v40, 0 }
 0x3e2   : > { %v5353_v52 = vsel %vm866_vm3, %v5323_v54, %v5352_v27  ;;  %v5354_v2 = vsel %vm611_vm0, %v5340_v36, %v5341_v29  ;;  %v5329_v39 = vpop.permute.xlu1 %5328  ;;  %18611 = vmatprep.subr.msk.bf16.mxu0 %vm611_vm0, %v21848_v51  ;;  %6383 = vmatpush1.bf16.msra.mxu1 %v21855_v55  ;;  %v21873_v41 = vsel %vm611_vm0, %v18595_v5, 0  ;;  %v6688_v36 = vld [vmem:[#allocation3 + $0xc] sm:$0xff] }
 0x3e3   : > { %v5355_v38 = vsel %vm866_vm3, %v5325_v28, %v5354_v2  ;;  %5376 = vst [vmem:[#allocation3 + $0xa8] sm:$0xff] %v5353_v52  ;;  %v5331_v43 = vpop.permute.xlu0 %5330  ;;  %v5342_v33 = vrot.slane %v5329_v39, 4  ;;  %v21865_v6 = vcombine.high %v5353_v52, %v5353_v52  ;;  %v18597_v26 = vcombine.low %v5353_v52, %v5353_v52 }
 0x3e4   : > { %5377 = vst [vmem:[#allocation3 + $0xb0] sm:$0xff] %v5355_v38  ;;  %v5343_v20 = vrot.slane %v5331_v43, 4  ;;  %v21867_v34 = vcombine.high %v5355_v38, %v5355_v38  ;;  %v18599_v58 = vcombine.low %v5355_v38, %v5355_v38  ;;  %v18626_v5 = vcombine.high %v6688_v36, %v6688_v36  ;;  %v6690_v38 = vld [vmem:[#allocation3 + $0x1c] sm:$0xff] }
 0x3e5   : > { %v5356_v19 = vsel %vm611_vm0, %v5341_v29, %v5342_v33  ;;  %18608 = vmatmul.mubr.msk.bf16.vlgmr.msra.gmra.mrb[176].mxu0 %vm962_vm1, %v21862_v53  ;;  %18613 = vmatprep.subr.msk.bf16.mxu1 %vm611_vm0, %v21865_v6  ;;  %v21878_v46 = vsel %vm611_vm0, %v18597_v26, 0  ;;  %v18625_v2 = vcombine.low %v6688_v36, %v6688_v36  ;;  %v7133_v36 = vld [vmem:[#allocation3 + $0x54] sm:$0xff] }
 0x3e6   : > { %v5357_v30 = vsel %vm866_vm3, %v5327_v18, %v5356_v19  ;;  %v5358_v22 = vsel %vm611_vm0, %v5342_v33, %v5343_v20  ;;  %v5333_v45 = vpop.permute.xlu1 %5332  ;;  %18610 = vmatmul.mubr.msk.bf16.vlgmr.msra.gmra.mrb[176].mxu1 %vm962_vm1, %v21862_v53  ;;  %6424 = vmatpush1.bf16.msra.mxu0 %v21873_v41  ;;  %v6687_v18 = vld [vmem:[#allocation3 + $0x4] sm:$0xff] }
 0x3e7   : > { %v5359_v12 = vsel %vm866_vm3, %v5329_v39, %v5358_v22  ;;  %5378 = vst [vmem:[#allocation3 + $0xb8] sm:$0xff] %v5357_v30  ;;  %v5084_v17 = vpop.permute.xlu0 %5083  ;;  %v5344_v47 = vrot.slane %v5333_v45, 4  ;;  %6465 = vmatpush1.bf16.msra.mxu1 %v21878_v46  ;;  %18615 = vmatprep.subr.msk.bf16.mxu0 %vm611_vm0, %v21867_v34  ;;  %v21889_v63 = vcombine.high %v5357_v30, %v5357_v30  ;;  %v6689_v39 = vld [vmem:[#allocation3 + $0x14] sm:$0xff]  ;;  %v6745_v26 = vsel %vm611_vm0, %v18625_v2, 0 }
 0x3e8   : > { %5379 = vst [vmem:[#allocation3 + $0xc0] sm:$0xff] %v5359_v12  ;;  %v5094_v44 = vrot.slane %v5084_v17, 4  ;;  %6455 = vmatprep.mubr.bf16.mxu0 %v20359_v0  ;;  %6496 = vmatprep.mubr.bf16.mxu1 %v20359_v0  ;;  %v18601_v21 = vcombine.low %v5357_v30, %v5357_v30  ;;  %v21913_v1 = vcombine.high %v5359_v12, %v5359_v12  ;;  %v6686_v30 = vld [vmem:[#allocation12 + $0x30] sm:$0xf] }
 0x3e9   : > { %v5360_v10 = vsel %vm611_vm0, %v5343_v20, %v5344_v47  ;;  %18617 = vmatprep.subr.msk.bf16.mxu1 %vm611_vm0, %v21889_v63  ;;  %v18603_v31 = vcombine.low %v5359_v12, %v5359_v12  ;;  %v18624_v29 = vcombine.high %v6687_v18, %v6687_v18  ;;  %v18623_v52 = vcombine.low %v6687_v18, %v6687_v18  ;;  %v6692_v12 = vld [vmem:[#allocation3 + $0x2c] sm:$0xff] }
 0x3ea   : > { %v5111_v56 = vsel %vm611_vm0, %v5093_v24, %v5094_v44  ;;  %v5361_v54 = vsel %vm866_vm3, %v5331_v43, %v5360_v10  ;;  %v5335_v4 = vpop.permute.xlu1 %5334  ;;  %v21911_v24 = vsel %vm611_vm0, %v18599_v58, 0  ;;  %v18628_v33 = vcombine.high %v6689_v39, %v6689_v39  ;;  %v7132_v18 = vld [vmem:[#allocation3 + $0x4c] sm:$0xff] }
 0x3eb   : > { %v21902_v16 = vsel %vm613_vm2, %v21801_v61, %v5111_v56  ;;  %5380 = vst [vmem:[#allocation3 + $0xc8] sm:$0xff] %v5361_v54  ;;  %v5345_v42 = vrot.slane %v5335_v4, 4  ;;  %v21905_v37 = vcombine.high %v5361_v54, %v5361_v54  ;;  %v21922_v61 = vsel %vm611_vm0, %v18601_v21, 0  ;;  %v6693_v56 = vld [vmem:[#allocation3 + $0x34] sm:$0xff] }
 0x3ec   : > { %5130 = vst [vmem:[#allocation3 + $0x40] sm:$0xff] %v21902_v16  ;;  %v18605_v13 = vcombine.low %v5361_v54, %v5361_v54  ;;  %v21935_v40 = vsel %vm611_vm0, %v18603_v31, 0  ;;  %v6739_v43 = vsel %vm611_vm0, %v18623_v52, 0  ;;  %v18630_v20 = vcombine.high %v6690_v38, %v6690_v38 }
 0x3ed   : > { %v5362_v8 = vsel %vm611_vm0, %v5344_v47, %v5345_v42  ;;  %18612 = vmatmul.mubr.msk.bf16.vlgmr.msra.gmra.mrb[180].mxu0 %vm962_vm1, %v21862_v53  ;;  %v18627_v19 = vcombine.low %v6689_v39, %v6689_v39  ;;  %v18629_v22 = vcombine.low %v6690_v38, %v6690_v38  ;;  %v18634_v44 = vcombine.high %v6692_v12, %v6692_v12 }
 0x3ee   : > { %v21916_v28 = vsel %vm866_vm3, %v5333_v45, %v5362_v8  ;;  %18614 = vmatmul.mubr.msk.bf16.vlgmr.msra.gmra.mrb[180].mxu1 %vm962_vm1, %v21862_v53  ;;  %6506 = vmatpush1.bf16.msra.mxu0 %v21911_v24  ;;  %v21941_v27 = vsel %vm611_vm0, %v18605_v13, 0  ;;  %v6691_v45 = vld [vmem:[#allocation3 + $0x24] sm:$0xff]  ;;  %v18633_v58 = vcombine.low %v6692_v12, %v6692_v12  ;;  %v18636_v21 = vcombine.high %v6693_v56, %v6693_v56 }
 0x3ef   : > { %5381 = vst [vmem:[#allocation3 + $0xd0] sm:$0xff] %v21916_v28  ;;  %6547 = vmatpush1.bf16.msra.mxu1 %v21922_v61  ;;  %18619 = vmatprep.subr.msk.bf16.mxu0 %vm611_vm0, %v21913_v1  ;;  %v18632_v17 = vcombine.high %v6691_v45, %v6691_v45  ;;  %v6757_v47 = vsel %vm611_vm0, %v18629_v22, 0  ;;  %v18631_v10 = vcombine.low %v6691_v45, %v6691_v45 }
 0x3f0   : > { %18621 = vmatprep.subr.msk.bf16.mxu1 %vm611_vm0, %v21905_v37  ;;  %6537 = vmatprep.mubr.bf16.mxu0 %v20359_v0  ;;  %v6769_v42 = vsel %vm611_vm0, %v18633_v58, 0  ;;  %v18635_v31 = vcombine.low %v6693_v56, %v6693_v56  ;;  %v18658_v2 = vcombine.high %v7133_v36, %v7133_v36  ;;  %v18655_v39 = vcombine.low %v7132_v18, %v7132_v18 }
 0x3f1   : > { %6578 = vmatprep.mubr.bf16.mxu1 %v20359_v0  ;;  %v6763_v4 = vsel %vm611_vm0, %v18631_v10, 0  ;;  %v18657_v38 = vcombine.low %v7133_v36, %v7133_v36 }
 0x3f3   : > { %v6694_v54 = vld [vmem:[#allocation3 + $0x3c] sm:$0xff] }
 0x3f4   : > { %v18638_v8 = vcombine.high %v6694_v54, %v6694_v54  ;;  %v18637_v13 = vcombine.low %v6694_v54, %v6694_v54 }
 0x3f5   : > { %18616 = vmatmul.mubr.msk.bf16.vlgmr.msra.gmra.mrb[184].mxu0 %vm962_vm1, %v21862_v53 }
 0x3f6   : > { %18618 = vmatmul.mubr.msk.bf16.vlgmr.msra.gmra.mrb[184].mxu1 %vm962_vm1, %v21862_v53  ;;  %6588 = vmatpush1.bf16.msra.mxu0 %v21935_v40  ;;  %v6781_v52 = vsel %vm611_vm0, %v18637_v13, 0 }
 0x3f7   : > { %6629 = vmatpush1.bf16.msra.mxu1 %v21941_v27  ;;  %18639 = vmatprep.subr.msk.bf16.mxu0 %vm611_vm0, %v18624_v29  ;;  %v6775_v29 = vsel %vm611_vm0, %v18635_v31, 0 }
 0x3f8   : > { %18641 = vmatprep.subr.msk.bf16.mxu1 %vm611_vm0, %v18626_v5  ;;  %6619 = vmatprep.mubr.bf16.mxu0 %v20359_v0  ;;  %v18656_v5 = vcombine.high %v7132_v18, %v7132_v18  ;;  %v7138_v18 = vld [vmem:[#allocation3 + $0x7c] sm:$0xff] }
 0x3f9   : > { %6660 = vmatprep.mubr.bf16.mxu1 %v20359_v0 }
 0x3fd   : > { %18620 = vmatmul.mubr.msk.bf16.vlgmr.msra.gmra.mrb[188].mxu0 %vm962_vm1, %v21862_v53 }
 0x3fe   : > { %18622 = vmatmul.mubr.msk.bf16.vlgmr.msra.gmra.mrb[188].mxu1 %vm962_vm1, %v21862_v53  ;;  %6787 = vmatpush1.bf16.msra.mxu0 %v6739_v43  ;;  %v6751_v53 = vsel %vm611_vm0, %v18627_v19, 0  ;;  %v7134_v43 = vld [vmem:[#allocation3 + $0x5c] sm:$0xff]  ;;  %v7190_v19 = vsel %vm611_vm0, %v18657_v38, 0 }
 0x3ff   : > { %6828 = vmatpush1.bf16.msra.mxu1 %v6745_v26  ;;  %18643 = vmatprep.subr.msk.bf16.mxu0 %vm611_vm0, %v18628_v33  ;;  %v7135_v33 = vld [vmem:[#allocation3 + $0x64] sm:$0xff]  ;;  %v7184_v26 = vsel %vm611_vm0, %v18655_v39, 0  ;;  %v18659_v45 = vcombine.low %v7134_v43, %v7134_v43 }
 0x400   : > { %18645 = vmatprep.subr.msk.bf16.mxu1 %vm611_vm0, %v18630_v20  ;;  %6818 = vmatprep.mubr.bf16.mxu0 %v20359_v0  ;;  %v18660_v20 = vcombine.high %v7134_v43, %v7134_v43  ;;  %v18662_v22 = vcombine.high %v7135_v33, %v7135_v33 }
 0x401   : > { %6859 = vmatprep.mubr.bf16.mxu1 %v20359_v0  ;;  %v7196_v56 = vsel %vm611_vm0, %v18659_v45, 0  ;;  %v7577_v45 = vld [vmem:[#allocation3 + $0x94] sm:$0xff] }
 0x405   : > { %18640 = vmatmul.mubr.msk.bf16.vlgmr.msra.gmra.mrb[192].mxu0 %vm962_vm1, %v6686_v30 }
 0x406   : > { %18642 = vmatmul.mubr.msk.bf16.vlgmr.msra.gmra.mrb[192].mxu1 %vm962_vm1, %v6686_v30  ;;  %6869 = vmatpush1.bf16.msra.mxu0 %v6751_v53  ;;  %v21992_v53 = vld [vmem:[#allocation12 + $0x34] sm:$0xf] }
 0x407   : > { %6910 = vmatpush1.bf16.msra.mxu1 %v6757_v47  ;;  %18647 = vmatprep.subr.msk.bf16.mxu0 %vm611_vm0, %v18632_v17  ;;  %v18661_v17 = vcombine.low %v7135_v33, %v7135_v33 }
 0x408   : > { %18649 = vmatprep.subr.msk.bf16.mxu1 %vm611_vm0, %v18634_v44  ;;  %6900 = vmatprep.mubr.bf16.mxu0 %v20359_v0  ;;  %v7137_v44 = vld [vmem:[#allocation3 + $0x74] sm:$0xff] }
 0x409   : > { %6941 = vmatprep.mubr.bf16.mxu1 %v20359_v0  ;;  %v18665_v13 = vcombine.low %v7137_v44, %v7137_v44 }
 0x40b   : > { %v7214_v39 = vsel %vm611_vm0, %v18665_v13, 0 }
 0x40d   : > { %18644 = vmatmul.mubr.msk.bf16.vlgmr.msra.gmra.mrb[196].mxu0 %vm962_vm1, %v6686_v30 }
 0x40e   : > { %18646 = vmatmul.mubr.msk.bf16.vlgmr.msra.gmra.mrb[196].mxu1 %vm962_vm1, %v6686_v30  ;;  %6951 = vmatpush1.bf16.msra.mxu0 %v6763_v4  ;;  %v7202_v4 = vsel %vm611_vm0, %v18661_v17, 0 }
 0x40f   : > { %6992 = vmatpush1.bf16.msra.mxu1 %v6769_v42  ;;  %18651 = vmatprep.subr.msk.bf16.mxu0 %vm611_vm0, %v18636_v21  ;;  %v18666_v21 = vcombine.high %v7137_v44, %v7137_v44  ;;  %v7578_v44 = vld [vmem:[#allocation3 + $0x9c] sm:$0xff] }
 0x410   : > { %18653 = vmatprep.subr.msk.bf16.mxu1 %vm611_vm0, %v18638_v8  ;;  %6982 = vmatprep.mubr.bf16.mxu0 %v20359_v0 }
 0x411   : > { %7023 = vmatprep.mubr.bf16.mxu1 %v20359_v0 }
 0x415   : > { %18648 = vmatmul.mubr.msk.bf16.vlgmr.msra.gmra.mrb[200].mxu0 %vm962_vm1, %v6686_v30 }
 0x416   : > { %18650 = vmatmul.mubr.msk.bf16.vlgmr.msra.gmra.mrb[200].mxu1 %vm962_vm1, %v6686_v30  ;;  %7033 = vmatpush1.bf16.msra.mxu0 %v6775_v29  ;;  %v7139_v29 = vld [vmem:[#allocation3 + $0x84] sm:$0xff] }
 0x417   : > { %7074 = vmatpush1.bf16.msra.mxu1 %v6781_v52  ;;  %18671 = vmatprep.subr.msk.bf16.mxu0 %vm611_vm0, %v18656_v5  ;;  %v18670_v38 = vcombine.high %v7139_v29, %v7139_v29 }
 0x418   : > { %18673 = vmatprep.subr.msk.bf16.mxu1 %vm611_vm0, %v18658_v2  ;;  %7064 = vmatprep.mubr.bf16.mxu0 %v20359_v0  ;;  %v18668_v2 = vcombine.high %v7138_v18, %v7138_v18 }
 0x419   : > { %7105 = vmatprep.mubr.bf16.mxu1 %v20359_v0 }
 0x41d   : > { %18652 = vmatmul.mubr.msk.bf16.vlgmr.msra.gmra.mrb[204].mxu0 %vm962_vm1, %v6686_v30 }
 0x41e   : > { %18654 = vmatmul.mubr.msk.bf16.vlgmr.msra.gmra.mrb[204].mxu1 %vm962_vm1, %v6686_v30  ;;  %7232 = vmatpush1.bf16.msra.mxu0 %v7184_v26  ;;  %v7136_v30 = vld [vmem:[#allocation3 + $0x6c] sm:$0xff]  ;;  %v18667_v26 = vcombine.low %v7138_v18, %v7138_v18  ;;  %v18687_v18 = vcombine.low %v7577_v45, %v7577_v45 }
 0x41f   : > { %7273 = vmatpush1.bf16.msra.mxu1 %v7190_v19  ;;  %18675 = vmatprep.subr.msk.bf16.mxu0 %vm611_vm0, %v18660_v20  ;;  %v18664_v54 = vcombine.high %v7136_v30, %v7136_v30  ;;  %v18663_v8 = vcombine.low %v7136_v30, %v7136_v30 }
 0x420   : > { %18677 = vmatprep.subr.msk.bf16.mxu1 %vm611_vm0, %v18662_v22  ;;  %7263 = vmatprep.mubr.bf16.mxu0 %v20359_v0  ;;  %v21990_v12 = vpop.f32.mrb[144].mxu0  ;;  %v18669_v22 = vcombine.low %v7139_v29, %v7139_v29 }
 0x421   : > { %7304 = vmatprep.mubr.bf16.mxu1 %v20359_v0  ;;  %v21994_v47 = vpop.f32.mrb[145].mxu0  ;;  %v7208_v52 = vsel %vm611_vm0, %v18663_v8, 0 }
 0x422   : > { %v5531_v10 = vpop.f32.mrb[146].mxu0 }
 0x423   : > { %v5532_v58 = vpop.f32.mrb[147].mxu0 }
 0x425   : > { %18672 = vmatmul.mubr.msk.bf16.vlgmr.msra.gmra.mrb[208].mxu0 %vm962_vm1, %v21992_v53 }
 0x426   : > { %18674 = vmatmul.mubr.msk.bf16.vlgmr.msra.gmra.mrb[208].mxu1 %vm962_vm1, %v21992_v53  ;;  %7314 = vmatpush1.bf16.msra.mxu0 %v7196_v56  ;;  %v7220_v56 = vsel %vm611_vm0, %v18667_v26, 0 }
 0x427   : > { %7355 = vmatpush1.bf16.msra.mxu1 %v7202_v4  ;;  %18679 = vmatprep.subr.msk.bf16.mxu0 %vm611_vm0, %v18664_v54  ;;  %v22005_v42 = vpop.f32.mrb[144].mxu1  ;;  %v18688_v54 = vcombine.high %v7577_v45, %v7577_v45  ;;  %v7226_v4 = vsel %vm611_vm0, %v18669_v22, 0  ;;  %v7629_v22 = vsel %vm611_vm0, %v18687_v18, 0  ;;  %v7581_v18 = vld [vmem:[#allocation3 + $0xb4] sm:$0xff] }
 0x428   : > { %18681 = vmatprep.subr.msk.bf16.mxu1 %vm611_vm0, %v18666_v21  ;;  %7345 = vmatprep.mubr.bf16.mxu0 %v20359_v0  ;;  %v22008_v31 = vpop.f32.mrb[145].mxu1  ;;  %v18690_v21 = vcombine.high %v7578_v44, %v7578_v44 }
 0x429   : > { %7386 = vmatprep.mubr.bf16.mxu1 %v20359_v0  ;;  %v5572_v36 = vpop.f32.mrb[146].mxu1 }
 0x42a   : > { %v5573_v5 = vpop.f32.mrb[147].mxu1 }
 0x42b   : > { %v18689_v5 = vcombine.low %v7578_v44, %v7578_v44 }
 0x42d   : > { %18676 = vmatmul.mubr.msk.bf16.vlgmr.msra.gmra.mrb[212].mxu0 %vm962_vm1, %v21992_v53  ;;  %v7635_v45 = vsel %vm611_vm0, %v18689_v5, 0 }
 0x42e   : > { %18678 = vmatmul.mubr.msk.bf16.vlgmr.msra.gmra.mrb[212].mxu1 %vm962_vm1, %v21992_v53  ;;  %7396 = vmatpush1.bf16.msra.mxu0 %v7208_v52  ;;  %v7579_v52 = vld [vmem:[#allocation3 + $0xa4] sm:$0xff] }
 0x42f   : > { %7437 = vmatpush1.bf16.msra.mxu1 %v7214_v39  ;;  %18683 = vmatprep.subr.msk.bf16.mxu0 %vm611_vm0, %v18668_v2  ;;  %v22017_v43 = vpop.f32.mrb[148].mxu0 }
 0x430   : > { %18685 = vmatprep.subr.msk.bf16.mxu1 %vm611_vm0, %v18670_v38  ;;  %7427 = vmatprep.mubr.bf16.mxu0 %v20359_v0  ;;  %v22021_v33 = vpop.f32.mrb[149].mxu0  ;;  %v7580_v38 = vld [vmem:[#allocation3 + $0xac] sm:$0xff] }
 0x431   : > { %7468 = vmatprep.mubr.bf16.mxu1 %v20359_v0  ;;  %v22024_v20 = vpop.f32.mrb[148].mxu1  ;;  %v5613_v19 = vpop.f32.mrb[150].mxu0  ;;  %v18694_v44 = vcombine.high %v7580_v38, %v7580_v38 }
 0x432   : > { %v22026_v17 = vpop.f32.mrb[149].mxu1  ;;  %v5614_v30 = vpop.f32.mrb[151].mxu0 }
 0x433   : > { %v5654_v10 = vpop.f32.mrb[150].mxu1  ;;  %v18692_v30 = vcombine.high %v7579_v52, %v7579_v52 }
 0x434   : > { %v5655_v58 = vpop.f32.mrb[151].mxu1 }
 0x435   : > { %18680 = vmatmul.mubr.msk.bf16.vlgmr.msra.gmra.mrb[216].mxu0 %vm962_vm1, %v21992_v53 }
 0x436   : > { %18682 = vmatmul.mubr.msk.bf16.vlgmr.msra.gmra.mrb[216].mxu1 %vm962_vm1, %v21992_v53  ;;  %7478 = vmatpush1.bf16.msra.mxu0 %v7220_v56  ;;  %v18691_v56 = vcombine.low %v7579_v52, %v7579_v52 }
 0x437   : > { %7519 = vmatpush1.bf16.msra.mxu1 %v7226_v4  ;;  %18703 = vmatprep.subr.msk.bf16.mxu0 %vm611_vm0, %v18688_v54  ;;  %v22035_v8 = vpop.f32.mrb[152].mxu0  ;;  %v7576_v4 = vld [vmem:[#allocation12 + $0x38] sm:$0xf] }
 0x438   : > { %18705 = vmatprep.subr.msk.bf16.mxu1 %vm611_vm0, %v18690_v21  ;;  %7509 = vmatprep.mubr.bf16.mxu0 %v20359_v0  ;;  %v22039_v13 = vpop.f32.mrb[153].mxu0  ;;  %v18693_v21 = vcombine.low %v7580_v38, %v7580_v38  ;;  %v18695_v38 = vcombine.low %v7581_v18, %v7581_v18 }
 0x439   : > { %7550 = vmatprep.mubr.bf16.mxu1 %v20359_v0  ;;  %v22042_v36 = vpop.f32.mrb[152].mxu1  ;;  %v5695_v29 = vpop.f32.mrb[154].mxu0 }
 0x43a   : > { %v22044_v2 = vpop.f32.mrb[153].mxu1  ;;  %v5696_v39 = vpop.f32.mrb[155].mxu0  ;;  %v7647_v52 = vsel %vm611_vm0, %v18693_v21, 0 }
 0x43b   : > { %v5736_v26 = vpop.f32.mrb[154].mxu1  ;;  %v7582_v39 = vld [vmem:[#allocation3 + $0xbc] sm:$0xff] }
 0x43c   : > { %v5737_v19 = vpop.f32.mrb[155].mxu1 }
 0x43d   : > { %18684 = vmatmul.mubr.msk.bf16.vlgmr.msra.gmra.mrb[220].mxu0 %vm962_vm1, %v21992_v53 }
 0x43e   : > { %18686 = vmatmul.mubr.msk.bf16.vlgmr.msra.gmra.mrb[220].mxu1 %vm962_vm1, %v21992_v53  ;;  %7677 = vmatpush1.bf16.msra.mxu0 %v7629_v22  ;;  %v7641_v22 = vsel %vm611_vm0, %v18691_v56, 0  ;;  %v7584_v56 = vld [vmem:[#allocation3 + $0xcc] sm:$0xff] }
 0x43f   : > { %7718 = vmatpush1.bf16.msra.mxu1 %v7635_v45  ;;  %18707 = vmatprep.subr.msk.bf16.mxu0 %vm611_vm0, %v18692_v30  ;;  %v22053_v10 = vpop.f32.mrb[156].mxu0  ;;  %v18696_v30 = vcombine.high %v7581_v18, %v7581_v18  ;;  %v18698_v45 = vcombine.high %v7582_v39, %v7582_v39 }
 0x440   : > { %18709 = vmatprep.subr.msk.bf16.mxu1 %vm611_vm0, %v18694_v44  ;;  %7708 = vmatprep.mubr.bf16.mxu0 %v20359_v0  ;;  %v22057_v58 = vpop.f32.mrb[157].mxu0  ;;  %v18697_v44 = vcombine.low %v7582_v39, %v7582_v39  ;;  %v18701_v39 = vcombine.low %v7584_v56, %v7584_v56 }
 0x441   : > { %7749 = vmatprep.mubr.bf16.mxu1 %v20359_v0  ;;  %v22060_v54 = vpop.f32.mrb[156].mxu1  ;;  %v5777_v53 = vpop.f32.mrb[158].mxu0 }
 0x442   : > { %v22062_v29 = vpop.f32.mrb[157].mxu1  ;;  %v5778_v5 = vpop.f32.mrb[159].mxu0  ;;  %v7583_v53 = vld [vmem:[#allocation3 + $0xc4] sm:$0xff]  ;;  %v7659_v21 = vsel %vm611_vm0, %v18697_v44, 0  ;;  %v8471_v44 = vld [vmem:[#allocation3 + $0x70] sm:$0xff] }
 0x443   : > { %v5818_v26 = vpop.f32.mrb[158].mxu1  ;;  %v7653_v5 = vsel %vm611_vm0, %v18695_v38, 0  ;;  %v18699_v18 = vcombine.low %v7583_v53, %v7583_v53 }
 0x444   : > { %v5819_v19 = vpop.f32.mrb[159].mxu1  ;;  %v18700_v26 = vcombine.high %v7583_v53, %v7583_v53  ;;  %v8472_v53 = vld [vmem:[#allocation3 + $0x78] sm:$0xff] }
 0x445   : > { %18704 = vmatmul.mubr.msk.bf16.vlgmr.msra.gmra.mrb[224].mxu0 %vm962_vm1, %v7576_v4  ;;  %v18702_v19 = vcombine.high %v7584_v56, %v7584_v56 }
 0x446   : > { %18706 = vmatmul.mubr.msk.bf16.vlgmr.msra.gmra.mrb[224].mxu1 %vm962_vm1, %v7576_v4  ;;  %7759 = vmatpush1.bf16.msra.mxu0 %v7641_v22  ;;  %v7665_v22 = vsel %vm611_vm0, %v18699_v18, 0  ;;  %v18761_v18 = vcombine.low %v8472_v53, %v8472_v53 }
 0x447   : > { %7800 = vmatpush1.bf16.msra.mxu1 %v7647_v52  ;;  %18711 = vmatprep.subr.msk.bf16.mxu0 %vm611_vm0, %v18696_v30  ;;  %v7671_v30 = vsel %vm611_vm0, %v18701_v39, 0  ;;  %v8473_v39 = vld [vmem:[#allocation3 + $0x80] sm:$0xff] }
 0x448   : > { %18713 = vmatprep.subr.msk.bf16.mxu1 %vm611_vm0, %v18698_v45  ;;  %7790 = vmatprep.mubr.bf16.mxu0 %v20359_v0  ;;  %v8466_v45 = vld [vmem:[#allocation12 + $0x40] sm:$0xf] }
 0x449   : > { %7831 = vmatprep.mubr.bf16.mxu1 %v20359_v0 }
 0x44d   : > { %18708 = vmatmul.mubr.msk.bf16.vlgmr.msra.gmra.mrb[228].mxu0 %vm962_vm1, %v7576_v4 }
 0x44e   : > { %18710 = vmatmul.mubr.msk.bf16.vlgmr.msra.gmra.mrb[228].mxu1 %vm962_vm1, %v7576_v4  ;;  %7841 = vmatpush1.bf16.msra.mxu0 %v7653_v5  ;;  %v18760_v5 = vcombine.high %v8471_v44, %v8471_v44 }
 0x44f   : > { %7882 = vmatpush1.bf16.msra.mxu1 %v7659_v21  ;;  %18715 = vmatprep.subr.msk.bf16.mxu0 %vm611_vm0, %v18700_v26  ;;  %v18762_v21 = vcombine.high %v8472_v53, %v8472_v53 }
 0x450   : > { %18717 = vmatprep.subr.msk.bf16.mxu1 %vm611_vm0, %v18702_v19  ;;  %7872 = vmatprep.mubr.bf16.mxu0 %v20359_v0  ;;  %v18759_v19 = vcombine.low %v8471_v44, %v8471_v44 }
 0x451   : > { %7913 = vmatprep.mubr.bf16.mxu1 %v20359_v0 }
 0x455   : > { %18712 = vmatmul.mubr.msk.bf16.vlgmr.msra.gmra.mrb[232].mxu0 %vm962_vm1, %v7576_v4 }
 0x456   : > { %18714 = vmatmul.mubr.msk.bf16.vlgmr.msra.gmra.mrb[232].mxu1 %vm962_vm1, %v7576_v4  ;;  %7923 = vmatpush1.bf16.msra.mxu0 %v7665_v22  ;;  %v8474_v22 = vld [vmem:[#allocation3 + $0x88] sm:$0xff] }
 0x457   : > { %7964 = vmatpush1.bf16.msra.mxu1 %v7671_v30  ;;  %18735 = vmatprep.subr.msk.bf16.mxu0 %vm611_vm0, %v21738_v59  ;;  %v8021_v59 = vld [vmem:[#allocation12 + $0x3c] sm:$0xf]  ;;  %v8543_v30 = vsel %vm611_vm0, %v18759_v19, 0 }
 0x458   : > { %18737 = vmatprep.subr.msk.bf16.mxu1 %vm611_vm0, %v21759_v15  ;;  %7954 = vmatprep.mubr.bf16.mxu0 %v20359_v0  ;;  %v18733_v15 = vcombine.low %v21902_v16, %v21902_v16 }
 0x459   : > { %7995 = vmatprep.mubr.bf16.mxu1 %v20359_v0 }
 0x45d   : > { %18716 = vmatmul.mubr.msk.bf16.vlgmr.msra.gmra.mrb[236].mxu0 %vm962_vm1, %v7576_v4 }
 0x45e   : > { %18718 = vmatmul.mubr.msk.bf16.vlgmr.msra.gmra.mrb[236].mxu1 %vm962_vm1, %v7576_v4  ;;  %8122 = vmatpush1.bf16.msra.mxu0 %v21745_v32  ;;  %v18734_v32 = vcombine.high %v21902_v16, %v21902_v16 }
 0x45f   : > { %8163 = vmatpush1.bf16.msra.mxu1 %v21767_v23  ;;  %18739 = vmatprep.subr.msk.bf16.mxu0 %vm611_vm0, %v21762_v25  ;;  %v8467_v25 = vld [vmem:[#allocation3 + $0x50] sm:$0xff]  ;;  %v8468_v23 = vld [vmem:[#allocation3 + $0x58] sm:$0xff] }
 0x460   : > { %18741 = vmatprep.subr.msk.bf16.mxu1 %vm611_vm0, %v21785_v48  ;;  %8153 = vmatprep.mubr.bf16.mxu0 %v20359_v0  ;;  %v8116_v48 = vsel %vm611_vm0, %v18733_v15, 0  ;;  %v18766_v15 = vcombine.high %v8474_v22, %v8474_v22 }
 0x461   : > { %8194 = vmatprep.mubr.bf16.mxu1 %v20359_v0 }
 0x465   : > { %18736 = vmatmul.mubr.msk.bf16.vlgmr.msra.gmra.mrb[240].mxu0 %vm962_vm1, %v8021_v59 }
 0x466   : > { %18738 = vmatmul.mubr.msk.bf16.vlgmr.msra.gmra.mrb[240].mxu1 %vm962_vm1, %v8021_v59  ;;  %8204 = vmatpush1.bf16.msra.mxu0 %v21773_v3  ;;  %v18752_v3 = vcombine.high %v8467_v25, %v8467_v25 }
 0x467   : > { %8245 = vmatpush1.bf16.msra.mxu1 %v21793_v62  ;;  %18743 = vmatprep.subr.msk.bf16.mxu0 %vm611_vm0, %v21788_v35  ;;  %v18754_v35 = vcombine.high %v8468_v23, %v8468_v23  ;;  %v18751_v62 = vcombine.low %v8467_v25, %v8467_v25  ;;  %v18763_v25 = vcombine.low %v8473_v39, %v8473_v39 }
 0x468   : > { %18745 = vmatprep.subr.msk.bf16.mxu1 %vm611_vm0, %v21816_v9  ;;  %8235 = vmatprep.mubr.bf16.mxu0 %v20359_v0  ;;  %v8469_v9 = vld [vmem:[#allocation3 + $0x60] sm:$0xff] }
 0x469   : > { %8276 = vmatprep.mubr.bf16.mxu1 %v20359_v0  ;;  %v18755_v52 = vcombine.low %v8469_v9, %v8469_v9 }
 0x46b   : > { %v8531_v56 = vsel %vm611_vm0, %v18755_v52, 0 }
 0x46d   : > { %18740 = vmatmul.mubr.msk.bf16.vlgmr.msra.gmra.mrb[244].mxu0 %vm962_vm1, %v8021_v59 }
 0x46e   : > { %18742 = vmatmul.mubr.msk.bf16.vlgmr.msra.gmra.mrb[244].mxu1 %vm962_vm1, %v8021_v59  ;;  %8286 = vmatpush1.bf16.msra.mxu0 %v21799_v50  ;;  %v18753_v50 = vcombine.low %v8468_v23, %v8468_v23  ;;  %v18765_v23 = vcombine.low %v8474_v22, %v8474_v22 }
 0x46f   : > { %8327 = vmatpush1.bf16.msra.mxu1 %v21824_v60  ;;  %18747 = vmatprep.subr.msk.bf16.mxu0 %vm611_vm0, %v21819_v11  ;;  %v8470_v11 = vld [vmem:[#allocation3 + $0x68] sm:$0xff]  ;;  %v8519_v60 = vsel %vm611_vm0, %v18751_v62, 0 }
 0x470   : > { %18749 = vmatprep.subr.msk.bf16.mxu1 %vm611_vm0, %v18734_v32  ;;  %8317 = vmatprep.mubr.bf16.mxu0 %v20359_v0  ;;  %v8525_v16 = vsel %vm611_vm0, %v18753_v50, 0  ;;  %v18758_v4 = vcombine.high %v8470_v11, %v8470_v11  ;;  %v18757_v38 = vcombine.low %v8470_v11, %v8470_v11  ;;  %v8549_v32 = vsel %vm611_vm0, %v18761_v18, 0 }
 0x471   : > { %8358 = vmatprep.mubr.bf16.mxu1 %v20359_v0 }
 0x472   : > { %v8537_v26 = vsel %vm611_vm0, %v18757_v38, 0  ;;  %v22196_v38 = vld [vmem:[#allocation12 + $0x44] sm:$0xf] }
 0x475   : > { %18744 = vmatmul.mubr.msk.bf16.vlgmr.msra.gmra.mrb[248].mxu0 %vm962_vm1, %v8021_v59 }
 0x476   : > { %18746 = vmatmul.mubr.msk.bf16.vlgmr.msra.gmra.mrb[248].mxu1 %vm962_vm1, %v8021_v59  ;;  %8368 = vmatpush1.bf16.msra.mxu0 %v21831_v57  ;;  %v18756_v57 = vcombine.high %v8469_v9, %v8469_v9 }
 0x477   : > { %8409 = vmatpush1.bf16.msra.mxu1 %v8116_v48  ;;  %18767 = vmatprep.subr.msk.bf16.mxu0 %vm611_vm0, %v18752_v3  ;;  %v8555_v3 = vsel %vm611_vm0, %v18763_v25, 0  ;;  %v8561_v48 = vsel %vm611_vm0, %v18765_v23, 0 }
 0x478   : > { %18769 = vmatprep.subr.msk.bf16.mxu1 %vm611_vm0, %v18754_v35  ;;  %8399 = vmatprep.mubr.bf16.mxu0 %v20359_v0 }
 0x479   : > { %8440 = vmatprep.mubr.bf16.mxu1 %v20359_v0 }
 0x47d   : > { %18748 = vmatmul.mubr.msk.bf16.vlgmr.msra.gmra.mrb[252].mxu0 %vm962_vm1, %v8021_v59 }
 0x47e   : > { %18750 = vmatmul.mubr.msk.bf16.vlgmr.msra.gmra.mrb[252].mxu1 %vm962_vm1, %v8021_v59  ;;  %8567 = vmatpush1.bf16.msra.mxu0 %v8519_v60  ;;  %v18764_v59 = vcombine.high %v8473_v39, %v8473_v39 }
 0x47f   : > { %8608 = vmatpush1.bf16.msra.mxu1 %v8525_v16  ;;  %18771 = vmatprep.subr.msk.bf16.mxu0 %vm611_vm0, %v18756_v57 }
 0x480   : > { %18773 = vmatprep.subr.msk.bf16.mxu1 %vm611_vm0, %v18758_v4  ;;  %8598 = vmatprep.mubr.bf16.mxu0 %v20359_v0 }
 0x481   : > { %8639 = vmatprep.mubr.bf16.mxu1 %v20359_v0 }
 0x485   : > { %18768 = vmatmul.mubr.msk.bf16.vlgmr.msra.gmra.mrb[0].mxu0 %vm962_vm1, %v8466_v45 }
 0x486   : > { %18770 = vmatmul.mubr.msk.bf16.vlgmr.msra.gmra.mrb[0].mxu1 %vm962_vm1, %v8466_v45  ;;  %8649 = vmatpush1.bf16.msra.mxu0 %v8531_v56 }
 0x487   : > { %8690 = vmatpush1.bf16.msra.mxu1 %v8537_v26  ;;  %18775 = vmatprep.subr.msk.bf16.mxu0 %vm611_vm0, %v18760_v5 }
 0x488   : > { %18777 = vmatprep.subr.msk.bf16.mxu1 %vm611_vm0, %v18762_v21  ;;  %8680 = vmatprep.mubr.bf16.mxu0 %v20359_v0 }
 0x489   : > { %8721 = vmatprep.mubr.bf16.mxu1 %v20359_v0 }
 0x48d   : > { %18772 = vmatmul.mubr.msk.bf16.vlgmr.msra.gmra.mrb[4].mxu0 %vm962_vm1, %v8466_v45 }
 0x48e   : > { %18774 = vmatmul.mubr.msk.bf16.vlgmr.msra.gmra.mrb[4].mxu1 %vm962_vm1, %v8466_v45  ;;  %8731 = vmatpush1.bf16.msra.mxu0 %v8543_v30 }
 0x48f   : > { %8772 = vmatpush1.bf16.msra.mxu1 %v8549_v32  ;;  %18779 = vmatprep.subr.msk.bf16.mxu0 %vm611_vm0, %v18764_v59 }
 0x490   : > { %18781 = vmatprep.subr.msk.bf16.mxu1 %vm611_vm0, %v18766_v15  ;;  %8762 = vmatprep.mubr.bf16.mxu0 %v20359_v0 }
 0x491   : > { %8803 = vmatprep.mubr.bf16.mxu1 %v20359_v0 }
 0x495   : > { %18776 = vmatmul.mubr.msk.bf16.vlgmr.msra.gmra.mrb[8].mxu0 %vm962_vm1, %v8466_v45 }
 0x496   : > { %18778 = vmatmul.mubr.msk.bf16.vlgmr.msra.gmra.mrb[8].mxu1 %vm962_vm1, %v8466_v45  ;;  %8813 = vmatpush1.bf16.msra.mxu0 %v8555_v3 }
 0x497   : > { %8854 = vmatpush1.bf16.msra.mxu1 %v8561_v48  ;;  %18799 = vmatprep.subr.msk.bf16.mxu0 %vm611_vm0, %v21845_v49 }
 0x498   : > { %18801 = vmatprep.subr.msk.bf16.mxu1 %vm611_vm0, %v21848_v51  ;;  %v5946_v35 = vpop.f32.mrb[160].mxu0  ;;  %8844 = vmatprep.mubr.bf16.mxu0 %v20359_v0 }
 0x499   : > { %v22165_v62 = vadd.f32 %v5946_v35, %v21990_v12  ;;  %v5987_v50 = vpop.f32.mrb[160].mxu1  ;;  %v5948_v9 = vpop.f32.mrb[161].mxu0  ;;  %8885 = vmatprep.mubr.bf16.mxu1 %v20359_v0 }
 0x49a   : > { %v22169_v11 = vadd.f32 %v5987_v50, %v22005_v42  ;;  %v22172_v60 = vadd.f32 %v5948_v9, %v21994_v47  ;;  %v5989_v49 = vpop.f32.mrb[161].mxu1  ;;  %v5950_v57 = vpop.f32.mrb[162].mxu0 }
 0x49b   : > { %v22175_v51 = vadd.f32 %v5989_v49, %v22008_v31  ;;  %v5991_v16 = vpop.f32.mrb[162].mxu1  ;;  %v5951_v4 = vpop.f32.mrb[163].mxu0 }
 0x49c   : > { %v5992_v52 = vpop.f32.mrb[163].mxu1 }
 0x49d   : > { %18780 = vmatmul.mubr.msk.bf16.vlgmr.msra.gmra.mrb[12].mxu0 %vm962_vm1, %v8466_v45 }
 0x49e   : > { %18782 = vmatmul.mubr.msk.bf16.vlgmr.msra.gmra.mrb[12].mxu1 %vm962_vm1, %v8466_v45  ;;  %9012 = vmatpush1.bf16.msra.mxu0 %v21855_v55 }
 0x49f   : > { %9053 = vmatpush1.bf16.msra.mxu1 %v21873_v41  ;;  %18803 = vmatprep.subr.msk.bf16.mxu0 %vm611_vm0, %v21865_v6 }
 0x4a0   : > { %18805 = vmatprep.subr.msk.bf16.mxu1 %vm611_vm0, %v21867_v34  ;;  %v6028_v12 = vpop.f32.mrb[164].mxu0  ;;  %9043 = vmatprep.mubr.bf16.mxu0 %v20359_v0 }
 0x4a1   : > { %v22187_v47 = vadd.f32 %v6028_v12, %v22017_v43  ;;  %v6069_v42 = vpop.f32.mrb[164].mxu1  ;;  %v6030_v31 = vpop.f32.mrb[165].mxu0  ;;  %9084 = vmatprep.mubr.bf16.mxu1 %v20359_v0 }
 0x4a2   : > { %v22191_v55 = vadd.f32 %v6069_v42, %v22024_v20  ;;  %v22194_v41 = vadd.f32 %v6030_v31, %v22021_v33  ;;  %v6071_v6 = vpop.f32.mrb[165].mxu1  ;;  %v6032_v45 = vpop.f32.mrb[166].mxu0 }
 0x4a3   : > { %v22199_v34 = vadd.f32 %v6071_v6, %v22026_v17  ;;  %v6073_v44 = vpop.f32.mrb[166].mxu1  ;;  %v6033_v43 = vpop.f32.mrb[167].mxu0 }
 0x4a4   : > { %v6074_v53 = vpop.f32.mrb[167].mxu1 }
 0x4a5   : > { %18800 = vmatmul.mubr.msk.bf16.vlgmr.msra.gmra.mrb[16].mxu0 %vm962_vm1, %v22196_v38 }
 0x4a6   : > { %18802 = vmatmul.mubr.msk.bf16.vlgmr.msra.gmra.mrb[16].mxu1 %vm962_vm1, %v22196_v38  ;;  %9094 = vmatpush1.bf16.msra.mxu0 %v21878_v46 }
 0x4a7   : > { %9135 = vmatpush1.bf16.msra.mxu1 %v21911_v24  ;;  %18807 = vmatprep.subr.msk.bf16.mxu0 %vm611_vm0, %v21889_v63 }
 0x4a8   : > { %18809 = vmatprep.subr.msk.bf16.mxu1 %vm611_vm0, %v21913_v1  ;;  %v6110_v33 = vpop.f32.mrb[168].mxu0  ;;  %9125 = vmatprep.mubr.bf16.mxu0 %v20359_v0 }
 0x4a9   : > { %v22213_v20 = vadd.f32 %v6110_v33, %v22035_v8  ;;  %v6151_v17 = vpop.f32.mrb[168].mxu1  ;;  %v6112_v56 = vpop.f32.mrb[169].mxu0  ;;  %9166 = vmatprep.mubr.bf16.mxu1 %v20359_v0  ;;  %v18798_v8 = vcombine.high %v21916_v28, %v21916_v28 }
 0x4aa   : > { %v22217_v46 = vadd.f32 %v6151_v17, %v22042_v36  ;;  %v22220_v24 = vadd.f32 %v6112_v56, %v22039_v13  ;;  %v6153_v63 = vpop.f32.mrb[169].mxu1  ;;  %v6114_v5 = vpop.f32.mrb[170].mxu0 }
 0x4ab   : > { %v22223_v1 = vadd.f32 %v6153_v63, %v22044_v2  ;;  %v6155_v26 = vpop.f32.mrb[170].mxu1  ;;  %v6115_v21 = vpop.f32.mrb[171].mxu0 }
 0x4ac   : > { %v6156_v19 = vpop.f32.mrb[171].mxu1 }
 0x4ad   : > { %18804 = vmatmul.mubr.msk.bf16.vlgmr.msra.gmra.mrb[20].mxu0 %vm962_vm1, %v22196_v38 }
 0x4ae   : > { %18806 = vmatmul.mubr.msk.bf16.vlgmr.msra.gmra.mrb[20].mxu1 %vm962_vm1, %v22196_v38  ;;  %9176 = vmatpush1.bf16.msra.mxu0 %v21922_v61 }
 0x4af   : > { %9217 = vmatpush1.bf16.msra.mxu1 %v21935_v40  ;;  %18811 = vmatprep.subr.msk.bf16.mxu0 %vm611_vm0, %v21905_v37  ;;  %v18797_v37 = vcombine.low %v21916_v28, %v21916_v28 }
 0x4b0   : > { %18813 = vmatprep.subr.msk.bf16.mxu1 %vm611_vm0, %v18798_v8  ;;  %v6192_v13 = vpop.f32.mrb[172].mxu0  ;;  %9207 = vmatprep.mubr.bf16.mxu0 %v20359_v0 }
 0x4b1   : > { %v6193_v36 = vadd.f32 %v6192_v13, %v22053_v10  ;;  %v6233_v2 = vpop.f32.mrb[172].mxu1  ;;  %v6194_v18 = vpop.f32.mrb[173].mxu0  ;;  %9248 = vmatprep.mubr.bf16.mxu1 %v20359_v0  ;;  %v9006_v10 = vsel %vm611_vm0, %v18797_v37, 0 }
 0x4b2   : > { %v6234_v61 = vadd.f32 %v6233_v2, %v22060_v54  ;;  %v6195_v39 = vadd.f32 %v6194_v18, %v22057_v58  ;;  %v6235_v22 = vpop.f32.mrb[173].mxu1  ;;  %v6196_v40 = vpop.f32.mrb[174].mxu0 }
 0x4b3   : > { %v6236_v30 = vadd.f32 %v6235_v22, %v22062_v29  ;;  %v6237_v59 = vpop.f32.mrb[174].mxu1  ;;  %v6197_v32 = vpop.f32.mrb[175].mxu0 }
 0x4b4   : > { %v6238_v15 = vpop.f32.mrb[175].mxu1 }
 0x4b5   : > { %18808 = vmatmul.mubr.msk.bf16.vlgmr.msra.gmra.mrb[24].mxu0 %vm962_vm1, %v22196_v38 }
 0x4b6   : > { %18810 = vmatmul.mubr.msk.bf16.vlgmr.msra.gmra.mrb[24].mxu1 %vm962_vm1, %v22196_v38  ;;  %9258 = vmatpush1.bf16.msra.mxu0 %v21941_v27 }
 0x4b7   : > { %9299 = vmatpush1.bf16.msra.mxu1 %v9006_v10  ;;  %9289 = vmatprep.mubr.bf16.mxu0 %v20359_v0 }
 0x4b8   : > { %v6375_v58 = vpop.f32.mrb[176].mxu0  ;;  %9330 = vmatprep.mubr.bf16.mxu1 %v20359_v0 }
 0x4b9   : > { %v6669_v28 = vadd.f32 %v6375_v58, %v22165_v62  ;;  %v6416_v54 = vpop.f32.mrb[176].mxu1  ;;  %v6377_v29 = vpop.f32.mrb[177].mxu0 }
 0x4ba   : > { %v6671_v25 = vadd.f32 %v6416_v54, %v22169_v11  ;;  %v6670_v23 = vadd.f32 %v6377_v29, %v22172_v60  ;;  %v6418_v3 = vpop.f32.mrb[177].mxu1  ;;  %v6379_v48 = vpop.f32.mrb[178].mxu0 }
 0x4bb   : > { %v6672_v27 = vadd.f32 %v6418_v3, %v22175_v51  ;;  %v6420_v35 = vpop.f32.mrb[178].mxu1  ;;  %v6380_v50 = vpop.f32.mrb[179].mxu0 }
 0x4bc   : > { %v6421_v9 = vpop.f32.mrb[179].mxu1 }
 0x4bd   : > { %18812 = vmatmul.mubr.msk.bf16.vlgmr.msra.gmra.mrb[28].mxu0 %vm962_vm1, %v22196_v38 }
 0x4be   : > { %18814 = vmatmul.mubr.msk.bf16.vlgmr.msra.gmra.mrb[28].mxu1 %vm962_vm1, %v22196_v38  ;;  %10004 = vmatprep.mubr.bf16.mxu0 %v20359_v0 }
 0x4bf   : > { %10045 = vmatprep.mubr.bf16.mxu1 %v20359_v0 }
 0x4c0   : > { %v6457_v62 = vpop.f32.mrb[180].mxu0 }
 0x4c1   : > { %v6673_v11 = vadd.f32 %v6457_v62, %v22187_v47  ;;  %v6498_v60 = vpop.f32.mrb[180].mxu1  ;;  %v6459_v49 = vpop.f32.mrb[181].mxu0 }
 0x4c2   : > { %v6675_v57 = vadd.f32 %v6498_v60, %v22191_v55  ;;  %v6674_v51 = vadd.f32 %v6459_v49, %v22194_v41  ;;  %v6500_v16 = vpop.f32.mrb[181].mxu1  ;;  %v6461_v4 = vpop.f32.mrb[182].mxu0 }
 0x4c3   : > { %v6676_v52 = vadd.f32 %v6500_v16, %v22199_v34  ;;  %v6502_v12 = vpop.f32.mrb[182].mxu1  ;;  %v6462_v42 = vpop.f32.mrb[183].mxu0 }
 0x4c4   : > { %v6503_v31 = vpop.f32.mrb[183].mxu1 }
 0x4c8   : > { %v6539_v6 = vpop.f32.mrb[184].mxu0 }
 0x4c9   : > { %v6677_v45 = vadd.f32 %v6539_v6, %v22213_v20  ;;  %v6580_v38 = vpop.f32.mrb[184].mxu1  ;;  %v6541_v44 = vpop.f32.mrb[185].mxu0 }
 0x4ca   : > { %v6679_v47 = vadd.f32 %v6580_v38, %v22217_v46  ;;  %v6678_v43 = vadd.f32 %v6541_v44, %v22220_v24  ;;  %v6582_v53 = vpop.f32.mrb[185].mxu1  ;;  %v6543_v55 = vpop.f32.mrb[186].mxu0 }
 0x4cb   : > { %v6680_v41 = vadd.f32 %v6582_v53, %v22223_v1  ;;  %v6584_v33 = vpop.f32.mrb[186].mxu1  ;;  %v6544_v17 = vpop.f32.mrb[187].mxu0 }
 0x4cc   : > { %v6585_v56 = vpop.f32.mrb[187].mxu1 }
 0x4d0   : > { %v6621_v34 = vpop.f32.mrb[188].mxu0 }
 0x4d1   : > { %v6681_v63 = vadd.f32 %v6621_v34, %v6193_v36  ;;  %v6662_v5 = vpop.f32.mrb[188].mxu1  ;;  %v6623_v26 = vpop.f32.mrb[189].mxu0 }
 0x4d2   : > { %v6683_v21 = vadd.f32 %v6662_v5, %v6234_v61  ;;  %v6682_v19 = vadd.f32 %v6623_v26, %v6195_v39  ;;  %v6664_v20 = vpop.f32.mrb[189].mxu1  ;;  %v6625_v8 = vpop.f32.mrb[190].mxu0 }
 0x4d3   : > { %v6684_v13 = vadd.f32 %v6664_v20, %v6236_v30  ;;  %v6666_v2 = vpop.f32.mrb[190].mxu1  ;;  %v6626_v46 = vpop.f32.mrb[191].mxu0 }
 0x4d4   : > { %v6667_v18 = vpop.f32.mrb[191].mxu1 }
 0x4d8   : > { %v6820_v24 = vpop.f32.mrb[192].mxu0 }
 0x4d9   : > { %v7114_v22 = vadd.f32 %v6820_v24, %v6669_v28  ;;  %v6861_v40 = vpop.f32.mrb[192].mxu1  ;;  %v6822_v37 = vpop.f32.mrb[193].mxu0 }
 0x4da   : > { %v7116_v1 = vadd.f32 %v6861_v40, %v6671_v25  ;;  %v7115_v59 = vadd.f32 %v6822_v37, %v6670_v23  ;;  %v6863_v32 = vpop.f32.mrb[193].mxu1  ;;  %v6824_v15 = vpop.f32.mrb[194].mxu0 }
 0x4db   : > { %v7117_v10 = vadd.f32 %v6863_v32, %v6672_v27  ;;  %v6865_v36 = vpop.f32.mrb[194].mxu1  ;;  %v6825_v58 = vpop.f32.mrb[195].mxu0 }
 0x4dc   : > { %v6866_v54 = vpop.f32.mrb[195].mxu1 }
 0x4e0   : > { %v6902_v61 = vpop.f32.mrb[196].mxu0 }
 0x4e1   : > { %v7118_v39 = vadd.f32 %v6902_v61, %v6673_v11  ;;  %v6943_v29 = vpop.f32.mrb[196].mxu1  ;;  %v6904_v3 = vpop.f32.mrb[197].mxu0 }
 0x4e2   : > { %v7120_v30 = vadd.f32 %v6943_v29, %v6675_v57  ;;  %v7119_v48 = vadd.f32 %v6904_v3, %v6674_v51  ;;  %v6945_v35 = vpop.f32.mrb[197].mxu1  ;;  %v6906_v50 = vpop.f32.mrb[198].mxu0 }
 0x4e3   : > { %v7121_v9 = vadd.f32 %v6945_v35, %v6676_v52  ;;  %v6947_v28 = vpop.f32.mrb[198].mxu1  ;;  %v6907_v62 = vpop.f32.mrb[199].mxu0 }
 0x4e4   : > { %v6948_v60 = vpop.f32.mrb[199].mxu1 }
 0x4e8   : > { %v6984_v25 = vpop.f32.mrb[200].mxu0 }
 0x4e9   : > { %v7122_v23 = vadd.f32 %v6984_v25, %v6677_v45  ;;  %v7025_v49 = vpop.f32.mrb[200].mxu1  ;;  %v6986_v16 = vpop.f32.mrb[201].mxu0 }
 0x4ea   : > { %v7124_v27 = vadd.f32 %v7025_v49, %v6679_v47  ;;  %v7123_v4 = vadd.f32 %v6986_v16, %v6678_v43  ;;  %v7027_v12 = vpop.f32.mrb[201].mxu1  ;;  %v6988_v42 = vpop.f32.mrb[202].mxu0 }
 0x4eb   : > { %v7125_v31 = vadd.f32 %v7027_v12, %v6680_v41  ;;  %v7029_v11 = vpop.f32.mrb[202].mxu1  ;;  %v6989_v6 = vpop.f32.mrb[203].mxu0 }
 0x4ec   : > { %v7030_v38 = vpop.f32.mrb[203].mxu1 }
 0x4f0   : > { %v7066_v57 = vpop.f32.mrb[204].mxu0 }
 0x4f1   : > { %v7126_v51 = vadd.f32 %v7066_v57, %v6681_v63  ;;  %v7107_v44 = vpop.f32.mrb[204].mxu1  ;;  %v7068_v53 = vpop.f32.mrb[205].mxu0 }
 0x4f2   : > { %v7128_v52 = vadd.f32 %v7107_v44, %v6683_v21  ;;  %v7127_v55 = vadd.f32 %v7068_v53, %v6682_v19  ;;  %v7109_v33 = vpop.f32.mrb[205].mxu1  ;;  %v7070_v17 = vpop.f32.mrb[206].mxu0 }
 0x4f3   : > { %v7129_v56 = vadd.f32 %v7109_v33, %v6684_v13  ;;  %v7111_v45 = vpop.f32.mrb[206].mxu1  ;;  %v7071_v34 = vpop.f32.mrb[207].mxu0 }
 0x4f4   : > { %v7112_v5 = vpop.f32.mrb[207].mxu1 }
 0x4f8   : > { %v7265_v47 = vpop.f32.mrb[208].mxu0 }
 0x4f9   : > { %v7559_v43 = vadd.f32 %v7265_v47, %v7114_v22  ;;  %v7306_v26 = vpop.f32.mrb[208].mxu1  ;;  %v7267_v20 = vpop.f32.mrb[209].mxu0 }
 0x4fa   : > { %v7561_v41 = vadd.f32 %v7306_v26, %v7116_v1  ;;  %v7560_v8 = vadd.f32 %v7267_v20, %v7115_v59  ;;  %v7308_v2 = vpop.f32.mrb[209].mxu1  ;;  %v7269_v46 = vpop.f32.mrb[210].mxu0 }
 0x4fb   : > { %v7562_v18 = vadd.f32 %v7308_v2, %v7117_v10  ;;  %v7310_v63 = vpop.f32.mrb[210].mxu1  ;;  %v7270_v24 = vpop.f32.mrb[211].mxu0 }
 0x4fc   : > { %v7311_v40 = vpop.f32.mrb[211].mxu1 }
 0x500   : > { %v7347_v21 = vpop.f32.mrb[212].mxu0 }
 0x501   : > { %v7563_v19 = vadd.f32 %v7347_v21, %v7118_v39  ;;  %v7388_v37 = vpop.f32.mrb[212].mxu1  ;;  %v7349_v32 = vpop.f32.mrb[213].mxu0 }
 0x502   : > { %v7565_v13 = vadd.f32 %v7388_v37, %v7120_v30  ;;  %v7564_v15 = vadd.f32 %v7349_v32, %v7119_v48  ;;  %v7390_v36 = vpop.f32.mrb[213].mxu1  ;;  %v7351_v58 = vpop.f32.mrb[214].mxu0 }
 0x503   : > { %v7566_v54 = vadd.f32 %v7390_v36, %v7121_v9  ;;  %v7392_v22 = vpop.f32.mrb[214].mxu1  ;;  %v7352_v61 = vpop.f32.mrb[215].mxu0 }
 0x504   : > { %v7393_v29 = vpop.f32.mrb[215].mxu1 }
 0x508   : > { %v7429_v1 = vpop.f32.mrb[216].mxu0 }
 0x509   : > { %v7567_v59 = vadd.f32 %v7429_v1, %v7122_v23  ;;  %v7470_v3 = vpop.f32.mrb[216].mxu1  ;;  %v7431_v35 = vpop.f32.mrb[217].mxu0 }
 0x50a   : > { %v7569_v10 = vadd.f32 %v7470_v3, %v7124_v27  ;;  %v7568_v50 = vadd.f32 %v7431_v35, %v7123_v4  ;;  %v7472_v28 = vpop.f32.mrb[217].mxu1  ;;  %v7433_v62 = vpop.f32.mrb[218].mxu0 }
 0x50b   : > { %v7570_v60 = vadd.f32 %v7472_v28, %v7125_v31  ;;  %v7474_v39 = vpop.f32.mrb[218].mxu1  ;;  %v7434_v25 = vpop.f32.mrb[219].mxu0 }
 0x50c   : > { %v7475_v49 = vpop.f32.mrb[219].mxu1 }
 0x510   : > { %v7511_v30 = vpop.f32.mrb[220].mxu0 }
 0x511   : > { %v7571_v48 = vadd.f32 %v7511_v30, %v7126_v51  ;;  %v7552_v16 = vpop.f32.mrb[220].mxu1  ;;  %v7513_v12 = vpop.f32.mrb[221].mxu0 }
 0x512   : > { %v7573_v9 = vadd.f32 %v7552_v16, %v7128_v52  ;;  %v7572_v42 = vadd.f32 %v7513_v12, %v7127_v55  ;;  %v7554_v11 = vpop.f32.mrb[221].mxu1  ;;  %v7515_v6 = vpop.f32.mrb[222].mxu0 }
 0x513   : > { %v7574_v38 = vadd.f32 %v7554_v11, %v7129_v56  ;;  %v7556_v23 = vpop.f32.mrb[222].mxu1  ;;  %v7516_v57 = vpop.f32.mrb[223].mxu0 }
 0x514   : > { %v7557_v44 = vpop.f32.mrb[223].mxu1 }
 0x518   : > { %v7710_v27 = vpop.f32.mrb[224].mxu0 }
 0x519   : > { %v8004_v4 = vadd.f32 %v7710_v27, %v7559_v43  ;;  %v7751_v53 = vpop.f32.mrb[224].mxu1  ;;  %v7712_v33 = vpop.f32.mrb[225].mxu0 }
 0x51a   : > { %v8006_v31 = vadd.f32 %v7751_v53, %v7561_v41  ;;  %v8005_v17 = vadd.f32 %v7712_v33, %v7560_v8  ;;  %v7753_v45 = vpop.f32.mrb[225].mxu1  ;;  %v7714_v34 = vpop.f32.mrb[226].mxu0 }
 0x51b   : > { %v8007_v5 = vadd.f32 %v7753_v45, %v7562_v18  ;;  %v7755_v51 = vpop.f32.mrb[226].mxu1  ;;  %v7715_v47 = vpop.f32.mrb[227].mxu0 }
 0x51c   : > { %v7756_v26 = vpop.f32.mrb[227].mxu1 }
 0x520   : > { %v7792_v52 = vpop.f32.mrb[228].mxu0 }
 0x521   : > { %v8008_v55 = vadd.f32 %v7792_v52, %v7563_v19  ;;  %v7833_v20 = vpop.f32.mrb[228].mxu1  ;;  %v7794_v2 = vpop.f32.mrb[229].mxu0 }
 0x522   : > { %v8010_v56 = vadd.f32 %v7833_v20, %v7565_v13  ;;  %v8009_v46 = vadd.f32 %v7794_v2, %v7564_v15  ;;  %v7835_v63 = vpop.f32.mrb[229].mxu1  ;;  %v7796_v24 = vpop.f32.mrb[230].mxu0 }
 0x523   : > { %v8011_v40 = vadd.f32 %v7835_v63, %v7566_v54  ;;  %v7837_v43 = vpop.f32.mrb[230].mxu1  ;;  %v7797_v21 = vpop.f32.mrb[231].mxu0 }
 0x524   : > { %v7838_v37 = vpop.f32.mrb[231].mxu1 }
 0x528   : > { %v7874_v41 = vpop.f32.mrb[232].mxu0 }
 0x529   : > { %v7915_v8 = vpop.f32.mrb[232].mxu1  ;;  %v7876_v32 = vpop.f32.mrb[233].mxu0  ;;  %v8012_v36 = vadd.f32 %v7874_v41, %v7567_v59 }
 0x52a   : > { %v7917_v18 = vpop.f32.mrb[233].mxu1  ;;  %v7878_v58 = vpop.f32.mrb[234].mxu0  ;;  %v8014_v22 = vadd.f32 %v7915_v8, %v7569_v10  ;;  %v8013_v61 = vadd.f32 %v7876_v32, %v7568_v50 }
 0x52b   : > { %v7919_v29 = vpop.f32.mrb[234].mxu1  ;;  %v7879_v19 = vpop.f32.mrb[235].mxu0  ;;  %v8015_v1 = vadd.f32 %v7917_v18, %v7570_v60 }
 0x52c   : > { %v7920_v3 = vpop.f32.mrb[235].mxu1 }
 0x530   : > { %v7956_v13 = vpop.f32.mrb[236].mxu0 }
 0x531   : > { %v7997_v15 = vpop.f32.mrb[236].mxu1  ;;  %v7958_v35 = vpop.f32.mrb[237].mxu0  ;;  %v8016_v28 = vadd.f32 %v7956_v13, %v7571_v48 }
 0x532   : > { %v7999_v54 = vpop.f32.mrb[237].mxu1  ;;  %v7960_v62 = vpop.f32.mrb[238].mxu0  ;;  %v8018_v39 = vadd.f32 %v7997_v15, %v7573_v9  ;;  %v8017_v25 = vadd.f32 %v7958_v35, %v7572_v42 }
 0x533   : > { %v8001_v49 = vpop.f32.mrb[238].mxu1  ;;  %v7961_v30 = vpop.f32.mrb[239].mxu0  ;;  %v8019_v16 = vadd.f32 %v7999_v54, %v7574_v38 }
 0x534   : > { %v8002_v59 = vpop.f32.mrb[239].mxu1 }
 0x538   : > { %v8155_v12 = vpop.f32.mrb[240].mxu0 }
 0x539   : > { %v8196_v11 = vpop.f32.mrb[240].mxu1  ;;  %v8157_v10 = vpop.f32.mrb[241].mxu0  ;;  %v8449_v50 = vadd.f32 %v8155_v12, %v8004_v4 }
 0x53a   : > { %v8198_v6 = vpop.f32.mrb[241].mxu1  ;;  %v8159_v23 = vpop.f32.mrb[242].mxu0  ;;  %v8451_v60 = vadd.f32 %v8196_v11, %v8006_v31  ;;  %v8450_v57 = vadd.f32 %v8157_v10, %v8005_v17 }
 0x53b   : > { %v8200_v44 = vpop.f32.mrb[242].mxu1  ;;  %v8160_v27 = vpop.f32.mrb[243].mxu0  ;;  %v8452_v53 = vadd.f32 %v8198_v6, %v8007_v5 }
 0x53c   : > { %v8201_v48 = vpop.f32.mrb[243].mxu1 }
 0x540   : > { %v8237_v33 = vpop.f32.mrb[244].mxu0 }
 0x541   : > { %v8278_v45 = vpop.f32.mrb[244].mxu1  ;;  %v8239_v9 = vpop.f32.mrb[245].mxu0  ;;  %v8453_v42 = vadd.f32 %v8237_v33, %v8008_v55 }
 0x542   : > { %v8280_v34 = vpop.f32.mrb[245].mxu1  ;;  %v8241_v51 = vpop.f32.mrb[246].mxu0  ;;  %v8455_v38 = vadd.f32 %v8278_v45, %v8010_v56  ;;  %v8454_v47 = vadd.f32 %v8239_v9, %v8009_v46 }
 0x543   : > { %v8282_v26 = vpop.f32.mrb[246].mxu1  ;;  %v8242_v52 = vpop.f32.mrb[247].mxu0  ;;  %v8456_v20 = vadd.f32 %v8280_v34, %v8011_v40 }
 0x544   : > { %v8283_v4 = vpop.f32.mrb[247].mxu1 }
 0x548   : > { %v8319_v2 = vpop.f32.mrb[248].mxu0 }
 0x549   : > { %v8457_v63 = vadd.f32 %v8319_v2, %v8012_v36  ;;  %v8360_v31 = vpop.f32.mrb[248].mxu1  ;;  %v8321_v17 = vpop.f32.mrb[249].mxu0 }
 0x54a   : > { %v8459_v24 = vadd.f32 %v8360_v31, %v8014_v22  ;;  %v8458_v43 = vadd.f32 %v8321_v17, %v8013_v61  ;;  %v8362_v5 = vpop.f32.mrb[249].mxu1  ;;  %v8323_v21 = vpop.f32.mrb[250].mxu0 }
 0x54b   : > { %v8460_v37 = vadd.f32 %v8362_v5, %v8015_v1  ;;  %v8364_v41 = vpop.f32.mrb[250].mxu1  ;;  %v8324_v8 = vpop.f32.mrb[251].mxu0 }
 0x54c   : > { %v8365_v55 = vpop.f32.mrb[251].mxu1 }
 0x54d   : > { %v22294_v55 = vpop.permute.xlu0 %9359 }
 0x550   : > { %v8401_v32 = vpop.f32.mrb[252].mxu0 }
 0x551   : > { %v8461_v18 = vadd.f32 %v8401_v32, %v8016_v28  ;;  %v8442_v56 = vpop.f32.mrb[252].mxu1  ;;  %v8403_v46 = vpop.f32.mrb[253].mxu0 }
 0x552   : > { %v8463_v58 = vadd.f32 %v8442_v56, %v8018_v39  ;;  %v8462_v29 = vadd.f32 %v8403_v46, %v8017_v25  ;;  %v8444_v40 = vpop.f32.mrb[253].mxu1  ;;  %v8405_v19 = vpop.f32.mrb[254].mxu0 }
 0x553   : > { %v8464_v3 = vadd.f32 %v8444_v40, %v8019_v16  ;;  %v8446_v36 = vpop.f32.mrb[254].mxu1  ;;  %v8406_v13 = vpop.f32.mrb[255].mxu0 }
 0x554   : > { %v8447_v15 = vpop.f32.mrb[255].mxu1 }
 0x558   : > { %v8600_v22 = vpop.f32.mrb[0].mxu0 }
 0x559   : > { %v8894_v61 = vadd.f32 %v8600_v22, %v8449_v50  ;;  %v8641_v35 = vpop.f32.mrb[0].mxu1  ;;  %v8602_v54 = vpop.f32.mrb[1].mxu0 }
 0x55a   : > { %v8896_v1 = vadd.f32 %v8641_v35, %v8451_v60  ;;  %v8895_v62 = vadd.f32 %v8602_v54, %v8450_v57  ;;  %v8643_v49 = vpop.f32.mrb[1].mxu1  ;;  %v8604_v30 = vpop.f32.mrb[2].mxu0 }
 0x55b   : > { %v8897_v59 = vadd.f32 %v8643_v49, %v8452_v53  ;;  %v8645_v28 = vpop.f32.mrb[2].mxu1  ;;  %v8605_v12 = vpop.f32.mrb[3].mxu0 }
 0x55c   : > { %v8646_v11 = vpop.f32.mrb[3].mxu1 }
 0x55d   : > { %v19915_v11 = vld [vmem:[%s20779_s4] sm:$0xff] }
 0x560   : > { %v8682_v39 = vpop.f32.mrb[4].mxu0 }
 0x561   : > { %v22270_v25 = vadd.f32 %v8682_v39, %v8453_v42  ;;  %v8723_v10 = vpop.f32.mrb[4].mxu1  ;;  %v8684_v16 = vpop.f32.mrb[5].mxu0 }
 0x562   : > { %v22272_v6 = vadd.f32 %v8723_v10, %v8455_v38  ;;  %v22274_v23 = vadd.f32 %v8684_v16, %v8454_v47  ;;  %v8725_v50 = vpop.f32.mrb[5].mxu1  ;;  %v8686_v44 = vpop.f32.mrb[6].mxu0 }
 0x563   : > { %v22276_v27 = vadd.f32 %v8725_v50, %v8456_v20  ;;  %v8727_v60 = vpop.f32.mrb[6].mxu1  ;;  %v8687_v57 = vpop.f32.mrb[7].mxu0 }
 0x564   : > { %v8728_v48 = vpop.f32.mrb[7].mxu1  ;;  %v19916_v60 = vld [vmem:[%s20779_s4 + $0x8] sm:$0xff] }
 0x568   : > { %v8764_v53 = vpop.f32.mrb[8].mxu0 }
 0x569   : > { %v22278_v33 = vadd.f32 %v8764_v53, %v8457_v63  ;;  %v8805_v45 = vpop.f32.mrb[8].mxu1  ;;  %v8766_v9 = vpop.f32.mrb[9].mxu0  ;;  %v19917_v53 = vld [vmem:[%s20779_s4 + $0x10] sm:$0xff] }
 0x56a   : > { %v22280_v42 = vadd.f32 %v8805_v45, %v8459_v24  ;;  %v22282_v34 = vadd.f32 %v8766_v9, %v8458_v43  ;;  %v8807_v51 = vpop.f32.mrb[9].mxu1  ;;  %v8768_v38 = vpop.f32.mrb[10].mxu0 }
 0x56b   : > { %v22284_v47 = vadd.f32 %v8807_v51, %v8460_v37  ;;  %v8809_v26 = vpop.f32.mrb[10].mxu1  ;;  %v8769_v52 = vpop.f32.mrb[11].mxu0 }
 0x56c   : > { %v8810_v20 = vpop.f32.mrb[11].mxu1 }
 0x56d   : > { %v19918_v20 = vld [vmem:[%s20779_s4 + $0x18] sm:$0xff] }
 0x570   : > { %v8846_v4 = vpop.f32.mrb[12].mxu0 }
 0x571   : > { %v22286_v2 = vadd.f32 %v8846_v4, %v8461_v18  ;;  %v8887_v31 = vpop.f32.mrb[12].mxu1  ;;  %v8848_v17 = vpop.f32.mrb[13].mxu0 }
 0x572   : > { %v22288_v63 = vadd.f32 %v8887_v31, %v8463_v58  ;;  %v22290_v5 = vadd.f32 %v8848_v17, %v8462_v29  ;;  %v8889_v24 = vpop.f32.mrb[13].mxu1  ;;  %v8850_v21 = vpop.f32.mrb[14].mxu0 }
 0x573   : > { %v22292_v43 = vadd.f32 %v8889_v24, %v8464_v3  ;;  %v8891_v41 = vpop.f32.mrb[14].mxu1  ;;  %v8851_v8 = vpop.f32.mrb[15].mxu0 }
 0x574   : > { %v8892_v37 = vpop.f32.mrb[15].mxu1 }
 0x578   : > { %v9045_v32 = vpop.f32.mrb[16].mxu0 }
 0x579   : > { %v9339_v56 = vadd.f32 %v9045_v32, %v8894_v61  ;;  %v9086_v46 = vpop.f32.mrb[16].mxu1  ;;  %v9047_v18 = vpop.f32.mrb[17].mxu0 }
 0x57a   : > { %v9341_v40 = vadd.f32 %v9086_v46, %v8896_v1  ;;  %v9340_v19 = vadd.f32 %v9047_v18, %v8895_v62  ;;  %v9088_v36 = vpop.f32.mrb[17].mxu1  ;;  %v9049_v58 = vpop.f32.mrb[18].mxu0 }
 0x57b   : > { %v9362_v29 = vadd.f32 %v22294_v55, %v9339_v56  ;;  %v9342_v13 = vadd.f32 %v9088_v36, %v8897_v59  ;;  %v9090_v15 = vpop.f32.mrb[18].mxu1  ;;  %v9050_v22 = vpop.f32.mrb[19].mxu0 }
 0x57c   : > { %v9364_v3 = vadd.f32 %v22294_v55, %v9341_v40  ;;  %v9363_v35 = vadd.f32 %v22294_v55, %v9340_v19  ;;  %v9091_v54 = vpop.f32.mrb[19].mxu1 }
 0x57d   : > { %vm9378_vm8 = vcmp.ge.f32.partialorder %v9362_v29, 0.0  ;;  %v9394_v49 = vmul.f32 0.1, %v9362_v29  ;;  %v9365_v61 = vadd.f32 %v22294_v55, %v9342_v13 }
 0x57e   : > { %vm9380_vm9 = vcmp.ge.f32.partialorder %v9364_v3, 0.0  ;;  %v9396_v1 = vmul.f32 0.1, %v9364_v3  ;;  %vm9379_vm10 = vcmp.ge.f32.partialorder %v9363_v35, 0.0  ;;  %v9395_v62 = vmul.f32 0.1, %v9363_v35 }
 0x57f   : > { %vm9381_vm11 = vcmp.ge.f32.partialorder %v9365_v61, 0.0  ;;  %v9397_v30 = vmul.f32 0.1, %v9365_v61  ;;  %v9410_v59 = vsel %vm9378_vm8, %v9362_v29, %v9394_v49  ;;  %v19919_v29 = vld [vmem:[%s20779_s4 + $0x20] sm:$0xff] }
 0x580   : > { %v9127_v28 = vpop.f32.mrb[20].mxu0  ;;  %v9411_v12 = vsel %vm9379_vm10, %v9363_v35, %v9395_v62  ;;  %v9426_v39 = vmul.f32 %v19915_v11, %v9410_v59  ;;  %v9412_v10 = vsel %vm9380_vm9, %v9364_v3, %v9396_v1  ;;  %v22331_v3 = vld [vmem:[#allocation12 + $0x4c] sm:$0xf] }
 0x581   : > { %v9343_v16 = vadd.f32 %v9127_v28, %v22270_v25  ;;  %v9168_v50 = vpop.f32.mrb[20].mxu1  ;;  %v9129_v44 = vpop.f32.mrb[21].mxu0  ;;  %v22303_v57 = vmul.f32 %v19916_v60, %v9411_v12  ;;  %v9413_v48 = vsel %vm9381_vm11, %v9365_v61, %v9397_v30  ;;  %v9428_v45 = vmul.f32 %v19917_v53, %v9412_v10  ;;  %v19920_v61 = vld [vmem:[%s20779_s4 + $0x28] sm:$0xff]  ;;  %v19921_v30 = vld [vmem:[%s20779_s4 + $0x30] sm:$0xff] }
 0x582   : > { %v9345_v9 = vadd.f32 %v9168_v50, %v22272_v6  ;;  %v9344_v51 = vadd.f32 %v9129_v44, %v22274_v23  ;;  %v9170_v38 = vpop.f32.mrb[21].mxu1  ;;  %v9131_v26 = vpop.f32.mrb[22].mxu0  ;;  %v22309_v52 = vpack.c.bf16 %v9426_v39, %v20363_v14  ;;  %v22312_v4 = vmul.f32 %v19918_v20, %v9413_v48 }
 0x583   : > { %v9366_v25 = vadd.f32 %v22294_v55, %v9343_v16  ;;  %v9346_v31 = vadd.f32 %v9170_v38, %v22276_v27  ;;  %v9172_v17 = vpop.f32.mrb[22].mxu1  ;;  %v9132_v24 = vpop.f32.mrb[23].mxu0  ;;  %v19427_v21 = vpack.c.bf16 %v22303_v57, %v9426_v39  ;;  %v22318_v6 = vpack.c.bf16 %v9428_v45, %v22303_v57 }
 0x584   : > { %v9368_v23 = vadd.f32 %v22294_v55, %v9345_v9  ;;  %v9367_v41 = vadd.f32 %v22294_v55, %v9344_v51  ;;  %v9173_v8 = vpop.f32.mrb[23].mxu1  ;;  %9700 = vst [vmem:[#allocation3 + $0x48] sm:$0xff] %v22309_v52  ;;  %v19428_v37 = vpack.c.bf16 %v22312_v4, %v9428_v45  ;;  %v19975_v32 = vpack.c.bf16 %v9426_v39, %v9426_v39 }
 0x585   : > { %vm9382_vm12 = vcmp.ge.f32.partialorder %v9366_v25, 0.0  ;;  %v9398_v27 = vmul.f32 0.1, %v9366_v25  ;;  %v9369_v56 = vadd.f32 %v22294_v55, %v9346_v31  ;;  %9546 = vrot.lane.b32.xlu0 %v19427_v21, %s20360_s24  ;;  %9701 = vst [vmem:[#allocation3 + $0x50] sm:$0xff] %v22318_v6  ;;  %v19977_v22 = vpack.c.bf16 %v9428_v45, %v9428_v45 }
 0x586   : > { %vm9384_vm13 = vcmp.ge.f32.partialorder %v9368_v23, 0.0  ;;  %v9400_v46 = vmul.f32 0.1, %v9368_v23  ;;  %vm9383_vm14 = vcmp.ge.f32.partialorder %v9367_v41, 0.0  ;;  %v9399_v18 = vmul.f32 0.1, %v9367_v41  ;;  %9548 = vrot.lane.b32.xlu1 %v19428_v37, %s20360_s24  ;;  %18860 = vmatprep.subr.msk.bf16.mxu0 %vm611_vm0, %v19975_v32 }
 0x587   : > { %vm9385_vm15 = vcmp.ge.f32.partialorder %v9369_v56, 0.0  ;;  %v9401_v40 = vmul.f32 0.1, %v9369_v56  ;;  %v9414_v19 = vsel %vm9382_vm12, %v9366_v25, %v9398_v27  ;;  %9973 = vmatpush1.bf16.msra.mxu0 %v20362_v7  ;;  %18862 = vmatprep.subr.msk.bf16.mxu1 %vm611_vm0, %v19977_v22  ;;  %v19978_v51 = vpack.c.bf16 %v22303_v57, %v22303_v57 }
 0x588   : > { %v9209_v36 = vpop.f32.mrb[24].mxu0  ;;  %v9415_v58 = vsel %vm9383_vm14, %v9367_v41, %v9399_v18  ;;  %v9430_v13 = vmul.f32 %v19919_v29, %v9414_v19  ;;  %v9416_v15 = vsel %vm9384_vm13, %v9368_v23, %v9400_v46  ;;  %v19923_v41 = vld [vmem:[%s20779_s4 + $0x40] sm:$0xff]  ;;  %v19980_v32 = vpack.c.bf16 %v22312_v4, %v22312_v4  ;;  %v19924_v18 = vld [vmem:[%s20779_s4 + $0x48] sm:$0xff] }
 0x589   : > { %v9347_v35 = vadd.f32 %v9209_v36, %v22278_v33  ;;  %v9250_v54 = vpop.f32.mrb[24].mxu1  ;;  %v9211_v49 = vpop.f32.mrb[25].mxu0  ;;  %v22335_v1 = vmul.f32 %v19920_v61, %v9415_v58  ;;  %v9417_v62 = vsel %vm9385_vm15, %v9369_v56, %v9401_v40  ;;  %v22339_v59 = vmul.f32 %v19921_v30, %v9416_v15  ;;  %v19922_v33 = vld [vmem:[%s20779_s4 + $0x38] sm:$0xff]  ;;  %v19925_v36 = vld [vmem:[%s20779_s4 + $0x50] sm:$0xff] }
 0x58a   : > { %v9349_v28 = vadd.f32 %v9250_v54, %v22280_v42  ;;  %v9348_v12 = vadd.f32 %v9211_v49, %v22282_v34  ;;  %v9252_v11 = vpop.f32.mrb[25].mxu1  ;;  %v9213_v39 = vpop.f32.mrb[26].mxu0  ;;  %v22344_v10 = vpack.c.bf16 %v9430_v13, %v22312_v4  ;;  %v22347_v16 = vmul.f32 %v19922_v33, %v9417_v62  ;;  %18861 = vmatmul.mubr.msk.bf16.vlgmr.msra.gmra.mrb[32].mxu0 %vm962_vm1, %v22331_v3 }
 0x58b   : > { %v9370_v50 = vadd.f32 %v22294_v55, %v9347_v35  ;;  %v9350_v44 = vadd.f32 %v9252_v11, %v22284_v47  ;;  %v9254_v60 = vpop.f32.mrb[26].mxu1  ;;  %v9214_v48 = vpop.f32.mrb[27].mxu0  ;;  %v19429_v42 = vpack.c.bf16 %v22335_v1, %v9430_v13  ;;  %v22355_v34 = vpack.c.bf16 %v22339_v59, %v22335_v1  ;;  %10086 = vmatprep.mubr.bf16.mxu0 %v20359_v0 }
 0x58c   : > { %v9372_v53 = vadd.f32 %v22294_v55, %v9349_v28  ;;  %v9371_v45 = vadd.f32 %v22294_v55, %v9348_v12  ;;  %v9255_v9 = vpop.f32.mrb[27].mxu1  ;;  %9702 = vst [vmem:[#allocation3 + $0x58] sm:$0xff] %v22344_v10  ;;  %v19430_v47 = vpack.c.bf16 %v22347_v16, %v22339_v59  ;;  %v19979_v20 = vpack.c.bf16 %v9430_v13, %v9430_v13 }
 0x58d   : > { %vm9386_vm4 = vcmp.ge.f32.partialorder %v9370_v50, 0.0  ;;  %v9402_v38 = vmul.f32 0.1, %v9370_v50  ;;  %v9373_v26 = vadd.f32 %v22294_v55, %v9350_v44  ;;  %9550 = vrot.lane.b32.xlu0 %v19429_v42, %s20360_s24  ;;  %9703 = vst [vmem:[#allocation3 + $0x60] sm:$0xff] %v22355_v34  ;;  %v9931_v17 = vsel %vm611_vm0, %v19978_v51, 0 }
 0x58e   : > { %vm9388_vm5 = vcmp.ge.f32.partialorder %v9372_v53, 0.0  ;;  %v9404_v25 = vmul.f32 0.1, %v9372_v53  ;;  %vm9387_vm6 = vcmp.ge.f32.partialorder %v9371_v45, 0.0  ;;  %v9403_v31 = vmul.f32 0.1, %v9371_v45  ;;  %9552 = vrot.lane.b32.xlu1 %v19430_v47, %s20360_s24  ;;  %18864 = vmatprep.subr.msk.bf16.mxu0 %vm611_vm0, %v19979_v20 }
 0x58f   : > { %vm9389_vm7 = vcmp.ge.f32.partialorder %v9373_v26, 0.0  ;;  %v9405_v57 = vmul.f32 0.1, %v9373_v26  ;;  %v9418_v24 = vsel %vm9386_vm4, %v9370_v50, %v9402_v38  ;;  %10014 = vmatpush1.bf16.msra.mxu1 %v9931_v17  ;;  %v9937_v11 = vsel %vm611_vm0, %v19980_v32, 0  ;;  %v19928_v38 = vld [vmem:[%s20779_s4 + $0x68] sm:$0xff] }
 0x590   : > { %v9291_v21 = vpop.f32.mrb[28].mxu0  ;;  %v9419_v23 = vsel %vm9387_vm6, %v9371_v45, %v9403_v31  ;;  %v22374_v8 = vmul.f32 %v19923_v41, %v9418_v24  ;;  %v9420_v37 = vsel %vm9388_vm5, %v9372_v53, %v9404_v25  ;;  %10055 = vmatpush1.bf16.msra.mxu0 %v9937_v11  ;;  %v19981_v50 = vpack.c.bf16 %v22339_v59, %v22339_v59  ;;  %v19927_v59 = vld [vmem:[%s20779_s4 + $0x60] sm:$0xff]  ;;  %v19929_v25 = vld [vmem:[%s20779_s4 + $0x70] sm:$0xff] }
 0x591   : > { %v9351_v27 = vadd.f32 %v9291_v21, %v22286_v2  ;;  %v9332_v56 = vpop.f32.mrb[28].mxu1  ;;  %v9293_v46 = vpop.f32.mrb[29].mxu0  ;;  %v22380_v40 = vmul.f32 %v19924_v18, %v9419_v23  ;;  %v9421_v19 = vsel %vm9389_vm7, %v9373_v26, %v9405_v57  ;;  %v22384_v58 = vmul.f32 %v19925_v36, %v9420_v37  ;;  %v19926_v2 = vld [vmem:[%s20779_s4 + $0x58] sm:$0xff] }
 0x592   : > { %v9353_v29 = vadd.f32 %v9332_v56, %v22288_v63  ;;  %v9352_v13 = vadd.f32 %v9293_v46, %v22290_v5  ;;  %v9334_v15 = vpop.f32.mrb[29].mxu1  ;;  %v9295_v22 = vpop.f32.mrb[30].mxu0  ;;  %v22390_v4 = vpack.c.bf16 %v22374_v8, %v22347_v16  ;;  %v22393_v35 = vmul.f32 %v19926_v2, %v9421_v19  ;;  %18863 = vmatmul.mubr.msk.bf16.vlgmr.msra.gmra.mrb[32].mxu1 %vm962_vm1, %v22331_v3  ;;  %v19930_v57 = vld [vmem:[%s20779_s4 + $0x78] sm:$0xff] }
 0x593   : > { %v9374_v54 = vadd.f32 %v22294_v55, %v9351_v27  ;;  %v9354_v49 = vadd.f32 %v9334_v15, %v22292_v43  ;;  %v9336_v61 = vpop.f32.mrb[30].mxu1  ;;  %v9296_v62 = vpop.f32.mrb[31].mxu0  ;;  %v19431_v63 = vpack.c.bf16 %v22380_v40, %v22374_v8  ;;  %v22401_v5 = vpack.c.bf16 %v22384_v58, %v22380_v40  ;;  %10127 = vmatprep.mubr.bf16.mxu1 %v20359_v0 }
 0x594   : > { %v9376_v30 = vadd.f32 %v22294_v55, %v9353_v29  ;;  %v9375_v28 = vadd.f32 %v22294_v55, %v9352_v13  ;;  %v9337_v12 = vpop.f32.mrb[31].mxu1  ;;  %9704 = vst [vmem:[#allocation3 + $0x68] sm:$0xff] %v22390_v4  ;;  %v19432_v43 = vpack.c.bf16 %v22393_v35, %v22384_v58  ;;  %18866 = vmatprep.subr.msk.bf16.mxu1 %vm611_vm0, %v19981_v50  ;;  %v22499_v61 = vld [vmem:[#allocation12 + $0x48] sm:$0xf] }
 0x595   : > { %vm9390_vm8 = vcmp.ge.f32.partialorder %v9374_v54, 0.0  ;;  %v9406_v39 = vmul.f32 0.1, %v9374_v54  ;;  %v9377_v33 = vadd.f32 %v22294_v55, %v9354_v49  ;;  %9554 = vrot.lane.b32.xlu0 %v19431_v63, %s20360_s24  ;;  %9705 = vst [vmem:[#allocation3 + $0x70] sm:$0xff] %v22401_v5  ;;  %v19982_v55 = vpack.c.bf16 %v22335_v1, %v22335_v1  ;;  %18865 = vmatmul.mubr.msk.bf16.vlgmr.msra.gmra.mrb[36].mxu0 %vm962_vm1, %v22331_v3 }
 0x596   : > { %vm9392_vm9 = vcmp.ge.f32.partialorder %v9376_v30, 0.0  ;;  %v9408_v44 = vmul.f32 0.1, %v9376_v30  ;;  %vm9391_vm10 = vcmp.ge.f32.partialorder %v9375_v28, 0.0  ;;  %v9407_v60 = vmul.f32 0.1, %v9375_v28  ;;  %9556 = vrot.lane.b32.xlu1 %v19432_v43, %s20360_s24  ;;  %10168 = vmatprep.mubr.bf16.mxu0 %v20359_v0 }
 0x597   : > { %vm9393_vm11 = vcmp.ge.f32.partialorder %v9377_v33, 0.0  ;;  %v9409_v48 = vmul.f32 0.1, %v9377_v33  ;;  %v9422_v42 = vsel %vm9390_vm8, %v9374_v54, %v9406_v39  ;;  %v19983_v47 = vpack.c.bf16 %v22374_v8, %v22374_v8 }
 0x598   : > { %v9423_v53 = vsel %vm9391_vm10, %v9375_v28, %v9407_v60  ;;  %v9438_v45 = vmul.f32 %v19927_v59, %v9422_v42  ;;  %v9424_v9 = vsel %vm9392_vm9, %v9376_v30, %v9408_v44  ;;  %v9943_v51 = vsel %vm611_vm0, %v19982_v55, 0 }
 0x599   : > { %v9439_v26 = vmul.f32 %v19928_v38, %v9423_v53  ;;  %v9425_v20 = vsel %vm9393_vm11, %v9377_v33, %v9409_v48  ;;  %v9440_v1 = vmul.f32 %v19929_v25, %v9424_v9  ;;  %10096 = vmatpush1.bf16.msra.mxu1 %v9943_v51  ;;  %18868 = vmatprep.subr.msk.bf16.mxu0 %vm611_vm0, %v19983_v47 }
 0x59a   : > { %v19442_v31 = vpack.c.bf16 %v9438_v45, %v22393_v35  ;;  %v9441_v17 = vmul.f32 %v19930_v57, %v9425_v20  ;;  %v19984_v24 = vpack.c.bf16 %v22347_v16, %v22347_v16  ;;  %v19985_v41 = vpack.c.bf16 %v22384_v58, %v22384_v58 }
 0x59b   : > { %v19433_v21 = vpack.c.bf16 %v9439_v26, %v9438_v45  ;;  %v19443_v23 = vpack.c.bf16 %v9440_v1, %v9439_v26  ;;  %v19986_v8 = vpack.c.bf16 %v22380_v40, %v22380_v40  ;;  %v19987_v27 = vpack.c.bf16 %v9438_v45, %v9438_v45 }
 0x59c   : > { %9706 = vst [vmem:[#allocation3 + $0x78] sm:$0xff] %v19442_v31  ;;  %v19434_v37 = vpack.c.bf16 %v9441_v17, %v9440_v1  ;;  %v9949_v32 = vsel %vm611_vm0, %v19984_v24, 0  ;;  %v19988_v56 = vpack.c.bf16 %v22393_v35, %v22393_v35  ;;  %v19444_v46 = vpack.c.bf16 %v20363_v14, %v9441_v17  ;;  %18870 = vmatprep.subr.msk.bf16.mxu1 %vm611_vm0, %v19985_v41 }
 0x59d   : > { %9558 = vrot.lane.b32.xlu0 %v19433_v21, %s20360_s24  ;;  %9707 = vst [vmem:[#allocation3 + $0x80] sm:$0xff] %v19443_v23  ;;  %10137 = vmatpush1.bf16.msra.mxu0 %v9949_v32  ;;  %v9955_v16 = vsel %vm611_vm0, %v19986_v8, 0  ;;  %v19989_v40 = vpack.c.bf16 %v9440_v1, %v9440_v1  ;;  %v19990_v14 = vpack.c.bf16 %v9439_v26, %v9439_v26 }
 0x59e   : > { %9560 = vrot.lane.b32.xlu1 %v19434_v37, %s20360_s24  ;;  %18867 = vmatmul.mubr.msk.bf16.vlgmr.msra.gmra.mrb[36].mxu1 %vm962_vm1, %v22331_v3  ;;  %v9961_v18 = vsel %vm611_vm0, %v19988_v56, 0  ;;  %9708 = vst [vmem:[#allocation3 + $0x88] sm:$0xff] %v19444_v46 }
 0x59f   : > { %18872 = vmatprep.subr.msk.bf16.mxu0 %vm611_vm0, %v19987_v27  ;;  %10178 = vmatpush1.bf16.msra.mxu1 %v9955_v16  ;;  %v9967_v19 = vsel %vm611_vm0, %v19990_v14, 0 }
 0x5a0   : > { %18869 = vmatmul.mubr.msk.bf16.vlgmr.msra.gmra.mrb[40].mxu0 %vm962_vm1, %v22331_v3  ;;  %10209 = vmatprep.mubr.bf16.mxu1 %v20359_v0 }
 0x5a1   : > { %9795 = vrot.lane.b32.xlu0 %v22309_v52, %s20361_s8  ;;  %10219 = vmatpush1.bf16.msra.mxu0 %v9961_v18  ;;  %v9545_v52 = vpop.permute.xlu1 %9544 }
 0x5a2   : > { %9797 = vrot.lane.b32.xlu1 %v22318_v6, %s20361_s8  ;;  %18874 = vmatprep.subr.msk.bf16.mxu1 %vm611_vm0, %v19989_v40 }
 0x5a3   : > { %10250 = vmatprep.mubr.bf16.mxu0 %v20359_v0 }
 0x5a5   : > { %9799 = vrot.lane.b32.xlu0 %v22344_v10, %s20361_s8  ;;  %v9564_v10 = vrot.slane %v9545_v52, 4 }
 0x5a6   : > { %9801 = vrot.lane.b32.xlu1 %v22355_v34, %s20361_s8  ;;  %18871 = vmatmul.mubr.msk.bf16.vlgmr.msra.gmra.mrb[40].mxu1 %vm962_vm1, %v22331_v3 }
 0x5a7   : > { %10260 = vmatpush1.bf16.msra.mxu1 %v9967_v19  ;;  %10291 = vmatprep.mubr.bf16.mxu1 %v20359_v0 }
 0x5a8   : > { %18873 = vmatmul.mubr.msk.bf16.vlgmr.msra.gmra.mrb[44].mxu0 %vm962_vm1, %v22331_v3 }
 0x5a9   : > { %9803 = vrot.lane.b32.xlu0 %v22390_v4, %s20361_s8  ;;  %10423 = vmatprep.mubr.bf16.mxu0 %v20359_v0 }
 0x5aa   : > { %9805 = vrot.lane.b32.xlu1 %v22401_v5, %s20361_s8 }
 0x5ad   : > { %9807 = vrot.lane.b32.xlu0 %v19442_v31, %s20361_s8 }
 0x5ae   : > { %9809 = vrot.lane.b32.xlu1 %v19443_v23, %s20361_s8  ;;  %18875 = vmatmul.mubr.msk.bf16.vlgmr.msra.gmra.mrb[44].mxu1 %vm962_vm1, %v22331_v3 }
 0x5af   : > { %10464 = vmatprep.mubr.bf16.mxu1 %v20359_v0 }
 0x5b1   : > { %9811 = vrot.lane.b32.xlu0 %v19444_v46, %s20361_s8 }
 0x5b2   : > { %9562 = vrot.lane.b32.xlu1 %v20362_v7, %s20360_s24 }
 0x5b5   : > { %9813 = vrot.lane.b32.xlu0 %v20362_v7, %s20361_s8 }
 0x5f7   : > { %v9547_v6 = vpop.permute.xlu0 %9546 }
 0x5f8   : > { %v9565_v34 = vrot.slane %v9547_v6, 4  ;;  %v9549_v36 = vpop.permute.xlu1 %9548 }
 0x5f9   : > { %v9566_v58 = vrot.slane %v9549_v36, 4 }
 0x5fa   : > { %v9574_v29 = vsel %vm611_vm0, %v9564_v10, %v9565_v34 }
 0x5fb   : > { %v9575_v3 = vsel %vm613_vm2, %v9545_v52, %v9574_v29  ;;  %v9576_v13 = vsel %vm611_vm0, %v9565_v34, %v9566_v58 }
 0x5fc   : > { %9601 = vst [vmem:[#allocation3] sm:$0xff] %v9575_v3  ;;  %v9577_v15 = vsel %vm613_vm2, %v9547_v6, %v9576_v13  ;;  %v18877_v22 = vcombine.high %v9575_v3, %v9575_v3  ;;  %v18876_v4 = vcombine.low %v9575_v3, %v9575_v3 }
 0x5fd   : > { %9602 = vst [vmem:[#allocation3 + $0x8] sm:$0xff] %v9577_v15  ;;  %v22490_v2 = vcombine.high %v9577_v15, %v9577_v15  ;;  %v18878_v7 = vcombine.low %v9577_v15, %v9577_v15 }
 0x5fe   : > { %18892 = vmatprep.subr.msk.bf16.mxu0 %vm611_vm0, %v18877_v22  ;;  %v10344_v35 = vsel %vm611_vm0, %v18876_v4, 0 }
 0x5ff   : > { %v9551_v54 = vpop.permute.xlu0 %9550  ;;  %18894 = vmatprep.subr.msk.bf16.mxu1 %vm611_vm0, %v22490_v2  ;;  %10392 = vmatpush1.bf16.msra.mxu0 %v10344_v35  ;;  %v22497_v49 = vsel %vm611_vm0, %v18878_v7, 0 }
 0x600   : > { %v9567_v62 = vrot.slane %v9551_v54, 4  ;;  %v9553_v63 = vpop.permute.xlu1 %9552  ;;  %10433 = vmatpush1.bf16.msra.mxu1 %v22497_v49 }
 0x601   : > { %v9568_v5 = vrot.slane %v9553_v63, 4 }
 0x602   : > { %v9578_v30 = vsel %vm611_vm0, %v9566_v58, %v9567_v62  ;;  %18893 = vmatmul.mubr.msk.bf16.vlgmr.msra.gmra.mrb[48].mxu0 %vm962_vm1, %v22499_v61 }
 0x603   : > { %v9579_v28 = vsel %vm613_vm2, %v9549_v36, %v9578_v30  ;;  %v9580_v12 = vsel %vm611_vm0, %v9567_v62, %v9568_v5  ;;  %18895 = vmatmul.mubr.msk.bf16.vlgmr.msra.gmra.mrb[48].mxu1 %vm962_vm1, %v22499_v61  ;;  %10505 = vmatprep.mubr.bf16.mxu0 %v20359_v0 }
 0x604   : > { %9603 = vst [vmem:[#allocation3 + $0x10] sm:$0xff] %v9579_v28  ;;  %v9581_v43 = vsel %vm613_vm2, %v9551_v54, %v9580_v12  ;;  %v22511_v11 = vcombine.high %v9579_v28, %v9579_v28  ;;  %v18880_v39 = vcombine.low %v9579_v28, %v9579_v28  ;;  %10546 = vmatprep.mubr.bf16.mxu1 %v20359_v0 }
 0x605   : > { %9604 = vst [vmem:[#allocation3 + $0x18] sm:$0xff] %v9581_v43  ;;  %v22514_v33 = vcombine.high %v9581_v43, %v9581_v43  ;;  %v18882_v50 = vcombine.low %v9581_v43, %v9581_v43 }
 0x606   : > { %18896 = vmatprep.subr.msk.bf16.mxu0 %vm611_vm0, %v22511_v11  ;;  %v22519_v44 = vsel %vm611_vm0, %v18880_v39, 0 }
 0x607   : > { %v9555_v60 = vpop.permute.xlu0 %9554  ;;  %18898 = vmatprep.subr.msk.bf16.mxu1 %vm611_vm0, %v22514_v33  ;;  %10474 = vmatpush1.bf16.msra.mxu0 %v22519_v44  ;;  %v22525_v48 = vsel %vm611_vm0, %v18882_v50, 0 }
 0x608   : > { %v9569_v55 = vrot.slane %v9555_v60, 4  ;;  %v9557_v42 = vpop.permute.xlu1 %9556  ;;  %10515 = vmatpush1.bf16.msra.mxu1 %v22525_v48 }
 0x609   : > { %v9570_v53 = vrot.slane %v9557_v42, 4 }
 0x60a   : > { %v9582_v59 = vsel %vm611_vm0, %v9568_v5, %v9569_v55  ;;  %18897 = vmatmul.mubr.msk.bf16.vlgmr.msra.gmra.mrb[52].mxu0 %vm962_vm1, %v22499_v61 }
 0x60b   : > { %v9583_v45 = vsel %vm613_vm2, %v9553_v63, %v9582_v59  ;;  %v9584_v9 = vsel %vm611_vm0, %v9569_v55, %v9570_v53  ;;  %18899 = vmatmul.mubr.msk.bf16.vlgmr.msra.gmra.mrb[52].mxu1 %vm962_vm1, %v22499_v61  ;;  %10587 = vmatprep.mubr.bf16.mxu0 %v20359_v0  ;;  %v22614_v55 = vld [vmem:[#allocation12 + $0x50] sm:$0xf] }
 0x60c   : > { %9605 = vst [vmem:[#allocation3 + $0x20] sm:$0xff] %v9583_v45  ;;  %v9585_v47 = vsel %vm613_vm2, %v9555_v60, %v9584_v9  ;;  %v22537_v51 = vcombine.high %v9583_v45, %v9583_v45  ;;  %v18884_v38 = vcombine.low %v9583_v45, %v9583_v45  ;;  %10628 = vmatprep.mubr.bf16.mxu1 %v20359_v0 }
 0x60d   : > { %9606 = vst [vmem:[#allocation3 + $0x28] sm:$0xff] %v9585_v47  ;;  %v22540_v26 = vcombine.high %v9585_v47, %v9585_v47  ;;  %v18886_v20 = vcombine.low %v9585_v47, %v9585_v47 }
 0x60e   : > { %18900 = vmatprep.subr.msk.bf16.mxu0 %vm611_vm0, %v22537_v51  ;;  %v22545_v25 = vsel %vm611_vm0, %v18884_v38, 0 }
 0x60f   : > { %v9559_v1 = vpop.permute.xlu0 %9558  ;;  %18902 = vmatprep.subr.msk.bf16.mxu1 %vm611_vm0, %v22540_v26  ;;  %10556 = vmatpush1.bf16.msra.mxu0 %v22545_v25  ;;  %v22551_v31 = vsel %vm611_vm0, %v18886_v20, 0 }
 0x610   : > { %v9571_v57 = vrot.slane %v9559_v1, 4  ;;  %v22553_v17 = vpop.permute.xlu1 %9560  ;;  %10597 = vmatpush1.bf16.msra.mxu1 %v22551_v31 }
 0x611   : > { %v9572_v24 = vrot.slane %v22553_v17, 4 }
 0x612   : > { %v9586_v21 = vsel %vm611_vm0, %v9570_v53, %v9571_v57  ;;  %18901 = vmatmul.mubr.msk.bf16.vlgmr.msra.gmra.mrb[56].mxu0 %vm962_vm1, %v22499_v61 }
 0x613   : > { %v9587_v23 = vsel %vm613_vm2, %v9557_v42, %v9586_v21  ;;  %v9588_v41 = vsel %vm611_vm0, %v9571_v57, %v9572_v24  ;;  %v9796_v8 = vpop.permute.xlu0 %9795  ;;  %18903 = vmatmul.mubr.msk.bf16.vlgmr.msra.gmra.mrb[56].mxu1 %vm962_vm1, %v22499_v61  ;;  %10669 = vmatprep.mubr.bf16.mxu0 %v20359_v0 }
 0x614   : > { %9607 = vst [vmem:[#allocation3 + $0x30] sm:$0xff] %v9587_v23  ;;  %v9589_v37 = vsel %vm613_vm2, %v9559_v1, %v9588_v41  ;;  %v9815_v32 = vrot.slane %v9796_v8, 4  ;;  %v9798_v27 = vpop.permute.xlu1 %9797  ;;  %v22568_v56 = vcombine.high %v9587_v23, %v9587_v23  ;;  %v18888_v16 = vcombine.low %v9587_v23, %v9587_v23  ;;  %10710 = vmatprep.mubr.bf16.mxu1 %v20359_v0 }
 0x615   : > { %9608 = vst [vmem:[#allocation3 + $0x38] sm:$0xff] %v9589_v37  ;;  %v9816_v46 = vrot.slane %v9798_v27, 4  ;;  %v22571_v18 = vcombine.high %v9589_v37, %v9589_v37  ;;  %v18890_v40 = vcombine.low %v9589_v37, %v9589_v37 }
 0x616   : > { %18904 = vmatprep.subr.msk.bf16.mxu0 %vm611_vm0, %v22568_v56  ;;  %v22576_v14 = vsel %vm611_vm0, %v18888_v16, 0 }
 0x617   : > { %v9825_v19 = vsel %vm611_vm0, %v9815_v32, %v9816_v46  ;;  %v9800_v52 = vpop.permute.xlu0 %9799  ;;  %18906 = vmatprep.subr.msk.bf16.mxu1 %vm611_vm0, %v22571_v18  ;;  %10638 = vmatpush1.bf16.msra.mxu0 %v22576_v14  ;;  %v22583_v6 = vsel %vm611_vm0, %v18890_v40, 0 }
 0x618   : > { %v9826_v10 = vsel %vm866_vm3, %v9796_v8, %v9825_v19  ;;  %v9817_v34 = vrot.slane %v9800_v52, 4  ;;  %v9802_v36 = vpop.permute.xlu1 %9801  ;;  %10679 = vmatpush1.bf16.msra.mxu1 %v22583_v6 }
 0x619   : > { %9852 = vst [vmem:[#allocation3 + $0x90] sm:$0xff] %v9826_v10  ;;  %v9818_v58 = vrot.slane %v9802_v36, 4  ;;  %v18909_v29 = vcombine.high %v9826_v10, %v9826_v10  ;;  %v18908_v3 = vcombine.low %v9826_v10, %v9826_v10 }
 0x61a   : > { %v9827_v13 = vsel %vm611_vm0, %v9816_v46, %v9817_v34  ;;  %18905 = vmatmul.mubr.msk.bf16.vlgmr.msra.gmra.mrb[60].mxu0 %vm962_vm1, %v22499_v61 }
 0x61b   : > { %v9828_v15 = vsel %vm866_vm3, %v9798_v27, %v9827_v13  ;;  %v9829_v22 = vsel %vm611_vm0, %v9817_v34, %v9818_v58  ;;  %v9804_v4 = vpop.permute.xlu0 %9803  ;;  %18907 = vmatmul.mubr.msk.bf16.vlgmr.msra.gmra.mrb[60].mxu1 %vm962_vm1, %v22499_v61  ;;  %18924 = vmatprep.subr.msk.bf16.mxu0 %vm611_vm0, %v18909_v29  ;;  %v10773_v7 = vsel %vm611_vm0, %v18908_v3, 0 }
 0x61c   : > { %9853 = vst [vmem:[#allocation3 + $0x98] sm:$0xff] %v9828_v15  ;;  %v9830_v35 = vsel %vm866_vm3, %v9800_v52, %v9829_v22  ;;  %v9819_v54 = vrot.slane %v9804_v4, 4  ;;  %v9806_v62 = vpop.permute.xlu1 %9805  ;;  %10821 = vmatpush1.bf16.msra.mxu0 %v10773_v7  ;;  %v22597_v63 = vcombine.high %v9828_v15, %v9828_v15  ;;  %v18910_v5 = vcombine.low %v9828_v15, %v9828_v15  ;;  %v11166_v7 = vld [vmem:[#allocation3 + $0x4] sm:$0xff] }
 0x61d   : > { %10852 = vmatprep.mubr.bf16.mxu0 %v20359_v0  ;;  %9854 = vst [vmem:[#allocation3 + $0xa0] sm:$0xff] %v9830_v35  ;;  %v9820_v30 = vrot.slane %v9806_v62, 4  ;;  %v22600_v28 = vcombine.high %v9830_v35, %v9830_v35  ;;  %10893 = vmatprep.mubr.bf16.mxu1 %v20359_v0  ;;  %v18912_v43 = vcombine.low %v9830_v35, %v9830_v35  ;;  %v11167_v35 = vld [vmem:[#allocation3 + $0xc] sm:$0xff] }
 0x61e   : > { %v9831_v61 = vsel %vm611_vm0, %v9818_v58, %v9819_v54  ;;  %18926 = vmatprep.subr.msk.bf16.mxu1 %vm611_vm0, %v22597_v63  ;;  %v22607_v12 = vsel %vm611_vm0, %v18910_v5, 0 }
 0x61f   : > { %v9832_v39 = vsel %vm866_vm3, %v9802_v36, %v9831_v61  ;;  %v9833_v50 = vsel %vm611_vm0, %v9819_v54, %v9820_v30  ;;  %v9808_v60 = vpop.permute.xlu0 %9807  ;;  %18928 = vmatprep.subr.msk.bf16.mxu0 %vm611_vm0, %v22600_v28  ;;  %10862 = vmatpush1.bf16.msra.mxu1 %v22607_v12  ;;  %v22625_v1 = vsel %vm611_vm0, %v18912_v43, 0  ;;  %v18940_v61 = vcombine.low %v11166_v7, %v11166_v7 }
 0x620   : > { %9855 = vst [vmem:[#allocation3 + $0xa8] sm:$0xff] %v9832_v39  ;;  %v9834_v42 = vsel %vm866_vm3, %v9804_v4, %v9833_v50  ;;  %v9821_v53 = vrot.slane %v9808_v60, 4  ;;  %v9810_v59 = vpop.permute.xlu1 %9809  ;;  %v22617_v45 = vcombine.high %v9832_v39, %v9832_v39  ;;  %v18914_v9 = vcombine.low %v9832_v39, %v9832_v39  ;;  %v11168_v39 = vld [vmem:[#allocation3 + $0x14] sm:$0xff]  ;;  %v11169_v50 = vld [vmem:[#allocation3 + $0x1c] sm:$0xff] }
 0x621   : > { %9856 = vst [vmem:[#allocation3 + $0xb0] sm:$0xff] %v9834_v42  ;;  %v9822_v47 = vrot.slane %v9810_v59, 4  ;;  %v22619_v38 = vcombine.high %v9834_v42, %v9834_v42  ;;  %v18916_v40 = vcombine.low %v9834_v42, %v9834_v42  ;;  %v18942_v43 = vcombine.low %v11167_v35, %v11167_v35 }
 0x622   : > { %v9835_v20 = vsel %vm611_vm0, %v9820_v30, %v9821_v53  ;;  %18925 = vmatmul.mubr.msk.bf16.vlgmr.msra.gmra.mrb[64].mxu0 %vm962_vm1, %v22614_v55  ;;  %18930 = vmatprep.subr.msk.bf16.mxu1 %vm611_vm0, %v22617_v45  ;;  %v22630_v57 = vsel %vm611_vm0, %v18914_v9, 0  ;;  %v18943_v30 = vcombine.high %v11167_v35, %v11167_v35  ;;  %v18945_v42 = vcombine.high %v11168_v39, %v11168_v39 }
 0x623   : > { %v9836_v21 = vsel %vm866_vm3, %v9806_v62, %v9835_v20  ;;  %v9837_v23 = vsel %vm611_vm0, %v9821_v53, %v9822_v47  ;;  %v9812_v41 = vpop.permute.xlu0 %9811  ;;  %18927 = vmatmul.mubr.msk.bf16.vlgmr.msra.gmra.mrb[64].mxu1 %vm962_vm1, %v22614_v55  ;;  %10903 = vmatpush1.bf16.msra.mxu0 %v22625_v1  ;;  %v22663_v13 = vsel %vm611_vm0, %v18916_v40, 0  ;;  %v18941_v62 = vcombine.high %v11166_v7, %v11166_v7 }
 0x624   : > { %9857 = vst [vmem:[#allocation3 + $0xb8] sm:$0xff] %v9836_v21  ;;  %v9838_v8 = vsel %vm866_vm3, %v9808_v60, %v9837_v23  ;;  %v9823_v37 = vrot.slane %v9812_v41, 4  ;;  %v9563_v32 = vpop.permute.xlu1 %9562  ;;  %10944 = vmatpush1.bf16.msra.mxu1 %v22630_v57  ;;  %18932 = vmatprep.subr.msk.bf16.mxu0 %vm611_vm0, %v22619_v38  ;;  %v22641_v27 = vcombine.high %v9836_v21, %v9836_v21  ;;  %v11218_v60 = vsel %vm611_vm0, %v18940_v61, 0  ;;  %v11171_v23 = vld [vmem:[#allocation3 + $0x2c] sm:$0xff] }
 0x625   : > { %9858 = vst [vmem:[#allocation3 + $0xc0] sm:$0xff] %v9838_v8  ;;  %v9573_v16 = vrot.slane %v9563_v32, 4  ;;  %10934 = vmatprep.mubr.bf16.mxu0 %v20359_v0  ;;  %10975 = vmatprep.mubr.bf16.mxu1 %v20359_v0  ;;  %v18918_v34 = vcombine.low %v9836_v21, %v9836_v21  ;;  %v18920_v22 = vcombine.low %v9838_v8, %v9838_v8  ;;  %v11224_v53 = vsel %vm611_vm0, %v18942_v43, 0  ;;  %v11170_v21 = vld [vmem:[#allocation3 + $0x24] sm:$0xff] }
 0x626   : > { %v9839_v46 = vsel %vm611_vm0, %v9822_v47, %v9823_v37  ;;  %18934 = vmatprep.subr.msk.bf16.mxu1 %vm611_vm0, %v22641_v27  ;;  %v18944_v9 = vcombine.low %v11168_v39, %v11168_v39  ;;  %v11165_v47 = vld [vmem:[#allocation12 + $0x54] sm:$0xf]  ;;  %v18946_v20 = vcombine.low %v11169_v50, %v11169_v50  ;;  %v18948_v32 = vcombine.low %v11170_v21, %v11170_v21  ;;  %v11613_v39 = vld [vmem:[#allocation3 + $0x5c] sm:$0xff] }
 0x627   : > { %v9840_v19 = vsel %vm866_vm3, %v9810_v59, %v9839_v46  ;;  %v9590_v52 = vsel %vm611_vm0, %v9572_v24, %v9573_v16  ;;  %v9814_v10 = vpop.permute.xlu0 %9813  ;;  %v22665_v24 = vcombine.high %v9838_v8, %v9838_v8  ;;  %v22687_v54 = vsel %vm611_vm0, %v18920_v22, 0  ;;  %v11172_v46 = vld [vmem:[#allocation3 + $0x34] sm:$0xff]  ;;  %v11611_v22 = vld [vmem:[#allocation3 + $0x4c] sm:$0xff] }
 0x628   : > { %9859 = vst [vmem:[#allocation3 + $0xc8] sm:$0xff] %v9840_v19  ;;  %v22654_v36 = vsel %vm613_vm2, %v22553_v17, %v9590_v52  ;;  %v9824_v58 = vrot.slane %v9814_v10, 4  ;;  %v22657_v29 = vcombine.high %v9840_v19, %v9840_v19  ;;  %v22674_v17 = vsel %vm611_vm0, %v18918_v34, 0 }
 0x629   : > { %9609 = vst [vmem:[#allocation3 + $0x40] sm:$0xff] %v22654_v36  ;;  %v18922_v4 = vcombine.low %v9840_v19, %v9840_v19  ;;  %v18947_v59 = vcombine.high %v11169_v50, %v11169_v50  ;;  %v11236_v8 = vsel %vm611_vm0, %v18946_v20, 0  ;;  %v18950_v16 = vcombine.low %v11171_v23, %v11171_v23  ;;  %v11614_v50 = vld [vmem:[#allocation3 + $0x64] sm:$0xff] }
 0x62a   : > { %v9841_v3 = vsel %vm611_vm0, %v9823_v37, %v9824_v58  ;;  %18929 = vmatmul.mubr.msk.bf16.vlgmr.msra.gmra.mrb[68].mxu0 %vm962_vm1, %v22614_v55  ;;  %v18951_v37 = vcombine.high %v11171_v23, %v11171_v23  ;;  %v11242_v19 = vsel %vm611_vm0, %v18948_v32, 0  ;;  %v18953_v52 = vcombine.high %v11172_v46, %v11172_v46 }
 0x62b   : > { %v22668_v15 = vsel %vm866_vm3, %v9812_v41, %v9841_v3  ;;  %18931 = vmatmul.mubr.msk.bf16.vlgmr.msra.gmra.mrb[68].mxu1 %vm962_vm1, %v22614_v55  ;;  %10985 = vmatpush1.bf16.msra.mxu0 %v22663_v13  ;;  %v22693_v5 = vsel %vm611_vm0, %v18922_v4, 0  ;;  %v18949_v41 = vcombine.high %v11170_v21, %v11170_v21  ;;  %v11248_v10 = vsel %vm611_vm0, %v18950_v16, 0  ;;  %v11612_v4 = vld [vmem:[#allocation3 + $0x54] sm:$0xff]  ;;  %v22742_v21 = vld [vmem:[#allocation12 + $0x58] sm:$0xf] }
 0x62c   : > { %9860 = vst [vmem:[#allocation3 + $0xd0] sm:$0xff] %v22668_v15  ;;  %11026 = vmatpush1.bf16.msra.mxu1 %v22674_v17  ;;  %18936 = vmatprep.subr.msk.bf16.mxu0 %vm611_vm0, %v22665_v24  ;;  %v18952_v58 = vcombine.low %v11172_v46, %v11172_v46  ;;  %v18973_v35 = vcombine.high %v11611_v22, %v11611_v22 }
 0x62d   : > { %18938 = vmatprep.subr.msk.bf16.mxu1 %vm611_vm0, %v22657_v29  ;;  %11016 = vmatprep.mubr.bf16.mxu0 %v20359_v0  ;;  %v18972_v61 = vcombine.low %v11611_v22, %v11611_v22  ;;  %v18974_v43 = vcombine.low %v11612_v4, %v11612_v4  ;;  %v18978_v23 = vcombine.low %v11614_v50, %v11614_v50 }
 0x62e   : > { %11057 = vmatprep.mubr.bf16.mxu1 %v20359_v0  ;;  %v11254_v7 = vsel %vm611_vm0, %v18952_v58, 0 }
 0x62f   : > { %v11681_v46 = vsel %vm611_vm0, %v18978_v23, 0 }
 0x630   : > { %v11173_v40 = vld [vmem:[#allocation3 + $0x3c] sm:$0xff] }
 0x631   : > { %v18955_v34 = vcombine.high %v11173_v40, %v11173_v40  ;;  %v18954_v3 = vcombine.low %v11173_v40, %v11173_v40 }
 0x632   : > { %18933 = vmatmul.mubr.msk.bf16.vlgmr.msra.gmra.mrb[72].mxu0 %vm962_vm1, %v22614_v55 }
 0x633   : > { %18935 = vmatmul.mubr.msk.bf16.vlgmr.msra.gmra.mrb[72].mxu1 %vm962_vm1, %v22614_v55  ;;  %11067 = vmatpush1.bf16.msra.mxu0 %v22687_v54 }
 0x634   : > { %11108 = vmatpush1.bf16.msra.mxu1 %v22693_v5  ;;  %18956 = vmatprep.subr.msk.bf16.mxu0 %vm611_vm0, %v18941_v62  ;;  %v11260_v62 = vsel %vm611_vm0, %v18954_v3, 0  ;;  %v11618_v3 = vld [vmem:[#allocation3 + $0x84] sm:$0xff] }
 0x635   : > { %18958 = vmatprep.subr.msk.bf16.mxu1 %vm611_vm0, %v18943_v30  ;;  %11098 = vmatprep.mubr.bf16.mxu0 %v20359_v0  ;;  %v18975_v30 = vcombine.high %v11612_v4, %v11612_v4 }
 0x636   : > { %11139 = vmatprep.mubr.bf16.mxu1 %v20359_v0 }
 0x63a   : > { %18937 = vmatmul.mubr.msk.bf16.vlgmr.msra.gmra.mrb[76].mxu0 %vm962_vm1, %v22614_v55 }
 0x63b   : > { %18939 = vmatmul.mubr.msk.bf16.vlgmr.msra.gmra.mrb[76].mxu1 %vm962_vm1, %v22614_v55  ;;  %11266 = vmatpush1.bf16.msra.mxu0 %v11218_v60  ;;  %v11230_v55 = vsel %vm611_vm0, %v18944_v9, 0  ;;  %v11663_v60 = vsel %vm611_vm0, %v18972_v61, 0  ;;  %v18976_v9 = vcombine.low %v11613_v39, %v11613_v39 }
 0x63c   : > { %11307 = vmatpush1.bf16.msra.mxu1 %v11224_v53  ;;  %18960 = vmatprep.subr.msk.bf16.mxu0 %vm611_vm0, %v18945_v42  ;;  %v18977_v42 = vcombine.high %v11613_v39, %v11613_v39  ;;  %v11669_v53 = vsel %vm611_vm0, %v18974_v43, 0 }
 0x63d   : > { %18962 = vmatprep.subr.msk.bf16.mxu1 %vm611_vm0, %v18947_v59  ;;  %11297 = vmatprep.mubr.bf16.mxu0 %v20359_v0  ;;  %v18979_v59 = vcombine.high %v11614_v50, %v11614_v50  ;;  %v11675_v32 = vsel %vm611_vm0, %v18976_v9, 0 }
 0x63e   : > { %11338 = vmatprep.mubr.bf16.mxu1 %v20359_v0 }
 0x642   : > { %18957 = vmatmul.mubr.msk.bf16.vlgmr.msra.gmra.mrb[80].mxu0 %vm962_vm1, %v11165_v47 }
 0x643   : > { %18959 = vmatmul.mubr.msk.bf16.vlgmr.msra.gmra.mrb[80].mxu1 %vm962_vm1, %v11165_v47  ;;  %11348 = vmatpush1.bf16.msra.mxu0 %v11230_v55  ;;  %v11615_v55 = vld [vmem:[#allocation3 + $0x6c] sm:$0xff] }
 0x644   : > { %11389 = vmatpush1.bf16.msra.mxu1 %v11236_v8  ;;  %18964 = vmatprep.subr.msk.bf16.mxu0 %vm611_vm0, %v18949_v41  ;;  %v11616_v41 = vld [vmem:[#allocation3 + $0x74] sm:$0xff]  ;;  %v18981_v16 = vcombine.high %v11615_v55, %v11615_v55 }
 0x645   : > { %18966 = vmatprep.subr.msk.bf16.mxu1 %vm611_vm0, %v18951_v37  ;;  %11379 = vmatprep.mubr.bf16.mxu0 %v20359_v0  ;;  %v18983_v40 = vcombine.high %v11616_v41, %v11616_v41 }
 0x646   : > { %11420 = vmatprep.mubr.bf16.mxu1 %v20359_v0 }
 0x64a   : > { %18961 = vmatmul.mubr.msk.bf16.vlgmr.msra.gmra.mrb[84].mxu0 %vm962_vm1, %v11165_v47 }
 0x64b   : > { %18963 = vmatmul.mubr.msk.bf16.vlgmr.msra.gmra.mrb[84].mxu1 %vm962_vm1, %v11165_v47  ;;  %11430 = vmatpush1.bf16.msra.mxu0 %v11242_v19  ;;  %v18980_v19 = vcombine.low %v11615_v55, %v11615_v55 }
 0x64c   : > { %11471 = vmatpush1.bf16.msra.mxu1 %v11248_v10  ;;  %18968 = vmatprep.subr.msk.bf16.mxu0 %vm611_vm0, %v18953_v52  ;;  %v18982_v10 = vcombine.low %v11616_v41, %v11616_v41 }
 0x64d   : > { %18970 = vmatprep.subr.msk.bf16.mxu1 %vm611_vm0, %v18955_v34  ;;  %11461 = vmatprep.mubr.bf16.mxu0 %v20359_v0  ;;  %v11617_v34 = vld [vmem:[#allocation3 + $0x7c] sm:$0xff] }
 0x64e   : > { %11502 = vmatprep.mubr.bf16.mxu1 %v20359_v0  ;;  %v18984_v50 = vcombine.low %v11617_v34, %v11617_v34 }
 0x650   : > { %v11699_v9 = vsel %vm611_vm0, %v18984_v50, 0 }
 0x652   : > { %18965 = vmatmul.mubr.msk.bf16.vlgmr.msra.gmra.mrb[88].mxu0 %vm962_vm1, %v11165_v47 }
 0x653   : > { %18967 = vmatmul.mubr.msk.bf16.vlgmr.msra.gmra.mrb[88].mxu1 %vm962_vm1, %v11165_v47  ;;  %11512 = vmatpush1.bf16.msra.mxu0 %v11254_v7  ;;  %v11687_v7 = vsel %vm611_vm0, %v18980_v19, 0 }
 0x654   : > { %11553 = vmatpush1.bf16.msra.mxu1 %v11260_v62  ;;  %18988 = vmatprep.subr.msk.bf16.mxu0 %vm611_vm0, %v18973_v35  ;;  %v18985_v35 = vcombine.high %v11617_v34, %v11617_v34  ;;  %v11693_v62 = vsel %vm611_vm0, %v18982_v10, 0  ;;  %v12058_v34 = vld [vmem:[#allocation3 + $0xa4] sm:$0xff] }
 0x655   : > { %18990 = vmatprep.subr.msk.bf16.mxu1 %vm611_vm0, %v18975_v30  ;;  %11543 = vmatprep.mubr.bf16.mxu0 %v20359_v0  ;;  %v18987_v30 = vcombine.high %v11618_v3, %v11618_v3 }
 0x656   : > { %11584 = vmatprep.mubr.bf16.mxu1 %v20359_v0 }
 0x65a   : > { %18969 = vmatmul.mubr.msk.bf16.vlgmr.msra.gmra.mrb[92].mxu0 %vm962_vm1, %v11165_v47 }
 0x65b   : > { %18971 = vmatmul.mubr.msk.bf16.vlgmr.msra.gmra.mrb[92].mxu1 %vm962_vm1, %v11165_v47  ;;  %11711 = vmatpush1.bf16.msra.mxu0 %v11663_v60 }
 0x65c   : > { %11752 = vmatpush1.bf16.msra.mxu1 %v11669_v53  ;;  %18992 = vmatprep.subr.msk.bf16.mxu0 %vm611_vm0, %v18977_v42  ;;  %v18986_v42 = vcombine.low %v11618_v3, %v11618_v3  ;;  %v12056_v53 = vld [vmem:[#allocation3 + $0x94] sm:$0xff]  ;;  %v12059_v3 = vld [vmem:[#allocation3 + $0xac] sm:$0xff] }
 0x65d   : > { %18994 = vmatprep.subr.msk.bf16.mxu1 %vm611_vm0, %v18979_v59  ;;  %11742 = vmatprep.mubr.bf16.mxu0 %v20359_v0  ;;  %v10006_v20 = vpop.f32.mrb[32].mxu0  ;;  %v12057_v59 = vld [vmem:[#allocation3 + $0x9c] sm:$0xff] }
 0x65e   : > { %11783 = vmatprep.mubr.bf16.mxu1 %v20359_v0  ;;  %v10008_v47 = vpop.f32.mrb[33].mxu0  ;;  %v19005_v20 = vcombine.high %v12056_v53, %v12056_v53  ;;  %v11705_v55 = vsel %vm611_vm0, %v18986_v42, 0  ;;  %v19006_v10 = vcombine.low %v12057_v59, %v12057_v59 }
 0x65f   : > { %v10010_v8 = vpop.f32.mrb[34].mxu0  ;;  %v19007_v47 = vcombine.high %v12057_v59, %v12057_v59  ;;  %v12055_v59 = vld [vmem:[#allocation12 + $0x5c] sm:$0xf] }
 0x660   : > { %v10011_v37 = vpop.f32.mrb[35].mxu0 }
 0x662   : > { %18989 = vmatmul.mubr.msk.bf16.vlgmr.msra.gmra.mrb[96].mxu0 %vm962_vm1, %v22742_v21 }
 0x663   : > { %18991 = vmatmul.mubr.msk.bf16.vlgmr.msra.gmra.mrb[96].mxu1 %vm962_vm1, %v22742_v21  ;;  %11793 = vmatpush1.bf16.msra.mxu0 %v11675_v32 }
 0x664   : > { %11834 = vmatpush1.bf16.msra.mxu1 %v11681_v46  ;;  %18996 = vmatprep.subr.msk.bf16.mxu0 %vm611_vm0, %v18981_v16 }
 0x665   : > { %18998 = vmatprep.subr.msk.bf16.mxu1 %vm611_vm0, %v18983_v40  ;;  %11824 = vmatprep.mubr.bf16.mxu0 %v20359_v0  ;;  %v22754_v52 = vpop.f32.mrb[32].mxu1  ;;  %v19004_v40 = vcombine.low %v12056_v53, %v12056_v53 }
 0x666   : > { %11865 = vmatprep.mubr.bf16.mxu1 %v20359_v0  ;;  %v22756_v58 = vpop.f32.mrb[33].mxu1 }
 0x667   : > { %v10051_v22 = vpop.f32.mrb[34].mxu1 }
 0x668   : > { %v10052_v4 = vpop.f32.mrb[35].mxu1  ;;  %v22764_v61 = vpop.f32.mrb[36].mxu0  ;;  %v12108_v22 = vsel %vm611_vm0, %v19004_v40, 0 }
 0x669   : > { %v22767_v43 = vpop.f32.mrb[37].mxu0  ;;  %v19009_v4 = vcombine.high %v12058_v34, %v12058_v34 }
 0x66a   : > { %18993 = vmatmul.mubr.msk.bf16.vlgmr.msra.gmra.mrb[100].mxu0 %vm962_vm1, %v22742_v21  ;;  %v10092_v39 = vpop.f32.mrb[38].mxu0 }
 0x66b   : > { %18995 = vmatmul.mubr.msk.bf16.vlgmr.msra.gmra.mrb[100].mxu1 %vm962_vm1, %v22742_v21  ;;  %11875 = vmatpush1.bf16.msra.mxu0 %v11687_v7  ;;  %v10093_v60 = vpop.f32.mrb[39].mxu0 }
 0x66c   : > { %11916 = vmatpush1.bf16.msra.mxu1 %v11693_v62  ;;  %19000 = vmatprep.subr.msk.bf16.mxu0 %vm611_vm0, %v18985_v35  ;;  %v12114_v35 = vsel %vm611_vm0, %v19006_v10, 0  ;;  %v19011_v62 = vcombine.high %v12059_v3, %v12059_v3 }
 0x66d   : > { %19002 = vmatprep.subr.msk.bf16.mxu1 %vm611_vm0, %v18987_v30  ;;  %11906 = vmatprep.mubr.bf16.mxu0 %v20359_v0 }
 0x66e   : > { %11947 = vmatprep.mubr.bf16.mxu1 %v20359_v0 }
 0x671   : > { %v22775_v23 = vpop.f32.mrb[36].mxu1 }
 0x672   : > { %18997 = vmatmul.mubr.msk.bf16.vlgmr.msra.gmra.mrb[104].mxu0 %vm962_vm1, %v22742_v21  ;;  %v22780_v41 = vpop.f32.mrb[37].mxu1 }
 0x673   : > { %18999 = vmatmul.mubr.msk.bf16.vlgmr.msra.gmra.mrb[104].mxu1 %vm962_vm1, %v22742_v21  ;;  %11957 = vmatpush1.bf16.msra.mxu0 %v11699_v9  ;;  %v22782_v8 = vpop.f32.mrb[40].mxu0  ;;  %v10133_v37 = vpop.f32.mrb[38].mxu1  ;;  %v19010_v9 = vcombine.low %v12059_v3, %v12059_v3 }
 0x674   : > { %11998 = vmatpush1.bf16.msra.mxu1 %v11705_v55  ;;  %19020 = vmatprep.subr.msk.bf16.mxu0 %vm611_vm0, %v19005_v20  ;;  %v22785_v32 = vpop.f32.mrb[41].mxu0  ;;  %v10134_v16 = vpop.f32.mrb[39].mxu1  ;;  %v12060_v20 = vld [vmem:[#allocation3 + $0xb4] sm:$0xff] }
 0x675   : > { %19022 = vmatprep.subr.msk.bf16.mxu1 %vm611_vm0, %v19007_v47  ;;  %11988 = vmatprep.mubr.bf16.mxu0 %v20359_v0  ;;  %v10174_v46 = vpop.f32.mrb[42].mxu0  ;;  %v12061_v47 = vld [vmem:[#allocation3 + $0xbc] sm:$0xff]  ;;  %v19013_v16 = vcombine.high %v12060_v20, %v12060_v20  ;;  %v12126_v40 = vsel %vm611_vm0, %v19010_v9, 0 }
 0x676   : > { %12029 = vmatprep.mubr.bf16.mxu1 %v20359_v0  ;;  %v10175_v19 = vpop.f32.mrb[43].mxu0 }
 0x677   : > { %v19015_v19 = vcombine.high %v12061_v47, %v12061_v47 }
 0x679   : > { %v22793_v7 = vpop.f32.mrb[40].mxu1 }
 0x67a   : > { %19001 = vmatmul.mubr.msk.bf16.vlgmr.msra.gmra.mrb[108].mxu0 %vm962_vm1, %v22742_v21  ;;  %v22798_v30 = vpop.f32.mrb[41].mxu1 }
 0x67b   : > { %19003 = vmatmul.mubr.msk.bf16.vlgmr.msra.gmra.mrb[108].mxu1 %vm962_vm1, %v22742_v21  ;;  %12156 = vmatpush1.bf16.msra.mxu0 %v12108_v22  ;;  %v10215_v39 = vpop.f32.mrb[42].mxu1  ;;  %v22801_v50 = vpop.f32.mrb[44].mxu0  ;;  %v19008_v21 = vcombine.low %v12058_v34, %v12058_v34  ;;  %v19012_v22 = vcombine.low %v12060_v20, %v12060_v20 }
 0x67c   : > { %12197 = vmatpush1.bf16.msra.mxu1 %v12114_v35  ;;  %19024 = vmatprep.subr.msk.bf16.mxu0 %vm611_vm0, %v19009_v4  ;;  %v10216_v60 = vpop.f32.mrb[43].mxu1  ;;  %v22805_v42 = vpop.f32.mrb[45].mxu0  ;;  %v19014_v4 = vcombine.low %v12061_v47, %v12061_v47  ;;  %v12062_v35 = vld [vmem:[#allocation3 + $0xc4] sm:$0xff] }
 0x67d   : > { %19026 = vmatprep.subr.msk.bf16.mxu1 %vm611_vm0, %v19011_v62  ;;  %12187 = vmatprep.mubr.bf16.mxu0 %v20359_v0  ;;  %v10256_v53 = vpop.f32.mrb[46].mxu0  ;;  %v12120_v37 = vsel %vm611_vm0, %v19008_v21, 0  ;;  %v12063_v62 = vld [vmem:[#allocation3 + $0xcc] sm:$0xff]  ;;  %v12132_v39 = vsel %vm611_vm0, %v19012_v22, 0  ;;  %v19017_v60 = vcombine.high %v12062_v35, %v12062_v35  ;;  %v19016_v9 = vcombine.low %v12062_v35, %v12062_v35 }
 0x67e   : > { %12228 = vmatprep.mubr.bf16.mxu1 %v20359_v0  ;;  %v10257_v55 = vpop.f32.mrb[47].mxu0  ;;  %v12138_v21 = vsel %vm611_vm0, %v19014_v4, 0  ;;  %v19019_v53 = vcombine.high %v12063_v62, %v12063_v62  ;;  %v19018_v20 = vcombine.low %v12063_v62, %v12063_v62 }
 0x67f   : > { %v12144_v55 = vsel %vm611_vm0, %v19016_v9, 0 }
 0x680   : > { %v12150_v47 = vsel %vm611_vm0, %v19018_v20, 0 }
 0x681   : > { %v10293_v46 = vpop.f32.mrb[44].mxu1 }
 0x682   : > { %19021 = vmatmul.mubr.msk.bf16.vlgmr.msra.gmra.mrb[112].mxu0 %vm962_vm1, %v12055_v59  ;;  %v10295_v10 = vpop.f32.mrb[45].mxu1  ;;  %v12945_v46 = vld [vmem:[#allocation12 + $0x64] sm:$0xf] }
 0x683   : > { %19023 = vmatmul.mubr.msk.bf16.vlgmr.msra.gmra.mrb[112].mxu1 %vm962_vm1, %v12055_v59  ;;  %12238 = vmatpush1.bf16.msra.mxu0 %v12120_v37  ;;  %v10297_v34 = vpop.f32.mrb[46].mxu1  ;;  %v12951_v10 = vld [vmem:[#allocation3 + $0x78] sm:$0xff] }
 0x684   : > { %12279 = vmatpush1.bf16.msra.mxu1 %v12126_v40  ;;  %19028 = vmatprep.subr.msk.bf16.mxu0 %vm611_vm0, %v19013_v16  ;;  %v10298_v3 = vpop.f32.mrb[47].mxu1  ;;  %v19079_v4 = vcombine.high %v12951_v10, %v12951_v10  ;;  %v19078_v62 = vcombine.low %v12951_v10, %v12951_v10 }
 0x685   : > { %19030 = vmatprep.subr.msk.bf16.mxu1 %vm611_vm0, %v19015_v19  ;;  %12269 = vmatprep.mubr.bf16.mxu0 %v20359_v0  ;;  %v12950_v19 = vld [vmem:[#allocation3 + $0x70] sm:$0xff] }
 0x686   : > { %12310 = vmatprep.mubr.bf16.mxu1 %v20359_v0  ;;  %v19077_v3 = vcombine.high %v12950_v19, %v12950_v19  ;;  %v19076_v35 = vcombine.low %v12950_v19, %v12950_v19  ;;  %v13028_v9 = vsel %vm611_vm0, %v19078_v62, 0 }
 0x68a   : > { %19025 = vmatmul.mubr.msk.bf16.vlgmr.msra.gmra.mrb[116].mxu0 %vm962_vm1, %v12055_v59 }
 0x68b   : > { %19027 = vmatmul.mubr.msk.bf16.vlgmr.msra.gmra.mrb[116].mxu1 %vm962_vm1, %v12055_v59  ;;  %12320 = vmatpush1.bf16.msra.mxu0 %v12132_v39  ;;  %v12952_v39 = vld [vmem:[#allocation3 + $0x80] sm:$0xff] }
 0x68c   : > { %12361 = vmatpush1.bf16.msra.mxu1 %v12138_v21  ;;  %19032 = vmatprep.subr.msk.bf16.mxu0 %vm611_vm0, %v19017_v60  ;;  %v12953_v60 = vld [vmem:[#allocation3 + $0x88] sm:$0xff]  ;;  %v13022_v21 = vsel %vm611_vm0, %v19076_v35, 0 }
 0x68d   : > { %19034 = vmatprep.subr.msk.bf16.mxu1 %vm611_vm0, %v19019_v53  ;;  %12351 = vmatprep.mubr.bf16.mxu0 %v20359_v0  ;;  %v19081_v53 = vcombine.high %v12952_v39, %v12952_v39  ;;  %v19083_v20 = vcombine.high %v12953_v60, %v12953_v60 }
 0x68e   : > { %12392 = vmatprep.mubr.bf16.mxu1 %v20359_v0 }
 0x692   : > { %19029 = vmatmul.mubr.msk.bf16.vlgmr.msra.gmra.mrb[120].mxu0 %vm962_vm1, %v12055_v59 }
 0x693   : > { %19031 = vmatmul.mubr.msk.bf16.vlgmr.msra.gmra.mrb[120].mxu1 %vm962_vm1, %v12055_v59  ;;  %12402 = vmatpush1.bf16.msra.mxu0 %v12144_v55  ;;  %v19080_v55 = vcombine.low %v12952_v39, %v12952_v39 }
 0x694   : > { %12443 = vmatpush1.bf16.msra.mxu1 %v12150_v47  ;;  %19052 = vmatprep.subr.msk.bf16.mxu0 %vm611_vm0, %v22490_v2  ;;  %v12500_v2 = vld [vmem:[#allocation12 + $0x60] sm:$0xf]  ;;  %v19082_v47 = vcombine.low %v12953_v60, %v12953_v60 }
 0x695   : > { %19054 = vmatprep.subr.msk.bf16.mxu1 %vm611_vm0, %v22511_v11  ;;  %12433 = vmatprep.mubr.bf16.mxu0 %v20359_v0  ;;  %v19050_v11 = vcombine.low %v22654_v36, %v22654_v36 }
 0x696   : > { %12474 = vmatprep.mubr.bf16.mxu1 %v20359_v0 }
 0x69a   : > { %19033 = vmatmul.mubr.msk.bf16.vlgmr.msra.gmra.mrb[124].mxu0 %vm962_vm1, %v12055_v59 }
 0x69b   : > { %19035 = vmatmul.mubr.msk.bf16.vlgmr.msra.gmra.mrb[124].mxu1 %vm962_vm1, %v12055_v59  ;;  %12601 = vmatpush1.bf16.msra.mxu0 %v22497_v49  ;;  %v19051_v49 = vcombine.high %v22654_v36, %v22654_v36 }
 0x69c   : > { %12642 = vmatpush1.bf16.msra.mxu1 %v22519_v44  ;;  %19056 = vmatprep.subr.msk.bf16.mxu0 %vm611_vm0, %v22514_v33  ;;  %v12946_v33 = vld [vmem:[#allocation3 + $0x50] sm:$0xff]  ;;  %v12947_v44 = vld [vmem:[#allocation3 + $0x58] sm:$0xff] }
 0x69d   : > { %19058 = vmatprep.subr.msk.bf16.mxu1 %vm611_vm0, %v22537_v51  ;;  %12632 = vmatprep.mubr.bf16.mxu0 %v20359_v0  ;;  %v12595_v51 = vsel %vm611_vm0, %v19050_v11, 0 }
 0x69e   : > { %12673 = vmatprep.mubr.bf16.mxu1 %v20359_v0 }
 0x6a2   : > { %19053 = vmatmul.mubr.msk.bf16.vlgmr.msra.gmra.mrb[128].mxu0 %vm962_vm1, %v12500_v2 }
 0x6a3   : > { %19055 = vmatmul.mubr.msk.bf16.vlgmr.msra.gmra.mrb[128].mxu1 %vm962_vm1, %v12500_v2  ;;  %12683 = vmatpush1.bf16.msra.mxu0 %v22525_v48  ;;  %v19069_v48 = vcombine.high %v12946_v33, %v12946_v33 }
 0x6a4   : > { %12724 = vmatpush1.bf16.msra.mxu1 %v22545_v25  ;;  %19060 = vmatprep.subr.msk.bf16.mxu0 %vm611_vm0, %v22540_v26  ;;  %v19071_v26 = vcombine.high %v12947_v44, %v12947_v44  ;;  %v19068_v25 = vcombine.low %v12946_v33, %v12946_v33 }
 0x6a5   : > { %19062 = vmatprep.subr.msk.bf16.mxu1 %vm611_vm0, %v22568_v56  ;;  %12714 = vmatprep.mubr.bf16.mxu0 %v20359_v0  ;;  %v12948_v56 = vld [vmem:[#allocation3 + $0x60] sm:$0xff] }
 0x6a6   : > { %12755 = vmatprep.mubr.bf16.mxu1 %v20359_v0  ;;  %v19073_v36 = vcombine.high %v12948_v56, %v12948_v56  ;;  %v19072_v16 = vcombine.low %v12948_v56, %v12948_v56 }
 0x6a8   : > { %v13010_v34 = vsel %vm611_vm0, %v19072_v16, 0 }
 0x6aa   : > { %19057 = vmatmul.mubr.msk.bf16.vlgmr.msra.gmra.mrb[132].mxu0 %vm962_vm1, %v12500_v2 }
 0x6ab   : > { %19059 = vmatmul.mubr.msk.bf16.vlgmr.msra.gmra.mrb[132].mxu1 %vm962_vm1, %v12500_v2  ;;  %12765 = vmatpush1.bf16.msra.mxu0 %v22551_v31  ;;  %v19070_v31 = vcombine.low %v12947_v44, %v12947_v44 }
 0x6ac   : > { %12806 = vmatpush1.bf16.msra.mxu1 %v22576_v14  ;;  %19064 = vmatprep.subr.msk.bf16.mxu0 %vm611_vm0, %v22571_v18  ;;  %v12949_v18 = vld [vmem:[#allocation3 + $0x68] sm:$0xff]  ;;  %v13835_v14 = vld [vmem:[#allocation13 + $0x10] sm:$0xff] }
 0x6ad   : > { %19066 = vmatprep.subr.msk.bf16.mxu1 %vm611_vm0, %v19051_v49  ;;  %12796 = vmatprep.mubr.bf16.mxu0 %v20359_v0  ;;  %v13004_v59 = vsel %vm611_vm0, %v19070_v31, 0  ;;  %v19075_v37 = vcombine.high %v12949_v18, %v12949_v18  ;;  %v19074_v40 = vcombine.low %v12949_v18, %v12949_v18  ;;  %v13040_v49 = vsel %vm611_vm0, %v19082_v47, 0 }
 0x6ae   : > { %12837 = vmatprep.mubr.bf16.mxu1 %v20359_v0  ;;  %13838 = vperm.xlu1 %19667, %v13835_v14  }
 0x6af   : > { %v13016_v22 = vsel %vm611_vm0, %v19074_v40, 0 }
 0x6b2   : > { %19061 = vmatmul.mubr.msk.bf16.vlgmr.msra.gmra.mrb[136].mxu0 %vm962_vm1, %v12500_v2 }
 0x6b3   : > { %19063 = vmatmul.mubr.msk.bf16.vlgmr.msra.gmra.mrb[136].mxu1 %vm962_vm1, %v12500_v2  ;;  %12847 = vmatpush1.bf16.msra.mxu0 %v22583_v6  ;;  %v12998_v6 = vsel %vm611_vm0, %v19068_v25, 0 }
 0x6b4   : > { %12888 = vmatpush1.bf16.msra.mxu1 %v12595_v51  ;;  %19084 = vmatprep.subr.msk.bf16.mxu0 %vm611_vm0, %v19069_v48 }
 0x6b5   : > { %19086 = vmatprep.subr.msk.bf16.mxu1 %vm611_vm0, %v19071_v26  ;;  %12878 = vmatprep.mubr.bf16.mxu0 %v20359_v0 }
 0x6b6   : > { %12919 = vmatprep.mubr.bf16.mxu1 %v20359_v0 }
 0x6ba   : > { %19065 = vmatmul.mubr.msk.bf16.vlgmr.msra.gmra.mrb[140].mxu0 %vm962_vm1, %v12500_v2 }
 0x6bb   : > { %19067 = vmatmul.mubr.msk.bf16.vlgmr.msra.gmra.mrb[140].mxu1 %vm962_vm1, %v12500_v2  ;;  %13046 = vmatpush1.bf16.msra.mxu0 %v12998_v6  ;;  %v13034_v2 = vsel %vm611_vm0, %v19080_v55, 0  ;;  %v22934_v6 = vld [vmem:[#allocation12 + $0x68] sm:$0xf] }
 0x6bc   : > { %13087 = vmatpush1.bf16.msra.mxu1 %v13004_v59  ;;  %19088 = vmatprep.subr.msk.bf16.mxu0 %vm611_vm0, %v19073_v36 }
 0x6bd   : > { %19090 = vmatprep.subr.msk.bf16.mxu1 %vm611_vm0, %v19075_v37  ;;  %13077 = vmatprep.mubr.bf16.mxu0 %v20359_v0 }
 0x6be   : > { %13118 = vmatprep.mubr.bf16.mxu1 %v20359_v0 }
 0x6c2   : > { %19085 = vmatmul.mubr.msk.bf16.vlgmr.msra.gmra.mrb[144].mxu0 %vm962_vm1, %v12945_v46 }
 0x6c3   : > { %19087 = vmatmul.mubr.msk.bf16.vlgmr.msra.gmra.mrb[144].mxu1 %vm962_vm1, %v12945_v46  ;;  %13128 = vmatpush1.bf16.msra.mxu0 %v13010_v34 }
 0x6c4   : > { %13169 = vmatpush1.bf16.msra.mxu1 %v13016_v22  ;;  %19092 = vmatprep.subr.msk.bf16.mxu0 %vm611_vm0, %v19077_v3 }
 0x6c5   : > { %19094 = vmatprep.subr.msk.bf16.mxu1 %vm611_vm0, %v19079_v4  ;;  %13159 = vmatprep.mubr.bf16.mxu0 %v20359_v0 }
 0x6c6   : > { %13200 = vmatprep.mubr.bf16.mxu1 %v20359_v0 }
 0x6ca   : > { %19089 = vmatmul.mubr.msk.bf16.vlgmr.msra.gmra.mrb[148].mxu0 %vm962_vm1, %v12945_v46 }
 0x6cb   : > { %19091 = vmatmul.mubr.msk.bf16.vlgmr.msra.gmra.mrb[148].mxu1 %vm962_vm1, %v12945_v46  ;;  %13210 = vmatpush1.bf16.msra.mxu0 %v13022_v21 }
 0x6cc   : > { %13251 = vmatpush1.bf16.msra.mxu1 %v13028_v9  ;;  %19096 = vmatprep.subr.msk.bf16.mxu0 %vm611_vm0, %v19081_v53 }
 0x6cd   : > { %19098 = vmatprep.subr.msk.bf16.mxu1 %vm611_vm0, %v19083_v20  ;;  %13241 = vmatprep.mubr.bf16.mxu0 %v20359_v0 }
 0x6ce   : > { %13282 = vmatprep.mubr.bf16.mxu1 %v20359_v0 }
 0x6d2   : > { %19093 = vmatmul.mubr.msk.bf16.vlgmr.msra.gmra.mrb[152].mxu0 %vm962_vm1, %v12945_v46 }
 0x6d3   : > { %19095 = vmatmul.mubr.msk.bf16.vlgmr.msra.gmra.mrb[152].mxu1 %vm962_vm1, %v12945_v46  ;;  %13292 = vmatpush1.bf16.msra.mxu0 %v13034_v2 }
 0x6d4   : > { %13333 = vmatpush1.bf16.msra.mxu1 %v13040_v49  ;;  %19116 = vmatprep.subr.msk.bf16.mxu0 %vm611_vm0, %v22597_v63 }
 0x6d5   : > { %19118 = vmatprep.subr.msk.bf16.mxu1 %vm611_vm0, %v22600_v28  ;;  %v10425_v11 = vpop.f32.mrb[48].mxu0  ;;  %13323 = vmatprep.mubr.bf16.mxu0 %v20359_v0 }
 0x6d6   : > { %v10466_v33 = vpop.f32.mrb[48].mxu1  ;;  %v10427_v44 = vpop.f32.mrb[49].mxu0  ;;  %13364 = vmatprep.mubr.bf16.mxu1 %v20359_v0 }
 0x6d7   : > { %v22910_v48 = vadd.f32 %v10466_v33, %v22754_v52  ;;  %v10468_v51 = vpop.f32.mrb[49].mxu1  ;;  %v10429_v26 = vpop.f32.mrb[50].mxu0 }
 0x6d8   : > { %v22913_v25 = vadd.f32 %v10468_v51, %v22756_v58  ;;  %v10470_v31 = vpop.f32.mrb[50].mxu1  ;;  %v10430_v63 = vpop.f32.mrb[51].mxu0 }
 0x6d9   : > { %v10471_v56 = vpop.f32.mrb[51].mxu1 }
 0x6da   : > { %19097 = vmatmul.mubr.msk.bf16.vlgmr.msra.gmra.mrb[156].mxu0 %vm962_vm1, %v12945_v46 }
 0x6db   : > { %19099 = vmatmul.mubr.msk.bf16.vlgmr.msra.gmra.mrb[156].mxu1 %vm962_vm1, %v12945_v46  ;;  %13491 = vmatpush1.bf16.msra.mxu0 %v22607_v12 }
 0x6dc   : > { %13532 = vmatpush1.bf16.msra.mxu1 %v22625_v1  ;;  %19120 = vmatprep.subr.msk.bf16.mxu0 %vm611_vm0, %v22617_v45 }
 0x6dd   : > { %19122 = vmatprep.subr.msk.bf16.mxu1 %vm611_vm0, %v22619_v38  ;;  %v10507_v28 = vpop.f32.mrb[52].mxu0  ;;  %13522 = vmatprep.mubr.bf16.mxu0 %v20359_v0 }
 0x6de   : > { %v22925_v52 = vadd.f32 %v10507_v28, %v22764_v61  ;;  %v10548_v58 = vpop.f32.mrb[52].mxu1  ;;  %v10509_v18 = vpop.f32.mrb[53].mxu0  ;;  %13563 = vmatprep.mubr.bf16.mxu1 %v20359_v0 }
 0x6df   : > { %v22929_v12 = vadd.f32 %v10548_v58, %v22775_v23  ;;  %v22932_v1 = vadd.f32 %v10509_v18, %v22767_v43  ;;  %v10550_v45 = vpop.f32.mrb[53].mxu1  ;;  %v10511_v14 = vpop.f32.mrb[54].mxu0 }
 0x6e0   : > { %v22937_v38 = vadd.f32 %v10550_v45, %v22780_v41  ;;  %v10552_v36 = vpop.f32.mrb[54].mxu1  ;;  %v10512_v61 = vpop.f32.mrb[55].mxu0 }
 0x6e1   : > { %v10553_v59 = vpop.f32.mrb[55].mxu1 }
 0x6e2   : > { %19117 = vmatmul.mubr.msk.bf16.vlgmr.msra.gmra.mrb[160].mxu0 %vm962_vm1, %v22934_v6 }
 0x6e3   : > { %19119 = vmatmul.mubr.msk.bf16.vlgmr.msra.gmra.mrb[160].mxu1 %vm962_vm1, %v22934_v6  ;;  %13573 = vmatpush1.bf16.msra.mxu0 %v22630_v57 }
 0x6e4   : > { %13614 = vmatpush1.bf16.msra.mxu1 %v22663_v13  ;;  %19124 = vmatprep.subr.msk.bf16.mxu0 %vm611_vm0, %v22641_v27 }
 0x6e5   : > { %19126 = vmatprep.subr.msk.bf16.mxu1 %vm611_vm0, %v22665_v24  ;;  %v10589_v43 = vpop.f32.mrb[56].mxu0  ;;  %13604 = vmatprep.mubr.bf16.mxu0 %v20359_v0 }
 0x6e6   : > { %v22951_v23 = vadd.f32 %v10589_v43, %v22782_v8  ;;  %v10630_v41 = vpop.f32.mrb[56].mxu1  ;;  %v10591_v37 = vpop.f32.mrb[57].mxu0  ;;  %13645 = vmatprep.mubr.bf16.mxu1 %v20359_v0  ;;  %v19115_v8 = vcombine.high %v22668_v15, %v22668_v15 }
 0x6e7   : > { %v22955_v57 = vadd.f32 %v10630_v41, %v22793_v7  ;;  %v22958_v13 = vadd.f32 %v10591_v37, %v22785_v32  ;;  %v10632_v27 = vpop.f32.mrb[57].mxu1  ;;  %v10593_v16 = vpop.f32.mrb[58].mxu0 }
 0x6e8   : > { %v22961_v24 = vadd.f32 %v10632_v27, %v22798_v30  ;;  %v10634_v46 = vpop.f32.mrb[58].mxu1  ;;  %v10594_v40 = vpop.f32.mrb[59].mxu0 }
 0x6e9   : > { %v10635_v19 = vpop.f32.mrb[59].mxu1 }
 0x6ea   : > { %19121 = vmatmul.mubr.msk.bf16.vlgmr.msra.gmra.mrb[164].mxu0 %vm962_vm1, %v22934_v6 }
 0x6eb   : > { %19123 = vmatmul.mubr.msk.bf16.vlgmr.msra.gmra.mrb[164].mxu1 %vm962_vm1, %v22934_v6  ;;  %13655 = vmatpush1.bf16.msra.mxu0 %v22674_v17 }
 0x6ec   : > { %13696 = vmatpush1.bf16.msra.mxu1 %v22687_v54  ;;  %19128 = vmatprep.subr.msk.bf16.mxu0 %vm611_vm0, %v22657_v29  ;;  %v19114_v54 = vcombine.low %v22668_v15, %v22668_v15 }
 0x6ed   : > { %19130 = vmatprep.subr.msk.bf16.mxu1 %vm611_vm0, %v19115_v8  ;;  %v10671_v32 = vpop.f32.mrb[60].mxu0  ;;  %13686 = vmatprep.mubr.bf16.mxu0 %v20359_v0 }
 0x6ee   : > { %v10672_v7 = vadd.f32 %v10671_v32, %v22801_v50  ;;  %v10712_v30 = vpop.f32.mrb[60].mxu1  ;;  %v10673_v10 = vpop.f32.mrb[61].mxu0  ;;  %13727 = vmatprep.mubr.bf16.mxu1 %v20359_v0  ;;  %v13485_v50 = vsel %vm611_vm0, %v19114_v54, 0 }
 0x6ef   : > { %v10674_v17 = vadd.f32 %v10673_v10, %v22805_v42  ;;  %v10714_v34 = vpop.f32.mrb[61].mxu1  ;;  %v10675_v3 = vpop.f32.mrb[62].mxu0 }
 0x6f0   : > { %v10716_v22 = vpop.f32.mrb[62].mxu1  ;;  %v10676_v29 = vpop.f32.mrb[63].mxu0 }
 0x6f1   : > { %v10717_v4 = vpop.f32.mrb[63].mxu1 }
 0x6f2   : > { %19125 = vmatmul.mubr.msk.bf16.vlgmr.msra.gmra.mrb[168].mxu0 %vm962_vm1, %v22934_v6 }
 0x6f3   : > { %19127 = vmatmul.mubr.msk.bf16.vlgmr.msra.gmra.mrb[168].mxu1 %vm962_vm1, %v22934_v6  ;;  %13737 = vmatpush1.bf16.msra.mxu0 %v22693_v5 }
 0x6f4   : > { %13778 = vmatpush1.bf16.msra.mxu1 %v13485_v50  ;;  %13768 = vmatprep.mubr.bf16.mxu0 %v20359_v0 }
 0x6f5   : > { %v10854_v42 = vpop.f32.mrb[64].mxu0  ;;  %13809 = vmatprep.mubr.bf16.mxu1 %v20359_v0 }
 0x6f6   : > { %v10895_v15 = vpop.f32.mrb[64].mxu1  ;;  %v10856_v35 = vpop.f32.mrb[65].mxu0 }
 0x6f7   : > { %v11150_v62 = vadd.f32 %v10895_v15, %v22910_v48  ;;  %v10897_v39 = vpop.f32.mrb[65].mxu1  ;;  %v10858_v60 = vpop.f32.mrb[66].mxu0 }
 0x6f8   : > { %v11151_v21 = vadd.f32 %v10897_v39, %v22913_v25  ;;  %v10899_v53 = vpop.f32.mrb[66].mxu1  ;;  %v10859_v9 = vpop.f32.mrb[67].mxu0 }
 0x6f9   : > { %v10900_v20 = vpop.f32.mrb[67].mxu1 }
 0x6fa   : > { %19129 = vmatmul.mubr.msk.bf16.vlgmr.msra.gmra.mrb[172].mxu0 %vm962_vm1, %v22934_v6 }
 0x6fb   : > { %19131 = vmatmul.mubr.msk.bf16.vlgmr.msra.gmra.mrb[172].mxu1 %vm962_vm1, %v22934_v6  ;;  %14259 = vmatprep.mubr.bf16.mxu0 %v20359_v0 }
 0x6fc   : > { %14300 = vmatprep.mubr.bf16.mxu1 %v20359_v0 }
 0x6fd   : > { %v10936_v5 = vpop.f32.mrb[68].mxu0 }
 0x6fe   : > { %v11152_v55 = vadd.f32 %v10936_v5, %v22925_v52  ;;  %v10977_v47 = vpop.f32.mrb[68].mxu1  ;;  %v10938_v2 = vpop.f32.mrb[69].mxu0 }
 0x6ff   : > { %v11154_v49 = vadd.f32 %v10977_v47, %v22929_v12  ;;  %v11153_v11 = vadd.f32 %v10938_v2, %v22932_v1  ;;  %v10979_v33 = vpop.f32.mrb[69].mxu1  ;;  %v10940_v44 = vpop.f32.mrb[70].mxu0 }
 0x700   : > { %v11155_v48 = vadd.f32 %v10979_v33, %v22937_v38  ;;  %v10981_v51 = vpop.f32.mrb[70].mxu1  ;;  %v10941_v26 = vpop.f32.mrb[71].mxu0 }
 0x701   : > { %v10982_v25 = vpop.f32.mrb[71].mxu1 }
 0x705   : > { %v11018_v31 = vpop.f32.mrb[72].mxu0 }
 0x706   : > { %v11156_v63 = vadd.f32 %v11018_v31, %v22951_v23  ;;  %v11059_v56 = vpop.f32.mrb[72].mxu1  ;;  %v11020_v28 = vpop.f32.mrb[73].mxu0 }
 0x707   : > { %v11158_v52 = vadd.f32 %v11059_v56, %v22955_v57  ;;  %v11157_v58 = vadd.f32 %v11020_v28, %v22958_v13  ;;  %v11061_v18 = vpop.f32.mrb[73].mxu1  ;;  %v11022_v12 = vpop.f32.mrb[74].mxu0 }
 0x708   : > { %v11159_v1 = vadd.f32 %v11061_v18, %v22961_v24  ;;  %v11063_v45 = vpop.f32.mrb[74].mxu1  ;;  %v11023_v14 = vpop.f32.mrb[75].mxu0 }
 0x709   : > { %v11064_v6 = vpop.f32.mrb[75].mxu1 }
 0x70d   : > { %v11100_v38 = vpop.f32.mrb[76].mxu0 }
 0x70e   : > { %v11160_v36 = vadd.f32 %v11100_v38, %v10672_v7  ;;  %v11141_v61 = vpop.f32.mrb[76].mxu1  ;;  %v11102_v59 = vpop.f32.mrb[77].mxu0 }
 0x70f   : > { %v11161_v43 = vadd.f32 %v11102_v59, %v10674_v17  ;;  %v11143_v41 = vpop.f32.mrb[77].mxu1  ;;  %v11104_v23 = vpop.f32.mrb[78].mxu0 }
 0x710   : > { %v11145_v37 = vpop.f32.mrb[78].mxu1  ;;  %v11105_v27 = vpop.f32.mrb[79].mxu0 }
 0x711   : > { %v11146_v16 = vpop.f32.mrb[79].mxu1 }
 0x715   : > { %v11299_v57 = vpop.f32.mrb[80].mxu0 }
 0x716   : > { %v11340_v46 = vpop.f32.mrb[80].mxu1  ;;  %v11301_v13 = vpop.f32.mrb[81].mxu0 }
 0x717   : > { %v11595_v40 = vadd.f32 %v11340_v46, %v11150_v62  ;;  %v11342_v19 = vpop.f32.mrb[81].mxu1  ;;  %v11303_v8 = vpop.f32.mrb[82].mxu0 }
 0x718   : > { %v11596_v24 = vadd.f32 %v11342_v19, %v11151_v21  ;;  %v11344_v32 = vpop.f32.mrb[82].mxu1  ;;  %v11304_v30 = vpop.f32.mrb[83].mxu0 }
 0x719   : > { %v11345_v10 = vpop.f32.mrb[83].mxu1 }
 0x71d   : > { %v11381_v34 = vpop.f32.mrb[84].mxu0 }
 0x71e   : > { %v11597_v7 = vadd.f32 %v11381_v34, %v11152_v55  ;;  %v11422_v3 = vpop.f32.mrb[84].mxu1  ;;  %v11383_v54 = vpop.f32.mrb[85].mxu0 }
 0x71f   : > { %v11599_v17 = vadd.f32 %v11422_v3, %v11154_v49  ;;  %v11598_v22 = vadd.f32 %v11383_v54, %v11153_v11  ;;  %v11424_v29 = vpop.f32.mrb[85].mxu1  ;;  %v11385_v4 = vpop.f32.mrb[86].mxu0 }
 0x720   : > { %v11600_v50 = vadd.f32 %v11424_v29, %v11155_v48  ;;  %v11426_v42 = vpop.f32.mrb[86].mxu1  ;;  %v11386_v15 = vpop.f32.mrb[87].mxu0 }
 0x721   : > { %v11427_v35 = vpop.f32.mrb[87].mxu1 }
 0x725   : > { %v11463_v39 = vpop.f32.mrb[88].mxu0 }
 0x726   : > { %v11601_v62 = vadd.f32 %v11463_v39, %v11156_v63  ;;  %v11504_v60 = vpop.f32.mrb[88].mxu1  ;;  %v11465_v53 = vpop.f32.mrb[89].mxu0 }
 0x727   : > { %v11603_v21 = vadd.f32 %v11504_v60, %v11158_v52  ;;  %v11602_v9 = vadd.f32 %v11465_v53, %v11157_v58  ;;  %v11506_v20 = vpop.f32.mrb[89].mxu1  ;;  %v11467_v5 = vpop.f32.mrb[90].mxu0 }
 0x728   : > { %v11604_v47 = vadd.f32 %v11506_v20, %v11159_v1  ;;  %v11508_v55 = vpop.f32.mrb[90].mxu1  ;;  %v11468_v2 = vpop.f32.mrb[91].mxu0 }
 0x729   : > { %v11509_v33 = vpop.f32.mrb[91].mxu1 }
 0x72d   : > { %v11545_v49 = vpop.f32.mrb[92].mxu0 }
 0x72e   : > { %v11605_v11 = vadd.f32 %v11545_v49, %v11160_v36  ;;  %v11586_v44 = vpop.f32.mrb[92].mxu1  ;;  %v11547_v51 = vpop.f32.mrb[93].mxu0 }
 0x72f   : > { %v11606_v48 = vadd.f32 %v11547_v51, %v11161_v43  ;;  %v11588_v26 = vpop.f32.mrb[93].mxu1  ;;  %v11549_v25 = vpop.f32.mrb[94].mxu0 }
 0x730   : > { %v11590_v31 = vpop.f32.mrb[94].mxu1  ;;  %v11550_v56 = vpop.f32.mrb[95].mxu0 }
 0x731   : > { %v11591_v63 = vpop.f32.mrb[95].mxu1 }
 0x735   : > { %v11744_v28 = vpop.f32.mrb[96].mxu0 }
 0x736   : > { %v11785_v18 = vpop.f32.mrb[96].mxu1  ;;  %v11746_v52 = vpop.f32.mrb[97].mxu0 }
 0x737   : > { %v12040_v58 = vadd.f32 %v11785_v18, %v11595_v40  ;;  %v11787_v12 = vpop.f32.mrb[97].mxu1  ;;  %v11748_v45 = vpop.f32.mrb[98].mxu0 }
 0x738   : > { %v12041_v1 = vadd.f32 %v11787_v12, %v11596_v24  ;;  %v11789_v14 = vpop.f32.mrb[98].mxu1  ;;  %v11749_v6 = vpop.f32.mrb[99].mxu0 }
 0x739   : > { %v11790_v38 = vpop.f32.mrb[99].mxu1 }
 0x73d   : > { %v11826_v61 = vpop.f32.mrb[100].mxu0 }
 0x73e   : > { %v12042_v36 = vadd.f32 %v11826_v61, %v11597_v7  ;;  %v11867_v59 = vpop.f32.mrb[100].mxu1  ;;  %v11828_v41 = vpop.f32.mrb[101].mxu0 }
 0x73f   : > { %v12044_v43 = vadd.f32 %v11867_v59, %v11599_v17  ;;  %v12043_v23 = vadd.f32 %v11828_v41, %v11598_v22  ;;  %v11869_v37 = vpop.f32.mrb[101].mxu1  ;;  %v11830_v27 = vpop.f32.mrb[102].mxu0 }
 0x740   : > { %v12045_v16 = vadd.f32 %v11869_v37, %v11600_v50  ;;  %v11871_v57 = vpop.f32.mrb[102].mxu1  ;;  %v11831_v46 = vpop.f32.mrb[103].mxu0 }
 0x741   : > { %v11872_v13 = vpop.f32.mrb[103].mxu1 }
 0x745   : > { %v11908_v19 = vpop.f32.mrb[104].mxu0 }
 0x746   : > { %v12046_v40 = vadd.f32 %v11908_v19, %v11601_v62  ;;  %v11949_v8 = vpop.f32.mrb[104].mxu1  ;;  %v11910_v32 = vpop.f32.mrb[105].mxu0 }
 0x747   : > { %v12048_v24 = vadd.f32 %v11949_v8, %v11603_v21  ;;  %v12047_v30 = vadd.f32 %v11910_v32, %v11602_v9  ;;  %v11951_v10 = vpop.f32.mrb[105].mxu1  ;;  %v11912_v34 = vpop.f32.mrb[106].mxu0 }
 0x748   : > { %v12049_v3 = vadd.f32 %v11951_v10, %v11604_v47  ;;  %v11953_v7 = vpop.f32.mrb[106].mxu1  ;;  %v11913_v54 = vpop.f32.mrb[107].mxu0 }
 0x749   : > { %v11954_v29 = vpop.f32.mrb[107].mxu1 }
 0x74d   : > { %v11990_v17 = vpop.f32.mrb[108].mxu0 }
 0x74e   : > { %v12050_v22 = vadd.f32 %v11990_v17, %v11605_v11  ;;  %v12031_v4 = vpop.f32.mrb[108].mxu1  ;;  %v11992_v42 = vpop.f32.mrb[109].mxu0 }
 0x74f   : > { %v12051_v50 = vadd.f32 %v11992_v42, %v11606_v48  ;;  %v12033_v15 = vpop.f32.mrb[109].mxu1  ;;  %v11994_v35 = vpop.f32.mrb[110].mxu0 }
 0x750   : > { %v12035_v39 = vpop.f32.mrb[110].mxu1  ;;  %v11995_v60 = vpop.f32.mrb[111].mxu0 }
 0x751   : > { %v12036_v62 = vpop.f32.mrb[111].mxu1 }
 0x755   : > { %v12189_v53 = vpop.f32.mrb[112].mxu0 }
 0x756   : > { %v12230_v20 = vpop.f32.mrb[112].mxu1  ;;  %v12191_v21 = vpop.f32.mrb[113].mxu0 }
 0x757   : > { %v12485_v9 = vadd.f32 %v12230_v20, %v12040_v58  ;;  %v12232_v5 = vpop.f32.mrb[113].mxu1  ;;  %v12193_v55 = vpop.f32.mrb[114].mxu0 }
 0x758   : > { %v12486_v47 = vadd.f32 %v12232_v5, %v12041_v1  ;;  %v12234_v2 = vpop.f32.mrb[114].mxu1  ;;  %v12194_v33 = vpop.f32.mrb[115].mxu0 }
 0x759   : > { %v12235_v49 = vpop.f32.mrb[115].mxu1 }
 0x75d   : > { %v12271_v44 = vpop.f32.mrb[116].mxu0 }
 0x75e   : > { %v12487_v11 = vadd.f32 %v12271_v44, %v12042_v36  ;;  %v12312_v51 = vpop.f32.mrb[116].mxu1  ;;  %v12273_v26 = vpop.f32.mrb[117].mxu0 }
 0x75f   : > { %v12489_v48 = vadd.f32 %v12312_v51, %v12044_v43  ;;  %v12488_v25 = vadd.f32 %v12273_v26, %v12043_v23  ;;  %v12314_v31 = vpop.f32.mrb[117].mxu1  ;;  %v12275_v56 = vpop.f32.mrb[118].mxu0 }
 0x760   : > { %v12490_v63 = vadd.f32 %v12314_v31, %v12045_v16  ;;  %v12316_v28 = vpop.f32.mrb[118].mxu1  ;;  %v12276_v18 = vpop.f32.mrb[119].mxu0 }
 0x761   : > { %v12317_v52 = vpop.f32.mrb[119].mxu1 }
 0x765   : > { %v12353_v12 = vpop.f32.mrb[120].mxu0 }
 0x766   : > { %v12491_v58 = vadd.f32 %v12353_v12, %v12046_v40  ;;  %v12394_v45 = vpop.f32.mrb[120].mxu1  ;;  %v12355_v14 = vpop.f32.mrb[121].mxu0 }
 0x767   : > { %v12493_v1 = vadd.f32 %v12394_v45, %v12048_v24  ;;  %v12492_v6 = vadd.f32 %v12355_v14, %v12047_v30  ;;  %v12396_v38 = vpop.f32.mrb[121].mxu1  ;;  %v12357_v61 = vpop.f32.mrb[122].mxu0 }
 0x768   : > { %v12494_v59 = vadd.f32 %v12396_v38, %v12049_v3  ;;  %v12398_v36 = vpop.f32.mrb[122].mxu1  ;;  %v12358_v41 = vpop.f32.mrb[123].mxu0 }
 0x769   : > { %v12399_v37 = vpop.f32.mrb[123].mxu1 }
 0x76d   : > { %v12435_v43 = vpop.f32.mrb[124].mxu0 }
 0x76e   : > { %v12495_v23 = vadd.f32 %v12435_v43, %v12050_v22  ;;  %v12476_v27 = vpop.f32.mrb[124].mxu1  ;;  %v12437_v57 = vpop.f32.mrb[125].mxu0 }
 0x76f   : > { %v12496_v16 = vadd.f32 %v12437_v57, %v12051_v50  ;;  %v12478_v46 = vpop.f32.mrb[125].mxu1  ;;  %v12439_v13 = vpop.f32.mrb[126].mxu0 }
 0x770   : > { %v12480_v19 = vpop.f32.mrb[126].mxu1  ;;  %v12440_v8 = vpop.f32.mrb[127].mxu0 }
 0x771   : > { %v12481_v40 = vpop.f32.mrb[127].mxu1 }
 0x775   : > { %v12634_v32 = vpop.f32.mrb[128].mxu0 }
 0x776   : > { %v12675_v10 = vpop.f32.mrb[128].mxu1  ;;  %v12636_v24 = vpop.f32.mrb[129].mxu0 }
 0x777   : > { %v12930_v30 = vadd.f32 %v12675_v10, %v12485_v9  ;;  %v12677_v34 = vpop.f32.mrb[129].mxu1  ;;  %v12638_v7 = vpop.f32.mrb[130].mxu0 }
 0x778   : > { %v12931_v3 = vadd.f32 %v12677_v34, %v12486_v47  ;;  %v12679_v54 = vpop.f32.mrb[130].mxu1  ;;  %v12639_v29 = vpop.f32.mrb[131].mxu0 }
 0x779   : > { %v12680_v17 = vpop.f32.mrb[131].mxu1 }
 0x77d   : > { %v12716_v4 = vpop.f32.mrb[132].mxu0 }
 0x77e   : > { %v12932_v22 = vadd.f32 %v12716_v4, %v12487_v11  ;;  %v12757_v42 = vpop.f32.mrb[132].mxu1  ;;  %v12718_v15 = vpop.f32.mrb[133].mxu0 }
 0x77f   : > { %v12934_v50 = vadd.f32 %v12757_v42, %v12489_v48  ;;  %v12933_v35 = vadd.f32 %v12718_v15, %v12488_v25  ;;  %v12759_v39 = vpop.f32.mrb[133].mxu1  ;;  %v12720_v60 = vpop.f32.mrb[134].mxu0 }
 0x780   : > { %v12935_v62 = vadd.f32 %v12759_v39, %v12490_v63  ;;  %v12761_v53 = vpop.f32.mrb[134].mxu1  ;;  %v12721_v20 = vpop.f32.mrb[135].mxu0 }
 0x781   : > { %v12762_v21 = vpop.f32.mrb[135].mxu1 }
 0x785   : > { %v12798_v5 = vpop.f32.mrb[136].mxu0 }
 0x786   : > { %v12936_v9 = vadd.f32 %v12798_v5, %v12491_v58  ;;  %v12839_v55 = vpop.f32.mrb[136].mxu1  ;;  %v12800_v2 = vpop.f32.mrb[137].mxu0 }
 0x787   : > { %v12938_v47 = vadd.f32 %v12839_v55, %v12493_v1  ;;  %v12937_v33 = vadd.f32 %v12800_v2, %v12492_v6  ;;  %v12841_v49 = vpop.f32.mrb[137].mxu1  ;;  %v12802_v44 = vpop.f32.mrb[138].mxu0 }
 0x788   : > { %v12939_v51 = vadd.f32 %v12841_v49, %v12494_v59  ;;  %v12843_v11 = vpop.f32.mrb[138].mxu1  ;;  %v12803_v26 = vpop.f32.mrb[139].mxu0 }
 0x789   : > { %v12844_v31 = vpop.f32.mrb[139].mxu1 }
 0x78d   : > { %v12880_v48 = vpop.f32.mrb[140].mxu0 }
 0x78e   : > { %v12940_v25 = vadd.f32 %v12880_v48, %v12495_v23  ;;  %v12921_v56 = vpop.f32.mrb[140].mxu1  ;;  %v12882_v28 = vpop.f32.mrb[141].mxu0 }
 0x78f   : > { %v12941_v63 = vadd.f32 %v12882_v28, %v12496_v16  ;;  %v12923_v18 = vpop.f32.mrb[141].mxu1  ;;  %v12884_v52 = vpop.f32.mrb[142].mxu0 }
 0x790   : > { %v12925_v12 = vpop.f32.mrb[142].mxu1  ;;  %v12885_v45 = vpop.f32.mrb[143].mxu0 }
 0x791   : > { %v12926_v58 = vpop.f32.mrb[143].mxu1 }
 0x795   : > { %v13079_v14 = vpop.f32.mrb[144].mxu0 }
 0x796   : > { %v13120_v38 = vpop.f32.mrb[144].mxu1  ;;  %v13081_v1 = vpop.f32.mrb[145].mxu0 }
 0x797   : > { %v13375_v6 = vadd.f32 %v13120_v38, %v12930_v30  ;;  %v13122_v61 = vpop.f32.mrb[145].mxu1  ;;  %v13083_v36 = vpop.f32.mrb[146].mxu0  ;;  %v19931_v1 = vld [vmem:[%s20779_s4 + $0x10] sm:$0xff] }
 0x798   : > { %v13376_v59 = vadd.f32 %v13122_v61, %v12931_v3  ;;  %v13124_v41 = vpop.f32.mrb[146].mxu1  ;;  %v13084_v37 = vpop.f32.mrb[147].mxu0 }
 0x799   : > { %v13125_v43 = vpop.f32.mrb[147].mxu1  ;;  %v19932_v37 = vld [vmem:[%s20779_s4 + $0x18] sm:$0xff] }
 0x79d   : > { %v13161_v27 = vpop.f32.mrb[148].mxu0 }
 0x79e   : > { %v13377_v23 = vadd.f32 %v13161_v27, %v12932_v22  ;;  %v13202_v57 = vpop.f32.mrb[148].mxu1  ;;  %v13163_v46 = vpop.f32.mrb[149].mxu0 }
 0x79f   : > { %v13379_v16 = vadd.f32 %v13202_v57, %v12934_v50  ;;  %v13378_v13 = vadd.f32 %v13163_v46, %v12933_v35  ;;  %v13204_v19 = vpop.f32.mrb[149].mxu1  ;;  %v13165_v8 = vpop.f32.mrb[150].mxu0 }
 0x7a0   : > { %v13380_v40 = vadd.f32 %v13204_v19, %v12935_v62  ;;  %v13206_v32 = vpop.f32.mrb[150].mxu1  ;;  %v13166_v10 = vpop.f32.mrb[151].mxu0 }
 0x7a1   : > { %v13207_v24 = vpop.f32.mrb[151].mxu1 }
 0x7a5   : > { %v13243_v34 = vpop.f32.mrb[152].mxu0 }
 0x7a6   : > { %v23004_v30 = vadd.f32 %v13243_v34, %v12936_v9  ;;  %v13284_v7 = vpop.f32.mrb[152].mxu1  ;;  %v13245_v3 = vpop.f32.mrb[153].mxu0 }
 0x7a7   : > { %v23006_v54 = vadd.f32 %v13284_v7, %v12938_v47  ;;  %v23008_v29 = vadd.f32 %v13245_v3, %v12937_v33  ;;  %v13286_v17 = vpop.f32.mrb[153].mxu1  ;;  %v13247_v4 = vpop.f32.mrb[154].mxu0 }
 0x7a8   : > { %v23010_v22 = vadd.f32 %v13286_v17, %v12939_v51  ;;  %v13288_v42 = vpop.f32.mrb[154].mxu1  ;;  %v13248_v15 = vpop.f32.mrb[155].mxu0  ;;  %v19933_v4 = vld [vmem:[%s20779_s4 + $0x20] sm:$0xff] }
 0x7a9   : > { %v13289_v50 = vpop.f32.mrb[155].mxu1  ;;  %v23016_v47 = vpop.permute.xlu1 %13838 }
 0x7ad   : > { %v13325_v35 = vpop.f32.mrb[156].mxu0 }
 0x7ae   : > { %v23012_v39 = vadd.f32 %v13325_v35, %v12940_v25  ;;  %v13366_v60 = vpop.f32.mrb[156].mxu1  ;;  %v13327_v62 = vpop.f32.mrb[157].mxu0 }
 0x7af   : > { %v23014_v53 = vadd.f32 %v13327_v62, %v12941_v63  ;;  %v13368_v20 = vpop.f32.mrb[157].mxu1  ;;  %v13329_v21 = vpop.f32.mrb[158].mxu0  ;;  %v19934_v62 = vld [vmem:[%s20779_s4 + $0x28] sm:$0xff] }
 0x7b0   : > { %v13370_v5 = vpop.f32.mrb[158].mxu1  ;;  %v13330_v9 = vpop.f32.mrb[159].mxu0 }
 0x7b1   : > { %v13371_v55 = vpop.f32.mrb[159].mxu1  ;;  %v19935_v5 = vld [vmem:[%s20779_s4 + $0x30] sm:$0xff] }
 0x7b5   : > { %v13524_v2 = vpop.f32.mrb[160].mxu0 }
 0x7b6   : > { %v13565_v33 = vpop.f32.mrb[160].mxu1  ;;  %v13526_v49 = vpop.f32.mrb[161].mxu0 }
 0x7b7   : > { %v13820_v44 = vadd.f32 %v13565_v33, %v13375_v6  ;;  %v13567_v51 = vpop.f32.mrb[161].mxu1  ;;  %v13528_v11 = vpop.f32.mrb[162].mxu0 }
 0x7b8   : > { %v13821_v26 = vadd.f32 %v13567_v51, %v13376_v59  ;;  %v13569_v31 = vpop.f32.mrb[162].mxu1  ;;  %v13529_v48 = vpop.f32.mrb[163].mxu0  ;;  %v19936_v51 = vld [vmem:[%s20779_s4 + $0x38] sm:$0xff] }
 0x7b9   : > { %v13570_v25 = vpop.f32.mrb[163].mxu1  ;;  %v13843_v56 = vadd.f32 %v23016_v47, %v13820_v44 }
 0x7ba   : > { %v13844_v28 = vadd.f32 %v23016_v47, %v13821_v26 }
 0x7bb   : > { %vm13859_vm12 = vcmp.ge.f32.partialorder %v13843_v56, 0.0  ;;  %v13875_v63 = vmul.f32 0.1, %v13843_v56 }
 0x7bc   : > { %vm13860_vm13 = vcmp.ge.f32.partialorder %v13844_v28, 0.0  ;;  %v13876_v18 = vmul.f32 0.1, %v13844_v28 }
 0x7bd   : > { %v13606_v52 = vpop.f32.mrb[164].mxu0  ;;  %v13891_v12 = vsel %vm13859_vm12, %v13843_v56, %v13875_v63 }
 0x7be   : > { %v13822_v45 = vadd.f32 %v13606_v52, %v13377_v23  ;;  %v13647_v58 = vpop.f32.mrb[164].mxu1  ;;  %v13608_v14 = vpop.f32.mrb[165].mxu0  ;;  %v13892_v38 = vsel %vm13860_vm13, %v13844_v28, %v13876_v18  ;;  %v13907_v6 = vmul.f32 %v19931_v1, %v13891_v12 }
 0x7bf   : > { %v13824_v61 = vadd.f32 %v13647_v58, %v13379_v16  ;;  %v13823_v36 = vadd.f32 %v13608_v14, %v13378_v13  ;;  %v13649_v59 = vpop.f32.mrb[165].mxu1  ;;  %v13610_v41 = vpop.f32.mrb[166].mxu0  ;;  %v23022_v43 = vmul.f32 %v19932_v37, %v13892_v38 }
 0x7c0   : > { %v13845_v27 = vadd.f32 %v23016_v47, %v13822_v45  ;;  %v13825_v57 = vadd.f32 %v13649_v59, %v13380_v40  ;;  %v13651_v46 = vpop.f32.mrb[166].mxu1  ;;  %v13611_v19 = vpop.f32.mrb[167].mxu0 }
 0x7c1   : > { %v13847_v8 = vadd.f32 %v23016_v47, %v13824_v61  ;;  %v13846_v23 = vadd.f32 %v23016_v47, %v13823_v36  ;;  %v13652_v32 = vpop.f32.mrb[167].mxu1  ;;  %v19455_v10 = vpack.c.bf16 %v23022_v43, %v13907_v6  ;;  %v19992_v12 = vpack.c.bf16 %v23022_v43, %v23022_v43  ;;  %v19937_v36 = vld [vmem:[%s20779_s4 + $0x40] sm:$0xff]  ;;  %v19938_v46 = vld [vmem:[%s20779_s4 + $0x48] sm:$0xff] }
 0x7c2   : > { %vm13861_vm14 = vcmp.ge.f32.partialorder %v13845_v27, 0.0  ;;  %v13877_v16 = vmul.f32 0.1, %v13845_v27  ;;  %v13848_v13 = vadd.f32 %v23016_v47, %v13825_v57 }
 0x7c3   : > { %vm13863_vm15 = vcmp.ge.f32.partialorder %v13847_v8, 0.0  ;;  %v13879_v24 = vmul.f32 0.1, %v13847_v8  ;;  %vm13862_vm4 = vcmp.ge.f32.partialorder %v13846_v23, 0.0  ;;  %v13878_v34 = vmul.f32 0.1, %v13846_v23  ;;  %13987 = vrot.lane.b32.xlu0 %v19455_v10, %s20360_s24 }
 0x7c4   : > { %vm13864_vm5 = vcmp.ge.f32.partialorder %v13848_v13, 0.0  ;;  %v13880_v40 = vmul.f32 0.1, %v13848_v13  ;;  %v13893_v7 = vsel %vm13861_vm14, %v13845_v27, %v13877_v16  ;;  %v14204_v1 = vsel %vm611_vm0, %v19992_v12, 0 }
 0x7c5   : > { %v13688_v3 = vpop.f32.mrb[168].mxu0  ;;  %v13894_v17 = vsel %vm13862_vm4, %v13846_v23, %v13878_v34  ;;  %v13909_v42 = vmul.f32 %v19933_v4, %v13893_v7  ;;  %v13895_v15 = vsel %vm13863_vm15, %v13847_v8, %v13879_v24  ;;  %v19939_v23 = vld [vmem:[%s20779_s4 + $0x50] sm:$0xff] }
 0x7c6   : > { %v13826_v50 = vadd.f32 %v13688_v3, %v23004_v30  ;;  %v13729_v35 = vpop.f32.mrb[168].mxu1  ;;  %v13690_v60 = vpop.f32.mrb[169].mxu0  ;;  %v23033_v20 = vmul.f32 %v19934_v62, %v13894_v17  ;;  %v13896_v21 = vsel %vm13864_vm5, %v13848_v13, %v13880_v40  ;;  %v13911_v9 = vmul.f32 %v19935_v5, %v13895_v15  ;;  %v19940_v13 = vld [vmem:[%s20779_s4 + $0x58] sm:$0xff] }
 0x7c7   : > { %v13828_v55 = vadd.f32 %v13729_v35, %v23006_v54  ;;  %v13827_v2 = vadd.f32 %v13690_v60, %v23008_v29  ;;  %v13731_v33 = vpop.f32.mrb[169].mxu1  ;;  %v13692_v49 = vpop.f32.mrb[170].mxu0  ;;  %v23039_v44 = vpack.c.bf16 %v13909_v42, %v23022_v43  ;;  %v23042_v11 = vmul.f32 %v19936_v51, %v13896_v21  ;;  %v23065_v43 = vld [vmem:[#allocation12 + $0x70] sm:$0xf] }
 0x7c8   : > { %v13849_v30 = vadd.f32 %v23016_v47, %v13826_v50  ;;  %v13829_v26 = vadd.f32 %v13731_v33, %v23010_v22  ;;  %v13733_v31 = vpop.f32.mrb[170].mxu1  ;;  %v13693_v48 = vpop.f32.mrb[171].mxu0  ;;  %v19456_v25 = vpack.c.bf16 %v23033_v20, %v13909_v42  ;;  %v23048_v54 = vpack.c.bf16 %v13911_v9, %v23033_v20  ;;  %v19941_v49 = vld [vmem:[%s20779_s4 + $0x60] sm:$0xff] }
 0x7c9   : > { %v13851_v29 = vadd.f32 %v23016_v47, %v13828_v55  ;;  %v13850_v56 = vadd.f32 %v23016_v47, %v13827_v2  ;;  %v13734_v28 = vpop.f32.mrb[171].mxu1  ;;  %14075 = vst [vmem:[#allocation3 + $0x48] sm:$0xff] %v23039_v44  ;;  %v19457_v63 = vpack.c.bf16 %v23042_v11, %v13911_v9  ;;  %v19991_v18 = vpack.c.bf16 %v13909_v42, %v13909_v42 }
 0x7ca   : > { %vm13865_vm6 = vcmp.ge.f32.partialorder %v13849_v30, 0.0  ;;  %v13881_v52 = vmul.f32 0.1, %v13849_v30  ;;  %v13852_v22 = vadd.f32 %v23016_v47, %v13829_v26  ;;  %13989 = vrot.lane.b32.xlu1 %v19456_v25, %s20360_s24  ;;  %14076 = vst [vmem:[#allocation3 + $0x50] sm:$0xff] %v23048_v54  ;;  %v23063_v37 = vpack.c.bf16 %v13911_v9, %v13911_v9  ;;  %v16178_v25 = vld [vmem:[#allocation13 + $0x18] sm:$0xff] }
 0x7cb   : > { %vm13867_vm7 = vcmp.ge.f32.partialorder %v13851_v29, 0.0  ;;  %v13883_v45 = vmul.f32 0.1, %v13851_v29  ;;  %vm13866_vm8 = vcmp.ge.f32.partialorder %v13850_v56, 0.0  ;;  %v13882_v58 = vmul.f32 0.1, %v13850_v56  ;;  %13991 = vrot.lane.b32.xlu0 %v19457_v63, %s20360_s24  ;;  %19157 = vmatprep.subr.msk.bf16.mxu0 %vm611_vm0, %v19991_v18 }
 0x7cc   : > { %vm13868_vm9 = vcmp.ge.f32.partialorder %v13852_v22, 0.0  ;;  %v13884_v14 = vmul.f32 0.1, %v13852_v22  ;;  %v13897_v38 = vsel %vm13865_vm6, %v13849_v30, %v13881_v52  ;;  %14228 = vmatpush1.bf16.msra.mxu0 %v14204_v1  ;;  %19159 = vmatprep.subr.msk.bf16.mxu1 %vm611_vm0, %v23063_v37 }
 0x7cd   : > { %v13770_v6 = vpop.f32.mrb[172].mxu0  ;;  %v13898_v61 = vsel %vm13866_vm8, %v13850_v56, %v13882_v58  ;;  %v13913_v59 = vmul.f32 %v19937_v36, %v13897_v38  ;;  %v13899_v41 = vsel %vm13867_vm7, %v13851_v29, %v13883_v45 }
 0x7ce   : > { %v13830_v27 = vadd.f32 %v13770_v6, %v23012_v39  ;;  %v13772_v57 = vpop.f32.mrb[173].mxu0  ;;  %v13914_v19 = vmul.f32 %v19938_v46, %v13898_v61  ;;  %v13900_v8 = vsel %vm13868_vm9, %v13852_v22, %v13884_v14  ;;  %v13915_v32 = vmul.f32 %v19939_v23, %v13899_v41  ;;  %v13811_v10 = vpop.f32.mrb[172].mxu1 }
 0x7cf   : > { %v13831_v16 = vadd.f32 %v13772_v57, %v23014_v53  ;;  %v23073_v24 = vmul.f32 %v19940_v13, %v13900_v8  ;;  %v13774_v34 = vpop.f32.mrb[174].mxu0  ;;  %v19994_v39 = vpack.c.bf16 %v23033_v20, %v23033_v20  ;;  %v19463_v40 = vpack.c.bf16 %v13913_v59, %v23042_v11  ;;  %v13813_v7 = vpop.f32.mrb[173].mxu1  ;;  %19158 = vmatmul.mubr.msk.bf16.vlgmr.msra.gmra.mrb[176].mxu0 %vm962_vm1, %v23065_v43 }
 0x7d0   : > { %v13853_v3 = vadd.f32 %v23016_v47, %v13830_v27  ;;  %v19458_v17 = vpack.c.bf16 %v13914_v19, %v13913_v59  ;;  %v13775_v4 = vpop.f32.mrb[175].mxu0  ;;  %v19464_v42 = vpack.c.bf16 %v13915_v32, %v13914_v19  ;;  %v13815_v53 = vpop.f32.mrb[174].mxu1  ;;  %v23088_v60 = vpack.c.bf16 %v13913_v59, %v13913_v59  ;;  %14341 = vmatprep.mubr.bf16.mxu0 %v20359_v0  ;;  %v14169_v59 = vld [vmem:[#allocation12 + $0x6c] sm:$0xf] }
 0x7d1   : > { %v13854_v15 = vadd.f32 %v23016_v47, %v13831_v16  ;;  %v19459_v50 = vpack.c.bf16 %v23073_v24, %v13915_v32  ;;  %v23086_v35 = vsel %vm611_vm0, %v19994_v39, 0  ;;  %14077 = vst [vmem:[#allocation3 + $0x58] sm:$0xff] %v19463_v40  ;;  %v13816_v62 = vpop.f32.mrb[175].mxu1  ;;  %v19996_v47 = vpack.c.bf16 %v23042_v11, %v23042_v11 }
 0x7d2   : > { %vm13869_vm10 = vcmp.ge.f32.partialorder %v13853_v3, 0.0  ;;  %v13885_v20 = vmul.f32 0.1, %v13853_v3  ;;  %13993 = vrot.lane.b32.xlu1 %v19458_v17, %s20360_s24  ;;  %14269 = vmatpush1.bf16.msra.mxu1 %v23086_v35  ;;  %14078 = vst [vmem:[#allocation3 + $0x60] sm:$0xff] %v19464_v42  ;;  %v23095_v21 = vpack.c.bf16 %v13915_v32, %v13915_v32  ;;  %v19998_v5 = vpack.c.bf16 %v13914_v19, %v13914_v19 }
 0x7d3   : > { %13995 = vrot.lane.b32.xlu0 %v19459_v50, %s20360_s24  ;;  %19161 = vmatprep.subr.msk.bf16.mxu0 %vm611_vm0, %v23088_v60  ;;  %v23101_v9 = vsel %vm611_vm0, %v19996_v47, 0  ;;  %v13886_v2 = vmul.f32 0.1, %v13854_v15  ;;  %vm13870_vm11 = vcmp.ge.f32.partialorder %v13854_v15, 0.0 }
 0x7d4   : > { %19163 = vmatprep.subr.msk.bf16.mxu1 %vm611_vm0, %v23095_v21  ;;  %v13901_v55 = vsel %vm13869_vm10, %v13853_v3, %v13885_v20  ;;  %14310 = vmatpush1.bf16.msra.mxu0 %v23101_v9  ;;  %v23109_v33 = vsel %vm611_vm0, %v19998_v5, 0 }
 0x7d5   : > { %19160 = vmatmul.mubr.msk.bf16.vlgmr.msra.gmra.mrb[176].mxu1 %vm962_vm1, %v23065_v43  ;;  %v13917_v51 = vmul.f32 %v19941_v49, %v13901_v55  ;;  %v13902_v30 = vsel %vm13870_vm11, %v13854_v15, %v13886_v2 }
 0x7d6   : > { %14130 = vrot.lane.b32.xlu1 %v23039_v44, %s20361_s8  ;;  %14351 = vmatpush1.bf16.msra.mxu1 %v23109_v33  ;;  %v19942_v44 = vld [vmem:[%s20779_s4 + $0x68] sm:$0xff]  ;;  %s24366_s4 = sld [smem:[#allocation43_spill]] }
 0x7d7   : > { %14132 = vrot.lane.b32.xlu0 %v23048_v54, %s20361_s8  ;;  %v19465_v11 = vpack.c.bf16 %v13917_v51, %v23073_v24  ;;  %14382 = vmatprep.mubr.bf16.mxu1 %v20359_v0  ;;  %v13918_v26 = vmul.f32 %v19942_v44, %v13902_v30  ;;  %v23125_v31 = vpack.c.bf16 %v13917_v51, %v13917_v51 }
 0x7d8   : > { %19162 = vmatmul.mubr.msk.bf16.vlgmr.msra.gmra.mrb[180].mxu0 %vm962_vm1, %v23065_v43 }
 0x7d9   : > { %14079 = vst [vmem:[#allocation3 + $0x68] sm:$0xff] %v19465_v11  ;;  %14470 = vmatprep.mubr.bf16.mxu0 %v20359_v0  ;;  %v19471_v48 = vpack.c.bf16 %v13918_v26, %v13918_v26 }
 0x7da   : > { %14134 = vrot.lane.b32.xlu1 %v19463_v40, %s20361_s8 }
 0x7db   : > { %14136 = vrot.lane.b32.xlu0 %v19464_v42, %s20361_s8 }
 0x7dd   : > { %19164 = vmatmul.mubr.msk.bf16.vlgmr.msra.gmra.mrb[180].mxu1 %vm962_vm1, %v23065_v43 }
 0x7de   : > { %14138 = vrot.lane.b32.xlu1 %v19465_v11, %s20361_s8  ;;  %14511 = vmatprep.mubr.bf16.mxu1 %v20359_v0 }
 0x7df   : > { %13997 = vrot.lane.b32.xlu0 %v23125_v31, %s20360_s24  ;;  %s24167_s24 = scalar_lea.hbm %s24366_s4, %s19361_s28 }
 0x7e2   : > { %14140 = vrot.lane.b32.xlu1 %v19471_v48, %s20361_s8  ;;  %s17905_s8 = scalar_lea.sflag [#allocation6], %s20754_s27 }
 0x7e3   : > { %16181 = vperm.xlu0 %19666, %v16178_v25  }
 0x835   : > { %v13988_v54 = vpop.permute.xlu0 %13987 }
 0x836   : > { %v13999_v56 = vrot.slane %v13988_v54, 4 }
 0x83c   : > { %v13990_v29 = vpop.permute.xlu1 %13989 }
 0x83d   : > { %v14000_v28 = vrot.slane %v13990_v29, 4  ;;  %v13992_v63 = vpop.permute.xlu0 %13991 }
 0x83e   : > { %v14001_v18 = vrot.slane %v13992_v63, 4 }
 0x83f   : > { %v14005_v52 = vsel %vm611_vm0, %v13999_v56, %v14000_v28 }
 0x840   : > { %v14006_v22 = vsel %vm613_vm2, %v13988_v54, %v14005_v52  ;;  %v14007_v12 = vsel %vm611_vm0, %v14000_v28, %v14001_v18  ;;  %v14603_v52 = vld [vmem:[#allocation12 + $0x74] sm:$0xf] }
 0x841   : > { %14020 = vst [vmem:[#allocation3] sm:$0xff] %v14006_v22  ;;  %v14008_v45 = vsel %vm613_vm2, %v13990_v29, %v14007_v12  ;;  %v19166_v58 = vcombine.high %v14006_v22, %v14006_v22  ;;  %v19165_v14 = vcombine.low %v14006_v22, %v14006_v22 }
 0x842   : > { %14021 = vst [vmem:[#allocation3 + $0x8] sm:$0xff] %v14008_v45  ;;  %v23138_v38 = vcombine.high %v14008_v45, %v14008_v45  ;;  %v19167_v1 = vcombine.low %v14008_v45, %v14008_v45 }
 0x843   : > { %19173 = vmatprep.subr.msk.bf16.mxu0 %vm611_vm0, %v19166_v58  ;;  %v14415_v6 = vsel %vm611_vm0, %v19165_v14, 0 }
 0x844   : > { %v13994_v61 = vpop.permute.xlu1 %13993  ;;  %19175 = vmatprep.subr.msk.bf16.mxu1 %vm611_vm0, %v23138_v38  ;;  %14439 = vmatpush1.bf16.msra.mxu0 %v14415_v6  ;;  %v23145_v36 = vsel %vm611_vm0, %v19167_v1, 0 }
 0x845   : > { %v14002_v41 = vrot.slane %v13994_v61, 4  ;;  %v23147_v43 = vpop.permute.xlu0 %13995  ;;  %14480 = vmatpush1.bf16.msra.mxu1 %v23145_v36 }
 0x846   : > { %v14003_v27 = vrot.slane %v23147_v43, 4 }
 0x847   : > { %v14009_v57 = vsel %vm611_vm0, %v14001_v18, %v14002_v41  ;;  %19174 = vmatmul.mubr.msk.bf16.vlgmr.msra.gmra.mrb[184].mxu0 %vm962_vm1, %v14169_v59 }
 0x848   : > { %v14010_v46 = vsel %vm613_vm2, %v13992_v63, %v14009_v57  ;;  %v14011_v19 = vsel %vm611_vm0, %v14002_v41, %v14003_v27  ;;  %v14131_v8 = vpop.permute.xlu1 %14130  ;;  %19176 = vmatmul.mubr.msk.bf16.vlgmr.msra.gmra.mrb[184].mxu1 %vm962_vm1, %v14169_v59  ;;  %14552 = vmatprep.mubr.bf16.mxu0 %v20359_v0 }
 0x849   : > { %14022 = vst [vmem:[#allocation3 + $0x10] sm:$0xff] %v14010_v46  ;;  %v14012_v23 = vsel %vm613_vm2, %v13994_v61, %v14011_v19  ;;  %v14142_v32 = vrot.slane %v14131_v8, 4  ;;  %v14133_v10 = vpop.permute.xlu0 %14132  ;;  %v23158_v16 = vcombine.high %v14010_v46, %v14010_v46  ;;  %v19169_v13 = vcombine.low %v14010_v46, %v14010_v46  ;;  %14593 = vmatprep.mubr.bf16.mxu1 %v20359_v0  ;;  %v14829_v22 = vld [vmem:[#allocation3 + $0x4] sm:$0xff] }
 0x84a   : > { %14023 = vst [vmem:[#allocation3 + $0x18] sm:$0xff] %v14012_v23  ;;  %v14143_v34 = vrot.slane %v14133_v10, 4  ;;  %v23161_v39 = vcombine.high %v14012_v23, %v14012_v23  ;;  %v19171_v40 = vcombine.low %v14012_v23, %v14012_v23  ;;  %v19198_v41 = vcombine.high %v14829_v22, %v14829_v22 }
 0x84b   : > { %19177 = vmatprep.subr.msk.bf16.mxu0 %vm611_vm0, %v23158_v16  ;;  %v23166_v7 = vsel %vm611_vm0, %v19169_v13, 0  ;;  %v19197_v57 = vcombine.low %v14829_v22, %v14829_v22 }
 0x84c   : > { %v14148_v3 = vsel %vm611_vm0, %v14142_v32, %v14143_v34  ;;  %v14135_v17 = vpop.permute.xlu1 %14134  ;;  %19179 = vmatprep.subr.msk.bf16.mxu1 %vm611_vm0, %v23161_v39  ;;  %14521 = vmatpush1.bf16.msra.mxu0 %v23166_v7  ;;  %v23173_v4 = vsel %vm611_vm0, %v19171_v40, 0  ;;  %v14828_v40 = vld [vmem:[#allocation12 + $0x78] sm:$0xf] }
 0x84d   : > { %v14149_v42 = vsel %vm866_vm3, %v14131_v8, %v14148_v3  ;;  %v14144_v53 = vrot.slane %v14135_v17, 4  ;;  %v14137_v15 = vpop.permute.xlu0 %14136  ;;  %14562 = vmatpush1.bf16.msra.mxu1 %v23173_v4  ;;  %v14857_v32 = vsel %vm611_vm0, %v19197_v57, 0 }
 0x84e   : > { %14163 = vst [vmem:[#allocation3 + $0x90] sm:$0xff] %v14149_v42  ;;  %v14145_v50 = vrot.slane %v14137_v15, 4  ;;  %v19182_v62 = vcombine.high %v14149_v42, %v14149_v42  ;;  %v19181_v20 = vcombine.low %v14149_v42, %v14149_v42  ;;  %v15055_v42 = vld [vmem:[#allocation3 + $0x54] sm:$0xff] }
 0x84f   : > { %v14150_v47 = vsel %vm611_vm0, %v14143_v34, %v14144_v53  ;;  %19178 = vmatmul.mubr.msk.bf16.vlgmr.msra.gmra.mrb[188].mxu0 %vm962_vm1, %v14169_v59 }
 0x850   : > { %v14151_v5 = vsel %vm866_vm3, %v14133_v10, %v14150_v47  ;;  %v14152_v55 = vsel %vm611_vm0, %v14144_v53, %v14145_v50  ;;  %v14139_v2 = vpop.permute.xlu1 %14138  ;;  %19180 = vmatmul.mubr.msk.bf16.vlgmr.msra.gmra.mrb[188].mxu1 %vm962_vm1, %v14169_v59  ;;  %19189 = vmatprep.subr.msk.bf16.mxu0 %vm611_vm0, %v19182_v62  ;;  %v14632_v49 = vsel %vm611_vm0, %v19181_v20, 0  ;;  %v14830_v1 = vld [vmem:[#allocation3 + $0xc] sm:$0xff]  ;;  %v19216_v62 = vcombine.high %v15055_v42, %v15055_v42 }
 0x851   : > { %14164 = vst [vmem:[#allocation3 + $0x98] sm:$0xff] %v14151_v5  ;;  %v14153_v51 = vsel %vm866_vm3, %v14135_v17, %v14152_v55  ;;  %v14146_v11 = vrot.slane %v14139_v2, 4  ;;  %v13998_v30 = vpop.permute.xlu0 %13997  ;;  %14656 = vmatpush1.bf16.msra.mxu0 %v14632_v49  ;;  %v23185_v44 = vcombine.high %v14151_v5, %v14151_v5  ;;  %v19183_v26 = vcombine.low %v14151_v5, %v14151_v5  ;;  %v14831_v19 = vld [vmem:[#allocation3 + $0x14] sm:$0xff]  ;;  %v15054_v17 = vld [vmem:[#allocation3 + $0x4c] sm:$0xff]  ;;  %v15056_v5 = vld [vmem:[#allocation3 + $0x5c] sm:$0xff] }
 0x852   : > { %14687 = vmatprep.mubr.bf16.mxu0 %v20359_v0  ;;  %14165 = vst [vmem:[#allocation3 + $0xa0] sm:$0xff] %v14153_v51  ;;  %v14004_v48 = vrot.slane %v13998_v30, 4  ;;  %v23188_v25 = vcombine.high %v14153_v51, %v14153_v51  ;;  %14728 = vmatprep.mubr.bf16.mxu1 %v20359_v0  ;;  %v19185_v56 = vcombine.low %v14153_v51, %v14153_v51  ;;  %v15057_v55 = vld [vmem:[#allocation3 + $0x64] sm:$0xff] }
 0x853   : > { %v14154_v54 = vsel %vm611_vm0, %v14145_v50, %v14146_v11  ;;  %19191 = vmatprep.subr.msk.bf16.mxu1 %vm611_vm0, %v23185_v44  ;;  %v23195_v29 = vsel %vm611_vm0, %v19183_v26, 0  ;;  %v19199_v46 = vcombine.low %v14830_v1, %v14830_v1  ;;  %v19202_v10 = vcombine.high %v14831_v19, %v14831_v19  ;;  %v15053_v26 = vld [vmem:[#allocation12 + $0x7c] sm:$0xf] }
 0x854   : > { %v14155_v28 = vsel %vm866_vm3, %v14137_v15, %v14154_v54  ;;  %v14013_v63 = vsel %vm611_vm0, %v14003_v27, %v14004_v48  ;;  %v14141_v18 = vpop.permute.xlu1 %14140  ;;  %19193 = vmatprep.subr.msk.bf16.mxu0 %vm611_vm0, %v23188_v25  ;;  %14697 = vmatpush1.bf16.msra.mxu1 %v23195_v29  ;;  %v23212_v61 = vsel %vm611_vm0, %v19185_v56, 0  ;;  %v19200_v27 = vcombine.high %v14830_v1, %v14830_v1 }
 0x855   : > { %14166 = vst [vmem:[#allocation3 + $0xa8] sm:$0xff] %v14155_v28  ;;  %v23204_v12 = vsel %vm613_vm2, %v23147_v43, %v14013_v63  ;;  %v14147_v45 = vrot.slane %v14141_v18, 4  ;;  %v23206_v58 = vcombine.high %v14155_v28, %v14155_v28  ;;  %v19187_v14 = vcombine.low %v14155_v28, %v14155_v28 }
 0x856   : > { %14024 = vst [vmem:[#allocation3 + $0x20] sm:$0xff] %v23204_v12  ;;  %v14863_v13 = vsel %vm611_vm0, %v19199_v46, 0  ;;  %v19201_v34 = vcombine.low %v14831_v19, %v14831_v19  ;;  %v19214_v15 = vcombine.high %v15054_v17, %v15054_v17  ;;  %v19213_v20 = vcombine.low %v15054_v17, %v15054_v17  ;;  %v15278_v19 = vld [vmem:[#allocation12 + $0x80] sm:$0xf] }
 0x857   : > { %v14156_v6 = vsel %vm611_vm0, %v14146_v11, %v14147_v45  ;;  %19190 = vmatmul.mubr.msk.bf16.vlgmr.msra.gmra.mrb[192].mxu0 %vm962_vm1, %v14603_v52  ;;  %19195 = vmatprep.subr.msk.bf16.mxu1 %vm611_vm0, %v23206_v58  ;;  %v23217_v59 = vsel %vm611_vm0, %v19187_v14, 0  ;;  %v19215_v47 = vcombine.low %v15055_v42, %v15055_v42  ;;  %v19218_v49 = vcombine.high %v15056_v5, %v15056_v5 }
 0x858   : > { %v23220_v43 = vsel %vm866_vm3, %v14139_v2, %v14156_v6  ;;  %19192 = vmatmul.mubr.msk.bf16.vlgmr.msra.gmra.mrb[192].mxu1 %vm962_vm1, %v14603_v52  ;;  %14738 = vmatpush1.bf16.msra.mxu0 %v23212_v61  ;;  %v14869_v53 = vsel %vm611_vm0, %v19201_v34, 0  ;;  %v15082_v2 = vsel %vm611_vm0, %v19213_v20, 0  ;;  %v19220_v11 = vcombine.high %v15057_v55, %v15057_v55  ;;  %v15279_v54 = vld [vmem:[#allocation3 + $0x94] sm:$0xff] }
 0x859   : > { %14167 = vst [vmem:[#allocation3 + $0xb0] sm:$0xff] %v23220_v43  ;;  %14779 = vmatpush1.bf16.msra.mxu1 %v23217_v59  ;;  %19205 = vmatprep.subr.msk.bf16.mxu0 %vm611_vm0, %v19198_v41  ;;  %v15088_v51 = vsel %vm611_vm0, %v19215_v47, 0  ;;  %v19217_v30 = vcombine.low %v15056_v5, %v15056_v5  ;;  %v19219_v48 = vcombine.low %v15057_v55, %v15057_v55  ;;  %v15280_v56 = vld [vmem:[#allocation3 + $0x9c] sm:$0xff] }
 0x85a   : > { %19207 = vmatprep.subr.msk.bf16.mxu1 %vm611_vm0, %v19200_v27  ;;  %14769 = vmatprep.mubr.bf16.mxu0 %v20359_v0  ;;  %v19230_v63 = vcombine.high %v15279_v54, %v15279_v54  ;;  %v19229_v22 = vcombine.low %v15279_v54, %v15279_v54  ;;  %v19231_v45 = vcombine.low %v15280_v56, %v15280_v56 }
 0x85b   : > { %14810 = vmatprep.mubr.bf16.mxu1 %v20359_v0  ;;  %v15094_v28 = vsel %vm611_vm0, %v19217_v30, 0  ;;  %v15100_v18 = vsel %vm611_vm0, %v19219_v48, 0 }
 0x85c   : > { %v15281_v14 = vld [vmem:[#allocation3 + $0xa4] sm:$0xff]  ;;  %v15307_v6 = vsel %vm611_vm0, %v19229_v22, 0  ;;  %v15313_v27 = vsel %vm611_vm0, %v19231_v45, 0 }
 0x85d   : > { %v14832_v8 = vld [vmem:[#allocation3 + $0x1c] sm:$0xff]  ;;  %v19234_v41 = vcombine.high %v15281_v14, %v15281_v14  ;;  %v19233_v46 = vcombine.low %v15281_v14, %v15281_v14 }
 0x85e   : > { %v19204_v23 = vcombine.high %v14832_v8, %v14832_v8  ;;  %v19203_v3 = vcombine.low %v14832_v8, %v14832_v8 }
 0x85f   : > { %19194 = vmatmul.mubr.msk.bf16.vlgmr.msra.gmra.mrb[196].mxu0 %vm962_vm1, %v14603_v52 }
 0x860   : > { %19196 = vmatmul.mubr.msk.bf16.vlgmr.msra.gmra.mrb[196].mxu1 %vm962_vm1, %v14603_v52  ;;  %14881 = vmatpush1.bf16.msra.mxu0 %v14857_v32  ;;  %v14875_v50 = vsel %vm611_vm0, %v19203_v3, 0  ;;  %v19232_v52 = vcombine.high %v15280_v56, %v15280_v56  ;;  %v15282_v1 = vld [vmem:[#allocation3 + $0xac] sm:$0xff] }
 0x861   : > { %14922 = vmatpush1.bf16.msra.mxu1 %v14863_v13  ;;  %19209 = vmatprep.subr.msk.bf16.mxu0 %vm611_vm0, %v19202_v10  ;;  %v19236_v57 = vcombine.high %v15282_v1, %v15282_v1  ;;  %v19235_v8 = vcombine.low %v15282_v1, %v15282_v1  ;;  %v19252_v10 = vcombine.high %v23204_v12, %v23204_v12 }
 0x862   : > { %19211 = vmatprep.subr.msk.bf16.mxu1 %vm611_vm0, %v19204_v23  ;;  %14912 = vmatprep.mubr.bf16.mxu0 %v20359_v0  ;;  %v15319_v23 = vsel %vm611_vm0, %v19233_v46, 0 }
 0x863   : > { %14953 = vmatprep.mubr.bf16.mxu1 %v20359_v0  ;;  %v15325_v32 = vsel %vm611_vm0, %v19235_v8, 0 }
 0x867   : > { %19206 = vmatmul.mubr.msk.bf16.vlgmr.msra.gmra.mrb[200].mxu0 %vm962_vm1, %v14828_v40 }
 0x868   : > { %19208 = vmatmul.mubr.msk.bf16.vlgmr.msra.gmra.mrb[200].mxu1 %vm962_vm1, %v14828_v40  ;;  %14963 = vmatpush1.bf16.msra.mxu0 %v14869_v53  ;;  %v15953_v53 = vld [vmem:[#allocation12 + $0x8c] sm:$0xf] }
 0x869   : > { %15004 = vmatpush1.bf16.msra.mxu1 %v14875_v50  ;;  %19221 = vmatprep.subr.msk.bf16.mxu0 %vm611_vm0, %v19214_v15 }
 0x86a   : > { %19223 = vmatprep.subr.msk.bf16.mxu1 %vm611_vm0, %v19216_v62  ;;  %14994 = vmatprep.mubr.bf16.mxu0 %v20359_v0 }
 0x86b   : > { %15035 = vmatprep.mubr.bf16.mxu1 %v20359_v0 }
 0x86f   : > { %19210 = vmatmul.mubr.msk.bf16.vlgmr.msra.gmra.mrb[204].mxu0 %vm962_vm1, %v14828_v40 }
 0x870   : > { %19212 = vmatmul.mubr.msk.bf16.vlgmr.msra.gmra.mrb[204].mxu1 %vm962_vm1, %v14828_v40  ;;  %15106 = vmatpush1.bf16.msra.mxu0 %v15082_v2 }
 0x871   : > { %15147 = vmatpush1.bf16.msra.mxu1 %v15088_v51  ;;  %19225 = vmatprep.subr.msk.bf16.mxu0 %vm611_vm0, %v19218_v49 }
 0x872   : > { %19227 = vmatprep.subr.msk.bf16.mxu1 %vm611_vm0, %v19220_v11  ;;  %15137 = vmatprep.mubr.bf16.mxu0 %v20359_v0 }
 0x873   : > { %15178 = vmatprep.mubr.bf16.mxu1 %v20359_v0 }
 0x877   : > { %19222 = vmatmul.mubr.msk.bf16.vlgmr.msra.gmra.mrb[208].mxu0 %vm962_vm1, %v15053_v26 }
 0x878   : > { %19224 = vmatmul.mubr.msk.bf16.vlgmr.msra.gmra.mrb[208].mxu1 %vm962_vm1, %v15053_v26  ;;  %15188 = vmatpush1.bf16.msra.mxu0 %v15094_v28 }
 0x879   : > { %15229 = vmatpush1.bf16.msra.mxu1 %v15100_v18  ;;  %19237 = vmatprep.subr.msk.bf16.mxu0 %vm611_vm0, %v19230_v63 }
 0x87a   : > { %19239 = vmatprep.subr.msk.bf16.mxu1 %vm611_vm0, %v19232_v52  ;;  %15219 = vmatprep.mubr.bf16.mxu0 %v20359_v0 }
 0x87b   : > { %15260 = vmatprep.mubr.bf16.mxu1 %v20359_v0 }
 0x87f   : > { %19226 = vmatmul.mubr.msk.bf16.vlgmr.msra.gmra.mrb[212].mxu0 %vm962_vm1, %v15053_v26 }
 0x880   : > { %19228 = vmatmul.mubr.msk.bf16.vlgmr.msra.gmra.mrb[212].mxu1 %vm962_vm1, %v15053_v26  ;;  %15331 = vmatpush1.bf16.msra.mxu0 %v15307_v6 }
 0x881   : > { %15372 = vmatpush1.bf16.msra.mxu1 %v15313_v27  ;;  %19241 = vmatprep.subr.msk.bf16.mxu0 %vm611_vm0, %v19234_v41 }
 0x882   : > { %19243 = vmatprep.subr.msk.bf16.mxu1 %vm611_vm0, %v19236_v57  ;;  %15362 = vmatprep.mubr.bf16.mxu0 %v20359_v0 }
 0x883   : > { %15403 = vmatprep.mubr.bf16.mxu1 %v20359_v0 }
 0x887   : > { %19238 = vmatmul.mubr.msk.bf16.vlgmr.msra.gmra.mrb[216].mxu0 %vm962_vm1, %v15278_v19 }
 0x888   : > { %19240 = vmatmul.mubr.msk.bf16.vlgmr.msra.gmra.mrb[216].mxu1 %vm962_vm1, %v15278_v19  ;;  %15413 = vmatpush1.bf16.msra.mxu0 %v15319_v23 }
 0x889   : > { %15454 = vmatpush1.bf16.msra.mxu1 %v15325_v32  ;;  %19253 = vmatprep.subr.msk.bf16.mxu0 %vm611_vm0, %v23138_v38  ;;  %v15503_v38 = vld [vmem:[#allocation12 + $0x84] sm:$0xf] }
 0x88a   : > { %19255 = vmatprep.subr.msk.bf16.mxu1 %vm611_vm0, %v23158_v16  ;;  %15444 = vmatprep.mubr.bf16.mxu0 %v20359_v0  ;;  %v19251_v16 = vcombine.low %v23204_v12, %v23204_v12 }
 0x88b   : > { %15485 = vmatprep.mubr.bf16.mxu1 %v20359_v0 }
 0x88f   : > { %19242 = vmatmul.mubr.msk.bf16.vlgmr.msra.gmra.mrb[220].mxu0 %vm962_vm1, %v15278_v19 }
 0x890   : > { %19244 = vmatmul.mubr.msk.bf16.vlgmr.msra.gmra.mrb[220].mxu1 %vm962_vm1, %v15278_v19  ;;  %15556 = vmatpush1.bf16.msra.mxu0 %v23145_v36  ;;  %v15550_v36 = vsel %vm611_vm0, %v19251_v16, 0 }
 0x891   : > { %15597 = vmatpush1.bf16.msra.mxu1 %v23166_v7  ;;  %19257 = vmatprep.subr.msk.bf16.mxu0 %vm611_vm0, %v23161_v39  ;;  %v20000_v39 = vpack.c.bf16 %v23073_v24, %v23073_v24 }
 0x892   : > { %19259 = vmatprep.subr.msk.bf16.mxu1 %vm611_vm0, %v19252_v10  ;;  %15587 = vmatprep.mubr.bf16.mxu0 %v20359_v0 }
 0x893   : > { %15628 = vmatprep.mubr.bf16.mxu1 %v20359_v0 }
 0x897   : > { %19254 = vmatmul.mubr.msk.bf16.vlgmr.msra.gmra.mrb[224].mxu0 %vm962_vm1, %v15503_v38 }
 0x898   : > { %19256 = vmatmul.mubr.msk.bf16.vlgmr.msra.gmra.mrb[224].mxu1 %vm962_vm1, %v15503_v38  ;;  %15638 = vmatpush1.bf16.msra.mxu0 %v23173_v4 }
 0x899   : > { %15679 = vmatpush1.bf16.msra.mxu1 %v15550_v36  ;;  %19269 = vmatprep.subr.msk.bf16.mxu0 %vm611_vm0, %v23063_v37 }
 0x89a   : > { %19271 = vmatprep.subr.msk.bf16.mxu1 %vm611_vm0, %v23088_v60  ;;  %15669 = vmatprep.mubr.bf16.mxu0 %v20359_v0  ;;  %v15728_v60 = vld [vmem:[#allocation12 + $0x88] sm:$0xf] }
 0x89b   : > { %15710 = vmatprep.mubr.bf16.mxu1 %v20359_v0 }
 0x89f   : > { %19258 = vmatmul.mubr.msk.bf16.vlgmr.msra.gmra.mrb[228].mxu0 %vm962_vm1, %v15503_v38 }
 0x8a0   : > { %19260 = vmatmul.mubr.msk.bf16.vlgmr.msra.gmra.mrb[228].mxu1 %vm962_vm1, %v15503_v38  ;;  %15781 = vmatpush1.bf16.msra.mxu0 %v23086_v35 }
 0x8a1   : > { %15822 = vmatpush1.bf16.msra.mxu1 %v23101_v9  ;;  %19273 = vmatprep.subr.msk.bf16.mxu0 %vm611_vm0, %v23095_v21  ;;  %v15775_v21 = vsel %vm611_vm0, %v20000_v39, 0 }
 0x8a2   : > { %19275 = vmatprep.subr.msk.bf16.mxu1 %vm611_vm0, %v23125_v31  ;;  %15812 = vmatprep.mubr.bf16.mxu0 %v20359_v0  ;;  %v14261_v37 = vpop.f32.mrb[176].mxu0 }
 0x8a3   : > { %15853 = vmatprep.mubr.bf16.mxu1 %v20359_v0  ;;  %v14263_v7 = vpop.f32.mrb[177].mxu0 }
 0x8a4   : > { %v14265_v4 = vpop.f32.mrb[178].mxu0 }
 0x8a5   : > { %v14266_v35 = vpop.f32.mrb[179].mxu0 }
 0x8a7   : > { %19270 = vmatmul.mubr.msk.bf16.vlgmr.msra.gmra.mrb[232].mxu0 %vm962_vm1, %v15728_v60 }
 0x8a8   : > { %19272 = vmatmul.mubr.msk.bf16.vlgmr.msra.gmra.mrb[232].mxu1 %vm962_vm1, %v15728_v60  ;;  %15863 = vmatpush1.bf16.msra.mxu0 %v23109_v33  ;;  %v14302_v9 = vpop.f32.mrb[176].mxu1 }
 0x8a9   : > { %15904 = vmatpush1.bf16.msra.mxu1 %v15775_v21  ;;  %19285 = vmatprep.subr.msk.bf16.mxu0 %vm611_vm0, %v23185_v44  ;;  %v14304_v31 = vpop.f32.mrb[177].mxu1  ;;  %v19284_v44 = vcombine.high %v23220_v43, %v23220_v43 }
 0x8aa   : > { %19287 = vmatprep.subr.msk.bf16.mxu1 %vm611_vm0, %v23188_v25  ;;  %15894 = vmatprep.mubr.bf16.mxu0 %v20359_v0  ;;  %v14306_v24 = vpop.f32.mrb[178].mxu1 }
 0x8ab   : > { %15935 = vmatprep.mubr.bf16.mxu1 %v20359_v0  ;;  %v14307_v12 = vpop.f32.mrb[179].mxu1  ;;  %v14343_v13 = vpop.f32.mrb[180].mxu0 }
 0x8ac   : > { %v14345_v34 = vpop.f32.mrb[181].mxu0 }
 0x8ad   : > { %v14347_v33 = vpop.f32.mrb[182].mxu0 }
 0x8ae   : > { %v14348_v40 = vpop.f32.mrb[183].mxu0 }
 0x8af   : > { %19274 = vmatmul.mubr.msk.bf16.vlgmr.msra.gmra.mrb[236].mxu0 %vm962_vm1, %v15728_v60 }
 0x8b0   : > { %19276 = vmatmul.mubr.msk.bf16.vlgmr.msra.gmra.mrb[236].mxu1 %vm962_vm1, %v15728_v60  ;;  %16006 = vmatpush1.bf16.msra.mxu0 %v23195_v29  ;;  %v14384_v25 = vpop.f32.mrb[180].mxu1  ;;  %v19283_v29 = vcombine.low %v23220_v43, %v23220_v43 }
 0x8b1   : > { %16047 = vmatpush1.bf16.msra.mxu1 %v23212_v61  ;;  %19289 = vmatprep.subr.msk.bf16.mxu0 %vm611_vm0, %v23206_v58  ;;  %v14386_v3 = vpop.f32.mrb[181].mxu1 }
 0x8b2   : > { %19291 = vmatprep.subr.msk.bf16.mxu1 %vm611_vm0, %v19284_v44  ;;  %16037 = vmatprep.mubr.bf16.mxu0 %v20359_v0  ;;  %v14388_v17 = vpop.f32.mrb[182].mxu1  ;;  %v16000_v58 = vsel %vm611_vm0, %v19283_v29, 0 }
 0x8b3   : > { %16078 = vmatprep.mubr.bf16.mxu1 %v20359_v0  ;;  %v14389_v42 = vpop.f32.mrb[183].mxu1 }
 0x8b7   : > { %19286 = vmatmul.mubr.msk.bf16.vlgmr.msra.gmra.mrb[240].mxu0 %vm962_vm1, %v15953_v53 }
 0x8b8   : > { %19288 = vmatmul.mubr.msk.bf16.vlgmr.msra.gmra.mrb[240].mxu1 %vm962_vm1, %v15953_v53  ;;  %16088 = vmatpush1.bf16.msra.mxu0 %v23217_v59 }
 0x8b9   : > { %16129 = vmatpush1.bf16.msra.mxu1 %v16000_v58  ;;  %16119 = vmatprep.mubr.bf16.mxu0 %v20359_v0 }
 0x8ba   : > { %16160 = vmatprep.mubr.bf16.mxu1 %v20359_v0 }
 0x8bf   : > { %19290 = vmatmul.mubr.msk.bf16.vlgmr.msra.gmra.mrb[244].mxu0 %vm962_vm1, %v15953_v53 }
 0x8c0   : > { %19292 = vmatmul.mubr.msk.bf16.vlgmr.msra.gmra.mrb[244].mxu1 %vm962_vm1, %v15953_v53 }
 0x91a   : > { %v14472_v61 = vpop.f32.mrb[184].mxu0 }
 0x91b   : > { %v14473_v15 = vadd.f32 %v14472_v61, %v14261_v37  ;;  %v14513_v43 = vpop.f32.mrb[184].mxu1  ;;  %v14474_v50 = vpop.f32.mrb[185].mxu0 }
 0x91c   : > { %v14514_v62 = vadd.f32 %v14513_v43, %v14302_v9  ;;  %v14475_v20 = vadd.f32 %v14474_v50, %v14263_v7  ;;  %v14515_v47 = vpop.f32.mrb[185].mxu1  ;;  %v14476_v5 = vpop.f32.mrb[186].mxu0 }
 0x91d   : > { %v14516_v59 = vadd.f32 %v14515_v47, %v14304_v31  ;;  %v14517_v55 = vpop.f32.mrb[186].mxu1  ;;  %v14477_v2 = vpop.f32.mrb[187].mxu0 }
 0x91e   : > { %v14518_v49 = vpop.f32.mrb[187].mxu1 }
 0x922   : > { %v14554_v51 = vpop.f32.mrb[188].mxu0 }
 0x923   : > { %v14555_v11 = vadd.f32 %v14554_v51, %v14343_v13  ;;  %v14595_v30 = vpop.f32.mrb[188].mxu1  ;;  %v14556_v0 = vpop.f32.mrb[189].mxu0 }
 0x924   : > { %v14596_v26 = vadd.f32 %v14595_v30, %v14384_v25  ;;  %v14557_v48 = vadd.f32 %v14556_v0, %v14345_v34  ;;  %v14597_v54 = vpop.f32.mrb[189].mxu1  ;;  %v14558_v56 = vpop.f32.mrb[190].mxu0 }
 0x925   : > { %v14598_v28 = vadd.f32 %v14597_v54, %v14386_v3  ;;  %v14599_v63 = vpop.f32.mrb[190].mxu1  ;;  %v14559_v18 = vpop.f32.mrb[191].mxu0 }
 0x926   : > { %v14600_v52 = vpop.f32.mrb[191].mxu1 }
 0x92a   : > { %v14689_v22 = vpop.f32.mrb[192].mxu0 }
 0x92b   : > { %v14819_v45 = vadd.f32 %v14689_v22, %v14473_v15  ;;  %v14730_v14 = vpop.f32.mrb[192].mxu1  ;;  %v14691_v1 = vpop.f32.mrb[193].mxu0 }
 0x92c   : > { %v14821_v6 = vadd.f32 %v14730_v14, %v14514_v62  ;;  %v14820_v41 = vadd.f32 %v14691_v1, %v14475_v20  ;;  %v14732_v27 = vpop.f32.mrb[193].mxu1  ;;  %v14693_v57 = vpop.f32.mrb[194].mxu0 }
 0x92d   : > { %v14822_v46 = vadd.f32 %v14732_v27, %v14516_v59  ;;  %v14734_v19 = vpop.f32.mrb[194].mxu1  ;;  %v14694_v8 = vpop.f32.mrb[195].mxu0 }
 0x92e   : > { %v14735_v23 = vpop.f32.mrb[195].mxu1 }
 0x932   : > { %v14771_v32 = vpop.f32.mrb[196].mxu0 }
 0x933   : > { %v14823_v10 = vadd.f32 %v14771_v32, %v14555_v11  ;;  %v14812_v38 = vpop.f32.mrb[196].mxu1  ;;  %v14773_v16 = vpop.f32.mrb[197].mxu0 }
 0x934   : > { %v14825_v36 = vadd.f32 %v14812_v38, %v14596_v26  ;;  %v14824_v37 = vadd.f32 %v14773_v16, %v14557_v48  ;;  %v14814_v60 = vpop.f32.mrb[197].mxu1  ;;  %v14775_v39 = vpop.f32.mrb[198].mxu0 }
 0x935   : > { %v14826_v7 = vadd.f32 %v14814_v60, %v14598_v28  ;;  %v14816_v4 = vpop.f32.mrb[198].mxu1  ;;  %v14776_v35 = vpop.f32.mrb[199].mxu0 }
 0x936   : > { %v14817_v21 = vpop.f32.mrb[199].mxu1 }
 0x93a   : > { %v14914_v9 = vpop.f32.mrb[200].mxu0 }
 0x93b   : > { %v15044_v31 = vadd.f32 %v14914_v9, %v14819_v45  ;;  %v14955_v24 = vpop.f32.mrb[200].mxu1  ;;  %v14916_v12 = vpop.f32.mrb[201].mxu0 }
 0x93c   : > { %v15046_v13 = vadd.f32 %v14955_v24, %v14821_v6  ;;  %v15045_v34 = vadd.f32 %v14916_v12, %v14820_v41  ;;  %v14957_v33 = vpop.f32.mrb[201].mxu1  ;;  %v14918_v40 = vpop.f32.mrb[202].mxu0 }
 0x93d   : > { %v15047_v44 = vadd.f32 %v14957_v33, %v14822_v46  ;;  %v14959_v25 = vpop.f32.mrb[202].mxu1  ;;  %v14919_v3 = vpop.f32.mrb[203].mxu0 }
 0x93e   : > { %v14960_v17 = vpop.f32.mrb[203].mxu1 }
 0x942   : > { %v14996_v42 = vpop.f32.mrb[204].mxu0 }
 0x943   : > { %v15048_v53 = vadd.f32 %v14996_v42, %v14823_v10  ;;  %v15037_v29 = vpop.f32.mrb[204].mxu1  ;;  %v14998_v58 = vpop.f32.mrb[205].mxu0 }
 0x944   : > { %v15050_v61 = vadd.f32 %v15037_v29, %v14825_v36  ;;  %v15049_v15 = vadd.f32 %v14998_v58, %v14824_v37  ;;  %v15039_v43 = vpop.f32.mrb[205].mxu1  ;;  %v15000_v50 = vpop.f32.mrb[206].mxu0 }
 0x945   : > { %v15051_v62 = vadd.f32 %v15039_v43, %v14826_v7  ;;  %v15041_v20 = vpop.f32.mrb[206].mxu1  ;;  %v15001_v47 = vpop.f32.mrb[207].mxu0 }
 0x946   : > { %v15042_v5 = vpop.f32.mrb[207].mxu1 }
 0x94a   : > { %v15139_v59 = vpop.f32.mrb[208].mxu0 }
 0x94b   : > { %v15269_v55 = vadd.f32 %v15139_v59, %v15044_v31  ;;  %v15180_v2 = vpop.f32.mrb[208].mxu1  ;;  %v15141_v49 = vpop.f32.mrb[209].mxu0 }
 0x94c   : > { %v15271_v51 = vadd.f32 %v15180_v2, %v15046_v13  ;;  %v15270_v11 = vadd.f32 %v15141_v49, %v15045_v34  ;;  %v15182_v30 = vpop.f32.mrb[209].mxu1  ;;  %v15143_v0 = vpop.f32.mrb[210].mxu0 }
 0x94d   : > { %v15272_v26 = vadd.f32 %v15182_v30, %v15047_v44  ;;  %v15184_v48 = vpop.f32.mrb[210].mxu1  ;;  %v15144_v54 = vpop.f32.mrb[211].mxu0 }
 0x94e   : > { %v15185_v56 = vpop.f32.mrb[211].mxu1 }
 0x952   : > { %v15221_v28 = vpop.f32.mrb[212].mxu0 }
 0x953   : > { %v15273_v63 = vadd.f32 %v15221_v28, %v15048_v53  ;;  %v15262_v18 = vpop.f32.mrb[212].mxu1  ;;  %v15223_v52 = vpop.f32.mrb[213].mxu0 }
 0x954   : > { %v15275_v22 = vadd.f32 %v15262_v18, %v15050_v61  ;;  %v15274_v45 = vadd.f32 %v15223_v52, %v15049_v15  ;;  %v15264_v14 = vpop.f32.mrb[213].mxu1  ;;  %v15225_v1 = vpop.f32.mrb[214].mxu0 }
 0x955   : > { %v15276_v6 = vadd.f32 %v15264_v14, %v15051_v62  ;;  %v15266_v41 = vpop.f32.mrb[214].mxu1  ;;  %v15226_v27 = vpop.f32.mrb[215].mxu0 }
 0x956   : > { %v15267_v57 = vpop.f32.mrb[215].mxu1 }
 0x95a   : > { %v15364_v46 = vpop.f32.mrb[216].mxu0 }
 0x95b   : > { %v15494_v19 = vadd.f32 %v15364_v46, %v15269_v55  ;;  %v15405_v8 = vpop.f32.mrb[216].mxu1  ;;  %v15366_v23 = vpop.f32.mrb[217].mxu0 }
 0x95c   : > { %v15496_v32 = vadd.f32 %v15405_v8, %v15271_v51  ;;  %v15495_v10 = vadd.f32 %v15366_v23, %v15270_v11  ;;  %v15407_v38 = vpop.f32.mrb[217].mxu1  ;;  %v15368_v16 = vpop.f32.mrb[218].mxu0 }
 0x95d   : > { %v15497_v36 = vadd.f32 %v15407_v38, %v15272_v26  ;;  %v15409_v37 = vpop.f32.mrb[218].mxu1  ;;  %v15369_v60 = vpop.f32.mrb[219].mxu0 }
 0x95e   : > { %v15410_v39 = vpop.f32.mrb[219].mxu1 }
 0x962   : > { %v15446_v7 = vpop.f32.mrb[220].mxu0 }
 0x963   : > { %v15498_v4 = vadd.f32 %v15446_v7, %v15273_v63  ;;  %v15487_v35 = vpop.f32.mrb[220].mxu1  ;;  %v15448_v21 = vpop.f32.mrb[221].mxu0 }
 0x964   : > { %v15500_v9 = vadd.f32 %v15487_v35, %v15275_v22  ;;  %v15499_v31 = vadd.f32 %v15448_v21, %v15274_v45  ;;  %v15489_v24 = vpop.f32.mrb[221].mxu1  ;;  %v15450_v12 = vpop.f32.mrb[222].mxu0 }
 0x965   : > { %v15501_v13 = vadd.f32 %v15489_v24, %v15276_v6  ;;  %v15491_v34 = vpop.f32.mrb[222].mxu1  ;;  %v15451_v33 = vpop.f32.mrb[223].mxu0  ;;  %v16194_v12 = vld [vmem:[%s20777_s17 + $0x10] sm:$0xff] }
 0x966   : > { %v15492_v40 = vpop.f32.mrb[223].mxu1 }
 0x96a   : > { %v15589_v44 = vpop.f32.mrb[224].mxu0 }
 0x96b   : > { %v15719_v25 = vadd.f32 %v15589_v44, %v15494_v19  ;;  %v15630_v3 = vpop.f32.mrb[224].mxu1  ;;  %v15591_v17 = vpop.f32.mrb[225].mxu0 }
 0x96c   : > { %v15721_v42 = vadd.f32 %v15630_v3, %v15496_v32  ;;  %v15720_v53 = vadd.f32 %v15591_v17, %v15495_v10  ;;  %v15632_v29 = vpop.f32.mrb[225].mxu1  ;;  %v15593_v58 = vpop.f32.mrb[226].mxu0 }
 0x96d   : > { %v15722_v61 = vadd.f32 %v15632_v29, %v15497_v36  ;;  %v15634_v15 = vpop.f32.mrb[226].mxu1  ;;  %v15594_v43 = vpop.f32.mrb[227].mxu0 }
 0x96e   : > { %v15635_v50 = vpop.f32.mrb[227].mxu1  ;;  %v23354_v36 = vpop.permute.xlu0 %16181 }
 0x972   : > { %v15671_v62 = vpop.f32.mrb[228].mxu0 }
 0x973   : > { %v15723_v20 = vadd.f32 %v15671_v62, %v15498_v4  ;;  %v15712_v47 = vpop.f32.mrb[228].mxu1  ;;  %v15673_v5 = vpop.f32.mrb[229].mxu0  ;;  %v16192_v4 = vld [vmem:[%s20777_s17] sm:$0xff] }
 0x974   : > { %v15725_v59 = vadd.f32 %v15712_v47, %v15500_v9  ;;  %v15724_v55 = vadd.f32 %v15673_v5, %v15499_v31  ;;  %v15714_v2 = vpop.f32.mrb[229].mxu1  ;;  %v15675_v49 = vpop.f32.mrb[230].mxu0 }
 0x975   : > { %v15726_v51 = vadd.f32 %v15714_v2, %v15501_v13  ;;  %v15716_v11 = vpop.f32.mrb[230].mxu1  ;;  %v15676_v30 = vpop.f32.mrb[231].mxu0  ;;  %v16193_v13 = vld [vmem:[%s20777_s17 + $0x8] sm:$0xff] }
 0x976   : > { %v15717_v0 = vpop.f32.mrb[231].mxu1 }
 0x97a   : > { %v15814_v26 = vpop.f32.mrb[232].mxu0 }
 0x97b   : > { %v15944_v48 = vadd.f32 %v15814_v26, %v15719_v25  ;;  %v15855_v54 = vpop.f32.mrb[232].mxu1  ;;  %v15816_v56 = vpop.f32.mrb[233].mxu0 }
 0x97c   : > { %v15946_v28 = vadd.f32 %v15855_v54, %v15721_v42  ;;  %v15945_v63 = vadd.f32 %v15816_v56, %v15720_v53  ;;  %v15857_v18 = vpop.f32.mrb[233].mxu1  ;;  %v15818_v52 = vpop.f32.mrb[234].mxu0 }
 0x97d   : > { %v15947_v22 = vadd.f32 %v15857_v18, %v15722_v61  ;;  %v15859_v45 = vpop.f32.mrb[234].mxu1  ;;  %v15819_v14 = vpop.f32.mrb[235].mxu0 }
 0x97e   : > { %v15860_v1 = vpop.f32.mrb[235].mxu1 }
 0x982   : > { %v15896_v6 = vpop.f32.mrb[236].mxu0 }
 0x983   : > { %v23346_v41 = vadd.f32 %v15896_v6, %v15723_v20  ;;  %v15937_v27 = vpop.f32.mrb[236].mxu1  ;;  %v15898_v57 = vpop.f32.mrb[237].mxu0 }
 0x984   : > { %v23348_v46 = vadd.f32 %v15937_v27, %v15725_v59  ;;  %v23350_v19 = vadd.f32 %v15898_v57, %v15724_v55  ;;  %v15939_v8 = vpop.f32.mrb[237].mxu1  ;;  %v15900_v23 = vpop.f32.mrb[238].mxu0 }
 0x985   : > { %v23352_v32 = vadd.f32 %v15939_v8, %v15726_v51  ;;  %v15941_v10 = vpop.f32.mrb[238].mxu1  ;;  %v15901_v38 = vpop.f32.mrb[239].mxu0  ;;  %v20364_v23 = vmov 683565275  }
 0x986   : > { %v15942_v16 = vpop.f32.mrb[239].mxu1 }
 0x98a   : > { %v16039_v37 = vpop.f32.mrb[240].mxu0 }
 0x98b   : > { %v16169_v60 = vadd.f32 %v16039_v37, %v15944_v48  ;;  %v16080_v39 = vpop.f32.mrb[240].mxu1  ;;  %v16041_v7 = vpop.f32.mrb[241].mxu0  ;;  %v20365_v37 = vmov 2475754826  }
 0x98c   : > { %v16171_v35 = vadd.f32 %v16080_v39, %v15946_v28  ;;  %v16170_v21 = vadd.f32 %v16041_v7, %v15945_v63  ;;  %v16082_v9 = vpop.f32.mrb[241].mxu1  ;;  %v16043_v31 = vpop.f32.mrb[242].mxu0  ;;  %v16195_v63 = vld [vmem:[%s20777_s17 + $0x18] sm:$0xff]  ;;  %v20366_v39 = vmov 2131351028  }
 0x98d   : > { %v16184_v24 = vadd.f32 %v23354_v36, %v16169_v60  ;;  %v16172_v34 = vadd.f32 %v16082_v9, %v15947_v22  ;;  %v16084_v33 = vpop.f32.mrb[242].mxu1  ;;  %v16044_v40 = vpop.f32.mrb[243].mxu0 }
 0x98e   : > { %v16186_v44 = vadd.f32 %v23354_v36, %v16171_v35  ;;  %v16185_v25 = vadd.f32 %v23354_v36, %v16170_v21  ;;  %v16085_v3 = vpop.f32.mrb[243].mxu1  ;;  %v20368_v21 = vmov 920167782   ;;  %v20369_v33 = vmov 1326507024  }
 0x98f   : > { %v23362_v17 = vadd.f32 %v16192_v4, %v16184_v24  ;;  %v16187_v0 = vadd.f32 %v23354_v36, %v16172_v34  ;;  %v20367_v4 = vmov 2102212464  }
 0x990   : > { %v23364_v42 = vadd.f32 %v16194_v12, %v16186_v44  ;;  %v23366_v53 = vadd.f32 %v16193_v13, %v16185_v25 }
 0x991   : > { %v16216_v29 = vand.u32 2147483647, %v23362_v17  ;;  %v16219_v58 = vand.u32 2139095040, %v23362_v17  ;;  %v23392_v57 = vadd.f32 %v16195_v63, %v16187_v0  ;;  %vm16218_vm9 = vcmp.lt.s32.totalorder %v23362_v17, 0 }
 0x992   : > { %v16422_v61 = vand.u32 2147483647, %v23364_v42  ;;  %v16425_v15 = vand.u32 2139095040, %v23364_v42  ;;  %v23372_v43 = vpop.f32.mrb[244].mxu0  ;;  %v16322_v5 = vand.u32 2139095040, %v23366_v53 }
 0x993   : > { %v16220_v50 = vshrl.u32 %v16219_v58, 23  ;;  %v16223_v62 = vand.u32 8388607, %v16216_v29  ;;  %v23379_v55 = vpop.f32.mrb[244].mxu1  ;;  %v23381_v2 = vpop.f32.mrb[245].mxu0 }
 0x994   : > { %v16426_v20 = vshrl.u32 %v16425_v15, 23  ;;  %v16429_v47 = vand.u32 8388607, %v16422_v61  ;;  %v16323_v51 = vshrl.u32 %v16322_v5, 23  ;;  %v16125_v11 = vpop.f32.mrb[246].mxu0 }
 0x995   : > { %v19293_v59 = vadd.s32 4294967169, %v16220_v50  ;;  %v16224_v26 = vor.u32 8388608, %v16223_v62  ;;  %v16126_v28 = vpop.f32.mrb[247].mxu0  ;;  %v16319_v14 = vand.u32 2147483647, %v23366_v53 }
 0x996   : > { %v19301_v49 = vadd.s32 4294967169, %v16426_v20  ;;  %v16430_v48 = vor.u32 8388608, %v16429_v47  ;;  %v19297_v56 = vadd.s32 4294967169, %v16323_v51  ;;  %vm23487_vm11 = vcmp.le.f32.partialorder %v16216_v29, 0.7853982 }
 0x997   : > { %v16226_v30 = vadd.s32 1, %v19293_v59  ;;  %v23386_v1 = vshll.u32 %v16224_v26, 8  ;;  %v23410_v59 = vpop.f32.mrb[245].mxu1 }
 0x998   : > { %v16432_v54 = vadd.s32 1, %v19301_v49  ;;  %v23388_v6 = vshll.u32 %v16430_v48, 8  ;;  %v23390_v27 = vadd.s32 1, %v19297_v56  ;;  %v16166_v0 = vpop.f32.mrb[246].mxu1 }
 0x999   : > { %vm16227_vm0 = vcmp.gt.s32.totalorder %v16226_v30, 0  ;;  %v16167_v28 = vpop.f32.mrb[247].mxu1 }
 0x99a   : > { %v16228_v18 = vsel %vm16227_vm0, %v16226_v30, 0  ;;  %vm16433_vm1 = vcmp.gt.s32.totalorder %v16432_v54, 0  ;;  %vm16330_vm14 = vcmp.gt.s32.totalorder %v23390_v27, 0  ;;  %vm16424_vm0 = vcmp.lt.s32.totalorder %v23364_v42, 0 }
 0x99b   : > { %v16229_v52 = vshrl.u32 %v16228_v18, 5  ;;  %v16230_v22 = vand.u32 31, %v16228_v18  ;;  %v16434_v45 = vsel %vm16433_vm1, %v16432_v54, 0 }
 0x99c   : > { %v23395_v38 = vshrl.u32 %v16434_v45, 5  ;;  %v16436_v16 = vand.u32 31, %v16434_v45 }
 0x99d   : > { %v16231_v8 = vsub.s32 32, %v16230_v22  ;;  %v16233_v10 = vshll.u32 %v20364_v23, %v16230_v22  ;;  %v16236_v60 = vshll.u32 %v20365_v37, %v16230_v22  ;;  %v16239_v7 = vshll.u32 %v20366_v39, %v16230_v22 }
 0x99e   : > { %v16242_v35 = vshll.u32 %v20367_v4, %v16230_v22  ;;  %v16245_v9 = vshll.u32 %v20368_v21, %v16230_v22  ;;  %vm16248_vm2 = vcmp.lt.s32.totalorder %v16229_v52, 1  ;;  %vm16249_vm3 = vcmp.lt.s32.totalorder %v16229_v52, 2 }
 0x99f   : > { %v16234_v31 = vshrl.u32 %v20365_v37, %v16231_v8  ;;  %v16237_v24 = vshrl.u32 %v20366_v39, %v16231_v8  ;;  %v16240_v12 = vshrl.u32 %v20367_v4, %v16231_v8  ;;  %v16232_v13 = vshrl.u32 %v20364_v23, %v16231_v8 }
 0x9a0   : > { %v16243_v34 = vshrl.u32 %v20368_v21, %v16231_v8  ;;  %v16246_v40 = vshrl.u32 %v20369_v33, %v16231_v8  ;;  %v16437_v58 = vsub.s32 32, %v16436_v16  ;;  %vm16250_vm12 = vcmp.lt.s32.totalorder %v16229_v52, 3 }
 0x9a1   : > { %v16235_v44 = vor.u32 %v16234_v31, %v16233_v10  ;;  %v16238_v25 = vor.u32 %v16237_v24, %v16236_v60  ;;  %v16241_v3 = vor.u32 %v16240_v12, %v16239_v7  ;;  %vm16251_vm13 = vcmp.lt.s32.totalorder %v16229_v52, 4 }
 0x9a2   : > { %v16244_v15 = vor.u32 %v16243_v34, %v16242_v35  ;;  %v16247_v50 = vor.u32 %v16246_v40, %v16245_v9  ;;  %v16439_v30 = vshll.u32 %v20364_v23, %v16436_v16  ;;  %v16440_v54 = vshrl.u32 %v20365_v37, %v16437_v58 }
 0x9a3   : > { %v16252_v62 = vsel %vm16248_vm2, %v16232_v13, %v16235_v44  ;;  %v16253_v20 = vsel %vm16251_vm13, %v16241_v3, 2102212464  ;;  %v16256_v47 = vsel %vm16248_vm2, %v16235_v44, %v16238_v25  ;;  %v16260_v5 = vsel %vm16248_vm2, %v16238_v25, %v16241_v3 }
 0x9a4   : > { %v16254_v49 = vsel %vm16250_vm12, %v16238_v25, %v16253_v20  ;;  %v16257_v51 = vsel %vm16251_vm13, %v16244_v15, 920167782  ;;  %v16261_v11 = vsel %vm16251_vm13, %v16247_v50, 1326507024  ;;  %v16442_v56 = vshll.u32 %v20365_v37, %v16436_v16 }
 0x9a5   : > { %v16258_v26 = vsel %vm16250_vm12, %v16241_v3, %v16257_v51  ;;  %v16262_v48 = vsel %vm16250_vm12, %v16244_v15, %v16261_v11  ;;  %v16255_v63 = vsel %vm16249_vm3, %v16252_v62, %v16254_v49  ;;  %v16443_v45 = vshrl.u32 %v20366_v39, %v16437_v58 }
 0x9a6   : > { %v16259_v18 = vsel %vm16249_vm3, %v16256_v47, %v16258_v26  ;;  %v16263_v22 = vsel %vm16249_vm3, %v16260_v5, %v16262_v48  ;;  %v16441_v35 = vor.u32 %v16440_v54, %v16439_v30  ;;  %v16445_v31 = vshll.u32 %v20366_v39, %v16436_v16 }
 0x9a7   : > { %v23421_v8 = vmul.u32.u64.low %v23386_v1, %v16263_v22  ;;  %v23422_v10 = vmul.u32.u64.high %v23386_v1, %v16263_v22, %v23421_v8  ;;  %v23425_v60 = vmul.u32.u64.low %v23386_v1, %v16259_v18  ;;  %v23426_v7 = vmul.u32.u64.high %v23386_v1, %v16259_v18, %v23425_v60 }
 0x9a8   : > { %v16444_v9 = vor.u32 %v16443_v45, %v16442_v56  ;;  %v16446_v24 = vshrl.u32 %v20367_v4, %v16437_v58  ;;  %v16438_v12 = vshrl.u32 %v20364_v23, %v16437_v58  ;;  %v16448_v52 = vshll.u32 %v20367_v4, %v16436_v16 }
 0x9a9   : > { %v16449_v13 = vshrl.u32 %v20368_v21, %v16437_v58  ;;  %v16452_v34 = vshrl.u32 %v20369_v33, %v16437_v58  ;;  %v16271_v40 = vmul.u32 %v23386_v1, %v16255_v63  ;;  %v16451_v25 = vshll.u32 %v20368_v21, %v16436_v16 }
 0x9aa   : > { %v16447_v44 = vor.u32 %v16446_v24, %v16445_v31  ;;  %vm16454_vm15 = vcmp.lt.s32.totalorder %v23395_v38, 1  ;;  %vm16273_vm4 = vc.u32 %v23422_v10, %v23425_v60  ;;  %v16274_v3 = vadd.s32 1, %v23426_v7 }
 0x9ab   : > { %v16450_v15 = vor.u32 %v16449_v13, %v16448_v52  ;;  %vm16455_vm5 = vcmp.lt.s32.totalorder %v23395_v38, 2  ;;  %v16453_v50 = vor.u32 %v16452_v34, %v16451_v25  ;;  %vm16456_vm6 = vcmp.lt.s32.totalorder %v23395_v38, 3 }
 0x9ac   : > { %vm16457_vm7 = vcmp.lt.s32.totalorder %v23395_v38, 4  ;;  %v16462_v58 = vsel %vm16454_vm15, %v16441_v35, %v16444_v9  ;;  %v16275_v1 = vsel %vm16273_vm4, %v16274_v3, %v23426_v7  ;;  %v16466_v16 = vsel %vm16454_vm15, %v16444_v9, %v16447_v44 }
 0x9ad   : > { %v16459_v62 = vsel %vm16457_vm7, %v16447_v44, 2102212464  ;;  %v16463_v20 = vsel %vm16457_vm7, %v16450_v15, 920167782  ;;  %v16276_v47 = vadd.s32 %v16275_v1, %v16271_v40  ;;  %v16458_v5 = vsel %vm16454_vm15, %v16438_v12, %v16441_v35 }
 0x9ae   : > { %v16464_v49 = vsel %vm16456_vm6, %v16447_v44, %v16463_v20  ;;  %v16467_v51 = vsel %vm16457_vm7, %v16453_v50, 1326507024  ;;  %v16460_v11 = vsel %vm16456_vm6, %v16444_v9, %v16459_v62  ;;  %v16331_v26 = vsel %vm16330_vm14, %v23390_v27, 0 }
 0x9af   : > { %v16465_v30 = vsel %vm16455_vm5, %v16462_v58, %v16464_v49  ;;  %v16468_v0 = vsel %vm16456_vm6, %v16450_v15, %v16467_v51  ;;  %v16277_v48 = vadd.s32 536870912, %v16276_v47  ;;  %v16326_v22 = vand.u32 8388607, %v16319_v14 }
 0x9b0   : > { %v16469_v54 = vsel %vm16455_vm5, %v16466_v16, %v16468_v0  ;;  %v23451_v56 = vmul.u32.u64.low %v23388_v6, %v16465_v30  ;;  %v23452_v28 = vmul.u32.u64.high %v23388_v6, %v16465_v30, %v23451_v56  ;;  %v16461_v8 = vsel %vm16455_vm5, %v16458_v5, %v16460_v11 }
 0x9b1   : > { %v23455_v63 = vmul.u32.u64.low %v23388_v6, %v16469_v54  ;;  %v23456_v18 = vmul.u32.u64.high %v23388_v6, %v16469_v54, %v23455_v63  ;;  %v16278_v45 = vshrl.u32 %v16277_v48, 30  ;;  %v16528_v27 = vand.u32 2139095040, %v23392_v57 }
 0x9b2   : > { %v16333_v7 = vand.u32 31, %v16331_v26  ;;  %v16480_v9 = vadd.s32 1, %v23452_v28  ;;  %v16477_v31 = vmul.u32 %v23388_v6, %v16461_v8  ;;  %v16327_v24 = vor.u32 8388608, %v16326_v22 }
 0x9b3   : > { %v16279_v35 = vshll.u32 %v16278_v45, 30  ;;  %vm16479_vm8 = vc.u32 %v23456_v18, %v23451_v56  ;;  %v16525_v12 = vand.u32 2147483647, %v23392_v57  ;;  %v23470_v34 = vshrl.u32 %v16331_v26, 5 }
 0x9b4   : > { %v16481_v13 = vsel %vm16479_vm8, %v16480_v9, %v23452_v28  ;;  %v16529_v38 = vshrl.u32 %v16528_v27, 23  ;;  %v16334_v44 = vsub.s32 32, %v16333_v7  ;;  %v16272_v6 = vadd.s32 %v23425_v60, %v23422_v10 }
 0x9b5   : > { %v23467_v52 = vsub.s32 %v16276_v47, %v16279_v35  ;;  %v16482_v40 = vadd.s32 %v16481_v13, %v16477_v31  ;;  %v23475_v15 = vshll.u32 %v16327_v24, 8  ;;  %vm16351_vm10 = vcmp.lt.s32.totalorder %v23470_v34, 1 }
 0x9b6   : > { %v23479_v58 = vadd.s32 4294967169, %v16529_v38  ;;  %v23483_v1 = vand.u32 8388607, %v16525_v12  ;;  %v16337_v60 = vshrl.u32 %v20365_v37, %v16334_v44  ;;  %v16340_v20 = vshrl.u32 %v20366_v39, %v16334_v44 }
 0x9b7   : > { %v16282_v25 = vsub.s32 0, %v23467_v52  ;;  %v16483_v3 = vadd.s32 536870912, %v16482_v40  ;;  %v16343_v16 = vshrl.u32 %v20367_v4, %v16334_v44  ;;  %v16302_v5 = vsub.s32 4, %v16278_v45 }
 0x9b8   : > { %v16345_v49 = vshll.u32 %v20367_v4, %v16333_v7  ;;  %v16346_v51 = vshrl.u32 %v20368_v21, %v16334_v44  ;;  %v16336_v30 = vshll.u32 %v20364_v23, %v16333_v7  ;;  %v16339_v29 = vshll.u32 %v20365_v37, %v16333_v7 }
 0x9b9   : > { %v19294_v50 = vmin.u32 %v16282_v25, %v23467_v52  ;;  %v16484_v10 = vshrl.u32 %v16483_v3, 30  ;;  %v16342_v0 = vshll.u32 %v20366_v39, %v16333_v7  ;;  %v16349_v54 = vshrl.u32 %v20369_v33, %v16334_v44 }
 0x9ba   : > { %v16347_v48 = vor.u32 %v16346_v51, %v16345_v49  ;;  %vm16354_vm1 = vcmp.lt.s32.totalorder %v23470_v34, 4  ;;  %v16338_v63 = vor.u32 %v16337_v60, %v16336_v30  ;;  %v16341_v22 = vor.u32 %v16340_v20, %v16339_v29 }
 0x9bb   : > { %v16284_v47 = vclz %v19294_v50  ;;  %v16485_v11 = vshll.u32 %v16484_v10, 30  ;;  %v16344_v8 = vor.u32 %v16343_v16, %v16342_v0  ;;  %v16348_v27 = vshll.u32 %v20368_v21, %v16333_v7 }
 0x9bc   : > { %vm16352_vm3 = vcmp.lt.s32.totalorder %v23470_v34, 2  ;;  %v16360_v35 = vsel %vm16354_vm1, %v16347_v48, 920167782  ;;  %v16303_v31 = vsel %vm16218_vm9, %v16302_v5, %v16278_v45  ;;  %vm16353_vm12 = vcmp.lt.s32.totalorder %v23470_v34, 3 }
 0x9bd   : > { %v19295_v26 = vadd.s32 4294967294, %v16284_v47  ;;  %v23502_v28 = vsub.s32 %v16482_v40, %v16485_v11  ;;  %v16478_v40 = vadd.s32 %v23451_v56, %v23456_v18  ;;  %v16350_v25 = vor.u32 %v16349_v54, %v16348_v27 }
 0x9be   : > { %vm23515_vm13 = vcmp.le.f32.partialorder %v16422_v61, 0.7853982  ;;  %v16508_v50 = vsub.s32 4, %v16484_v10  ;;  %v16359_v45 = vsel %vm16351_vm10, %v16338_v63, %v16341_v22  ;;  %v16361_v60 = vsel %vm16353_vm12, %v16344_v8, %v16360_v35 }
 0x9bf   : > { %vm19296_vm2 = vcmp.lt.s32.totalorder %v19295_v26, 0  ;;  %v16488_v24 = vsub.s32 0, %v23502_v28  ;;  %v16305_v18 = vsel %vm23487_vm11, 0, %v16303_v31  ;;  %v16335_v47 = vshrl.u32 %v20364_v23, %v16334_v44 }
 0x9c0   : > { %v16287_v9 = vsel %vm19296_vm2, 0, %v19295_v26  ;;  %v16356_v5 = vsel %vm16354_vm1, %v16344_v8, 2102212464  ;;  %v16363_v49 = vsel %vm16351_vm10, %v16341_v22, %v16344_v8  ;;  %v16362_v30 = vsel %vm16352_vm3, %v16359_v45, %v16361_v60 }
 0x9c1   : > { %v16288_v13 = vsub.s32 32, %v16287_v9  ;;  %v16292_v38 = vsub.s32 4294967266, %v16287_v9  ;;  %v19302_v3 = vmin.u32 %v16488_v24, %v23502_v28  ;;  %v16289_v20 = vshll.u32 %v23467_v52, %v16287_v9 }
 0x9c2   : > { %v16364_v52 = vsel %vm16354_vm1, %v16350_v25, 1326507024  ;;  %v16509_v0 = vsel %vm16424_vm0, %v16508_v50, %v16484_v10  ;;  %v16355_v44 = vsel %vm16351_vm10, %v16335_v47, %v16338_v63  ;;  %v16357_v8 = vsel %vm16353_vm12, %v16341_v22, %v16356_v5 }
 0x9c3   : > { %v16290_v16 = vshrl.u32 %v16272_v6, %v16288_v13  ;;  %v16293_v56 = vadd.s32 127, %v16292_v38  ;;  %v16490_v61 = vclz %v19302_v3  ;;  %v17149_v6 = vadd.s32 3, %v16305_v18 }
 0x9c4   : > { %v16365_v27 = vsel %vm16353_vm12, %v16347_v48, %v16364_v52  ;;  %v23547_v9 = vmul.u32.u64.low %v23475_v15, %v16362_v30  ;;  %v23548_v31 = vmul.u32.u64.high %v23475_v15, %v16362_v30, %v23547_v9  ;;  %v16358_v22 = vsel %vm16352_vm3, %v16355_v44, %v16357_v8 }
 0x9c5   : > { %v16291_v51 = vor.u32 %v16290_v16, %v16289_v20  ;;  %v16294_v11 = vshll.u32 %v16293_v56, 23  ;;  %v19303_v29 = vadd.s32 4294967294, %v16490_v61  ;;  %v16366_v35 = vsel %vm16352_vm3, %v16363_v49, %v16365_v27 }
 0x9c6   : > { %v23551_v63 = vmul.u32.u64.low %v23475_v15, %v16366_v35  ;;  %v23552_v13 = vmul.u32.u64.high %v23475_v15, %v16366_v35, %v23551_v63  ;;  %v16535_v48 = vadd.s32 1, %v23479_v58  ;;  %v16511_v45 = vsel %vm23515_vm13, 0, %v16509_v0 }
 0x9c7   : > { %v16295_v26 = vor.u32 4788187, %v16294_v11  ;;  %v16298_v54 = vcvt.s32.f32 %v16291_v51  ;;  %vm19304_vm14 = vcmp.lt.s32.totalorder %v19303_v29, 0  ;;  %v16173_v60 = vadd.f32 %v23372_v43, %v23346_v41 }
 0x9c8   : > { %v16493_v24 = vsel %vm19304_vm14, 0, %v19303_v29  ;;  %v16377_v56 = vadd.s32 1, %v23548_v31  ;;  %vm16536_vm15 = vcmp.gt.s32.totalorder %v16535_v48, 0  ;;  %v16374_v34 = vmul.u32 %v23475_v15, %v16358_v22 }
 0x9c9   : > { %v16296_v10 = vand.u32 2147483647, %v16295_v26  ;;  %v16494_v38 = vsub.s32 32, %v16493_v24  ;;  %v16498_v25 = vsub.s32 4294967266, %v16493_v24  ;;  %v16495_v50 = vshll.u32 %v23502_v28, %v16493_v24 }
 0x9ca   : > { %vm16376_vm4 = vc.u32 %v23552_v13, %v23547_v9  ;;  %v16537_v58 = vsel %vm16536_vm15, %v16535_v48, 0  ;;  %v23568_v51 = vand.u32 3, %v16305_v18  ;;  %v17357_v15 = vadd.s32 3, %v16511_v45 }
 0x9cb   : > { %v16299_v3 = vmul.f32 %v16298_v54, %v16296_v10  ;;  %v16496_v20 = vshrl.u32 %v16478_v40, %v16494_v38  ;;  %v16499_v16 = vadd.s32 127, %v16498_v25  ;;  %v16378_v28 = vsel %vm16376_vm4, %v16377_v56, %v23548_v31 }
 0x9cc   : > { %v16379_v41 = vadd.s32 %v16378_v28, %v16374_v34  ;;  %v16539_v43 = vand.u32 31, %v16537_v58  ;;  %v16533_v30 = vor.u32 8388608, %v23483_v1  ;;  %v23574_v52 = vand.u32 3, %v17149_v6 }
 0x9cd   : > { %v16300_v61 = vxor.u32 2147483648, %v16299_v3  ;;  %v16497_v47 = vor.u32 %v16496_v20, %v16495_v50  ;;  %v16500_v5 = vshll.u32 %v16499_v16, 23  ;;  %v23576_v0 = vshrl.u32 %v16537_v58, 5 }
 0x9ce   : > { %v16380_v29 = vadd.s32 536870912, %v16379_v41  ;;  %v16540_v26 = vsub.s32 32, %v16539_v43  ;;  %vm16321_vm5 = vcmp.lt.s32.totalorder %v23366_v53, 0  ;;  %v23579_v62 = vand.u32 3, %v16511_v45 }
 0x9cf   : > { %v16301_v49 = vsel %vm16218_vm9, %v16300_v61, %v16299_v3  ;;  %v16501_v11 = vor.u32 4788187, %v16500_v5  ;;  %v16504_v18 = vcvt.s32.f32 %v16497_v47  ;;  %v23581_v27 = vand.u32 3, %v17357_v15 }
 0x9d0   : > { %v16304_v40 = vsel %vm23487_vm11, %v23362_v17, %v16301_v49  ;;  %v16381_v54 = vshrl.u32 %v16380_v29, 30  ;;  %v23583_v35 = vshll.u32 %v16533_v30, 8  ;;  %vm16314_vm6 = vcmp.eq.s32.totalorder %v23568_v51, 2 }
 0x9d1   : > { %19882 = vcosq.f32 %v16304_v40  ;;  %v16502_v44 = vand.u32 2147483647, %v16501_v11  ;;  %vm17155_vm7 = vcmp.eq.s32.totalorder %v23574_v52, 2  ;;  %v23588_v1 = vadd.s32 %v23547_v9, %v23552_v13 }
 0x9d2   : > { %19884 = vsinq.f32 %v16304_v40  ;;  %v16382_v6 = vshll.u32 %v16381_v54, 30  ;;  %vm16557_vm8 = vcmp.lt.s32.totalorder %v23576_v0, 1  ;;  %v23592_v31 = vadd.f32 %v23354_v36, %v16173_v60 }
 0x9d3   : > { %v16505_v8 = vmul.f32 %v16504_v18, %v16502_v44  ;;  %vm16311_vm9 = vcmp.eq.s32.totalorder %v23568_v51, 0  ;;  %vm17152_vm10 = vcmp.eq.s32.totalorder %v23574_v52, 0  ;;  %v16543_v24 = vshrl.u32 %v20365_v37, %v16540_v26 }
 0x9d4   : > { %v16546_v63 = vshrl.u32 %v20366_v39, %v16540_v26  ;;  %v16549_v38 = vshrl.u32 %v20367_v4, %v16540_v26  ;;  %vm16310_vm11 = vcmp.lt.s32.totalorder %v23568_v51, 2  ;;  %vm17151_vm1 = vcmp.lt.s32.totalorder %v23574_v52, 2 }
 0x9d5   : > { %v16506_v10 = vxor.u32 2147483648, %v16505_v8  ;;  %v23601_v9 = vsub.s32 %v16379_v41, %v16382_v6  ;;  %v16542_v13 = vshll.u32 %v20364_v23, %v16539_v43  ;;  %v16545_v25 = vshll.u32 %v20365_v37, %v16539_v43 }
 0x9d6   : > { %v16552_v22 = vshrl.u32 %v20368_v21, %v16540_v26  ;;  %vm16308_vm2 = vweird.f32 %v23362_v17  ;;  %v16405_v3 = vsub.s32 4, %v16381_v54  ;;  %v16541_v50 = vshrl.u32 %v20364_v23, %v16540_v26 }
 0x9d7   : > { %v16507_v48 = vsel %vm16424_vm0, %v16506_v10, %v16505_v8  ;;  %v16548_v45 = vshll.u32 %v20366_v39, %v16539_v43  ;;  %v16385_v20 = vsub.s32 0, %v23601_v9  ;;  %v16551_v16 = vshll.u32 %v20367_v4, %v16539_v43 }
 0x9d8   : > { %v16510_v60 = vsel %vm23515_vm13, %v23364_v42, %v16507_v48  ;;  %v16555_v56 = vshrl.u32 %v20369_v33, %v16540_v26  ;;  %v16544_v61 = vor.u32 %v16543_v24, %v16542_v13  ;;  %v16547_v34 = vor.u32 %v16546_v63, %v16545_v25  ;;  %v16208_v26 = vld [vmem:[%s20769_s29] sm:$0xff] }
 0x9d9   : > { %19886 = vcosq.f32 %v16510_v60  ;;  %v16550_v58 = vor.u32 %v16549_v38, %v16548_v45  ;;  %v19298_v5 = vmin.u32 %v16385_v20, %v23601_v9  ;;  %v16553_v28 = vor.u32 %v16552_v22, %v16551_v16 }
 0x9da   : > { %19888 = vsinq.f32 %v16510_v60  ;;  %v16554_v49 = vshll.u32 %v20368_v21, %v16539_v43  ;;  %v23621_v40 = vsel %vm16321_vm5, %v16405_v3, %v16381_v54  ;;  %vm16558_vm0 = vcmp.lt.s32.totalorder %v23576_v0, 2 }
 0x9db   : > { %v19883_v47 = vpop.eup %19882  ;;  %vm16559_vm3 = vcmp.lt.s32.totalorder %v23576_v0, 3  ;;  %v16387_v15 = vclz %v19298_v5  ;;  %vm16560_vm12 = vcmp.lt.s32.totalorder %v23576_v0, 4  ;;  %vm16520_vm13 = vcmp.eq.s32.totalorder %v23579_v62, 2 }
 0x9dc   : > { %v19885_v7 = vpop.eup %19884  ;;  %v16315_v41 = vxor.u32 2147483648, %v19883_v47  ;;  %v16556_v30 = vor.u32 %v16555_v56, %v16554_v49  ;;  %vm17363_vm14 = vcmp.eq.s32.totalorder %v23581_v27, 2  ;;  %v16561_v44 = vsel %vm16557_vm8, %v16541_v50, %v16544_v61 }
 0x9dd   : > { %v16312_v11 = vxor.u32 2147483648, %v19885_v7  ;;  %v16562_v18 = vsel %vm16560_vm12, %v16550_v58, 2102212464  ;;  %vm16517_vm15 = vcmp.eq.s32.totalorder %v23579_v62, 0  ;;  %vm17360_vm4 = vcmp.eq.s32.totalorder %v23581_v27, 0 }
 0x9de   : > { %v16316_v29 = vsel %vm16314_vm6, %v16315_v41, %v19885_v7  ;;  %v17157_v43 = vsel %vm17155_vm7, %v16315_v41, %v19885_v7  ;;  %v19299_v6 = vadd.s32 4294967294, %v16387_v15  ;;  %v16565_v10 = vsel %vm16557_vm8, %v16544_v61, %v16547_v34 }
 0x9df   : > { %v16313_v54 = vsel %vm16311_vm9, %v19883_v47, %v16312_v11  ;;  %v17154_v8 = vsel %vm17152_vm10, %v19883_v47, %v16312_v11  ;;  %vm16516_vm6 = vcmp.lt.s32.totalorder %v23579_v62, 2  ;;  %vm17359_vm7 = vcmp.lt.s32.totalorder %v23581_v27, 2  ;;  %v16196_v11 = vld [vmem:[%s20777_s17 + $0x20] sm:$0xff] }
 0x9e0   : > { %v16317_v24 = vsel %vm16310_vm11, %v16313_v54, %v16316_v29  ;;  %v17158_v63 = vsel %vm17151_vm1, %v17154_v8, %v17157_v43  ;;  %v16566_v38 = vsel %vm16560_vm12, %v16553_v28, 920167782  ;;  %v16569_v13 = vsel %vm16557_vm8, %v16547_v34, %v16550_v58 }
 0x9e1   : > { %v16318_v25 = vsel %vm16308_vm2, nan, %v16317_v24  ;;  %v17159_v51 = vsel %vm16308_vm2, nan, %v17158_v63  ;;  %vm16514_vm9 = vweird.f32 %v23364_v42  ;;  %vm19300_vm10 = vcmp.lt.s32.totalorder %v19299_v6, 0 }
 0x9e2   : > { %v16567_v52 = vsel %vm16559_vm3, %v16550_v58, %v16566_v38  ;;  %v17040_v22 = vmul.f32 %v16318_v25, %v16208_v26  ;;  %v17888_v48 = vmul.f32 %v17159_v51, %v16208_v26  ;;  %v16390_v3 = vsel %vm19300_vm10, 0, %v19299_v6  ;;  %v16210_v26 = vld [vmem:[%s20769_s29 + $0x10] sm:$0xff] }
 0x9e3   : > { %v16568_v50 = vsel %vm16558_vm0, %v16565_v10, %v16567_v52  ;;  %v16391_v45 = vsub.s32 32, %v16390_v3  ;;  %v16395_v60 = vsub.s32 4294967266, %v16390_v3  ;;  %v16563_v17 = vsel %vm16559_vm3, %v16547_v34, %v16562_v18  ;;  %v19887_v16 = vpop.eup %19886 }
 0x9e4   : > { %v16570_v20 = vsel %vm16560_vm12, %v16556_v30, 1326507024  ;;  %17048 = vst [vmem:[%s23669_s6] sm:$0xff] %v17040_v22  ;;  %17896 = vst [vmem:[%s23673_s19] sm:$0xff] %v17888_v48  ;;  %v16392_v56 = vshll.u32 %v23601_v9, %v16390_v3  ;;  %v23680_v34 = vmul.u32.u64.low %v23583_v35, %v16568_v50  ;;  %v23681_v58 = vmul.u32.u64.high %v23583_v35, %v16568_v50, %v23680_v34  ;;  %v19889_v47 = vpop.eup %19888 }
 0x9e5   : > { %v16571_v61 = vsel %vm16559_vm3, %v16553_v28, %v16570_v20  ;;  %v16521_v5 = vxor.u32 2147483648, %v19887_v16  ;;  %v16393_v49 = vshrl.u32 %v23588_v1, %v16391_v45  ;;  %v16396_v7 = vadd.s32 127, %v16395_v60  ;;  %v16198_v60 = vld [vmem:[%s20777_s17 + $0x30] sm:$0xff] }
 0x9e6   : > { %v16572_v41 = vsel %vm16558_vm0, %v16569_v13, %v16571_v61  ;;  %v16518_v15 = vxor.u32 2147483648, %v19889_v47  ;;  %v16564_v9 = vsel %vm16558_vm0, %v16561_v44, %v16563_v17  ;;  %v16583_v44 = vadd.s32 1, %v23681_v58 }
 0x9e7   : > { %v23691_v28 = vmul.u32.u64.low %v23583_v35, %v16572_v41  ;;  %v23692_v30 = vmul.u32.u64.high %v23583_v35, %v16572_v41, %v23691_v28  ;;  %v16522_v29 = vsel %vm16520_vm13, %v16521_v5, %v19889_v47  ;;  %v17365_v43 = vsel %vm17363_vm14, %v16521_v5, %v19889_v47 }
 0x9e8   : > { %v16394_v1 = vor.u32 %v16393_v49, %v16392_v56  ;;  %v16397_v18 = vshll.u32 %v16396_v7, 23  ;;  %v16519_v54 = vsel %vm16517_vm15, %v19887_v16, %v16518_v15  ;;  %v17362_v0 = vsel %vm17360_vm4, %v19887_v16, %v16518_v15 }
 0x9e9   : > { %v23705_v8 = vadd.f32 %v16196_v11, %v23592_v31  ;;  %v16523_v6 = vsel %vm16516_vm6, %v16519_v54, %v16522_v29  ;;  %v17366_v10 = vsel %vm17359_vm7, %v17362_v0, %v17365_v43  ;;  %v16580_v63 = vmul.u32 %v23583_v35, %v16564_v9 }
 0x9ea   : > { %v16398_v24 = vor.u32 4788187, %v16397_v18  ;;  %v16524_v38 = vsel %vm16514_vm9, nan, %v16523_v6  ;;  %v17367_v13 = vsel %vm16514_vm9, nan, %v17366_v10  ;;  %v16401_v25 = vcvt.s32.f32 %v16394_v1 }
 0x9eb   : > { %vm16582_vm8 = vc.u32 %v23692_v30, %v23680_v34  ;;  %v17042_v62 = vmul.f32 %v16524_v38, %v16210_v26  ;;  %v17890_v31 = vmul.f32 %v17367_v13, %v16210_v26  ;;  %vm23721_vm11 = vcmp.le.f32.partialorder %v16319_v14, 0.7853982 }
 0x9ec   : > { %v16399_v51 = vand.u32 2147483647, %v16398_v24  ;;  %v16584_v27 = vsel %vm16582_vm8, %v16583_v44, %v23681_v58  ;;  %v16631_v42 = vand.u32 2139095040, %v23705_v8  ;;  %v16408_v48 = vsel %vm23721_vm11, 0, %v23621_v40 }
 0x9ed   : > { %v16585_v52 = vadd.s32 %v16584_v27, %v16580_v63  ;;  %17050 = vst [vmem:[%s23669_s6 + $0x10] sm:$0xff] %v17042_v62  ;;  %17898 = vst [vmem:[%s23673_s19 + $0x10] sm:$0xff] %v17890_v31  ;;  %v16628_v3 = vand.u32 2147483647, %v23705_v8  ;;  %v16175_v50 = vadd.f32 %v23379_v55, %v23348_v46  ;;  %v23737_v17 = vadd.f32 %v23381_v2, %v23350_v19 }
 0x9ee   : > { %v16402_v22 = vmul.f32 %v16401_v25, %v16399_v51  ;;  %v16632_v14 = vshrl.u32 %v16631_v42, 23  ;;  %v23741_v20 = vadd.f32 %v23410_v59, %v23352_v32  ;;  %v17253_v40 = vadd.s32 3, %v16408_v48 }
 0x9ef   : > { %v16586_v45 = vadd.s32 536870912, %v16585_v52  ;;  %v16190_v56 = vadd.f32 %v23354_v36, %v16175_v50  ;;  %v16635_v55 = vand.u32 8388607, %v16628_v3  ;;  %v16412_v59 = vand.u32 3, %v16408_v48 }
 0x9f0   : > { %v16403_v16 = vxor.u32 2147483648, %v16402_v22  ;;  %v19309_v58 = vadd.s32 4294967169, %v16632_v14  ;;  %v17254_v49 = vand.u32 3, %v17253_v40  ;;  %v16581_v43 = vadd.s32 %v23680_v34, %v23692_v30  ;;  %v16209_v40 = vld [vmem:[%s20769_s29 + $0x8] sm:$0xff] }
 0x9f1   : > { %v23744_v61 = vshrl.u32 %v16586_v45, 30  ;;  %v23750_v47 = vadd.f32 %v16198_v60, %v16190_v56  ;;  %v16636_v41 = vor.u32 8388608, %v16635_v55  ;;  %vm16414_vm1 = vcmp.eq.s32.totalorder %v16412_v59, 0 }
 0x9f2   : > { %v16404_v46 = vsel %vm16321_vm5, %v16403_v16, %v16402_v22  ;;  %v16638_v2 = vadd.s32 1, %v19309_v58  ;;  %vm16417_vm2 = vcmp.eq.s32.totalorder %v16412_v59, 2  ;;  %vm17256_vm0 = vcmp.eq.s32.totalorder %v17254_v49, 0 }
 0x9f3   : > { %v16407_v19 = vsel %vm23721_vm11, %v23366_v53, %v16404_v46  ;;  %v16588_v32 = vshll.u32 %v23744_v61, 30  ;;  %v16837_v5 = vand.u32 2139095040, %v23750_v47  ;;  %vm16413_vm3 = vcmp.lt.s32.totalorder %v16412_v59, 2 }
 0x9f4   : > { %19890 = vcosq.f32 %v16407_v19  ;;  %vm16639_vm5 = vcmp.gt.s32.totalorder %v16638_v2, 0  ;;  %vm17255_vm12 = vcmp.lt.s32.totalorder %v17254_v49, 2  ;;  %vm17259_vm13 = vcmp.eq.s32.totalorder %v17254_v49, 2 }
 0x9f5   : > { %19892 = vsinq.f32 %v16407_v19  ;;  %v23757_v7 = vsub.s32 %v16585_v52, %v16588_v32  ;;  %v16640_v11 = vsel %vm16639_vm5, %v16638_v2, 0  ;;  %v16838_v9 = vshrl.u32 %v16837_v5, 23 }
 0x9f6   : > { %v16642_v28 = vand.u32 31, %v16640_v11  ;;  %v23763_v18 = vshll.u32 %v16636_v41, 8  ;;  %vm16411_vm14 = vweird.f32 %v23366_v53  ;;  %v16611_v54 = vsub.s32 4, %v23744_v61 }
 0x9f7   : > { %v16591_v15 = vsub.s32 0, %v23757_v7  ;;  %v23767_v0 = vshrl.u32 %v16640_v11, 5  ;;  %v23769_v44 = vadd.s32 4294967169, %v16838_v9  ;;  %vm16527_vm15 = vcmp.lt.s32.totalorder %v23392_v57, 0 }
 0x9f8   : > { %v16643_v1 = vsub.s32 32, %v16642_v28  ;;  %v16645_v6 = vshll.u32 %v20364_v23, %v16642_v28  ;;  %v16648_v10 = vshll.u32 %v20365_v37, %v16642_v28  ;;  %v16651_v24 = vshll.u32 %v20366_v39, %v16642_v28 }
 0x9f9   : > { %v19306_v29 = vmin.u32 %v16591_v15, %v23757_v7  ;;  %v16654_v34 = vshll.u32 %v20367_v4, %v16642_v28  ;;  %v16657_v51 = vshll.u32 %v20368_v21, %v16642_v28  ;;  %vm16660_vm6 = vcmp.lt.s32.totalorder %v23767_v0, 1 }
 0x9fa   : > { %v16646_v63 = vshrl.u32 %v20365_v37, %v16643_v1  ;;  %v16649_v38 = vshrl.u32 %v20366_v39, %v16643_v1  ;;  %v16652_v13 = vshrl.u32 %v20367_v4, %v16643_v1  ;;  %v16644_v62 = vshrl.u32 %v20364_v23, %v16643_v1 }
 0x9fb   : > { %v16593_v26 = vclz %v19306_v29  ;;  %v16655_v31 = vshrl.u32 %v20368_v21, %v16643_v1  ;;  %v16658_v27 = vshrl.u32 %v20369_v33, %v16643_v1  ;;  %vm16662_vm7 = vcmp.lt.s32.totalorder %v23767_v0, 3 }
 0x9fc   : > { %v16647_v42 = vor.u32 %v16646_v63, %v16645_v6  ;;  %v16650_v50 = vor.u32 %v16649_v38, %v16648_v10  ;;  %v16653_v45 = vor.u32 %v16652_v13, %v16651_v24  ;;  %vm16663_vm9 = vcmp.lt.s32.totalorder %v23767_v0, 4 }
 0x9fd   : > { %v19307_v30 = vadd.s32 4294967294, %v16593_v26  ;;  %v16656_v56 = vor.u32 %v16655_v31, %v16654_v34  ;;  %v16659_v41 = vor.u32 %v16658_v27, %v16657_v51  ;;  %v16612_v53 = vsel %vm16527_vm15, %v16611_v54, %v23744_v61 }
 0x9fe   : > { %v19891_v25 = vpop.eup %19890  ;;  %v16665_v49 = vsel %vm16663_vm9, %v16653_v45, 2102212464  ;;  %vm16661_vm10 = vcmp.lt.s32.totalorder %v23767_v0, 2  ;;  %v16672_v6 = vsel %vm16660_vm6, %v16650_v50, %v16653_v45  ;;  %v16664_v24 = vsel %vm16660_vm6, %v16644_v62, %v16647_v42 }
 0x9ff   : > { %v19893_v35 = vpop.eup %19892  ;;  %v16418_v52 = vxor.u32 2147483648, %v19891_v25  ;;  %vm19308_vm4 = vcmp.lt.s32.totalorder %v19307_v30, 0  ;;  %v16669_v1 = vsel %vm16663_vm9, %v16656_v56, 920167782  ;;  %v16666_v63 = vsel %vm16662_vm7, %v16650_v50, %v16665_v49 }
 0xa00   : > { %v16415_v22 = vxor.u32 2147483648, %v19893_v35  ;;  %v16596_v48 = vsel %vm19308_vm4, 0, %v19307_v30  ;;  %v16670_v26 = vsel %vm16662_vm7, %v16653_v45, %v16669_v1  ;;  %v16673_v30 = vsel %vm16663_vm9, %v16659_v41, 1326507024 }
 0xa01   : > { %v16419_v14 = vsel %vm16417_vm2, %v16418_v52, %v19893_v35  ;;  %v17261_v60 = vsel %vm17259_vm13, %v16418_v52, %v19893_v35  ;;  %v16597_v16 = vsub.s32 32, %v16596_v48  ;;  %v16598_v55 = vshll.u32 %v23757_v7, %v16596_v48 }
 0xa02   : > { %v16416_v58 = vsel %vm16414_vm1, %v19891_v25, %v16415_v22  ;;  %v17258_v46 = vsel %vm17256_vm0, %v19891_v25, %v16415_v22  ;;  %v16601_v19 = vsub.s32 4294967266, %v16596_v48  ;;  %v16674_v61 = vsel %vm16662_vm7, %v16656_v56, %v16673_v30 }
 0xa03   : > { %v16420_v32 = vsel %vm16413_vm3, %v16416_v58, %v16419_v14  ;;  %v17262_v2 = vsel %vm17255_vm12, %v17258_v46, %v17261_v60  ;;  %v16599_v5 = vshrl.u32 %v16581_v43, %v16597_v16  ;;  %v16668_v43 = vsel %vm16660_vm6, %v16647_v42, %v16650_v50 }
 0xa04   : > { %v16421_v11 = vsel %vm16411_vm14, nan, %v16420_v32  ;;  %v17263_v15 = vsel %vm16411_vm14, nan, %v17262_v2  ;;  %v16602_v9 = vadd.s32 127, %v16601_v19  ;;  %v16671_v34 = vsel %vm16661_vm10, %v16668_v43, %v16670_v26 }
 0xa05   : > { %v17041_v28 = vmul.f32 %v16421_v11, %v16209_v40  ;;  %v17889_v7 = vmul.f32 %v17263_v15, %v16209_v40  ;;  %v16600_v29 = vor.u32 %v16599_v5, %v16598_v55  ;;  %v16675_v62 = vsel %vm16661_vm10, %v16672_v6, %v16674_v61 }
 0xa06   : > { %v16603_v59 = vshll.u32 %v16602_v9, 23  ;;  %v23819_v54 = vmul.u32.u64.low %v23763_v18, %v16671_v34  ;;  %v23820_v38 = vmul.u32.u64.high %v23763_v18, %v16671_v34, %v23819_v54  ;;  %v16844_v31 = vadd.s32 1, %v23769_v44  ;;  %v16197_v9 = vld [vmem:[%s20777_s17 + $0x28] sm:$0xff] }
 0xa07   : > { %17049 = vst [vmem:[%s23669_s6 + $0x8] sm:$0xff] %v17041_v28  ;;  %17897 = vst [vmem:[%s23673_s19 + $0x8] sm:$0xff] %v17889_v7  ;;  %v16607_v25 = vcvt.s32.f32 %v16600_v29  ;;  %vm23828_vm8 = vcmp.le.f32.partialorder %v16525_v12, 0.7853982  ;;  %v23833_v27 = vmul.u32.u64.low %v23763_v18, %v16675_v62  ;;  %v23834_v35 = vmul.u32.u64.high %v23763_v18, %v16675_v62, %v23833_v27 }
 0xa08   : > { %v16604_v10 = vor.u32 4788187, %v16603_v59  ;;  %v16834_v52 = vand.u32 2147483647, %v23750_v47  ;;  %v16614_v22 = vsel %vm23828_vm8, 0, %v16612_v53  ;;  %v16667_v48 = vsel %vm16661_vm10, %v16664_v24, %v16666_v63 }
 0xa09   : > { %vm16845_vm11 = vcmp.gt.s32.totalorder %v16844_v31, 0  ;;  %v16686_v44 = vadd.s32 1, %v23820_v38  ;;  %v16189_v14 = vadd.f32 %v23354_v36, %v23737_v17  ;;  %v23844_v60 = vand.u32 3, %v16614_v22 }
 0xa0a   : > { %v16605_v13 = vand.u32 2147483647, %v16604_v10  ;;  %v16846_v12 = vsel %vm16845_vm11, %v16844_v31, 0  ;;  %v17461_v16 = vadd.s32 3, %v16614_v22  ;;  %v16683_v56 = vmul.u32 %v23763_v18, %v16667_v48 }
 0xa0b   : > { %v16848_v45 = vand.u32 31, %v16846_v12  ;;  %vm16685_vm5 = vc.u32 %v23834_v35, %v23819_v54  ;;  %v16841_v58 = vand.u32 8388607, %v16834_v52  ;;  %v23857_v19 = vshrl.u32 %v16846_v12, 5 }
 0xa0c   : > { %v16608_v42 = vmul.f32 %v16607_v25, %v16605_v13  ;;  %v16687_v40 = vsel %vm16685_vm5, %v16686_v44, %v23820_v38  ;;  %v23870_v10 = vadd.f32 %v16197_v9, %v16189_v14  ;;  %vm16620_vm1 = vcmp.eq.s32.totalorder %v23844_v60, 0 }
 0xa0d   : > { %v16849_v46 = vsub.s32 32, %v16848_v45  ;;  %v16688_v55 = vadd.s32 %v16687_v40, %v16683_v56  ;;  %v16851_v18 = vshll.u32 %v20364_v23, %v16848_v45  ;;  %v16854_v2 = vshll.u32 %v20365_v37, %v16848_v45 }
 0xa0e   : > { %v16609_v50 = vxor.u32 2147483648, %v16608_v42  ;;  %v16857_v11 = vshll.u32 %v20366_v39, %v16848_v45  ;;  %v16860_v29 = vshll.u32 %v20367_v4, %v16848_v45  ;;  %v16863_v1 = vshll.u32 %v20368_v21, %v16848_v45 }
 0xa0f   : > { %v16852_v32 = vshrl.u32 %v20365_v37, %v16849_v46  ;;  %v16855_v5 = vshrl.u32 %v20366_v39, %v16849_v46  ;;  %v16689_v41 = vadd.s32 536870912, %v16688_v55  ;;  %v16858_v15 = vshrl.u32 %v20367_v4, %v16849_v46 }
 0xa10   : > { %v16610_v0 = vsel %vm16527_vm15, %v16609_v50, %v16608_v42  ;;  %v16861_v59 = vshrl.u32 %v20368_v21, %v16849_v46  ;;  %v16864_v53 = vshrl.u32 %v20369_v33, %v16849_v46  ;;  %v16842_v26 = vor.u32 8388608, %v16841_v58 }
 0xa11   : > { %v16613_v17 = vsel %vm23828_vm8, %v23392_v57, %v16610_v0  ;;  %v16853_v28 = vor.u32 %v16852_v32, %v16851_v18  ;;  %v16856_v7 = vor.u32 %v16855_v5, %v16854_v2  ;;  %v16690_v49 = vshrl.u32 %v16689_v41, 30  ;;  %v16211_v2 = vld [vmem:[%s20769_s29 + $0x18] sm:$0xff] }
 0xa12   : > { %19894 = vcosq.f32 %v16613_v17  ;;  %v16859_v43 = vor.u32 %v16858_v15, %v16857_v11  ;;  %v16862_v6 = vor.u32 %v16861_v59, %v16860_v29  ;;  %vm16630_vm2 = vcmp.lt.s32.totalorder %v23705_v8, 0 }
 0xa13   : > { %19896 = vsinq.f32 %v16613_v17  ;;  %v16691_v24 = vshll.u32 %v16690_v49, 30  ;;  %v16865_v34 = vor.u32 %v16864_v53, %v16863_v1  ;;  %vm16866_vm0 = vcmp.lt.s32.totalorder %v23857_v19, 1 }
 0xa14   : > { %vm16869_vm3 = vcmp.lt.s32.totalorder %v23857_v19, 4  ;;  %vm16619_vm12 = vcmp.lt.s32.totalorder %v23844_v60, 2  ;;  %vm16623_vm13 = vcmp.eq.s32.totalorder %v23844_v60, 2  ;;  %vm16868_vm14 = vcmp.lt.s32.totalorder %v23857_v19, 3 }
 0xa15   : > { %v16874_v30 = vsel %vm16866_vm0, %v16853_v28, %v16856_v7  ;;  %v16875_v63 = vsel %vm16869_vm3, %v16862_v6, 920167782  ;;  %vm16617_vm15 = vweird.f32 %v23392_v57  ;;  %v17462_v61 = vand.u32 3, %v17461_v16 }
 0xa16   : > { %v23884_v38 = vsub.s32 %v16688_v55, %v16691_v24  ;;  %vm16867_vm4 = vcmp.lt.s32.totalorder %v23857_v19, 2  ;;  %v16876_v13 = vsel %vm16868_vm14, %v16859_v43, %v16875_v63  ;;  %v16879_v62 = vsel %vm16869_vm3, %v16865_v34, 1326507024 }
 0xa17   : > { %v16877_v25 = vsel %vm16867_vm4, %v16874_v30, %v16876_v13  ;;  %v16882_v31 = vshll.u32 %v16842_v26, 8  ;;  %v16734_v51 = vand.u32 2139095040, %v23870_v10  ;;  %v16714_v42 = vsub.s32 4, %v16690_v49 }
 0xa18   : > { %v16694_v27 = vsub.s32 0, %v23884_v38  ;;  %v16850_v22 = vshrl.u32 %v20364_v23, %v16849_v46  ;;  %v16871_v48 = vsel %vm16869_vm3, %v16859_v43, 2102212464  ;;  %v16878_v12 = vsel %vm16866_vm0, %v16856_v7, %v16859_v43 }
 0xa19   : > { %v16880_v50 = vsel %vm16868_vm14, %v16862_v6, %v16879_v62  ;;  %v23902_v45 = vmul.u32.u64.low %v16882_v31, %v16877_v25  ;;  %v23903_v14 = vmul.u32.u64.high %v16882_v31, %v16877_v25, %v23902_v45  ;;  %vm17463_vm6 = vcmp.lt.s32.totalorder %v17462_v61, 2 }
 0xa1a   : > { %vm17464_vm7 = vcmp.eq.s32.totalorder %v17462_v61, 0  ;;  %v19310_v0 = vmin.u32 %v16694_v27, %v23884_v38  ;;  %vm17467_vm9 = vcmp.eq.s32.totalorder %v17462_v61, 2  ;;  %v16870_v58 = vsel %vm16866_vm0, %v16850_v22, %v16853_v28 }
 0xa1b   : > { %v16872_v46 = vsel %vm16868_vm14, %v16856_v7, %v16871_v48  ;;  %v16881_v32 = vsel %vm16867_vm4, %v16878_v12, %v16880_v50  ;;  %v16715_v11 = vsel %vm16630_vm2, %v16714_v42, %v16690_v49  ;;  %v16735_v15 = vshrl.u32 %v16734_v51, 23 }
 0xa1c   : > { %v19895_v44 = vpop.eup %19894  ;;  %v16696_v18 = vclz %v19310_v0  ;;  %v16873_v29 = vsel %vm16867_vm4, %v16870_v58, %v16872_v46  ;;  %v23929_v1 = vmul.u32.u64.low %v16882_v31, %v16881_v32  ;;  %v23930_v49 = vmul.u32.u64.high %v16882_v31, %v16881_v32, %v23929_v1 }
 0xa1d   : > { %v19897_v16 = vpop.eup %19896  ;;  %v16624_v56 = vxor.u32 2147483648, %v19895_v44  ;;  %v16892_v60 = vadd.s32 1, %v23903_v14  ;;  %vm23935_vm8 = vcmp.le.f32.partialorder %v16628_v3, 0.7853982  ;;  %v19313_v24 = vadd.s32 4294967169, %v16735_v15 }
 0xa1e   : > { %v16621_v40 = vxor.u32 2147483648, %v19897_v16  ;;  %v19311_v7 = vadd.s32 4294967294, %v16696_v18  ;;  %v16684_v57 = vadd.s32 %v23819_v54, %v23834_v35  ;;  %v16731_v63 = vand.u32 2147483647, %v23870_v10 }
 0xa1f   : > { %v16625_v17 = vsel %vm16623_vm13, %v16624_v56, %v19897_v16  ;;  %v17469_v55 = vsel %vm17467_vm9, %v16624_v56, %v19897_v16  ;;  %v16717_v61 = vsel %vm23935_vm8, 0, %v16715_v11  ;;  %v16889_v13 = vmul.u32 %v16882_v31, %v16873_v29 }
 0xa20   : > { %v16622_v5 = vsel %vm16620_vm1, %v19895_v44, %v16621_v40  ;;  %v17466_v41 = vsel %vm17464_vm7, %v19895_v44, %v16621_v40  ;;  %vm19312_vm10 = vcmp.lt.s32.totalorder %v19311_v7, 0  ;;  %vm16891_vm11 = vc.u32 %v23930_v49, %v23902_v45  ;;  %v16199_v44 = vld [vmem:[%s20777_s17 + $0x38] sm:$0xff] }
 0xa21   : > { %v16626_v9 = vsel %vm16619_vm12, %v16622_v5, %v16625_v17  ;;  %v17470_v28 = vsel %vm17463_vm6, %v17466_v41, %v17469_v55  ;;  %v16699_v19 = vsel %vm19312_vm10, 0, %v19311_v7  ;;  %v16741_v3 = vadd.s32 1, %v19313_v24 }
 0xa22   : > { %v16627_v59 = vsel %vm16617_vm15, nan, %v16626_v9  ;;  %v17471_v43 = vsel %vm16617_vm15, nan, %v17470_v28  ;;  %v16700_v34 = vsub.s32 32, %v16699_v19  ;;  %v16704_v30 = vsub.s32 4294967266, %v16699_v19 }
 0xa23   : > { %v17043_v53 = vmul.f32 %v16627_v59, %v16211_v2  ;;  %v17891_v26 = vmul.f32 %v17471_v43, %v16211_v2  ;;  %v16701_v25 = vshll.u32 %v23884_v38, %v16699_v19  ;;  %v16893_v27 = vsel %vm16891_vm11, %v16892_v60, %v23903_v14 }
 0xa24   : > { %v16702_v62 = vshrl.u32 %v16684_v57, %v16700_v34  ;;  %v16705_v51 = vadd.s32 127, %v16704_v30  ;;  %v16894_v54 = vadd.s32 %v16893_v27, %v16889_v13  ;;  %vm16742_vm5 = vcmp.gt.s32.totalorder %v16741_v3, 0 }
 0xa25   : > { %17051 = vst [vmem:[%s23669_s6 + $0x18] sm:$0xff] %v17043_v53  ;;  %17899 = vst [vmem:[%s23673_s19 + $0x18] sm:$0xff] %v17891_v26  ;;  %v16191_v35 = vadd.f32 %v23354_v36, %v23741_v20  ;;  %v16743_v48 = vsel %vm16742_vm5, %v16741_v3, 0  ;;  %v17565_v31 = vadd.s32 3, %v16717_v61  ;;  %v16738_v38 = vand.u32 8388607, %v16731_v63 }
 0xa26   : > { %v16703_v42 = vor.u32 %v16702_v62, %v16701_v25  ;;  %v16706_v22 = vshll.u32 %v16705_v51, 23  ;;  %v16895_v12 = vadd.s32 536870912, %v16894_v54  ;;  %v16745_v50 = vand.u32 31, %v16743_v48 }
 0xa27   : > { %v23957_v14 = vadd.f32 %v16199_v44, %v16191_v35  ;;  %v23959_v46 = vand.u32 3, %v16717_v61  ;;  %v23961_v36 = vand.u32 3, %v17565_v31  ;;  %v16739_v55 = vor.u32 8388608, %v16738_v38 }
 0xa28   : > { %v16707_v16 = vor.u32 4788187, %v16706_v22  ;;  %v23955_v56 = vshrl.u32 %v16895_v12, 30  ;;  %v16746_v0 = vsub.s32 32, %v16745_v50  ;;  %v16710_v58 = vcvt.s32.f32 %v16703_v42 }
 0xa29   : > { %v16940_v11 = vand.u32 2139095040, %v23957_v14  ;;  %v16748_v9 = vshll.u32 %v20364_v23, %v16745_v50  ;;  %v16754_v28 = vshll.u32 %v20366_v39, %v16745_v50  ;;  %v16744_v59 = vshrl.u32 %v16743_v48, 5 }
 0xa2a   : > { %v16708_v40 = vand.u32 2147483647, %v16707_v16  ;;  %v16897_v20 = vshll.u32 %v23955_v56, 30  ;;  %v16749_v18 = vshrl.u32 %v20365_v37, %v16746_v0  ;;  %v16755_v32 = vshrl.u32 %v20367_v4, %v16746_v0 }
 0xa2b   : > { %v16752_v5 = vshrl.u32 %v20366_v39, %v16746_v0  ;;  %v16758_v41 = vshrl.u32 %v20368_v21, %v16746_v0  ;;  %v16761_v7 = vshrl.u32 %v20369_v33, %v16746_v0  ;;  %v16751_v43 = vshll.u32 %v20365_v37, %v16745_v50 }
 0xa2c   : > { %v16711_v17 = vmul.f32 %v16710_v58, %v16708_v40  ;;  %v23966_v2 = vsub.s32 %v16894_v54, %v16897_v20  ;;  %v16757_v1 = vshll.u32 %v20367_v4, %v16745_v50  ;;  %v16750_v26 = vor.u32 %v16749_v18, %v16748_v9 }
 0xa2d   : > { %v16756_v60 = vor.u32 %v16755_v32, %v16754_v28  ;;  %v16760_v19 = vshll.u32 %v20368_v21, %v16745_v50  ;;  %vm16836_vm1 = vcmp.lt.s32.totalorder %v23750_v47, 0  ;;  %v16753_v34 = vor.u32 %v16752_v5, %v16751_v43 }
 0xa2e   : > { %v16712_v15 = vxor.u32 2147483648, %v16711_v17  ;;  %v16900_v29 = vsub.s32 0, %v23966_v2  ;;  %v16759_v30 = vor.u32 %v16758_v41, %v16757_v1  ;;  %v23985_v13 = vshll.u32 %v16739_v55, 8 }
 0xa2f   : > { %v16762_v61 = vor.u32 %v16761_v7, %v16760_v19  ;;  %v16941_v3 = vshrl.u32 %v16940_v11, 23  ;;  %v16920_v62 = vsub.s32 4, %v23955_v56  ;;  %v16747_v51 = vshrl.u32 %v20364_v23, %v16746_v0 }
 0xa30   : > { %v16713_v53 = vsel %vm16630_vm2, %v16712_v15, %v16711_v17  ;;  %v19318_v57 = vmin.u32 %v16900_v29, %v23966_v2  ;;  %vm16766_vm2 = vcmp.lt.s32.totalorder %v16744_v59, 4  ;;  %vm16763_vm0 = vcmp.lt.s32.totalorder %v16744_v59, 1 }
 0xa31   : > { %v16716_v24 = vsel %vm23935_vm8, %v23705_v8, %v16713_v53  ;;  %vm16764_vm3 = vcmp.lt.s32.totalorder %v16744_v59, 2  ;;  %v16768_v6 = vsel %vm16766_vm2, %v16756_v60, 2102212464  ;;  %vm23991_vm12 = vcmp.le.f32.partialorder %v16834_v52, 0.7853982 }
 0xa32   : > { %19898 = vcosq.f32 %v16716_v24  ;;  %v16902_v25 = vclz %v19318_v57  ;;  %vm16765_vm13 = vcmp.lt.s32.totalorder %v16744_v59, 3  ;;  %v16771_v35 = vsel %vm16763_vm0, %v16750_v26, %v16753_v34  ;;  %v16212_v57 = vld [vmem:[%s20769_s29 + $0x20] sm:$0xff] }
 0xa33   : > { %19900 = vsinq.f32 %v16716_v24  ;;  %v16772_v42 = vsel %vm16766_vm2, %v16759_v30, 920167782  ;;  %vm16726_vm14 = vcmp.eq.s32.totalorder %v23959_v46, 2  ;;  %v16767_v22 = vsel %vm16763_vm0, %v16747_v51, %v16750_v26 }
 0xa34   : > { %v19319_v54 = vadd.s32 4294967294, %v16902_v25  ;;  %v16773_v48 = vsel %vm16765_vm13, %v16756_v60, %v16772_v42  ;;  %v16775_v44 = vsel %vm16763_vm0, %v16753_v34, %v16756_v60  ;;  %v16776_v31 = vsel %vm16766_vm2, %v16762_v61, 1326507024 }
 0xa35   : > { %vm16723_vm15 = vcmp.eq.s32.totalorder %v23959_v46, 0  ;;  %v16769_v12 = vsel %vm16765_vm13, %v16753_v34, %v16768_v6  ;;  %v16774_v50 = vsel %vm16764_vm3, %v16771_v35, %v16773_v48  ;;  %v16777_v52 = vsel %vm16765_vm13, %v16759_v30, %v16776_v31 }
 0xa36   : > { %vm19320_vm4 = vcmp.lt.s32.totalorder %v19319_v54, 0  ;;  %vm16722_vm6 = vcmp.lt.s32.totalorder %v23959_v46, 2  ;;  %vm17567_vm7 = vcmp.lt.s32.totalorder %v23961_v36, 2  ;;  %v16778_v38 = vsel %vm16764_vm3, %v16775_v44, %v16777_v52 }
 0xa37   : > { %v16905_v16 = vsel %vm19320_vm4, 0, %v19319_v54  ;;  %v24002_v0 = vmul.u32.u64.low %v23985_v13, %v16774_v50  ;;  %v24003_v40 = vmul.u32.u64.high %v23985_v13, %v16774_v50, %v24002_v0  ;;  %vm16720_vm9 = vweird.f32 %v23705_v8 }
 0xa38   : > { %v16890_v58 = vadd.s32 %v23902_v45, %v23930_v49  ;;  %v16906_v20 = vsub.s32 32, %v16905_v16  ;;  %v16910_v17 = vsub.s32 4294967266, %v16905_v16  ;;  %v19321_v55 = vadd.s32 4294967169, %v16941_v3 }
 0xa39   : > { %v16921_v18 = vsel %vm16836_vm1, %v16920_v62, %v23955_v56  ;;  %v16770_v32 = vsel %vm16764_vm3, %v16767_v22, %v16769_v12  ;;  %v24014_v5 = vmul.u32.u64.low %v23985_v13, %v16778_v38  ;;  %v24015_v41 = vmul.u32.u64.high %v23985_v13, %v16778_v38, %v24014_v5 }
 0xa3a   : > { %v16907_v11 = vshll.u32 %v23966_v2, %v16905_v16  ;;  %v16908_v15 = vshrl.u32 %v16890_v58, %v16906_v20  ;;  %v16911_v9 = vadd.s32 127, %v16910_v17  ;;  %v16947_v28 = vadd.s32 1, %v19321_v55 }
 0xa3b   : > { %vm17568_vm10 = vcmp.eq.s32.totalorder %v23961_v36, 0  ;;  %vm17571_vm8 = vcmp.eq.s32.totalorder %v23961_v36, 2  ;;  %v16789_v45 = vadd.s32 1, %v24003_v40  ;;  %v16937_v49 = vand.u32 2147483647, %v23957_v14 }
 0xa3c   : > { %v19899_v7 = vpop.eup %19898  ;;  %v16909_v59 = vor.u32 %v16908_v15, %v16907_v11  ;;  %v16912_v43 = vshll.u32 %v16911_v9, 23  ;;  %vm16948_vm11 = vcmp.gt.s32.totalorder %v16947_v28, 0  ;;  %v16923_v2 = vsel %vm23991_vm12, 0, %v16921_v18 }
 0xa3d   : > { %v19901_v56 = vpop.eup %19900  ;;  %v16727_v29 = vxor.u32 2147483648, %v19899_v7  ;;  %v16786_v53 = vmul.u32 %v23985_v13, %v16770_v32  ;;  %vm16788_vm5 = vc.u32 %v24015_v41, %v24002_v0  ;;  %v16949_v24 = vsel %vm16948_vm11, %v16947_v28, 0 }
 0xa3e   : > { %v16724_v1 = vxor.u32 2147483648, %v19901_v56  ;;  %v16913_v19 = vor.u32 4788187, %v16912_v43  ;;  %v16916_v61 = vcvt.s32.f32 %v16909_v59  ;;  %v16790_v13 = vsel %vm16788_vm5, %v16789_v45, %v24003_v40 }
 0xa3f   : > { %v16728_v26 = vsel %vm16726_vm14, %v16727_v29, %v19901_v56  ;;  %v17573_v60 = vsel %vm17571_vm8, %v16727_v29, %v19901_v56  ;;  %v16791_v51 = vadd.s32 %v16790_v13, %v16786_v53  ;;  %v16951_v35 = vand.u32 31, %v16949_v24 }
 0xa40   : > { %v16725_v34 = vsel %vm16723_vm15, %v19899_v7, %v16724_v1  ;;  %v17570_v30 = vsel %vm17568_vm10, %v19899_v7, %v16724_v1  ;;  %v16914_v62 = vand.u32 2147483647, %v16913_v19  ;;  %v24043_v31 = vand.u32 3, %v16923_v2 }
 0xa41   : > { %v16729_v3 = vsel %vm16722_vm6, %v16725_v34, %v16728_v26  ;;  %v17574_v25 = vsel %vm17567_vm7, %v17570_v30, %v17573_v60  ;;  %v16792_v44 = vadd.s32 536870912, %v16791_v51  ;;  %v16944_v46 = vand.u32 8388607, %v16937_v49 }
 0xa42   : > { %v16730_v6 = vsel %vm16720_vm9, nan, %v16729_v3  ;;  %v17575_v54 = vsel %vm16720_vm9, nan, %v17574_v25  ;;  %v16917_v48 = vmul.f32 %v16916_v61, %v16914_v62  ;;  %v16952_v36 = vsub.s32 32, %v16951_v35 }
 0xa43   : > { %v17044_v42 = vmul.f32 %v16730_v6, %v16212_v57  ;;  %v17892_v22 = vmul.f32 %v17575_v54, %v16212_v57  ;;  %v17773_v50 = vadd.s32 3, %v16923_v2  ;;  %v24049_v52 = vshrl.u32 %v16792_v44, 30 }
 0xa44   : > { %v16918_v12 = vxor.u32 2147483648, %v16917_v48  ;;  %v24051_v16 = vshrl.u32 %v16949_v24, 5  ;;  %v16954_v8 = vshll.u32 %v20364_v23, %v16951_v35  ;;  %v16955_v38 = vshrl.u32 %v20365_v37, %v16952_v36 }
 0xa45   : > { %17052 = vst [vmem:[%s23669_s6 + $0x20] sm:$0xff] %v17044_v42  ;;  %17900 = vst [vmem:[%s23673_s19 + $0x20] sm:$0xff] %v17892_v22  ;;  %v16958_v40 = vshrl.u32 %v20366_v39, %v16952_v36  ;;  %v16961_v58 = vshrl.u32 %v20367_v4, %v16952_v36  ;;  %v16794_v17 = vshll.u32 %v24049_v52, 30  ;;  %v16957_v55 = vshll.u32 %v20365_v37, %v16951_v35 }
 0xa46   : > { %v16919_v20 = vsel %vm16836_vm1, %v16918_v12, %v16917_v48  ;;  %v16964_v18 = vshrl.u32 %v20368_v21, %v16952_v36  ;;  %v16960_v5 = vshll.u32 %v20366_v39, %v16951_v35  ;;  %v16963_v11 = vshll.u32 %v20367_v4, %v16951_v35 }
 0xa47   : > { %v16922_v32 = vsel %vm23991_vm12, %v23750_v47, %v16919_v20  ;;  %v16966_v15 = vshll.u32 %v20368_v21, %v16951_v35  ;;  %v24068_v9 = vsub.s32 %v16791_v51, %v16794_v17  ;;  %v16956_v28 = vor.u32 %v16955_v38, %v16954_v8  ;;  %v16214_v38 = vld [vmem:[%s20769_s29 + $0x30] sm:$0xff] }
 0xa48   : > { %19902 = vcosq.f32 %v16922_v32  ;;  %v16959_v7 = vor.u32 %v16958_v40, %v16957_v55  ;;  %v16962_v45 = vor.u32 %v16961_v58, %v16960_v5  ;;  %v16965_v37 = vor.u32 %v16964_v18, %v16963_v11 }
 0xa49   : > { %19904 = vsinq.f32 %v16922_v32  ;;  %v16967_v56 = vshrl.u32 %v20369_v33, %v16952_v36  ;;  %v16797_v29 = vsub.s32 0, %v24068_v9  ;;  %v17774_v27 = vand.u32 3, %v17773_v50 }
 0xa4a   : > { %v16945_v59 = vor.u32 8388608, %v16944_v46  ;;  %v16953_v4 = vshrl.u32 %v20364_v23, %v16952_v36  ;;  %vm16969_vm1 = vcmp.lt.s32.totalorder %v24051_v16, 1  ;;  %vm16972_vm2 = vcmp.lt.s32.totalorder %v24051_v16, 4 }
 0xa4b   : > { %v16968_v43 = vor.u32 %v16967_v56, %v16966_v15  ;;  %v19314_v39 = vmin.u32 %v16797_v29, %v24068_v9  ;;  %vm16929_vm0 = vcmp.eq.s32.totalorder %v24043_v31, 0  ;;  %vm16971_vm3 = vcmp.lt.s32.totalorder %v24051_v16, 3 }
 0xa4c   : > { %v16974_v21 = vsel %vm16972_vm2, %v16962_v45, 2102212464  ;;  %v16977_v33 = vsel %vm16969_vm1, %v16956_v28, %v16959_v7  ;;  %v16978_v1 = vsel %vm16972_vm2, %v16965_v37, 920167782  ;;  %vm16928_vm12 = vcmp.lt.s32.totalorder %v24043_v31, 2 }
 0xa4d   : > { %v16799_v2 = vclz %v19314_v39  ;;  %v16979_v53 = vsel %vm16971_vm3, %v16962_v45, %v16978_v1  ;;  %v16981_v23 = vsel %vm16969_vm1, %v16959_v7, %v16962_v45  ;;  %v16982_v26 = vsel %vm16972_vm2, %v16968_v43, 1326507024 }
 0xa4e   : > { %vm16926_vm13 = vweird.f32 %v23750_v47  ;;  %vm16932_vm14 = vcmp.eq.s32.totalorder %v24043_v31, 2  ;;  %vm17775_vm15 = vcmp.lt.s32.totalorder %v17774_v27, 2  ;;  %vm16970_vm4 = vcmp.lt.s32.totalorder %v24051_v16, 2 }
 0xa4f   : > { %v16985_v60 = vshll.u32 %v16945_v59, 8  ;;  %v19315_v19 = vadd.s32 4294967294, %v16799_v2  ;;  %v16973_v24 = vsel %vm16969_vm1, %v16953_v4, %v16956_v28  ;;  %v16980_v57 = vsel %vm16970_vm4, %v16977_v33, %v16979_v53 }
 0xa50   : > { %v16983_v34 = vsel %vm16971_vm3, %v16965_v37, %v16982_v26  ;;  %v16975_v30 = vsel %vm16971_vm3, %v16959_v7, %v16974_v21  ;;  %vm17776_vm6 = vcmp.eq.s32.totalorder %v17774_v27, 0  ;;  %vm17779_vm9 = vcmp.eq.s32.totalorder %v17774_v27, 2 }
 0xa51   : > { %v16984_v61 = vsel %vm16970_vm4, %v16981_v23, %v16983_v34  ;;  %v24098_v13 = vmul.u32.u64.low %v16985_v60, %v16980_v57  ;;  %v24099_v3 = vmul.u32.u64.high %v16985_v60, %v16980_v57, %v24098_v13  ;;  %vm19316_vm7 = vcmp.lt.s32.totalorder %v19315_v19, 0 }
 0xa52   : > { %v19903_v25 = vpop.eup %19902  ;;  %v24102_v62 = vmul.u32.u64.low %v16985_v60, %v16984_v61  ;;  %v24103_v51 = vmul.u32.u64.high %v16985_v60, %v16984_v61, %v24102_v62  ;;  %v16787_v35 = vadd.s32 %v24002_v0, %v24015_v41  ;;  %v16802_v42 = vsel %vm19316_vm7, 0, %v19315_v19 }
 0xa53   : > { %v19905_v6 = vpop.eup %19904  ;;  %v16933_v54 = vxor.u32 2147483648, %v19903_v25  ;;  %v16803_v48 = vsub.s32 32, %v16802_v42  ;;  %v16807_v44 = vsub.s32 4294967266, %v16802_v42  ;;  %v16976_v46 = vsel %vm16970_vm4, %v16973_v24, %v16975_v30 }
 0xa54   : > { %v16930_v22 = vxor.u32 2147483648, %v19905_v6  ;;  %v16804_v50 = vshll.u32 %v24068_v9, %v16802_v42  ;;  %v16995_v8 = vadd.s32 1, %v24099_v3  ;;  %v16992_v17 = vmul.u32 %v16985_v60, %v16976_v46  ;;  %v16213_v42 = vld [vmem:[%s20769_s29 + $0x28] sm:$0xff] }
 0xa55   : > { %v16934_v36 = vsel %vm16932_vm14, %v16933_v54, %v19905_v6  ;;  %v17781_v12 = vsel %vm17779_vm9, %v16933_v54, %v19905_v6  ;;  %v16805_v41 = vshrl.u32 %v16787_v35, %v16803_v48  ;;  %v16808_v58 = vadd.s32 127, %v16807_v44 }
 0xa56   : > { %v16931_v40 = vsel %vm16929_vm0, %v19903_v25, %v16930_v22  ;;  %v17778_v0 = vsel %vm17776_vm6, %v19903_v25, %v16930_v22  ;;  %vm16994_vm10 = vc.u32 %v24103_v51, %v24098_v13  ;;  %v16817_v56 = vsub.s32 4, %v24049_v52 }
 0xa57   : > { %v16935_v16 = vsel %vm16928_vm12, %v16931_v40, %v16934_v36  ;;  %v17782_v20 = vsel %vm17775_vm15, %v17778_v0, %v17781_v12  ;;  %v16806_v32 = vor.u32 %v16805_v41, %v16804_v50  ;;  %v16809_v5 = vshll.u32 %v16808_v58, 23 }
 0xa58   : > { %v16936_v55 = vsel %vm16926_vm13, nan, %v16935_v16  ;;  %v17783_v18 = vsel %vm16926_vm13, nan, %v17782_v20  ;;  %v16996_v9 = vsel %vm16994_vm10, %v16995_v8, %v24099_v3  ;;  %vm16733_vm8 = vcmp.lt.s32.totalorder %v23870_v10, 0 }
 0xa59   : > { %v17046_v11 = vmul.f32 %v16936_v55, %v16214_v38  ;;  %v17894_v15 = vmul.f32 %v17783_v18, %v16214_v38  ;;  %v16810_v31 = vor.u32 4788187, %v16809_v5  ;;  %v16997_v28 = vadd.s32 %v16996_v9, %v16992_v17 }
 0xa5a   : > { %v16813_v45 = vcvt.s32.f32 %v16806_v32  ;;  %v16818_v43 = vsel %vm16733_vm8, %v16817_v56, %v24049_v52  ;;  %vm16732_vm11 = vcmp.le.f32.partialorder %v16731_v63, 0.7853982  ;;  %v16993_v63 = vadd.s32 %v24098_v13, %v24103_v51 }
 0xa5b   : > { %17054 = vst [vmem:[%s23669_s6 + $0x30] sm:$0xff] %v17046_v11  ;;  %17902 = vst [vmem:[%s23673_s19 + $0x30] sm:$0xff] %v17894_v15  ;;  %v16811_v7 = vand.u32 2147483647, %v16810_v31  ;;  %v16998_v37 = vadd.s32 536870912, %v16997_v28  ;;  %v16820_v33 = vsel %vm16732_vm11, 0, %v16818_v43  ;;  %vm16823_vm14 = vweird.f32 %v23870_v10 }
 0xa5c   : > { %v17669_v53 = vadd.s32 3, %v16820_v33  ;;  %v16824_v26 = vand.u32 3, %v16820_v33  ;;  %vm16939_vm15 = vcmp.lt.s32.totalorder %v23957_v14, 0  ;;  %vm16938_vm4 = vcmp.le.f32.partialorder %v16937_v49, 0.7853982 }
 0xa5d   : > { %v16814_v29 = vmul.f32 %v16813_v45, %v16811_v7  ;;  %v24130_v27 = vshrl.u32 %v16998_v37, 30  ;;  %v16215_v7 = vld [vmem:[%s20769_s29 + $0x38] sm:$0xff]  ;;  %s24160_s29 = scalar_lea.hbm %s24365_s13, %s19361_s28 }
 0xa5e   : > { %v17670_v19 = vand.u32 3, %v17669_v53  ;;  %vm16825_vm1 = vcmp.lt.s32.totalorder %v16824_v26, 2  ;;  %vm16826_vm2 = vcmp.eq.s32.totalorder %v16824_v26, 0  ;;  %vm16829_vm0 = vcmp.eq.s32.totalorder %v16824_v26, 2 }
 0xa5f   : > { %v16815_v47 = vxor.u32 2147483648, %v16814_v29  ;;  %v17000_v59 = vshll.u32 %v24130_v27, 30  ;;  %v17023_v58 = vsub.s32 4, %v24130_v27 }
 0xa60   : > { %vm17675_vm3 = vcmp.eq.s32.totalorder %v17670_v19, 2  ;;  %vm17671_vm12 = vcmp.lt.s32.totalorder %v17670_v19, 2  ;;  %vm17672_vm13 = vcmp.eq.s32.totalorder %v17670_v19, 0 }
 0xa61   : > { %v16816_v39 = vsel %vm16733_vm8, %v16815_v47, %v16814_v29  ;;  %v17001_v4 = vsub.s32 %v16997_v28, %v17000_v59  ;;  %v17024_v20 = vsel %vm16939_vm15, %v17023_v58, %v24130_v27 }
 0xa62   : > { %v16819_v21 = vsel %vm16732_vm11, %v23870_v10, %v16816_v39  ;;  %v17026_v55 = vsel %vm16938_vm4, 0, %v17024_v20 }
 0xa63   : > { %19906 = vcosq.f32 %v16819_v21  ;;  %v17003_v1 = vsub.s32 0, %v17001_v4  ;;  %v17877_v18 = vadd.s32 3, %v17026_v55  ;;  %v17030_v32 = vand.u32 3, %v17026_v55 }
 0xa64   : > { %19908 = vsinq.f32 %v16819_v21 }
 0xa65   : > { %v19322_v2 = vmin.u32 %v17003_v1, %v17001_v4  ;;  %v17878_v5 = vand.u32 3, %v17877_v18  ;;  %vm17035_vm6 = vcmp.eq.s32.totalorder %v17030_v32, 2  ;;  %vm17032_vm9 = vcmp.eq.s32.totalorder %v17030_v32, 0 }
 0xa66   : > { %vm17031_vm8 = vcmp.lt.s32.totalorder %v17030_v32, 2 }
 0xa67   : > { %v17005_v23 = vclz %v19322_v2  ;;  %vm17883_vm7 = vcmp.eq.s32.totalorder %v17878_v5, 2  ;;  %vm17880_vm10 = vcmp.eq.s32.totalorder %v17878_v5, 0  ;;  %vm17879_vm11 = vcmp.lt.s32.totalorder %v17878_v5, 2 }
 0xa69   : > { %v19323_v60 = vadd.s32 4294967294, %v17005_v23 }
 0xa6b   : > { %vm19324_vm5 = vcmp.lt.s32.totalorder %v19323_v60, 0 }
 0xa6c   : > { %v17008_v24 = vsel %vm19324_vm5, 0, %v19323_v60  ;;  %vm17029_vm5 = vweird.f32 %v23957_v14 }
 0xa6d   : > { %v19907_v52 = vpop.eup %19906  ;;  %v17009_v57 = vsub.s32 32, %v17008_v24  ;;  %v17013_v34 = vsub.s32 4294967266, %v17008_v24  ;;  %v17010_v25 = vshll.u32 %v17001_v4, %v17008_v24 }
 0xa6e   : > { %v19909_v30 = vpop.eup %19908  ;;  %v16830_v61 = vxor.u32 2147483648, %v19907_v52 }
 0xa6f   : > { %v16827_v3 = vxor.u32 2147483648, %v19909_v30  ;;  %v17011_v62 = vshrl.u32 %v16993_v63, %v17009_v57  ;;  %v17014_v6 = vadd.s32 127, %v17013_v34 }
 0xa70   : > { %v16831_v54 = vsel %vm16829_vm0, %v16830_v61, %v19909_v30  ;;  %v17677_v35 = vsel %vm17675_vm3, %v16830_v61, %v19909_v30 }
 0xa71   : > { %v16828_v13 = vsel %vm16826_vm2, %v19907_v52, %v16827_v3  ;;  %v17674_v51 = vsel %vm17672_vm13, %v19907_v52, %v16827_v3  ;;  %v17012_v22 = vor.u32 %v17011_v62, %v17010_v25  ;;  %v17015_v48 = vshll.u32 %v17014_v6, 23 }
 0xa72   : > { %v16832_v44 = vsel %vm16825_vm1, %v16828_v13, %v16831_v54  ;;  %v17678_v46 = vsel %vm17671_vm12, %v17674_v51, %v17677_v35 }
 0xa73   : > { %v16833_v36 = vsel %vm16823_vm14, nan, %v16832_v44  ;;  %v17679_v12 = vsel %vm16823_vm14, nan, %v17678_v46  ;;  %v17016_v50 = vor.u32 4788187, %v17015_v48  ;;  %v17019_v0 = vcvt.s32.f32 %v17012_v22 }
 0xa74   : > { %v17045_v8 = vmul.f32 %v16833_v36, %v16213_v42  ;;  %v17893_v38 = vmul.f32 %v17679_v12, %v16213_v42 }
 0xa75   : > { %v17017_v40 = vand.u32 2147483647, %v17016_v50 }
 0xa76   : > { %17053 = vst [vmem:[%s23669_s6 + $0x28] sm:$0xff] %v17045_v8  ;;  %17901 = vst [vmem:[%s23673_s19 + $0x28] sm:$0xff] %v17893_v38 }
 0xa77   : > { %v17020_v41 = vmul.f32 %v17019_v0, %v17017_v40 }
 0xa79   : > { %v17021_v16 = vxor.u32 2147483648, %v17020_v41 }
 0xa7b   : > { %v17022_v10 = vsel %vm16939_vm15, %v17021_v16, %v17020_v41 }
 0xa7c   : > { %v17025_v17 = vsel %vm16938_vm4, %v23957_v14, %v17022_v10 }
 0xa7d   : > { %19910 = vcosq.f32 %v17025_v17 }
 0xa7e   : > { %19912 = vsinq.f32 %v17025_v17 }
 0xa87   : > { %v19911_v11 = vpop.eup %19910 }
 0xa88   : > { %v19913_v15 = vpop.eup %19912  ;;  %v17036_v9 = vxor.u32 2147483648, %v19911_v11 }
 0xa89   : > { %v17033_v49 = vxor.u32 2147483648, %v19913_v15 }
 0xa8a   : > { %v17037_v31 = vsel %vm17035_vm6, %v17036_v9, %v19913_v15  ;;  %v17885_v28 = vsel %vm17883_vm7, %v17036_v9, %v19913_v15 }
 0xa8b   : > { %v17034_v45 = vsel %vm17032_vm9, %v19911_v11, %v17033_v49  ;;  %v17882_v37 = vsel %vm17880_vm10, %v19911_v11, %v17033_v49 }
 0xa8c   : > { %v17038_v56 = vsel %vm17031_vm8, %v17034_v45, %v17037_v31  ;;  %v17886_v29 = vsel %vm17879_vm11, %v17882_v37, %v17885_v28 }
 0xa8d   : > { %v17039_v27 = vsel %vm17029_vm5, nan, %v17038_v56  ;;  %v17887_v47 = vsel %vm17029_vm5, nan, %v17886_v29 }
 0xa8e   : > { %v17047_v59 = vmul.f32 %v17039_v27, %v16215_v7  ;;  %v17895_v43 = vmul.f32 %v17887_v47, %v16215_v7 }
 0xa90   : > { %17055 = vst [vmem:[%s23669_s6 + $0x38] sm:$0xff] %v17047_v59  ;;  %17903 = vst [vmem:[%s23673_s19 + $0x38] sm:$0xff] %v17895_v43 }
 0xa91   : > { %20190 = shalt.err (!%p20187_p1)
}
 0xa92   : > { %s20191_s6 = scalar_lea.hbm %s24160_s29, 1024  ;;  %s20195_s28 = scalar_lea.hbm %s24365_s13, 4096 }
 0xa93   : > { %p20192_p11 = scmp.ne.s32.totalorder %s24160_s29, %s20191_s6  ;;  %p20196_p10 = scmp.lt.u32.totalorder %s24160_s29, %s24365_s13 }
 0xa94   : > { %p20197_p12 = scmp.lt.u32.totalorder %s20195_s28, %s20191_s6  ;;  %p20199_p13 = scmp.lt.u32.totalorder %s20191_s6, %s24160_s29 }
 0xa95   : > { %p20193_p2 = pnand %p20192_p11, %p24367_p5 }
 0xa96   : > { %p20198_p9 = por %p20197_p12, %p20196_p10 }
 0xa97   : > { %p20194_p7 = pneg %p20193_p2 }
 0xa98   : > { %p20200_p6 = por %p20199_p13, %p20198_p9 }
 0xa9a   : > { %p20201_p0 = pnand %p20200_p6, %p20194_p7 }
 0xa9c   : > { %20204 = shalt.err (!%p20201_p0)
}
 0xa9d   : > { %19524 = dma.vmem_to_hbm [thread:$0]  (%p24367_p5), %s24162_s23, 1024, %s24160_s29, %s17905_s8  }
 0xa9e   : > { %s17910_s17 = scalar_lea.sflag [#allocation17], %s20754_s27  ;;  %s20205_s15 = scalar_lea.vmem %s24169_s14, 1024 }
 0xa9f   : > { %p20206_p4 = scmp.ne.s32.totalorder %s24169_s14, %s20205_s15  ;;  %s20371_s3 = smov [#allocation16]  }
 0xaa0   : > { %s20209_s12 = sshll.u32 %s20371_s3, 4  ;;  %s20210_s12 = int_to_ptr.vmem [resolvable:$false] %s20209_s12 }
 0xaa1   : > { %p20207_p3 = pnand %p20206_p4, %p24367_p5  ;;  %s20211_s21 = scalar_lea.vmem %s20210_s12, 2048 }
 0xaa2   : > { %p20212_p1 = scmp.lt.s32.totalorder %s24169_s14, %s20210_s12  ;;  %p20213_p11 = scmp.lt.s32.totalorder %s20211_s21, %s20205_s15 }
 0xaa3   : > { %p20208_p8 = pneg %p20207_p3 }
 0xaa4   : > { %p20214_p2 = por %p20213_p11, %p20212_p1 }
 0xaa6   : > { %p20215_p7 = pnand %p20214_p2, %p20208_p8 }
 0xaa8   : > { %20218 = shalt.err (!%p20215_p7)
}
 0xaa9   : > { %s20219_s27 = scalar_lea.hbm %s24167_s24, 1024  ;;  %s20223_s8 = scalar_lea.hbm %s24366_s4, 4096 }
 0xaaa   : > { %p20220_p10 = scmp.ne.s32.totalorder %s24167_s24, %s20219_s27  ;;  %p20224_p13 = scmp.lt.u32.totalorder %s24167_s24, %s24366_s4 }
 0xaab   : > { %p20225_p6 = scmp.lt.u32.totalorder %s20223_s8, %s20219_s27  ;;  %p20227_p4 = scmp.lt.u32.totalorder %s20219_s27, %s24167_s24 }
 0xaac   : > { %p20221_p12 = pnand %p20220_p10, %p24367_p5 }
 0xaad   : > { %p20226_p0 = por %p20225_p6, %p20224_p13 }
 0xaae   : > { %p20222_p9 = pneg %p20221_p12 }
 0xaaf   : > { %p20228_p3 = por %p20227_p4, %p20226_p0 }
 0xab1   : > { %p20229_p8 = pnand %p20228_p3, %p20222_p9 }
 0xab3   : > { %20232 = shalt.err (!%p20229_p8)
}
 0xab4   : > { %19525 = dma.vmem_to_hbm [thread:$0]  (%p24367_p5), %s24169_s14, 1024, %s24167_s24, %s17910_s17  }
 0xab5 PF: > { %s24368_s19 = sld [smem:[#allocation26_spill]]  ;;  %s24369_s18 = sld [smem:[#allocation37_spill]] }
 0xab6   : > { %p19560_p1 = scmp.ge.s32.totalorder %s20347_s11, 2 }
 0xabb   : > { %s17954_s28 = sand.u32 1, %s24368_s19   ;;  %p24370_p11 = scmp.ne.s32.totalorder %s24369_s18, 0 }
 0xabc   : > { %s17955_s16 = scalar_lea.sflag [#allocation6], %s17954_s28 }
 0xabd   : > { %p19549_p2 = pnand %p19560_p1, %p24370_p11 }
 0xabf   : > { %20298 = dma.done.wait (!%p19549_p2), %s17955_s16, 1024  }
 0xac0   : > { %20300 = vsyncadd (!%p19549_p2), %s17955_s16, 4294966272  ;;  %s17964_s1 = scalar_lea.sflag [#allocation17], %s17954_s28 }
 0xac1   : > { %20302 = dma.done.wait (!%p19549_p2), %s17964_s1, 1024  }
 0xac2   : > { %20304 = vsyncadd (!%p19549_p2), %s17964_s1, 4294966272  ;;  %s34_s11 = sadd.s32 1, %s20347_s11   ;;  %s24371_s27 = sld [smem:[#allocation27_spill]] }
 0xac3   : > { %p31_p7 = scmp.ge.s32.totalorder %s34_s11, 6   ;;  %s24372_s28 = sld [smem:[#allocation28_spill]] }
 0xac4   : > { %s24373_s29 = sld [smem:[#allocation38_spill]]  ;;  %s24374_s14 = sld [smem:[#allocation33_spill]] }
 0xac5   : > { %s24375_s17 = sld [smem:[#allocation34_spill]]  ;;  %s24376_s24 = smov %s20311_s25 }
 0xac6   : > { %s24377_s25 = smov %s20315_s26  ;;  %s24378_s26 = smov %s20697_s22 }
 0xac7   : > { %s24379_s30 = smov %s20339_s9  ;;  %s24380_s8 = smov %s20343_s10 }
 0xac8   :  { %33 = sbr.rel (!%p31_p7) target bundleno = 22 (0x16), region = 191 }
 0xaca   : > { %s24381_s9 = smov %s24374_s14 }
 0xacb   : > { %s24382_s10 = smov %s24375_s17 }
 0xacf   :  { %17969 = vsyncpa [#allocation5], 1 }
 0xad0   :  { %17971 = vsyncpa [#allocation5 + $0x1], 1 }
 0xad1   :  { %17972 = vsyncpa [#allocation8], 1 }
 0xad2   :  { %17974 = vsyncpa [#allocation8 + $0x1], 1 }
 0xad3   :  { %17975 = vsyncpa [#allocation11], 1 }
 0xad4   :  { %17977 = vsyncpa [#allocation11 + $0x1], 1 }
 0xad5   :  { %17978 = vsyncpa [#allocation14], 1 }
 0xad6   :  { %17979 = vsyncpa [#allocation6], 1 }
 0xad7   :  { %17981 = vsyncpa [#allocation6 + $0x1], 1 }
 0xad8   :  { %17982 = vsyncpa [#allocation17], 1 }
 0xad9   :  { %17984 = vsyncpa [#allocation17 + $0x1], 1 }

</bundles_post_ra>
